<compile_context>
chip_gen: v7x
topology: tpu7x:2x2x1
jax: 0.10.0
libtpu: 0.0.40
codegen_flags: <defaults>
</compile_context>

<pallas_src>
import functools

import jax
import jax.numpy as jnp
from jax import lax
from jax.experimental import pallas as pl
from jax.experimental.pallas import tpu as pltpu

BN_EPS = 1e-5
COS_EPS = 1e-8


# ---------------------------------------------------------------------------
# Kernel 1: tiled / pipelined average pooling of both views.
# Grid = (N tiles, C tiles, HW chunks); HW is the reduction axis (last,
# "arbitrary").  Lane-folded f32 accumulator -> no XLU work in the hot loop.
# ---------------------------------------------------------------------------
def _pool_kernel(x1_ref, x2_ref, o_ref, acc_ref, *, inv_hw):
    k = pl.program_id(2)

    @pl.when(k == 0)
    def _init():
        acc_ref[...] = jnp.zeros_like(acc_ref)

    def _lane_folded_sum(view_ref):
        # Static 128-wide lane slices are vreg-column selects; the adds are
        # plain elementwise VPU ops (no cross-lane reduce, no relayout).
        thw = view_ref.shape[-1]
        s = view_ref[:, :, 0:128].astype(jnp.float32)
        for j in range(128, thw, 128):
            s = s + view_ref[:, :, j:j + 128].astype(jnp.float32)
        return s

    acc_ref[0] += _lane_folded_sum(x1_ref)
    acc_ref[1] += _lane_folded_sum(x2_ref)

    @pl.when(k == pl.num_programs(2) - 1)
    def _finalize():
        # Single cross-lane reduce + scale per (i, c) tile (amortized XLU work).
        o_ref[...] = jnp.sum(acc_ref[...], axis=-1) * inv_hw


# ---------------------------------------------------------------------------
# Kernel 2: per-view proj + pred MLP.  grid=(2,) over views ("parallel" ->
# both TensorCores on v7x).  bf16 MXU matmuls, f32 accumulate, per-view BN.
# ---------------------------------------------------------------------------
def _head_kernel(v_ref,
                 w1_ref, b1_ref, g1_ref, be1_ref,     # proj layer 1: linear+BN+relu
                 w2_ref, b2_ref, g2_ref, be2_ref,     # proj layer 2: linear+BN
                 w3_ref, b3_ref, g3_ref, be3_ref,     # pred layer 1: linear+BN+relu
                 w4_ref, b4_ref,                      # pred layer 2: linear
                 z_ref, p_ref):
    def linear(x_f32, w_ref, b_ref):
        # bf16 operands hit the native MXU path on v5e/v6e/v7x; accumulate in f32.
        return jnp.dot(x_f32.astype(jnp.bfloat16), w_ref[...],
                       preferred_element_type=jnp.float32) + b_ref[...]

    def bn(y, g_ref, be_ref):
        # BatchNorm1d, training mode, statistics over this view's batch.
        # Two-pass variance (matches reference; avoids E[x^2]-mu^2 cancellation).
        mu = jnp.mean(y, axis=0, keepdims=True)
        d = y - mu
        var = jnp.mean(d * d, axis=0, keepdims=True)
        scale = g_ref[...] * lax.rsqrt(var + BN_EPS)        # rsqrt -> EUP slot
        return y * scale + (be_ref[...] - mu * scale)

    v = v_ref[...]                                           # (N, C) f32
    h1 = jnp.maximum(bn(linear(v, w1_ref, b1_ref), g1_ref, be1_ref), 0.0)
    z = bn(linear(h1, w2_ref, b2_ref), g2_ref, be2_ref)      # projection output
    h2 = jnp.maximum(bn(linear(z, w3_ref, b3_ref), g3_ref, be3_ref), 0.0)
    p = linear(h2, w4_ref, b4_ref)                           # prediction output

    z_ref[...] = z
    p_ref[...] = p


# ---------------------------------------------------------------------------
# Kernel 3: SimSiam loss from both views' z and p.
# ---------------------------------------------------------------------------
def _loss_kernel(z_ref, p_ref, out_ref):
    n = z_ref.shape[1]
    z1, z2 = z_ref[0], z_ref[1]
    p1, p2 = p_ref[0], p_ref[1]

    def neg_cos_sum(pp, zz):
        pn2 = jnp.sum(pp * pp, axis=-1, keepdims=True)
        zn2 = jnp.sum(zz * zz, axis=-1, keepdims=True)
        # 1 / (max(|p|,eps) * max(|z|,eps)) via rsqrt of squared norms (EUP).
        inv = lax.rsqrt(jnp.maximum(pn2, COS_EPS * COS_EPS) *
                        jnp.maximum(zn2, COS_EPS * COS_EPS))
        cos = jnp.sum(pp * zz, axis=-1, keepdims=True) * inv  # (n, 1)
        return -jnp.sum(cos, axis=0, keepdims=True)            # (1, 1)

    loss = (neg_cos_sum(p1, z2) + neg_cos_sum(p2, z1)) * (0.5 / n)
    out_ref[...] = loss


# ---------------------------------------------------------------------------
# Wrapper
# ---------------------------------------------------------------------------
def _pick_tile(dim, align, cap):
    """Largest t <= cap that is a multiple of `align` and divides `dim` exactly.
    Falls back to the full dim (a full-extent block is always legal)."""
    if dim <= cap or dim % align != 0:
        return dim
    t = (cap // align) * align
    while t >= align and dim % t != 0:
        t -= align
    return t if t >= align else dim


def _clamp_vmem(nbytes):
    # Keep under v7x's 64 MiB physical VMEM; never below a useful floor.
    return int(min(max(int(nbytes), 16 << 20), 64 << 20))


@functools.partial(jax.jit, static_argnames=("tn_cap", "tc_cap", "thw_cap"))
def simsiam_head_forward(x1, x2, params, *, tn_cap=8, tc_cap=256, thw_cap=512):
    # Raise tc_cap/thw_cap (with the computed vmem limit) for bigger per-step
    # tiles on v6e/v7x; defaults keep the footprint modest for v5e as well.
    N, C, H, W = x1.shape
    HW = H * W
    in_itemsize = x1.dtype.itemsize

    # Free reshape only; NO dtype upcast in the wrapper — the pooling DMA moves
    # the native (e.g. bf16) bytes and the kernel casts after load.
    x1f = x1.reshape(N, C, HW)
    x2f = x2.reshape(N, C, HW)

    # Keep pooling tiles lane-dense (e.g. backbone HW = 7*7 = 49): pad the
    # reduction axis to a multiple of 128 with zeros (they add 0 to the sum;
    # the mean divides by the true HW).
    HWp = HW if HW % 128 == 0 else ((HW // 128) + 1) * 128
    if HWp != HW:
        # TODO(synk): fuse this zero-pad into the pooling DMA (costs an extra
        # HBM materialization pass today).
        pad = ((0, 0), (0, 0), (0, HWp - HW))
        x1f = jnp.pad(x1f, pad)
        x2f = jnp.pad(x2f, pad)

    tn = _pick_tile(N, 8, tn_cap)        # sublane dim of the pooled output block
    tc = _pick_tile(C, 128, tc_cap)      # lane dim of pooled output / sublane of input
    thw = _pick_tile(HWp, 128, thw_cap)  # lane dim of input (reduction axis)
    grid = (N // tn, C // tc, HWp // thw)

    pool_bytes = (2 * 2 * tn * tc * thw * in_itemsize   # 2 inputs x 2 buffers
                  + 2 * tn * tc * 128 * 4               # lane-folded f32 accumulator
                  + 2 * 2 * tn * tc * 4)                # output blocks
    pool_vmem = _clamp_vmem(int(pool_bytes * 1.5) + (2 << 20))

    pooled = pl.pallas_call(
        functools.partial(_pool_kernel, inv_hw=1.0 / HW),
        out_shape=jax.ShapeDtypeStruct((2, N, C), jnp.float32),
        grid=grid,
        in_specs=[pl.BlockSpec((tn, tc, thw), lambda i, c, k: (i, c, k)),
                  pl.BlockSpec((tn, tc, thw), lambda i, c, k: (i, c, k))],
        out_specs=pl.BlockSpec((2, tn, tc), lambda i, c, k: (0, i, c)),
        scratch_shapes=[pltpu.VMEM((2, tn, tc, 128), jnp.float32)],
        compiler_params=pltpu.CompilerParams(
            dimension_semantics=("parallel", "parallel", "arbitrary"),
            vmem_limit_bytes=pool_vmem),
    )(x1f, x2f)

    out_c = params["w1"].shape[1]
    hid_c = params["w4"].shape[0]

    # bf16 weights: native MXU operands + half the weight DMA bytes.
    wb = {k: params[k].astype(jnp.bfloat16) for k in ("w1", "w2", "w3", "w4")}

    w_bytes = sum(int(params[k].size) * 2 for k in ("w1", "w2", "w3", "w4"))
    small_bytes = sum(int(params[k].size) * 4 for k in params
                      if k not in ("w1", "w2", "w3", "w4"))
    io_bytes = N * C * 4 + 2 * N * out_c * 4
    act_bytes = 8 * N * max(C, out_c, hid_c) * 4
    head_vmem = _clamp_vmem(2 * (w_bytes + small_bytes + io_bytes)
                            + act_bytes + (4 << 20))

    z_all, p_all = pl.pallas_call(
        _head_kernel,
        out_shape=(jax.ShapeDtypeStruct((2, N, out_c), jnp.float32),
                   jax.ShapeDtypeStruct((2, N, out_c), jnp.float32)),
        grid=(2,),
        in_specs=[
            pl.BlockSpec((None, N, C), lambda v: (v, 0, 0)),       # pooled features
            pl.BlockSpec((C, out_c), lambda v: (0, 0)),            # w1
            pl.BlockSpec((1, out_c), lambda v: (0, 0)),            # b1
            pl.BlockSpec((1, out_c), lambda v: (0, 0)),            # g1
            pl.BlockSpec((1, out_c), lambda v: (0, 0)),            # be1
            pl.BlockSpec((out_c, out_c), lambda v: (0, 0)),        # w2
            pl.BlockSpec((1, out_c), lambda v: (0, 0)),            # b2
            pl.BlockSpec((1, out_c), lambda v: (0, 0)),            # g2
            pl.BlockSpec((1, out_c), lambda v: (0, 0)),            # be2
            pl.BlockSpec((out_c, hid_c), lambda v: (0, 0)),        # w3
            pl.BlockSpec((1, hid_c), lambda v: (0, 0)),            # b3
            pl.BlockSpec((1, hid_c), lambda v: (0, 0)),            # g3
            pl.BlockSpec((1, hid_c), lambda v: (0, 0)),            # be3
            pl.BlockSpec((hid_c, out_c), lambda v: (0, 0)),        # w4
            pl.BlockSpec((1, out_c), lambda v: (0, 0)),            # b4
        ],
        out_specs=(pl.BlockSpec((None, N, out_c), lambda v: (v, 0, 0)),
                   pl.BlockSpec((None, N, out_c), lambda v: (v, 0, 0))),
        compiler_params=pltpu.CompilerParams(
            dimension_semantics=("parallel",),     # view split -> 2 TCs on v7x
            vmem_limit_bytes=head_vmem),
    )(pooled,
      wb["w1"], params["b1"], params["g1"], params["be1"],
      wb["w2"], params["b2"], params["g2"], params["be2"],
      wb["w3"], params["b3"], params["g3"], params["be3"],
      wb["w4"], params["b4"])

    # TODO(synk): for very large batches tile the loss kernel over N with an
    # accumulator; at typical SimSiam sizes z/p fit comfortably in VMEM.
    loss_vmem = _clamp_vmem(4 * 2 * N * out_c * 4 + (4 << 20))
    out = pl.pallas_call(
        _loss_kernel,
        out_shape=jax.ShapeDtypeStruct((1, 1), jnp.float32),
        compiler_params=pltpu.CompilerParams(vmem_limit_bytes=loss_vmem),
    )(z_all, p_all)

    loss = out[0, 0]
    return {"sim": loss, "loss": loss}


# ---------------------------------------------------------------------------
# Parameters + pure-JAX reference (mirrors PyTorch training-mode forward)
# ---------------------------------------------------------------------------
def make_params(key, in_channels, hidden_channels, out_channels):
    ks = jax.random.split(key, 7)

    def linear_params(k, fin, fout):
        kw, kb = jax.random.split(k)
        bound = 1.0 / float(fin) ** 0.5
        w = jax.random.uniform(kw, (fin, fout), jnp.float32, -bound, bound)
        b = jax.random.uniform(kb, (1, fout), jnp.float32, -bound, bound)
        return w, b

    def bn_params(k, d):
        kg, kb = jax.random.split(k)
        g = 1.0 + 0.1 * jax.random.normal(kg, (1, d), jnp.float32)
        be = 0.1 * jax.random.normal(kb, (1, d), jnp.float32)
        return g, be

    w1, b1 = linear_params(ks[0], in_channels, out_channels)
    w2, b2 = linear_params(ks[1], out_channels, out_channels)
    w3, b3 = linear_params(ks[2], out_channels, hidden_channels)
    w4, b4 = linear_params(ks[3], hidden_channels, out_channels)
    g1, be1 = bn_params(ks[4], out_channels)
    g2, be2 = bn_params(ks[5], out_channels)
    g3, be3 = bn_params(ks[6], hidden_channels)
    return dict(w1=w1, b1=b1, g1=g1, be1=be1,
                w2=w2, b2=b2, g2=g2, be2=be2,
                w3=w3, b3=b3, g3=g3, be3=be3,
                w4=w4, b4=b4)


def _reference_forward(x1, x2, params, matmul_dtype=jnp.float32):
    N, C, H, W = x1.shape
    v1 = jnp.mean(x1.astype(jnp.float32).reshape(N, C, H * W), axis=-1)
    v2 = jnp.mean(x2.astype(jnp.float32).reshape(N, C, H * W), axis=-1)

    def linear(x, w, b):
        return jnp.dot(x.astype(matmul_dtype), w.astype(matmul_dtype),
                       preferred_element_type=jnp.float32) + b

    def bn(x, g, be):
        mu = jnp.mean(x, axis=0, keepdims=True)
        var = jnp.mean((x - mu) ** 2, axis=0, keepdims=True)
        return (x - mu) / jnp.sqrt(var + BN_EPS) * g + be

    def proj(x):
        h = jax.nn.relu(bn(linear(x, params["w1"], params["b1"]), params["g1"], params["be1"]))
        return bn(linear(h, params["w2"], params["b2"]), params["g2"], params["be2"])

    def pred(x):
        h = jax.nn.relu(bn(linear(x, params["w3"], params["b3"]), params["g3"], params["be3"]))
        return linear(h, params["w4"], params["b4"])

    def D(p, z):
        pn = jnp.maximum(jnp.linalg.norm(p, axis=-1), COS_EPS)
        zn = jnp.maximum(jnp.linalg.norm(z, axis=-1), COS_EPS)
        cos = jnp.sum(p * z, axis=-1) / (pn * zn)
        return -jnp.mean(cos)

    z1, z2 = proj(v1), proj(v2)
    p1, p2 = pred(z1), pred(z2)
    return D(p1, z2) / 2 + D(p2, z1) / 2


if __name__ == "__main__":
    key = jax.random.PRNGKey(0)
    k_x1, k_x2, k_p = jax.random.split(key, 3)

    # Small demo shapes (module defaults are in=2048, hidden=512, out=2048).
    N, C, H, W = 8, 256, 16, 16
    hidden_channels, out_channels = 128, 128

    # bf16 inputs: the pooling kernel DMAs the native dtype (half the HBM bytes).
    x1 = jax.random.normal(k_x1, (N, C, H, W), jnp.bfloat16)
    x2 = jax.random.normal(k_x2, (N, C, H, W), jnp.bfloat16)
    params = make_params(k_p, C, hidden_channels, out_channels)

    # Small tile caps so the demo exercises the tiled grid
    # (C tiles = 2, HW chunks = 2 -> accumulator init/accumulate/finalize covered).
    outputs = simsiam_head_forward(x1, x2, params, tc_cap=128, thw_cap=128)
    jax.block_until_ready(outputs)

    # Numerics-matched reference (bf16 MXU operands, f32 accumulate): tight check.
    ref_matched = _reference_forward(x1, x2, params, matmul_dtype=jnp.bfloat16)
    # Module-faithful all-f32 reference: loose check (only bf16 matmul deviation).
    ref_f32 = _reference_forward(x1, x2, params, matmul_dtype=jnp.float32)

    assert bool(jnp.isfinite(outputs["loss"])), outputs["loss"]
    assert jnp.allclose(outputs["loss"], ref_matched, atol=2e-3, rtol=2e-3), (
        outputs["loss"], ref_matched)
    assert jnp.allclose(outputs["loss"], ref_f32, atol=5e-2, rtol=5e-2), (
        outputs["loss"], ref_f32)
    assert jnp.allclose(outputs["sim"], outputs["loss"])

    print("KERNEL_OK")
</pallas_src>

<mosaic_0001>
module attributes {stable_mosaic.version = 11 : i64} {
  func.func @_pool_kernel(%arg0: i32, %arg1: i32, %arg2: i32, %arg3: memref<8x128x128xbf16, #tpu.memory_space<vmem>>, %arg4: memref<8x128x128xbf16, #tpu.memory_space<vmem>>, %arg5: memref<2x8x128xf32, #tpu.memory_space<vmem>>, %arg6: memref<2x8x128x128xf32, #tpu.memory_space<vmem>>) attributes {dimension_semantics = [#tpu.dimension_semantics<parallel>, #tpu.dimension_semantics<parallel>, #tpu.dimension_semantics<arbitrary>], iteration_bounds = array<i64: 1, 2, 2>, scalar_prefetch = 0 : i64, scratch_operands = 1 : i64, tpu.core_type = #tpu.core_type<tc>, window_params = [{transform_indices = @transform_0, window_bounds = array<i64: 8, 128, 128>}, {transform_indices = @transform_1, window_bounds = array<i64: 8, 128, 128>}, {transform_indices = @transform_2, window_bounds = array<i64: 2, 8, 128>}]} {
    %c0_i32 = arith.constant 0 : i32
    %0 = arith.cmpi eq, %arg2, %c0_i32 : i32
    %1 = arith.extui %0 : i1 to i32
    %c0_i32_0 = arith.constant 0 : i32
    %2 = arith.cmpi ne, %1, %c0_i32_0 : i32
    scf.if %2 {
      %cst = arith.constant 0.000000e+00 : f32
      %22 = vector.broadcast %cst : f32 to vector<2x8x128x128xf32>
      %c0_22 = arith.constant 0 : index
      %c0_23 = arith.constant 0 : index
      %c0_24 = arith.constant 0 : index
      %c0_25 = arith.constant 0 : index
      %23 = vector.load %arg6[%c0_22, %c0_23, %c0_24, %c0_25] : memref<2x8x128x128xf32, #tpu.memory_space<vmem>>, vector<2x8x128x128xf32>
      tpu.vector_store %arg6[%c0_22, %c0_23, %c0_24, %c0_25], %22 {strides = array<i32>} : memref<2x8x128x128xf32, #tpu.memory_space<vmem>>, vector<2x8x128x128xf32>,
    } else {
    }
    %c0 = arith.constant 0 : index
    %c0_1 = arith.constant 0 : index
    %c0_2 = arith.constant 0 : index
    %c0_3 = arith.constant 0 : index
    %3 = vector.load %arg6[%c0, %c0_1, %c0_2, %c0_3] : memref<2x8x128x128xf32, #tpu.memory_space<vmem>>, vector<1x8x128x128xf32>
    %4 = vector.shape_cast %3 : vector<1x8x128x128xf32> to vector<8x128x128xf32>
    %c0_4 = arith.constant 0 : index
    %c0_5 = arith.constant 0 : index
    %c0_6 = arith.constant 0 : index
    %5 = vector.load %arg3[%c0_4, %c0_5, %c0_6] : memref<8x128x128xbf16, #tpu.memory_space<vmem>>, vector<8x128x128xbf16>
    %6 = arith.extf %5 : vector<8x128x128xbf16> to vector<8x128x128xf32>
    %7 = arith.addf %4, %6 : vector<8x128x128xf32>
    %c0_7 = arith.constant 0 : index
    %c0_8 = arith.constant 0 : index
    %c0_9 = arith.constant 0 : index
    %c0_10 = arith.constant 0 : index
    %8 = vector.load %arg6[%c0_7, %c0_8, %c0_9, %c0_10] : memref<2x8x128x128xf32, #tpu.memory_space<vmem>>, vector<1x8x128x128xf32>
    %9 = vector.shape_cast %8 : vector<1x8x128x128xf32> to vector<8x128x128xf32>
    %10 = vector.shape_cast %7 : vector<8x128x128xf32> to vector<1x8x128x128xf32>
    tpu.vector_store %arg6[%c0_7, %c0_8, %c0_9, %c0_10], %10 {strides = array<i32>} : memref<2x8x128x128xf32, #tpu.memory_space<vmem>>, vector<1x8x128x128xf32>,
    %c1 = arith.constant 1 : index
    %c0_11 = arith.constant 0 : index
    %c0_12 = arith.constant 0 : index
    %c0_13 = arith.constant 0 : index
    %11 = vector.load %arg6[%c1, %c0_11, %c0_12, %c0_13] : memref<2x8x128x128xf32, #tpu.memory_space<vmem>>, vector<1x8x128x128xf32>
    %12 = vector.shape_cast %11 : vector<1x8x128x128xf32> to vector<8x128x128xf32>
    %c0_14 = arith.constant 0 : index
    %c0_15 = arith.constant 0 : index
    %c0_16 = arith.constant 0 : index
    %13 = vector.load %arg4[%c0_14, %c0_15, %c0_16] : memref<8x128x128xbf16, #tpu.memory_space<vmem>>, vector<8x128x128xbf16>
    %14 = arith.extf %13 : vector<8x128x128xbf16> to vector<8x128x128xf32>
    %15 = arith.addf %12, %14 : vector<8x128x128xf32>
    %c1_17 = arith.constant 1 : index
    %c0_18 = arith.constant 0 : index
    %c0_19 = arith.constant 0 : index
    %c0_20 = arith.constant 0 : index
    %16 = vector.load %arg6[%c1_17, %c0_18, %c0_19, %c0_20] : memref<2x8x128x128xf32, #tpu.memory_space<vmem>>, vector<1x8x128x128xf32>
    %17 = vector.shape_cast %16 : vector<1x8x128x128xf32> to vector<8x128x128xf32>
    %18 = vector.shape_cast %15 : vector<8x128x128xf32> to vector<1x8x128x128xf32>
    tpu.vector_store %arg6[%c1_17, %c0_18, %c0_19, %c0_20], %18 {strides = array<i32>} : memref<2x8x128x128xf32, #tpu.memory_space<vmem>>, vector<1x8x128x128xf32>,
    %c1_i32 = arith.constant 1 : i32
    %19 = arith.cmpi eq, %arg2, %c1_i32 : i32
    %20 = arith.extui %19 : i1 to i32
    %c0_i32_21 = arith.constant 0 : i32
    %21 = arith.cmpi ne, %20, %c0_i32_21 : i32
    scf.if %21 {
      %c0_22 = arith.constant 0 : index
      %c0_23 = arith.constant 0 : index
      %c0_24 = arith.constant 0 : index
      %c0_25 = arith.constant 0 : index
      %22 = vector.load %arg6[%c0_22, %c0_23, %c0_24, %c0_25] : memref<2x8x128x128xf32, #tpu.memory_space<vmem>>, vector<2x8x128x128xf32>
      %cst = arith.constant dense<0.000000e+00> : vector<2x8x128xf32>
      %23 = vector.multi_reduction <add>, %22, %cst [3] : vector<2x8x128x128xf32> to vector<2x8x128xf32>
      %cst_26 = arith.constant 3.906250e-03 : f32
      %24 = vector.broadcast %cst_26 : f32 to vector<2x8x128xf32>
      %25 = arith.mulf %23, %24 : vector<2x8x128xf32>
      %c0_27 = arith.constant 0 : index
      %c0_28 = arith.constant 0 : index
      %c0_29 = arith.constant 0 : index
      %26 = vector.load %arg5[%c0_27, %c0_28, %c0_29] : memref<2x8x128xf32, #tpu.memory_space<vmem>>, vector<2x8x128xf32>
      tpu.vector_store %arg5[%c0_27, %c0_28, %c0_29], %25 {strides = array<i32>} : memref<2x8x128xf32, #tpu.memory_space<vmem>>, vector<2x8x128xf32>,
    } else {
    }
    return
  }
  func.func @transform_0(%arg0: i32, %arg1: i32, %arg2: i32) -> (i32, i32, i32) {
    %c0_i32 = arith.constant 0 : i32
    return %arg0, %arg1, %arg2 : i32, i32, i32
  }
  func.func @transform_1(%arg0: i32, %arg1: i32, %arg2: i32) -> (i32, i32, i32) {
    %c0_i32 = arith.constant 0 : i32
    return %arg0, %arg1, %arg2 : i32, i32, i32
  }
  func.func @transform_2(%arg0: i32, %arg1: i32, %arg2: i32) -> (i32, i32, i32) {
    %c0_i32 = arith.constant 0 : i32
    %c0_i32_0 = arith.constant 0 : i32
    return %c0_i32, %arg0, %arg1 : i32, i32, i32
  }
}

module attributes {stable_mosaic.version = 11 : i64} {
  func.func @_head_kernel(%arg0: i32, %arg1: memref<1x8x256xf32, #tpu.memory_space<vmem>>, %arg2: memref<256x128xbf16, #tpu.memory_space<vmem>>, %arg3: memref<1x128xf32, #tpu.memory_space<vmem>>, %arg4: memref<1x128xf32, #tpu.memory_space<vmem>>, %arg5: memref<1x128xf32, #tpu.memory_space<vmem>>, %arg6: memref<128x128xbf16, #tpu.memory_space<vmem>>, %arg7: memref<1x128xf32, #tpu.memory_space<vmem>>, %arg8: memref<1x128xf32, #tpu.memory_space<vmem>>, %arg9: memref<1x128xf32, #tpu.memory_space<vmem>>, %arg10: memref<128x128xbf16, #tpu.memory_space<vmem>>, %arg11: memref<1x128xf32, #tpu.memory_space<vmem>>, %arg12: memref<1x128xf32, #tpu.memory_space<vmem>>, %arg13: memref<1x128xf32, #tpu.memory_space<vmem>>, %arg14: memref<128x128xbf16, #tpu.memory_space<vmem>>, %arg15: memref<1x128xf32, #tpu.memory_space<vmem>>, %arg16: memref<1x8x128xf32, #tpu.memory_space<vmem>>, %arg17: memref<1x8x128xf32, #tpu.memory_space<vmem>>) attributes {dimension_semantics = [#tpu.dimension_semantics<parallel>], iteration_bounds = array<i64: 2>, scalar_prefetch = 0 : i64, scratch_operands = 0 : i64, tpu.core_type = #tpu.core_type<tc>, window_params = [{transform_indices = @transform_0, window_bounds = array<i64: 1, 8, 256>}, {pipeline_mode = #tpu.pipeline_mode<synchronous>, transform_indices = @transform_1, window_bounds = array<i64: 256, 128>}, {pipeline_mode = #tpu.pipeline_mode<synchronous>, transform_indices = @transform_2, window_bounds = array<i64: 1, 128>}, {pipeline_mode = #tpu.pipeline_mode<synchronous>, transform_indices = @transform_3, window_bounds = array<i64: 1, 128>}, {pipeline_mode = #tpu.pipeline_mode<synchronous>, transform_indices = @transform_4, window_bounds = array<i64: 1, 128>}, {pipeline_mode = #tpu.pipeline_mode<synchronous>, transform_indices = @transform_5, window_bounds = array<i64: 128, 128>}, {pipeline_mode = #tpu.pipeline_mode<synchronous>, transform_indices = @transform_6, window_bounds = array<i64: 1, 128>}, {pipeline_mode = #tpu.pipeline_mode<synchronous>, transform_indices = @transform_7, window_bounds = array<i64: 1, 128>}, {pipeline_mode = #tpu.pipeline_mode<synchronous>, transform_indices = @transform_8, window_bounds = array<i64: 1, 128>}, {pipeline_mode = #tpu.pipeline_mode<synchronous>, transform_indices = @transform_9, window_bounds = array<i64: 128, 128>}, {pipeline_mode = #tpu.pipeline_mode<synchronous>, transform_indices = @transform_10, window_bounds = array<i64: 1, 128>}, {pipeline_mode = #tpu.pipeline_mode<synchronous>, transform_indices = @transform_11, window_bounds = array<i64: 1, 128>}, {pipeline_mode = #tpu.pipeline_mode<synchronous>, transform_indices = @transform_12, window_bounds = array<i64: 1, 128>}, {pipeline_mode = #tpu.pipeline_mode<synchronous>, transform_indices = @transform_13, window_bounds = array<i64: 128, 128>}, {pipeline_mode = #tpu.pipeline_mode<synchronous>, transform_indices = @transform_14, window_bounds = array<i64: 1, 128>}, {transform_indices = @transform_15, window_bounds = array<i64: 1, 8, 128>}, {transform_indices = @transform_16, window_bounds = array<i64: 1, 8, 128>}]} {
    %c0 = arith.constant 0 : index
    %c0_0 = arith.constant 0 : index
    %c0_1 = arith.constant 0 : index
    %0 = vector.load %arg1[%c0, %c0_0, %c0_1] : memref<1x8x256xf32, #tpu.memory_space<vmem>>, vector<1x8x256xf32>
    %1 = vector.shape_cast %0 : vector<1x8x256xf32> to vector<8x256xf32>
    %2 = arith.truncf %1 : vector<8x256xf32> to vector<8x256xbf16>
    %c0_2 = arith.constant 0 : index
    %c0_3 = arith.constant 0 : index
    %3 = vector.load %arg2[%c0_2, %c0_3] : memref<256x128xbf16, #tpu.memory_space<vmem>>, vector<256x128xbf16>
    %cst = arith.constant dense<0.000000e+00> : vector<8x128xf32>
    %4 = tpu.matmul %2, %3, %cst {dimension_numbers = #tpu.dot_dimension_numbers<[1], [0], [0], [1], [0, 0, 1, 1], [], []>} : vector<8x256xbf16>, vector<256x128xbf16>, vector<8x128xf32> -> vector<8x128xf32>
    %c0_4 = arith.constant 0 : index
    %c0_5 = arith.constant 0 : index
    %5 = vector.load %arg3[%c0_4, %c0_5] : memref<1x128xf32, #tpu.memory_space<vmem>>, vector<1x128xf32>
    %6 = vector.broadcast %5 : vector<1x128xf32> to vector<8x128xf32>
    %7 = arith.addf %4, %6 : vector<8x128xf32>
    %cst_6 = arith.constant dense<0.000000e+00> : vector<128xf32>
    %8 = vector.multi_reduction <add>, %7, %cst_6 [0] : vector<8x128xf32> to vector<128xf32>
    %9 = vector.shape_cast %8 : vector<128xf32> to vector<1x128xf32>
    %cst_7 = arith.constant 8.000000e+00 : f32
    %10 = vector.broadcast %cst_7 : f32 to vector<1x128xf32>
    %11 = arith.divf %9, %10 : vector<1x128xf32>
    %12 = vector.broadcast %11 : vector<1x128xf32> to vector<8x128xf32>
    %13 = arith.subf %7, %12 : vector<8x128xf32>
    %14 = arith.mulf %13, %13 : vector<8x128xf32>
    %cst_8 = arith.constant dense<0.000000e+00> : vector<128xf32>
    %15 = vector.multi_reduction <add>, %14, %cst_8 [0] : vector<8x128xf32> to vector<128xf32>
    %16 = vector.shape_cast %15 : vector<128xf32> to vector<1x128xf32>
    %cst_9 = arith.constant 8.000000e+00 : f32
    %17 = vector.broadcast %cst_9 : f32 to vector<1x128xf32>
    %18 = arith.divf %16, %17 : vector<1x128xf32>
    %c0_10 = arith.constant 0 : index
    %c0_11 = arith.constant 0 : index
    %19 = vector.load %arg4[%c0_10, %c0_11] : memref<1x128xf32, #tpu.memory_space<vmem>>, vector<1x128xf32>
    %cst_12 = arith.constant 9.99999974E-6 : f32
    %20 = vector.broadcast %cst_12 : f32 to vector<1x128xf32>
    %21 = arith.addf %18, %20 : vector<1x128xf32>
    %22 = math.rsqrt %21 : vector<1x128xf32>
    %23 = arith.mulf %19, %22 : vector<1x128xf32>
    %24 = vector.broadcast %23 : vector<1x128xf32> to vector<8x128xf32>
    %25 = arith.mulf %7, %24 : vector<8x128xf32>
    %c0_13 = arith.constant 0 : index
    %c0_14 = arith.constant 0 : index
    %26 = vector.load %arg5[%c0_13, %c0_14] : memref<1x128xf32, #tpu.memory_space<vmem>>, vector<1x128xf32>
    %27 = arith.mulf %11, %23 : vector<1x128xf32>
    %28 = arith.subf %26, %27 : vector<1x128xf32>
    %29 = vector.broadcast %28 : vector<1x128xf32> to vector<8x128xf32>
    %30 = arith.addf %25, %29 : vector<8x128xf32>
    %cst_15 = arith.constant 0.000000e+00 : f32
    %31 = vector.broadcast %cst_15 : f32 to vector<8x128xf32>
    %32 = arith.maximumf %30, %31 : vector<8x128xf32>
    %33 = arith.truncf %32 : vector<8x128xf32> to vector<8x128xbf16>
    %c0_16 = arith.constant 0 : index
    %c0_17 = arith.constant 0 : index
    %34 = vector.load %arg6[%c0_16, %c0_17] : memref<128x128xbf16, #tpu.memory_space<vmem>>, vector<128x128xbf16>
    %cst_18 = arith.constant dense<0.000000e+00> : vector<8x128xf32>
    %35 = tpu.matmul %33, %34, %cst_18 {dimension_numbers = #tpu.dot_dimension_numbers<[1], [0], [0], [1], [0, 0, 1, 1], [], []>} : vector<8x128xbf16>, vector<128x128xbf16>, vector<8x128xf32> -> vector<8x128xf32>
    %c0_19 = arith.constant 0 : index
    %c0_20 = arith.constant 0 : index
    %36 = vector.load %arg7[%c0_19, %c0_20] : memref<1x128xf32, #tpu.memory_space<vmem>>, vector<1x128xf32>
    %37 = vector.broadcast %36 : vector<1x128xf32> to vector<8x128xf32>
    %38 = arith.addf %35, %37 : vector<8x128xf32>
    %cst_21 = arith.constant dense<0.000000e+00> : vector<128xf32>
    %39 = vector.multi_reduction <add>, %38, %cst_21 [0] : vector<8x128xf32> to vector<128xf32>
    %40 = vector.shape_cast %39 : vector<128xf32> to vector<1x128xf32>
    %cst_22 = arith.constant 8.000000e+00 : f32
    %41 = vector.broadcast %cst_22 : f32 to vector<1x128xf32>
    %42 = arith.divf %40, %41 : vector<1x128xf32>
    %43 = vector.broadcast %42 : vector<1x128xf32> to vector<8x128xf32>
    %44 = arith.subf %38, %43 : vector<8x128xf32>
    %45 = arith.mulf %44, %44 : vector<8x128xf32>
    %cst_23 = arith.constant dense<0.000000e+00> : vector<128xf32>
    %46 = vector.multi_reduction <add>, %45, %cst_23 [0] : vector<8x128xf32> to vector<128xf32>
    %47 = vector.shape_cast %46 : vector<128xf32> to vector<1x128xf32>
    %cst_24 = arith.constant 8.000000e+00 : f32
    %48 = vector.broadcast %cst_24 : f32 to vector<1x128xf32>
    %49 = arith.divf %47, %48 : vector<1x128xf32>
    %c0_25 = arith.constant 0 : index
    %c0_26 = arith.constant 0 : index
    %50 = vector.load %arg8[%c0_25, %c0_26] : memref<1x128xf32, #tpu.memory_space<vmem>>, vector<1x128xf32>
    %cst_27 = arith.constant 9.99999974E-6 : f32
    %51 = vector.broadcast %cst_27 : f32 to vector<1x128xf32>
    %52 = arith.addf %49, %51 : vector<1x128xf32>
    %53 = math.rsqrt %52 : vector<1x128xf32>
    %54 = arith.mulf %50, %53 : vector<1x128xf32>
    %55 = vector.broadcast %54 : vector<1x128xf32> to vector<8x128xf32>
    %56 = arith.mulf %38, %55 : vector<8x128xf32>
    %c0_28 = arith.constant 0 : index
    %c0_29 = arith.constant 0 : index
    %57 = vector.load %arg9[%c0_28, %c0_29] : memref<1x128xf32, #tpu.memory_space<vmem>>, vector<1x128xf32>
    %58 = arith.mulf %42, %54 : vector<1x128xf32>
    %59 = arith.subf %57, %58 : vector<1x128xf32>
    %60 = vector.broadcast %59 : vector<1x128xf32> to vector<8x128xf32>
    %61 = arith.addf %56, %60 : vector<8x128xf32>
    %62 = arith.truncf %61 : vector<8x128xf32> to vector<8x128xbf16>
    %c0_30 = arith.constant 0 : index
    %c0_31 = arith.constant 0 : index
    %63 = vector.load %arg10[%c0_30, %c0_31] : memref<128x128xbf16, #tpu.memory_space<vmem>>, vector<128x128xbf16>
    %cst_32 = arith.constant dense<0.000000e+00> : vector<8x128xf32>
    %64 = tpu.matmul %62, %63, %cst_32 {dimension_numbers = #tpu.dot_dimension_numbers<[1], [0], [0], [1], [0, 0, 1, 1], [], []>} : vector<8x128xbf16>, vector<128x128xbf16>, vector<8x128xf32> -> vector<8x128xf32>
    %c0_33 = arith.constant 0 : index
    %c0_34 = arith.constant 0 : index
    %65 = vector.load %arg11[%c0_33, %c0_34] : memref<1x128xf32, #tpu.memory_space<vmem>>, vector<1x128xf32>
    %66 = vector.broadcast %65 : vector<1x128xf32> to vector<8x128xf32>
    %67 = arith.addf %64, %66 : vector<8x128xf32>
    %cst_35 = arith.constant dense<0.000000e+00> : vector<128xf32>
    %68 = vector.multi_reduction <add>, %67, %cst_35 [0] : vector<8x128xf32> to vector<128xf32>
    %69 = vector.shape_cast %68 : vector<128xf32> to vector<1x128xf32>
    %cst_36 = arith.constant 8.000000e+00 : f32
    %70 = vector.broadcast %cst_36 : f32 to vector<1x128xf32>
    %71 = arith.divf %69, %70 : vector<1x128xf32>
    %72 = vector.broadcast %71 : vector<1x128xf32> to vector<8x128xf32>
    %73 = arith.subf %67, %72 : vector<8x128xf32>
    %74 = arith.mulf %73, %73 : vector<8x128xf32>
    %cst_37 = arith.constant dense<0.000000e+00> : vector<128xf32>
    %75 = vector.multi_reduction <add>, %74, %cst_37 [0] : vector<8x128xf32> to vector<128xf32>
    %76 = vector.shape_cast %75 : vector<128xf32> to vector<1x128xf32>
    %cst_38 = arith.constant 8.000000e+00 : f32
    %77 = vector.broadcast %cst_38 : f32 to vector<1x128xf32>
    %78 = arith.divf %76, %77 : vector<1x128xf32>
    %c0_39 = arith.constant 0 : index
    %c0_40 = arith.constant 0 : index
    %79 = vector.load %arg12[%c0_39, %c0_40] : memref<1x128xf32, #tpu.memory_space<vmem>>, vector<1x128xf32>
    %cst_41 = arith.constant 9.99999974E-6 : f32
    %80 = vector.broadcast %cst_41 : f32 to vector<1x128xf32>
    %81 = arith.addf %78, %80 : vector<1x128xf32>
    %82 = math.rsqrt %81 : vector<1x128xf32>
    %83 = arith.mulf %79, %82 : vector<1x128xf32>
    %84 = vector.broadcast %83 : vector<1x128xf32> to vector<8x128xf32>
    %85 = arith.mulf %67, %84 : vector<8x128xf32>
    %c0_42 = arith.constant 0 : index
    %c0_43 = arith.constant 0 : index
    %86 = vector.load %arg13[%c0_42, %c0_43] : memref<1x128xf32, #tpu.memory_space<vmem>>, vector<1x128xf32>
    %87 = arith.mulf %71, %83 : vector<1x128xf32>
    %88 = arith.subf %86, %87 : vector<1x128xf32>
    %89 = vector.broadcast %88 : vector<1x128xf32> to vector<8x128xf32>
    %90 = arith.addf %85, %89 : vector<8x128xf32>
    %cst_44 = arith.constant 0.000000e+00 : f32
    %91 = vector.broadcast %cst_44 : f32 to vector<8x128xf32>
    %92 = arith.maximumf %90, %91 : vector<8x128xf32>
    %93 = arith.truncf %92 : vector<8x128xf32> to vector<8x128xbf16>
    %c0_45 = arith.constant 0 : index
    %c0_46 = arith.constant 0 : index
    %94 = vector.load %arg14[%c0_45, %c0_46] : memref<128x128xbf16, #tpu.memory_space<vmem>>, vector<128x128xbf16>
    %cst_47 = arith.constant dense<0.000000e+00> : vector<8x128xf32>
    %95 = tpu.matmul %93, %94, %cst_47 {dimension_numbers = #tpu.dot_dimension_numbers<[1], [0], [0], [1], [0, 0, 1, 1], [], []>} : vector<8x128xbf16>, vector<128x128xbf16>, vector<8x128xf32> -> vector<8x128xf32>
    %c0_48 = arith.constant 0 : index
    %c0_49 = arith.constant 0 : index
    %96 = vector.load %arg15[%c0_48, %c0_49] : memref<1x128xf32, #tpu.memory_space<vmem>>, vector<1x128xf32>
    %97 = vector.broadcast %96 : vector<1x128xf32> to vector<8x128xf32>
    %98 = arith.addf %95, %97 : vector<8x128xf32>
    %c0_50 = arith.constant 0 : index
    %c0_51 = arith.constant 0 : index
    %c0_52 = arith.constant 0 : index
    %99 = vector.load %arg16[%c0_50, %c0_51, %c0_52] : memref<1x8x128xf32, #tpu.memory_space<vmem>>, vector<1x8x128xf32>
    %100 = vector.shape_cast %99 : vector<1x8x128xf32> to vector<8x128xf32>
    %101 = vector.shape_cast %61 : vector<8x128xf32> to vector<1x8x128xf32>
    tpu.vector_store %arg16[%c0_50, %c0_51, %c0_52], %101 {strides = array<i32>} : memref<1x8x128xf32, #tpu.memory_space<vmem>>, vector<1x8x128xf32>,
    %c0_53 = arith.constant 0 : index
    %c0_54 = arith.constant 0 : index
    %c0_55 = arith.constant 0 : index
    %102 = vector.load %arg17[%c0_53, %c0_54, %c0_55] : memref<1x8x128xf32, #tpu.memory_space<vmem>>, vector<1x8x128xf32>
    %103 = vector.shape_cast %102 : vector<1x8x128xf32> to vector<8x128xf32>
    %104 = vector.shape_cast %98 : vector<8x128xf32> to vector<1x8x128xf32>
    tpu.vector_store %arg17[%c0_53, %c0_54, %c0_55], %104 {strides = array<i32>} : memref<1x8x128xf32, #tpu.memory_space<vmem>>, vector<1x8x128xf32>,
    return
  }
  func.func @transform_0(%arg0: i32) -> (i32, i32, i32) {
    %c0_i32 = arith.constant 0 : i32
    %c0_i32_0 = arith.constant 0 : i32
    %c0_i32_1 = arith.constant 0 : i32
    return %arg0, %c0_i32, %c0_i32_0 : i32, i32, i32
  }
  func.func @transform_1(%arg0: i32) -> (i32, i32) {
    %c0_i32 = arith.constant 0 : i32
    %c0_i32_0 = arith.constant 0 : i32
    %c0_i32_1 = arith.constant 0 : i32
    return %c0_i32, %c0_i32_0 : i32, i32
  }
  func.func @transform_2(%arg0: i32) -> (i32, i32) {
    %c0_i32 = arith.constant 0 : i32
    %c0_i32_0 = arith.constant 0 : i32
    %c0_i32_1 = arith.constant 0 : i32
    return %c0_i32, %c0_i32_0 : i32, i32
  }
  func.func @transform_3(%arg0: i32) -> (i32, i32) {
    %c0_i32 = arith.constant 0 : i32
    %c0_i32_0 = arith.constant 0 : i32
    %c0_i32_1 = arith.constant 0 : i32
    return %c0_i32, %c0_i32_0 : i32, i32
  }
  func.func @transform_4(%arg0: i32) -> (i32, i32) {
    %c0_i32 = arith.constant 0 : i32
    %c0_i32_0 = arith.constant 0 : i32
    %c0_i32_1 = arith.constant 0 : i32
    return %c0_i32, %c0_i32_0 : i32, i32
  }
  func.func @transform_5(%arg0: i32) -> (i32, i32) {
    %c0_i32 = arith.constant 0 : i32
    %c0_i32_0 = arith.constant 0 : i32
    %c0_i32_1 = arith.constant 0 : i32
    return %c0_i32, %c0_i32_0 : i32, i32
  }
  func.func @transform_6(%arg0: i32) -> (i32, i32) {
    %c0_i32 = arith.constant 0 : i32
    %c0_i32_0 = arith.constant 0 : i32
    %c0_i32_1 = arith.constant 0 : i32
    return %c0_i32, %c0_i32_0 : i32, i32
  }
  func.func @transform_7(%arg0: i32) -> (i32, i32) {
    %c0_i32 = arith.constant 0 : i32
    %c0_i32_0 = arith.constant 0 : i32
    %c0_i32_1 = arith.constant 0 : i32
    return %c0_i32, %c0_i32_0 : i32, i32
  }
  func.func @transform_8(%arg0: i32) -> (i32, i32) {
    %c0_i32 = arith.constant 0 : i32
    %c0_i32_0 = arith.constant 0 : i32
    %c0_i32_1 = arith.constant 0 : i32
    return %c0_i32, %c0_i32_0 : i32, i32
  }
  func.func @transform_9(%arg0: i32) -> (i32, i32) {
    %c0_i32 = arith.constant 0 : i32
    %c0_i32_0 = arith.constant 0 : i32
    %c0_i32_1 = arith.constant 0 : i32
    return %c0_i32, %c0_i32_0 : i32, i32
  }
  func.func @transform_10(%arg0: i32) -> (i32, i32) {
    %c0_i32 = arith.constant 0 : i32
    %c0_i32_0 = arith.constant 0 : i32
    %c0_i32_1 = arith.constant 0 : i32
    return %c0_i32, %c0_i32_0 : i32, i32
  }
  func.func @transform_11(%arg0: i32) -> (i32, i32) {
    %c0_i32 = arith.constant 0 : i32
    %c0_i32_0 = arith.constant 0 : i32
    %c0_i32_1 = arith.constant 0 : i32
    return %c0_i32, %c0_i32_0 : i32, i32
  }
  func.func @transform_12(%arg0: i32) -> (i32, i32) {
    %c0_i32 = arith.constant 0 : i32
    %c0_i32_0 = arith.constant 0 : i32
    %c0_i32_1 = arith.constant 0 : i32
    return %c0_i32, %c0_i32_0 : i32, i32
  }
  func.func @transform_13(%arg0: i32) -> (i32, i32) {
    %c0_i32 = arith.constant 0 : i32
    %c0_i32_0 = arith.constant 0 : i32
    %c0_i32_1 = arith.constant 0 : i32
    return %c0_i32, %c0_i32_0 : i32, i32
  }
  func.func @transform_14(%arg0: i32) -> (i32, i32) {
    %c0_i32 = arith.constant 0 : i32
    %c0_i32_0 = arith.constant 0 : i32
    %c0_i32_1 = arith.constant 0 : i32
    return %c0_i32, %c0_i32_0 : i32, i32
  }
  func.func @transform_15(%arg0: i32) -> (i32, i32, i32) {
    %c0_i32 = arith.constant 0 : i32
    %c0_i32_0 = arith.constant 0 : i32
    %c0_i32_1 = arith.constant 0 : i32
    return %arg0, %c0_i32, %c0_i32_0 : i32, i32, i32
  }
  func.func @transform_16(%arg0: i32) -> (i32, i32, i32) {
    %c0_i32 = arith.constant 0 : i32
    %c0_i32_0 = arith.constant 0 : i32
    %c0_i32_1 = arith.constant 0 : i32
    return %arg0, %c0_i32, %c0_i32_0 : i32, i32, i32
  }
}

module attributes {stable_mosaic.version = 11 : i64} {
  func.func @_loss_kernel(%arg0: memref<2x8x128xf32, #tpu.memory_space<vmem>>, %arg1: memref<2x8x128xf32, #tpu.memory_space<vmem>>, %arg2: memref<1x1xf32, #tpu.memory_space<vmem>>) attributes {dimension_semantics = [], scalar_prefetch = 0 : i64, scratch_operands = 0 : i64, tpu.core_type = #tpu.core_type<tc>} {
    %c0 = arith.constant 0 : index
    %c0_0 = arith.constant 0 : index
    %c0_1 = arith.constant 0 : index
    %0 = vector.load %arg0[%c0, %c0_0, %c0_1] : memref<2x8x128xf32, #tpu.memory_space<vmem>>, vector<1x8x128xf32>
    %1 = vector.shape_cast %0 : vector<1x8x128xf32> to vector<8x128xf32>
    %c1 = arith.constant 1 : index
    %c0_2 = arith.constant 0 : index
    %c0_3 = arith.constant 0 : index
    %2 = vector.load %arg0[%c1, %c0_2, %c0_3] : memref<2x8x128xf32, #tpu.memory_space<vmem>>, vector<1x8x128xf32>
    %3 = vector.shape_cast %2 : vector<1x8x128xf32> to vector<8x128xf32>
    %c0_4 = arith.constant 0 : index
    %c0_5 = arith.constant 0 : index
    %c0_6 = arith.constant 0 : index
    %4 = vector.load %arg1[%c0_4, %c0_5, %c0_6] : memref<2x8x128xf32, #tpu.memory_space<vmem>>, vector<1x8x128xf32>
    %5 = vector.shape_cast %4 : vector<1x8x128xf32> to vector<8x128xf32>
    %c1_7 = arith.constant 1 : index
    %c0_8 = arith.constant 0 : index
    %c0_9 = arith.constant 0 : index
    %6 = vector.load %arg1[%c1_7, %c0_8, %c0_9] : memref<2x8x128xf32, #tpu.memory_space<vmem>>, vector<1x8x128xf32>
    %7 = vector.shape_cast %6 : vector<1x8x128xf32> to vector<8x128xf32>
    %8 = arith.mulf %5, %5 : vector<8x128xf32>
    %cst = arith.constant dense<0.000000e+00> : vector<8xf32>
    %9 = vector.multi_reduction <add>, %8, %cst [1] : vector<8x128xf32> to vector<8xf32>
    %10 = vector.shape_cast %9 : vector<8xf32> to vector<8x1xf32>
    %11 = arith.mulf %3, %3 : vector<8x128xf32>
    %cst_10 = arith.constant dense<0.000000e+00> : vector<8xf32>
    %12 = vector.multi_reduction <add>, %11, %cst_10 [1] : vector<8x128xf32> to vector<8xf32>
    %13 = vector.shape_cast %12 : vector<8xf32> to vector<8x1xf32>
    %cst_11 = arith.constant 1.000000e-16 : f32
    %14 = vector.broadcast %cst_11 : f32 to vector<8x1xf32>
    %15 = arith.maximumf %10, %14 : vector<8x1xf32>
    %cst_12 = arith.constant 1.000000e-16 : f32
    %16 = vector.broadcast %cst_12 : f32 to vector<8x1xf32>
    %17 = arith.maximumf %13, %16 : vector<8x1xf32>
    %18 = arith.mulf %15, %17 : vector<8x1xf32>
    %19 = math.rsqrt %18 : vector<8x1xf32>
    %20 = arith.mulf %5, %3 : vector<8x128xf32>
    %cst_13 = arith.constant dense<0.000000e+00> : vector<8xf32>
    %21 = vector.multi_reduction <add>, %20, %cst_13 [1] : vector<8x128xf32> to vector<8xf32>
    %22 = vector.shape_cast %21 : vector<8xf32> to vector<8x1xf32>
    %23 = arith.mulf %22, %19 : vector<8x1xf32>
    %cst_14 = arith.constant dense<0.000000e+00> : vector<1xf32>
    %24 = vector.multi_reduction <add>, %23, %cst_14 [0] : vector<8x1xf32> to vector<1xf32>
    %25 = vector.shape_cast %24 : vector<1xf32> to vector<1x1xf32>
    %cst_15 = arith.constant 0.000000e+00 : f32
    %26 = vector.broadcast %cst_15 : f32 to vector<1x1xf32>
    %27 = arith.subf %26, %25 : vector<1x1xf32>
    %28 = arith.mulf %7, %7 : vector<8x128xf32>
    %cst_16 = arith.constant dense<0.000000e+00> : vector<8xf32>
    %29 = vector.multi_reduction <add>, %28, %cst_16 [1] : vector<8x128xf32> to vector<8xf32>
    %30 = vector.shape_cast %29 : vector<8xf32> to vector<8x1xf32>
    %31 = arith.mulf %1, %1 : vector<8x128xf32>
    %cst_17 = arith.constant dense<0.000000e+00> : vector<8xf32>
    %32 = vector.multi_reduction <add>, %31, %cst_17 [1] : vector<8x128xf32> to vector<8xf32>
    %33 = vector.shape_cast %32 : vector<8xf32> to vector<8x1xf32>
    %cst_18 = arith.constant 1.000000e-16 : f32
    %34 = vector.broadcast %cst_18 : f32 to vector<8x1xf32>
    %35 = arith.maximumf %30, %34 : vector<8x1xf32>
    %cst_19 = arith.constant 1.000000e-16 : f32
    %36 = vector.broadcast %cst_19 : f32 to vector<8x1xf32>
    %37 = arith.maximumf %33, %36 : vector<8x1xf32>
    %38 = arith.mulf %35, %37 : vector<8x1xf32>
    %39 = math.rsqrt %38 : vector<8x1xf32>
    %40 = arith.mulf %7, %1 : vector<8x128xf32>
    %cst_20 = arith.constant dense<0.000000e+00> : vector<8xf32>
    %41 = vector.multi_reduction <add>, %40, %cst_20 [1] : vector<8x128xf32> to vector<8xf32>
    %42 = vector.shape_cast %41 : vector<8xf32> to vector<8x1xf32>
    %43 = arith.mulf %42, %39 : vector<8x1xf32>
    %cst_21 = arith.constant dense<0.000000e+00> : vector<1xf32>
    %44 = vector.multi_reduction <add>, %43, %cst_21 [0] : vector<8x1xf32> to vector<1xf32>
    %45 = vector.shape_cast %44 : vector<1xf32> to vector<1x1xf32>
    %cst_22 = arith.constant 0.000000e+00 : f32
    %46 = vector.broadcast %cst_22 : f32 to vector<1x1xf32>
    %47 = arith.subf %46, %45 : vector<1x1xf32>
    %48 = arith.addf %27, %47 : vector<1x1xf32>
    %cst_23 = arith.constant 6.250000e-02 : f32
    %49 = vector.broadcast %cst_23 : f32 to vector<1x1xf32>
    %50 = arith.mulf %48, %49 : vector<1x1xf32>
    %c0_24 = arith.constant 0 : index
    %c0_25 = arith.constant 0 : index
    %51 = vector.load %arg2[%c0_24, %c0_25] : memref<1x1xf32, #tpu.memory_space<vmem>>, vector<1x1xf32>
    tpu.vector_store %arg2[%c0_24, %c0_25], %50 {strides = array<i32>} : memref<1x1xf32, #tpu.memory_space<vmem>>, vector<1x1xf32>,
    return
  }
}

</mosaic_0001>

<bundles_post_ra>
// kernel: simsiam_head_forward.4
= control target key start
LH: loop header
LB: loop body
LE: loop exit
PB: predicated region body
PF: predicated region fallthrough
CT: control target
= control target key end

     0   :  { %s1563_s21 = smov 0   ;;  %s1779_s0 = inlined_call_operand.vmem [shape: f32[2,8,256], index: 0, kind: input, shape index: {}]   ;;  %s1780_s1 = inlined_call_operand.vmem [shape: bf16[256,128], index: 1, kind: input, shape index: {}]   ;;  %s1781_s2 = inlined_call_operand.vmem [shape: f32[1,128], index: 2, kind: input, shape index: {}]   ;;  %s1782_s3 = inlined_call_operand.vmem [shape: f32[1,128], index: 3, kind: input, shape index: {}]   ;;  %s1783_s4 = inlined_call_operand.vmem [shape: f32[1,128], index: 4, kind: input, shape index: {}]   ;;  %s1784_s5 = inlined_call_operand.vmem [shape: bf16[128,128], index: 5, kind: input, shape index: {}]   ;;  %s1785_s6 = inlined_call_operand.vmem [shape: f32[1,128], index: 6, kind: input, shape index: {}]   ;;  %s1786_s7 = inlined_call_operand.vmem [shape: f32[1,128], index: 7, kind: input, shape index: {}]   ;;  %s1787_s8 = inlined_call_operand.vmem [shape: f32[1,128], index: 8, kind: input, shape index: {}]   ;;  %s1788_s9 = inlined_call_operand.vmem [shape: bf16[128,128], index: 9, kind: input, shape index: {}]   ;;  %s1789_s10 = inlined_call_operand.vmem [shape: f32[1,128], index: 10, kind: input, shape index: {}]   ;;  %s1790_s11 = inlined_call_operand.vmem [shape: f32[1,128], index: 11, kind: input, shape index: {}]   ;;  %s1791_s12 = inlined_call_operand.vmem [shape: f32[1,128], index: 12, kind: input, shape index: {}]   ;;  %s1792_s13 = inlined_call_operand.vmem [shape: bf16[128,128], index: 13, kind: input, shape index: {}]   ;;  %s1793_s14 = inlined_call_operand.vmem [shape: f32[1,128], index: 14, kind: input, shape index: {}]   ;;  %s1794_s15 = inlined_call_operand.vmem [shape: f32[2,8,128], index: 15, kind: output, shape index: {0}]   ;;  %s1795_s16 = inlined_call_operand.vmem [shape: f32[2,8,128], index: 16, kind: output, shape index: {1}]  }
   0x1   :  { %1796 = sst [smem:[#allocation2_spill]] %s1779_s0 }
   0x2 LB: > { %s1247_s22 = sadd.s32 4294967295, %s1474_s21   ;;  %p1251_p0 = scmp.ge.s32.totalorder %s1474_s21, 1  ;;  %s1474_s21 = sphi %s1563_s21, %s27_s21  }
   0x3   : > { %p465_p1 = scmp.lt.s32.totalorder %s1474_s21, 3 }
   0x5   : > { %p466_p2 = pnand %p1251_p0, %p465_p1 }
   0x6   : > { %v1422_v0 = vld [vmem:[%s1780_s1 + $0x40] sm:$0xff] (!%p466_p2)   ;;  %v1424_v2 = vld [vmem:[%s1780_s1 + $0x48] sm:$0xff] (!%p466_p2)   ;;  %p518_p3 = scmp.lt.s32.totalorder (!%p466_p2), %s1247_s22, 1  ;;  %v1426_v4 = vld [vmem:[%s1780_s1 + $0x50] sm:$0xff] (!%p466_p2)   ;;  %s1797_s0 = sld [smem:[#allocation2_spill]] (!%p466_p2)  ;;  %v1476_v21 = vmov (!%p466_p2), 0.0   ;;  %v733_v53 = vlaneseq (!%p466_p2) }
   0x7   : > { %469 = sbr.rel (%p466_p2) target bundleno = 1074 (0x432), region = 80  ;;  %v1423_v1 = vld [vmem:[%s1780_s1] sm:$0xff] (!%p466_p2)   ;;  %1303 = vmatprep.subr.bf16.mxu0 (!%p466_p2), %v1422_v0  ;;  %v1425_v3 = vld [vmem:[%s1780_s1 + $0x8] sm:$0xff] (!%p466_p2)   ;;  %v1427_v5 = vld [vmem:[%s1780_s1 + $0x10] sm:$0xff] (!%p466_p2)   ;;  %1352 = vmatprep.subr.bf16.mxu1 (!%p466_p2), %v1476_v21  ;;  %vm1477_vm0 = vmmov (!%p466_p2), 0  }
   0x8   : > { %1304 = vmatpush3.bf16.msra.mxu0 (!%p466_p2), %v1423_v1  ;;  %v1428_v6 = vld [vmem:[%s1780_s1 + $0x58] sm:$0xff] (!%p466_p2)   ;;  %v1430_v8 = vld [vmem:[%s1780_s1 + $0x60] sm:$0xff] (!%p466_p2)   ;;  %v1432_v10 = vld [vmem:[%s1780_s1 + $0x68] sm:$0xff] (!%p466_p2)   ;;  %1368 = vmatprep.mubr.msk.bf16.mxu1 (!%p466_p2), %vm1477_vm0, %v1476_v21  ;;  %v734_v54 = vshrl.u32 (!%p466_p2), %v733_v53, 7 }
   0x9   : > { %1305 = vmatprep.subr.bf16.mxu0 (!%p466_p2), %v1424_v2  ;;  %v1429_v7 = vld [vmem:[%s1780_s1 + $0x18] sm:$0xff] (!%p466_p2)   ;;  %v1431_v9 = vld [vmem:[%s1780_s1 + $0x20] sm:$0xff] (!%p466_p2)   ;;  %v1433_v12 = vld [vmem:[%s1780_s1 + $0x28] sm:$0xff] (!%p466_p2)  }
   0xa   : > { %v1434_v14 = vld [vmem:[%s1780_s1 + $0x70] sm:$0xff] (!%p466_p2)   ;;  %v1436_v16 = vld [vmem:[%s1780_s1 + $0x78] sm:$0xff] (!%p466_p2)   ;;  %v1438_v20 = vld [vmem:[%s1784_s5] sm:$0xff] (!%p466_p2)   ;;  %v1669_v56 = vsub.s32 (!%p466_p2), 0, %v734_v54 }
   0xb   : > { %v1435_v15 = vld [vmem:[%s1780_s1 + $0x30] sm:$0xff] (!%p466_p2)   ;;  %v1437_v17 = vld [vmem:[%s1780_s1 + $0x38] sm:$0xff] (!%p466_p2)   ;;  %1353 = vmatpush3.bf16.msra.mxu1 (!%p466_p2), %v1438_v20  ;;  %v1439_v22 = vld [vmem:[%s1784_s5 + $0x8] sm:$0xff] (!%p466_p2)  }
   0xc   : > { %1306 = vmatpush3.bf16.msra.mxu0 (!%p466_p2), %v1425_v3  ;;  %1354 = vmatprep.subr.bf16.mxu1 (!%p466_p2), %v1476_v21  ;;  %v1440_v23 = vld [vmem:[%s1784_s5 + $0x10] sm:$0xff] (!%p466_p2)   ;;  %v1441_v24 = vld [vmem:[%s1784_s5 + $0x18] sm:$0xff] (!%p466_p2)   ;;  %v1442_v25 = vld [vmem:[%s1784_s5 + $0x20] sm:$0xff] (!%p466_p2)  }
   0xd   : > { %1307 = vmatprep.subr.bf16.mxu0 (!%p466_p2), %v1426_v4  ;;  %v1443_v26 = vld [vmem:[%s1784_s5 + $0x28] sm:$0xff] (!%p466_p2)   ;;  %v1444_v27 = vld [vmem:[%s1784_s5 + $0x30] sm:$0xff] (!%p466_p2)   ;;  %v1445_v28 = vld [vmem:[%s1784_s5 + $0x38] sm:$0xff] (!%p466_p2)  }
   0xe   : > { %s1799_s22 = smov (!%p518_p3, %s1247_s22), 1  ;;  %v1256_v30 = vld [vmem:[%s1781_s2] ss:$0 sm:$0xff]  ;;  %v1460_v53 = vld [vmem:[%s1792_s13 + $0x30] sm:$0xff]   ;;  %v1461_v54 = vld [vmem:[%s1792_s13 + $0x38] sm:$0xff]  }
   0xf   : > { %s1302_s24 = sshll.u32 %s1799_s22, 4  ;;  %1355 = vmatpush3.bf16.msra.mxu1 %v1439_v22  ;;  %v728_v55 = vld [vmem:[%s1782_s3] sm:$0x1]  ;;  %s1254_s27 = sshll.u32 %s1799_s22, 3 }
  0x10   : > { %1308 = vmatpush3.bf16.msra.mxu0 %v1427_v5  ;;  %s522_s17 = scalar_lea.vmem %s1797_s0, %s1302_s24  ;;  %1356 = vmatprep.subr.bf16.mxu1 %v1476_v21  ;;  %v739_v59 = vld [vmem:[%s1783_s4] sm:$0x1]  ;;  %v1447_v5 = vld [vmem:[%s1788_s9 + $0x8] sm:$0xff]   ;;  %s526_s29 = scalar_lea.vmem %s1794_s15, %s1254_s27 }
  0x11   : > { %1309 = vmatprep.subr.bf16.mxu0 %v1428_v6  ;;  %v533_v11 = vld [vmem:[%s522_s17 + $0x8] sm:$0xff]  ;;  %v532_v18 = vld [vmem:[%s522_s17] sm:$0xff]  ;;  %v1448_v6 = vld [vmem:[%s1788_s9 + $0x10] sm:$0xff]   ;;  %s530_s18 = scalar_lea.vmem %s1795_s16, %s1254_s27 }
  0x12   : > { %v535_v13 = vpack.c.bf16 %v533_v11, %v533_v11  ;;  %v534_v19 = vpack.c.bf16 %v532_v18, %v532_v18  ;;  %v1446_v4 = vld [vmem:[%s1788_s9] sm:$0xff]   ;;  %v1453_v11 = vld [vmem:[%s1788_s9 + $0x38] sm:$0xff]  }
  0x13   : > { %1357 = vmatpush3.bf16.msra.mxu1 %v1440_v23 }
  0x14   : > { %1310 = vmatpush3.bf16.msra.mxu0 %v1429_v7  ;;  %703 = vmatprep.mubr.bf16.mxu0 %v535_v13  ;;  %v1449_v7 = vld [vmem:[%s1788_s9 + $0x18] sm:$0xff]  }
  0x15   : > { %1311 = vmatprep.subr.bf16.mxu0 %v1430_v8  ;;  %1358 = vmatprep.subr.bf16.mxu1 %v1476_v21  ;;  %v1450_v8 = vld [vmem:[%s1788_s9 + $0x20] sm:$0xff]  }
  0x17   : > { %1359 = vmatpush3.bf16.msra.mxu1 %v1441_v24 }
  0x18   : > { %1312 = vmatpush3.bf16.msra.mxu0 %v1431_v9  ;;  %1360 = vmatprep.subr.bf16.mxu1 %v1476_v21  ;;  %v1451_v9 = vld [vmem:[%s1788_s9 + $0x28] sm:$0xff]  }
  0x19   : > { %1313 = vmatprep.subr.bf16.mxu0 %v1432_v10  ;;  %v1452_v10 = vld [vmem:[%s1788_s9 + $0x30] sm:$0xff]  }
  0x1b   : > { %1361 = vmatpush3.bf16.msra.mxu1 %v1442_v25 }
  0x1c   : > { %1314 = vmatpush3.bf16.msra.mxu0 %v1433_v12  ;;  %1362 = vmatprep.subr.bf16.mxu1 %v1476_v21  ;;  %v1273_v12 = vld [vmem:[%s1785_s6] ss:$0 sm:$0xff] }
  0x1d   : > { %1315 = vmatprep.subr.bf16.mxu0 %v1434_v14 }
  0x1f   : > { %1363 = vmatpush3.bf16.msra.mxu1 %v1443_v26 }
  0x20   : > { %1316 = vmatpush3.bf16.msra.mxu0 %v1435_v15  ;;  %1364 = vmatprep.subr.bf16.mxu1 %v1476_v21 }
  0x21   : > { %1317 = vmatprep.subr.bf16.mxu0 %v1436_v16 }
  0x23   : > { %1365 = vmatpush3.bf16.msra.mxu1 %v1444_v27 }
  0x24   : > { %1318 = vmatpush3.bf16.msra.mxu0 %v1437_v17  ;;  %1366 = vmatprep.subr.bf16.mxu1 %v1476_v21 }
  0x25   : > { %1372 = vmatprep.subr.bf16.mxu0 %v1476_v21 }
  0x27   : > { %704 = vmatmul.mubr.bf16.vlgmr.msra.gmra.mrb[0].mxu0 %v534_v19  ;;  %1367 = vmatpush3.bf16.msra.mxu1 %v1445_v28 }
  0x28   : > { %1388 = vmatprep.mubr.msk.bf16.mxu0 %vm1477_vm0, %v1476_v21  ;;  %1392 = vmatprep.subr.bf16.mxu1 %v1476_v21 }
  0x29   : > { %1373 = vmatpush3.bf16.msra.mxu0 %v1446_v4 }
  0x2a   : > { %1374 = vmatprep.subr.bf16.mxu0 %v1476_v21 }
  0x2d   : > { %1375 = vmatpush3.bf16.msra.mxu0 %v1447_v5 }
  0x2e   : > { %1376 = vmatprep.subr.bf16.mxu0 %v1476_v21 }
  0x31   : > { %1377 = vmatpush3.bf16.msra.mxu0 %v1448_v6 }
  0x32   : > { %1378 = vmatprep.subr.bf16.mxu0 %v1476_v21 }
  0x35   : > { %1379 = vmatpush3.bf16.msra.mxu0 %v1449_v7 }
  0x36   : > { %1380 = vmatprep.subr.bf16.mxu0 %v1476_v21 }
  0x39   : > { %1381 = vmatpush3.bf16.msra.mxu0 %v1450_v8 }
  0x3a   : > { %1382 = vmatprep.subr.bf16.mxu0 %v1476_v21 }
  0x3d   : > { %1383 = vmatpush3.bf16.msra.mxu0 %v1451_v9 }
  0x3e   : > { %1384 = vmatprep.subr.bf16.mxu0 %v1476_v21 }
  0x41   : > { %1385 = vmatpush3.bf16.msra.mxu0 %v1452_v10 }
  0x42   : > { %1386 = vmatprep.subr.bf16.mxu0 %v1476_v21 }
  0x45   : > { %1387 = vmatpush3.bf16.msra.mxu0 %v1453_v11 }
  0xfa   : > { %v1319_v29 = vpop.f32.mrb[0].mxu0 }
  0xfb   : > { %v1320_v31 = vpop.f32.mrb[1].mxu0 }
  0xfc   : > { %v1321_v32 = vadd.f32 %v1320_v31, %v1319_v29  ;;  %v1322_v33 = vpop.f32.mrb[2].mxu0 }
  0xfd   : > { %v1323_v34 = vpop.f32.mrb[3].mxu0 }
  0xfe   : > { %v706_v35 = vadd.f32 %v1321_v32, %v1256_v30 }
 0x100   : > { %v711_v36 = vrot.slane %v706_v35, 4 }
 0x102   : > { %v712_v37 = vadd.f32 %v711_v36, %v706_v35  ;;  %v878_v36 = vld [vmem:[%s1786_s7] sm:$0x1] }
 0x104   : > { %v713_v38 = vrot.slane %v712_v37, 2 }
 0x106   : > { %v714_v39 = vadd.f32 %v713_v38, %v712_v37 }
 0x108   : > { %v715_v40 = vrot.slane %v714_v39, 1 }
 0x10a   : > { %v716_v41 = vadd.f32 %v715_v40, %v714_v39  ;;  %v889_v39 = vld [vmem:[%s1787_s8] sm:$0x1] }
 0x10c   : > { %v718_v42 = vmul.f32 0.125, %v716_v41 }
 0x10e   : > { %v719_v43 = vsub.f32 %v706_v35, %v718_v42 }
 0x110   : > { %v720_v44 = vmul.f32 %v719_v43, %v719_v43 }
 0x112   : > { %v721_v45 = vrot.slane %v720_v44, 4 }
 0x114   : > { %v722_v46 = vadd.f32 %v721_v45, %v720_v44 }
 0x116   : > { %v723_v47 = vrot.slane %v722_v46, 2 }
 0x118   : > { %v724_v48 = vadd.f32 %v723_v47, %v722_v46  ;;  %v1454_v47 = vld [vmem:[%s1792_s13] sm:$0xff]  }
 0x11a   : > { %v725_v49 = vrot.slane %v724_v48, 1 }
 0x11c   : > { %v726_v50 = vadd.f32 %v725_v49, %v724_v48  ;;  %v1455_v48 = vld [vmem:[%s1792_s13 + $0x8] sm:$0xff]   ;;  %v1456_v49 = vld [vmem:[%s1792_s13 + $0x10] sm:$0xff]  }
 0x11e   : > { %v727_v51 = vmul.f32 0.125, %v726_v50  ;;  %v1457_v50 = vld [vmem:[%s1792_s13 + $0x18] sm:$0xff]  }
 0x120   : > { %v729_v52 = vadd.f32 1e-05, %v727_v51  ;;  %v1458_v51 = vld [vmem:[%s1792_s13 + $0x20] sm:$0xff]  }
 0x122   : > { %1462 = vrsqrt.f32 %v729_v52  ;;  %v1459_v52 = vld [vmem:[%s1792_s13 + $0x28] sm:$0xff]  }
 0x12c   : > { %v1463_v57 = vpop.eup %1462 }
 0x12d   : > { %v731_v58 = vmul.f32 %v1463_v57, %v728_v55  ;;  %v1282_v55 = vld [vmem:[%s1789_s10] ss:$0 sm:$0xff] }
 0x12f   : > { %v736_v60 = vrot.slane %v731_v58, %v1669_v56  ;;  %v740_v61 = vmul.f32 %v731_v58, %v718_v42 }
 0x131   : > { %v741_v62 = vsub.f32 %v739_v59, %v740_v61  ;;  %v738_v63 = vmul.f32 %v736_v60, %v706_v35 }
 0x133   : > { %v746_v0 = vrot.slane %v741_v62, %v1669_v56 }
 0x135   : > { %v748_v1 = vadd.f32 %v746_v0, %v738_v63 }
 0x137   : > { %v749_v2 = vmax.f32 %v748_v1, 0.0 }
 0x139   : > { %v750_v3 = vpack.c.bf16 %v749_v2, %v749_v2 }
 0x13b   : > { %1369 = vmatmul.mubr.bf16.vlgmr.msra.gmra.mrb[0].mxu1 %v750_v3 }
 0x13c   : > { %1408 = vmatprep.mubr.msk.bf16.mxu1 %vm1477_vm0, %v1476_v21  ;;  %1393 = vmatpush3.bf16.msra.mxu1 %v1454_v47 }
 0x13d   : > { %1394 = vmatprep.subr.bf16.mxu1 %v1476_v21 }
 0x140   : > { %1395 = vmatpush3.bf16.msra.mxu1 %v1455_v48 }
 0x141   : > { %1396 = vmatprep.subr.bf16.mxu1 %v1476_v21 }
 0x144   : > { %1397 = vmatpush3.bf16.msra.mxu1 %v1456_v49 }
 0x145   : > { %1398 = vmatprep.subr.bf16.mxu1 %v1476_v21 }
 0x148   : > { %1399 = vmatpush3.bf16.msra.mxu1 %v1457_v50 }
 0x149   : > { %1400 = vmatprep.subr.bf16.mxu1 %v1476_v21 }
 0x14c   : > { %1401 = vmatpush3.bf16.msra.mxu1 %v1458_v51 }
 0x14d   : > { %1402 = vmatprep.subr.bf16.mxu1 %v1476_v21 }
 0x150   : > { %1403 = vmatpush3.bf16.msra.mxu1 %v1459_v52 }
 0x151   : > { %1404 = vmatprep.subr.bf16.mxu1 %v1476_v21 }
 0x154   : > { %1405 = vmatpush3.bf16.msra.mxu1 %v1460_v53 }
 0x155   : > { %1406 = vmatprep.subr.bf16.mxu1 %v1476_v21 }
 0x158   : > { %1407 = vmatpush3.bf16.msra.mxu1 %v1461_v54 }
 0x20e   : > { %v856_v13 = vpop.f32.mrb[0].mxu1 }
 0x20f   : > { %v857_v14 = vadd.f32 %v1273_v12, %v856_v13  ;;  %v1370_v15 = vpop.f32.mrb[1].mxu1 }
 0x210   : > { %v859_v16 = vpop.f32.mrb[2].mxu1 }
 0x211   : > { %v862_v17 = vrot.slane %v857_v14, 4  ;;  %v1371_v18 = vpop.f32.mrb[3].mxu1 }
 0x213   : > { %v863_v19 = vadd.f32 %v862_v17, %v857_v14  ;;  %v1038_v17 = vld [vmem:[%s1791_s12] sm:$0x1] }
 0x215   : > { %v864_v20 = vrot.slane %v863_v19, 2 }
 0x217   : > { %v865_v22 = vadd.f32 %v864_v20, %v863_v19 }
 0x219   : > { %v866_v23 = vrot.slane %v865_v22, 1 }
 0x21b   : > { %v867_v24 = vadd.f32 %v866_v23, %v865_v22 }
 0x21d   : > { %v868_v25 = vmul.f32 0.125, %v867_v24 }
 0x21f   : > { %v869_v26 = vsub.f32 %v857_v14, %v868_v25 }
 0x221   : > { %v870_v27 = vmul.f32 %v869_v26, %v869_v26 }
 0x223   : > { %v871_v28 = vrot.slane %v870_v27, 4 }
 0x225   : > { %v872_v29 = vadd.f32 %v871_v28, %v870_v27  ;;  %v1291_v27 = vld [vmem:[%s1793_s14] ss:$0 sm:$0xff] }
 0x227   : > { %v873_v30 = vrot.slane %v872_v29, 2 }
 0x229   : > { %v874_v31 = vadd.f32 %v873_v30, %v872_v29 }
 0x22b   : > { %v875_v32 = vrot.slane %v874_v31, 1 }
 0x22d   : > { %v876_v33 = vadd.f32 %v875_v32, %v874_v31 }
 0x22f   : > { %v877_v34 = vmul.f32 0.125, %v876_v33 }
 0x231   : > { %v879_v35 = vadd.f32 1e-05, %v877_v34 }
 0x233   : > { %1464 = vrsqrt.f32 %v879_v35 }
 0x23d   : > { %v1465_v37 = vpop.eup %1464 }
 0x23e   : > { %v881_v38 = vmul.f32 %v1465_v37, %v878_v36 }
 0x240   : > { %v886_v40 = vrot.slane %v881_v38, %v1669_v56  ;;  %v890_v41 = vmul.f32 %v881_v38, %v868_v25 }
 0x242   : > { %v891_v42 = vsub.f32 %v889_v39, %v890_v41  ;;  %v888_v43 = vmul.f32 %v886_v40, %v857_v14  ;;  %v1027_v14 = vld [vmem:[%s1790_s11] sm:$0x1] }
 0x244   : > { %v896_v44 = vrot.slane %v891_v42, %v1669_v56 }
 0x246   : > { %v898_v45 = vadd.f32 %v896_v44, %v888_v43 }
 0x248   : > { %v899_v46 = vpack.c.bf16 %v898_v45, %v898_v45  ;;  %1161 = vst [vmem:[%s526_s29] sm:$0xff] %v898_v45 }
 0x24a   : > { %1389 = vmatmul.mubr.bf16.vlgmr.msra.gmra.mrb[4].mxu0 %v899_v46 }
 0x31d   : > { %v1005_v57 = vpop.f32.mrb[4].mxu0 }
 0x31e   : > { %v1006_v58 = vadd.f32 %v1282_v55, %v1005_v57  ;;  %v1390_v59 = vpop.f32.mrb[5].mxu0 }
 0x31f   : > { %v1008_v60 = vpop.f32.mrb[6].mxu0 }
 0x320   : > { %v1011_v61 = vrot.slane %v1006_v58, 4  ;;  %v1391_v62 = vpop.f32.mrb[7].mxu0 }
 0x322   : > { %v1012_v63 = vadd.f32 %v1011_v61, %v1006_v58 }
 0x324   : > { %v1013_v0 = vrot.slane %v1012_v63, 2 }
 0x326   : > { %v1014_v1 = vadd.f32 %v1013_v0, %v1012_v63 }
 0x328   : > { %v1015_v2 = vrot.slane %v1014_v1, 1 }
 0x32a   : > { %v1016_v3 = vadd.f32 %v1015_v2, %v1014_v1 }
 0x32c   : > { %v1017_v4 = vmul.f32 0.125, %v1016_v3 }
 0x32e   : > { %v1018_v5 = vsub.f32 %v1006_v58, %v1017_v4 }
 0x330   : > { %v1019_v6 = vmul.f32 %v1018_v5, %v1018_v5 }
 0x332   : > { %v1020_v21 = vrot.slane %v1019_v6, 4 }
 0x334   : > { %v1021_v7 = vadd.f32 %v1020_v21, %v1019_v6 }
 0x336   : > { %v1022_v8 = vrot.slane %v1021_v7, 2 }
 0x338   : > { %v1023_v9 = vadd.f32 %v1022_v8, %v1021_v7 }
 0x33a   : > { %v1024_v10 = vrot.slane %v1023_v9, 1 }
 0x33c   : > { %v1025_v11 = vadd.f32 %v1024_v10, %v1023_v9 }
 0x33e   : > { %v1026_v12 = vmul.f32 0.125, %v1025_v11 }
 0x340   : > { %v1028_v13 = vadd.f32 1e-05, %v1026_v12 }
 0x342   : > { %1466 = vrsqrt.f32 %v1028_v13 }
 0x34c   : > { %v1467_v15 = vpop.eup %1466 }
 0x34d   : > { %v1030_v16 = vmul.f32 %v1467_v15, %v1027_v14 }
 0x34f   : > { %v1035_v18 = vrot.slane %v1030_v16, %v1669_v56  ;;  %v1039_v19 = vmul.f32 %v1030_v16, %v1017_v4 }
 0x351   : > { %v1040_v20 = vsub.f32 %v1038_v17, %v1039_v19  ;;  %v1037_v22 = vmul.f32 %v1035_v18, %v1006_v58 }
 0x353   : > { %v1045_v23 = vrot.slane %v1040_v20, %v1669_v56 }
 0x355   : > { %v1047_v24 = vadd.f32 %v1045_v23, %v1037_v22 }
 0x357   : > { %v1048_v25 = vmax.f32 %v1047_v24, 0.0 }
 0x359   : > { %v1049_v26 = vpack.c.bf16 %v1048_v25, %v1048_v25 }
 0x35b   : > { %1409 = vmatmul.mubr.bf16.vlgmr.msra.gmra.mrb[4].mxu1 %v1049_v26 }
 0x42e   : > { %v1155_v28 = vpop.f32.mrb[4].mxu1 }
 0x42f   : > { %v1156_v29 = vadd.f32 %v1291_v27, %v1155_v28  ;;  %v1410_v30 = vpop.f32.mrb[5].mxu1 }
 0x430   : > { %v1158_v31 = vpop.f32.mrb[6].mxu1 }
 0x431   : > { %1162 = vst [vmem:[%s530_s18] sm:$0xff] %v1156_v29  ;;  %v1411_v32 = vpop.f32.mrb[7].mxu1 }
 0x432 PF: > { %s27_s21 = sadd.s32 1, %s1474_s21  }
 0x433   : > { %p24_p4 = scmp.ge.s32.totalorder %s27_s21, 4  }
 0x435   :  { %26 = sbr.rel (!%p24_p4) target bundleno = 2 (0x2), region = 122 }

// kernel: simsiam_head_forward.5
= control target key start
LH: loop header
LB: loop body
LE: loop exit
PB: predicated region body
PF: predicated region fallthrough
CT: control target
= control target key end

     0   :  { %s149_s0 = inlined_call_operand.vmem [shape: f32[2,8,128], index: 0, kind: input, shape index: {}]   ;;  %s150_s1 = inlined_call_operand.vmem [shape: f32[2,8,128], index: 1, kind: input, shape index: {}]   ;;  %s151_s2 = inlined_call_operand.hbm [shape: f32[1,1], index: 2, kind: output, shape index: {}]  }
   0x1   :  { %v79_v0 = vld [vmem:[%s150_s1 + $0x8] sm:$0xff]  ;;  %v15_v1 = vld [vmem:[%s150_s1] sm:$0xff] }
   0x2   :  { %v78_v2 = vld [vmem:[%s149_s0 + $0x8] sm:$0xff]  ;;  %v39_v3 = vmul.f32 %v79_v0, %v79_v0  ;;  %v18_v4 = vmul.f32 %v15_v1, %v15_v1  ;;  %v12_v5 = vld [vmem:[%s149_s0] sm:$0xff] }
   0x3   :  { %7 = vsyncpa [#allocation3], 0  ;;  %v21_v6 = vmul.f32 %v78_v2, %v78_v2  ;;  %v42_v7 = vmul.f32 %v12_v5, %v12_v5  ;;  %v28_v8 = vmul.f32 %v78_v2, %v15_v1  ;;  %v49_v9 = vmul.f32 %v79_v0, %v12_v5  ;;  %s109_s0 = smov [#allocation2]  }
   0x4   :  { %40 = vadd.xlane.f32.xlu1 %v39_v3  ;;  %19 = vadd.xlane.f32.xlu0 %v18_v4  ;;  %s70_s1 = sshll.u32 %s109_s0, 4  ;;  %vm62_vm0 = vcmask 0   ;;  %s71_s1 = int_to_ptr.vmem [resolvable:$true] %s70_s1 }
   0x5   :  { %s85_s17 = scalar_lea.vmem %s71_s1, 16  ;;  %s89_s18 = scalar_lea.vmem %s71_s1, 32 }
   0x6   :  { %p86_p0 = scmp.ne.s32.totalorder %s71_s1, %s85_s17  ;;  %p90_p1 = scmp.lt.s32.totalorder %s71_s1, %s71_s1 }
   0x7   :  { %p91_p2 = scmp.lt.s32.totalorder %s89_s18, %s85_s17 }
   0x8   :  { %22 = vadd.xlane.f32.xlu0 %v21_v6  ;;  %43 = vadd.xlane.f32.xlu1 %v42_v7 }
   0x9   :  { %p92_p3 = por %p91_p2, %p90_p1 }
   0xb   :  { %p93_p4 = pnand %p92_p3, %p86_p0 }
   0xc   :  { %29 = vadd.xlane.f32.xlu0 %v28_v8  ;;  %50 = vadd.xlane.f32.xlu1 %v49_v9 }
  0x91   :  { %v41_v10 = vpop.xlane.xlu1 %40  ;;  %v20_v11 = vpop.xlane.xlu0 %19 }
  0x92   :  { %v45_v12 = vmax.f32 %v41_v10, 1e-16  ;;  %v24_v15 = vmax.f32 %v20_v11, 1e-16 }
  0x95   :  { %v23_v13 = vpop.xlane.xlu0 %22  ;;  %v44_v14 = vpop.xlane.xlu1 %43 }
  0x96   :  { %v25_v16 = vmax.f32 %v23_v13, 1e-16  ;;  %v46_v17 = vmax.f32 %v44_v14, 1e-16 }
  0x98   :  { %v26_v18 = vmul.f32 %v25_v16, %v24_v15  ;;  %v47_v19 = vmul.f32 %v46_v17, %v45_v12 }
  0x99   :  { %v30_v20 = vpop.xlane.xlu0 %29  ;;  %v51_v21 = vpop.xlane.xlu1 %50 }
  0x9a   :  { %81 = vrsqrt.f32 %v26_v18 }
  0x9b   :  { %83 = vrsqrt.f32 %v47_v19 }
  0xa4   :  { %v82_v22 = vpop.eup %81 }
  0xa5   :  { %v84_v23 = vpop.eup %83  ;;  %v31_v24 = vmul.f32 %v82_v22, %v30_v20 }
  0xa6   :  { %v52_v25 = vmul.f32 %v84_v23, %v51_v21 }
  0xa7   :  { %v32_v26 = vrot.slane %v31_v24, 4 }
  0xa8   :  { %v53_v27 = vrot.slane %v52_v25, 4 }
  0xa9   :  { %v33_v28 = vadd.f32 %v32_v26, %v31_v24 }
  0xaa   :  { %v54_v29 = vadd.f32 %v53_v27, %v52_v25 }
  0xab   :  { %v34_v30 = vrot.slane %v33_v28, 2 }
  0xac   :  { %v55_v31 = vrot.slane %v54_v29, 2 }
  0xad   :  { %v35_v32 = vadd.f32 %v34_v30, %v33_v28 }
  0xae   :  { %v56_v33 = vadd.f32 %v55_v31, %v54_v29 }
  0xaf   :  { %v36_v34 = vrot.slane %v35_v32, 1 }
  0xb0   :  { %v57_v35 = vrot.slane %v56_v33, 1 }
  0xb1   :  { %v37_v36 = vadd.f32 %v36_v34, %v35_v32 }
  0xb2   :  { %v58_v37 = vadd.f32 %v57_v35, %v56_v33 }
  0xb3   :  { %v38_v38 = vsub.f32 0.0, %v37_v36 }
  0xb4   :  { %v59_v39 = vsub.f32 0.0, %v58_v37 }
  0xb6   :  { %v60_v40 = vadd.f32 %v59_v39, %v38_v38 }
  0xb8   :  { %v61_v41 = vmul.f32 0.0625, %v60_v40 }
  0xba   :  { %63 = vst.msk [vmem:[#allocation2] sm:$0x1] %vm62_vm0, %v61_v41 }
  0xbb   :  { %96 = shalt.err (!%p93_p4)
}
  0xbc   :  { %s97_s21 = scalar_lea.hbm %s151_s2, 16 }
  0xbd   :  { %p98_p5 = scmp.ne.s32.totalorder %s151_s2, %s97_s21  ;;  %p101_p6 = scmp.lt.u32.totalorder %s97_s21, %s151_s2 }
  0xbf   :  { %p103_p7 = pnand %p101_p6, %p98_p5 }
  0xc1   :  { %106 = shalt.err (!%p103_p7)
}
  0xc2   :  { %73 = dma.vmem_to_hbm [thread:$0]  %s71_s1, 16, %s151_s2, [#allocation3]  }
  0xc3   :  { %107 = dma.done.wait [#allocation3], 16  }
  0xc4   :  { %108 = vsyncadd [#allocation3], 4294967280 }
  0xc5   :  { %77 = vsyncpa [#allocation3], 1 }

// kernel: simsiam_head_forward.3
= control target key start
LH: loop header
LB: loop body
LE: loop exit
PB: predicated region body
PF: predicated region fallthrough
CT: control target
= control target key end

     0   :  { %s6416_s9 = smov 0   ;;  %s6418_s10 = smov 0   ;;  %s8114_s0 = inlined_call_operand.vmem [shape: bf16[8,256,256], index: 0, kind: input, shape index: {}]   ;;  %s8115_s1 = inlined_call_operand.vmem [shape: bf16[8,256,256], index: 1, kind: input, shape index: {}]   ;;  %s8116_s2 = inlined_call_operand.vmem [shape: f32[2,8,256], index: 2, kind: output, shape index: {}]  }
   0x1   :  { %s6420_s11 = smov 0   ;;  %s6422_s12 = smov 0  }
   0x2   :  { %s6424_s13 = smov 0   ;;  %s6426_s14 = smov 0  }
   0x3   :  { %s6428_s15 = smov 0   ;;  %s6430_s16 = smov 0  }
   0x4   :  { %s6432_s17 = smov 0  }
   0x5 LB: > { %s24_s18 = sadd.s32 1, %s6390_s15  ;;  %s27_s19 = sadd.s32 1, %s6394_s16  ;;  %s6398_s17 = sphi %s6432_s17, %s12_s17   ;;  %s6394_s16 = sphi %s6430_s16, %s8146_s16   ;;  %s6390_s15 = sphi %s6428_s15, %s8145_s15   ;;  %s6386_s14 = sphi %s6426_s14, %s8144_s14   ;;  %s6382_s13 = sphi %s6424_s13, %s8143_s13   ;;  %s6378_s12 = sphi %s6422_s12, %s8142_s12   ;;  %s6374_s11 = sphi %s6420_s11, %s8141_s11   ;;  %s6370_s10 = sphi %s6418_s10, %s8140_s10   ;;  %s6366_s9 = sphi %s6416_s9, %s8139_s9  }
   0x6   : > { %p25_p0 = scmp.ge.s32.totalorder %s24_s18, 2  ;;  %p49_p1 = scmp.ne.s32.totalorder %s6378_s12, %s6374_s11 }
   0x7   : > { %s5593_s20 = sadd.s32 4294967295, %s6398_s17   ;;  %p50_p2 = scmp.eq.s32.totalorder %s6398_s17, 0 }
   0x8   : > { %s8148_s18 = smov (%p25_p0, %s24_s18), 0  ;;  %s8150_s19 = smov (!%p25_p0, %s27_s19), %s6394_s16 }
   0x9   : > { %p29_p3 = scmp.ge.s32.totalorder %s8150_s19, 2  ;;  %s38_s21 = ssub.s32 %s6390_s15, %s8148_s18 }
   0xa   : > { %p6472_p4 = por %p50_p2, %p49_p1  ;;  %p110_p5 = scmp.ne.s32.totalorder %s6370_s10, %s6366_s9 }
   0xb   : > { %s8152_s19 = smov (%p29_p3, %s8150_s19), 0  ;;  %s42_s23 = sadd.s32 1, %s6378_s12 }
   0xc   : > { %p111_p6 = scmp.eq.s32.totalorder %s5593_s20, 3  ;;  %s36_s24 = ssub.s32 %s6394_s16, %s8152_s19 }
   0xd   : > { %s100_s25 = sadd.s32 1, %s6370_s10  ;;  %s39_s26 = sor.u32 %s38_s21, %s36_s24 }
   0xe   : > { %p98_p7 = scmp.eq.s32.totalorder %s36_s24, 0  ;;  %p40_p8 = scmp.eq.s32.totalorder %s39_s26, 0 }
   0xf   : > { %p6484_p9 = por %p111_p6, %p110_p5  ;;  %p5596_p10 = scmp.ge.s32.totalorder %s6398_s17, 4 }
  0x10   : > { %s6489_s28 = scalar_select %p98_p7, %s6370_s10, %s100_s25  }
  0x11   : > { %s6492_s29 = scalar_select %p40_p8, %s6378_s12, %s42_s23  }
  0x12   : > { %133 = sbr.rel (%p5596_p10) target bundleno = 207 (0xcf), region = 16 }
  0x19   : > { %136 = sbr.rel (!%p6472_p4) target bundleno = 116 (0x74), region = 20  ;;  %s138_s30 = sand.u32 (%p6472_p4), 1, %s6378_s12  }
  0x1a   : > { %s5615_s3 = sshll.u32 (%p6472_p4), %s6394_s16, 5  ;;  %s5597_s4 = sshll.u32 (%p6472_p4), %s138_s30, 9 }
  0x1b   : > { %s144_s5 = sadd.s32 (%p6472_p4), %s6390_s15, %s5615_s3  ;;  %s6508_s21 = scalar_lea.vmem (%p6472_p4), [#allocation3], %s5597_s4 }
  0x1c   : > { %s5600_s6 = sshll.u32 (%p6472_p4), %s144_s5, 2 }
  0x1d   : > { %s6503_s20 = scalar_lea.vmem (%p6472_p4), %s8114_s0, %s5600_s6 }
  0x1e   : > { %v164_v0 = vld [vmem:[%s6503_s20] sm:$0xf] (%p6472_p4)  ;;  %v166_v1 = vld [vmem:[%s6503_s20 + $0x8] sm:$0xf] (%p6472_p4)  ;;  %v168_v2 = vld [vmem:[%s6503_s20 + $0x10] sm:$0xf] (%p6472_p4) }
  0x1f   : > { %165 = vst [vmem:[%s6508_s21] sm:$0xf] (%p6472_p4), %v164_v0  ;;  %167 = vst [vmem:[%s6508_s21 + $0x4] sm:$0xf] (%p6472_p4), %v166_v1  ;;  %v170_v3 = vld [vmem:[%s6503_s20 + $0x18] sm:$0xf] (%p6472_p4) }
  0x20   : > { %169 = vst [vmem:[%s6508_s21 + $0x8] sm:$0xf] %v168_v2  ;;  %v172_v4 = vld [vmem:[%s6503_s20 + $0x20] sm:$0xf]  ;;  %v174_v5 = vld [vmem:[%s6503_s20 + $0x28] sm:$0xf] }
  0x21   : > { %171 = vst [vmem:[%s6508_s21 + $0xc] sm:$0xf] %v170_v3  ;;  %173 = vst [vmem:[%s6508_s21 + $0x10] sm:$0xf] %v172_v4  ;;  %v176_v6 = vld [vmem:[%s6503_s20 + $0x30] sm:$0xf] }
  0x22   : > { %175 = vst [vmem:[%s6508_s21 + $0x14] sm:$0xf] %v174_v5  ;;  %v178_v7 = vld [vmem:[%s6503_s20 + $0x38] sm:$0xf]  ;;  %v180_v8 = vld [vmem:[%s6503_s20 + $0x40] sm:$0xf] }
  0x23   : > { %177 = vst [vmem:[%s6508_s21 + $0x18] sm:$0xf] %v176_v6  ;;  %179 = vst [vmem:[%s6508_s21 + $0x1c] sm:$0xf] %v178_v7  ;;  %v182_v9 = vld [vmem:[%s6503_s20 + $0x48] sm:$0xf] }
  0x24   : > { %181 = vst [vmem:[%s6508_s21 + $0x20] sm:$0xf] %v180_v8  ;;  %v184_v10 = vld [vmem:[%s6503_s20 + $0x50] sm:$0xf]  ;;  %v186_v11 = vld [vmem:[%s6503_s20 + $0x58] sm:$0xf] }
  0x25   : > { %183 = vst [vmem:[%s6508_s21 + $0x24] sm:$0xf] %v182_v9  ;;  %185 = vst [vmem:[%s6508_s21 + $0x28] sm:$0xf] %v184_v10  ;;  %v188_v12 = vld [vmem:[%s6503_s20 + $0x60] sm:$0xf] }
  0x26   : > { %187 = vst [vmem:[%s6508_s21 + $0x2c] sm:$0xf] %v186_v11  ;;  %v190_v13 = vld [vmem:[%s6503_s20 + $0x68] sm:$0xf]  ;;  %v192_v14 = vld [vmem:[%s6503_s20 + $0x70] sm:$0xf] }
  0x27   : > { %189 = vst [vmem:[%s6508_s21 + $0x30] sm:$0xf] %v188_v12  ;;  %191 = vst [vmem:[%s6508_s21 + $0x34] sm:$0xf] %v190_v13  ;;  %v194_v15 = vld [vmem:[%s6503_s20 + $0x78] sm:$0xf] }
  0x28   : > { %193 = vst [vmem:[%s6508_s21 + $0x38] sm:$0xf] %v192_v14  ;;  %v196_v16 = vld [vmem:[%s6503_s20 + $0x100] sm:$0xf]  ;;  %v198_v17 = vld [vmem:[%s6503_s20 + $0x108] sm:$0xf] }
  0x29   : > { %195 = vst [vmem:[%s6508_s21 + $0x3c] sm:$0xf] %v194_v15  ;;  %197 = vst [vmem:[%s6508_s21 + $0x40] sm:$0xf] %v196_v16  ;;  %v200_v18 = vld [vmem:[%s6503_s20 + $0x110] sm:$0xf] }
  0x2a   : > { %199 = vst [vmem:[%s6508_s21 + $0x44] sm:$0xf] %v198_v17  ;;  %v202_v19 = vld [vmem:[%s6503_s20 + $0x118] sm:$0xf]  ;;  %v204_v20 = vld [vmem:[%s6503_s20 + $0x120] sm:$0xf] }
  0x2b   : > { %201 = vst [vmem:[%s6508_s21 + $0x48] sm:$0xf] %v200_v18  ;;  %203 = vst [vmem:[%s6508_s21 + $0x4c] sm:$0xf] %v202_v19  ;;  %v206_v21 = vld [vmem:[%s6503_s20 + $0x128] sm:$0xf] }
  0x2c   : > { %205 = vst [vmem:[%s6508_s21 + $0x50] sm:$0xf] %v204_v20  ;;  %v208_v22 = vld [vmem:[%s6503_s20 + $0x130] sm:$0xf]  ;;  %v210_v23 = vld [vmem:[%s6503_s20 + $0x138] sm:$0xf] }
  0x2d   : > { %207 = vst [vmem:[%s6508_s21 + $0x54] sm:$0xf] %v206_v21  ;;  %209 = vst [vmem:[%s6508_s21 + $0x58] sm:$0xf] %v208_v22  ;;  %v212_v24 = vld [vmem:[%s6503_s20 + $0x140] sm:$0xf] }
  0x2e   : > { %211 = vst [vmem:[%s6508_s21 + $0x5c] sm:$0xf] %v210_v23  ;;  %v214_v25 = vld [vmem:[%s6503_s20 + $0x148] sm:$0xf]  ;;  %v216_v26 = vld [vmem:[%s6503_s20 + $0x150] sm:$0xf] }
  0x2f   : > { %213 = vst [vmem:[%s6508_s21 + $0x60] sm:$0xf] %v212_v24  ;;  %215 = vst [vmem:[%s6508_s21 + $0x64] sm:$0xf] %v214_v25  ;;  %v218_v27 = vld [vmem:[%s6503_s20 + $0x158] sm:$0xf] }
  0x30   : > { %217 = vst [vmem:[%s6508_s21 + $0x68] sm:$0xf] %v216_v26  ;;  %v220_v28 = vld [vmem:[%s6503_s20 + $0x160] sm:$0xf]  ;;  %v222_v29 = vld [vmem:[%s6503_s20 + $0x168] sm:$0xf] }
  0x31   : > { %219 = vst [vmem:[%s6508_s21 + $0x6c] sm:$0xf] %v218_v27  ;;  %221 = vst [vmem:[%s6508_s21 + $0x70] sm:$0xf] %v220_v28  ;;  %v224_v30 = vld [vmem:[%s6503_s20 + $0x170] sm:$0xf] }
  0x32   : > { %223 = vst [vmem:[%s6508_s21 + $0x74] sm:$0xf] %v222_v29  ;;  %v226_v31 = vld [vmem:[%s6503_s20 + $0x178] sm:$0xf]  ;;  %v228_v32 = vld [vmem:[%s6503_s20 + $0x200] sm:$0xf] }
  0x33   : > { %225 = vst [vmem:[%s6508_s21 + $0x78] sm:$0xf] %v224_v30  ;;  %227 = vst [vmem:[%s6508_s21 + $0x7c] sm:$0xf] %v226_v31  ;;  %v230_v33 = vld [vmem:[%s6503_s20 + $0x208] sm:$0xf] }
  0x34   : > { %229 = vst [vmem:[%s6508_s21 + $0x80] sm:$0xf] %v228_v32  ;;  %v232_v34 = vld [vmem:[%s6503_s20 + $0x210] sm:$0xf]  ;;  %v234_v35 = vld [vmem:[%s6503_s20 + $0x218] sm:$0xf] }
  0x35   : > { %231 = vst [vmem:[%s6508_s21 + $0x84] sm:$0xf] %v230_v33  ;;  %233 = vst [vmem:[%s6508_s21 + $0x88] sm:$0xf] %v232_v34  ;;  %v236_v36 = vld [vmem:[%s6503_s20 + $0x220] sm:$0xf] }
  0x36   : > { %235 = vst [vmem:[%s6508_s21 + $0x8c] sm:$0xf] %v234_v35  ;;  %v238_v37 = vld [vmem:[%s6503_s20 + $0x228] sm:$0xf]  ;;  %v240_v38 = vld [vmem:[%s6503_s20 + $0x230] sm:$0xf] }
  0x37   : > { %237 = vst [vmem:[%s6508_s21 + $0x90] sm:$0xf] %v236_v36  ;;  %239 = vst [vmem:[%s6508_s21 + $0x94] sm:$0xf] %v238_v37  ;;  %v242_v39 = vld [vmem:[%s6503_s20 + $0x238] sm:$0xf] }
  0x38   : > { %241 = vst [vmem:[%s6508_s21 + $0x98] sm:$0xf] %v240_v38  ;;  %v244_v40 = vld [vmem:[%s6503_s20 + $0x240] sm:$0xf]  ;;  %v246_v41 = vld [vmem:[%s6503_s20 + $0x248] sm:$0xf] }
  0x39   : > { %243 = vst [vmem:[%s6508_s21 + $0x9c] sm:$0xf] %v242_v39  ;;  %245 = vst [vmem:[%s6508_s21 + $0xa0] sm:$0xf] %v244_v40  ;;  %v248_v42 = vld [vmem:[%s6503_s20 + $0x250] sm:$0xf] }
  0x3a   : > { %247 = vst [vmem:[%s6508_s21 + $0xa4] sm:$0xf] %v246_v41  ;;  %v250_v43 = vld [vmem:[%s6503_s20 + $0x258] sm:$0xf]  ;;  %v252_v44 = vld [vmem:[%s6503_s20 + $0x260] sm:$0xf] }
  0x3b   : > { %249 = vst [vmem:[%s6508_s21 + $0xa8] sm:$0xf] %v248_v42  ;;  %251 = vst [vmem:[%s6508_s21 + $0xac] sm:$0xf] %v250_v43  ;;  %v254_v45 = vld [vmem:[%s6503_s20 + $0x268] sm:$0xf] }
  0x3c   : > { %253 = vst [vmem:[%s6508_s21 + $0xb0] sm:$0xf] %v252_v44  ;;  %v256_v46 = vld [vmem:[%s6503_s20 + $0x270] sm:$0xf]  ;;  %v258_v47 = vld [vmem:[%s6503_s20 + $0x278] sm:$0xf] }
  0x3d   : > { %255 = vst [vmem:[%s6508_s21 + $0xb4] sm:$0xf] %v254_v45  ;;  %257 = vst [vmem:[%s6508_s21 + $0xb8] sm:$0xf] %v256_v46  ;;  %v260_v48 = vld [vmem:[%s6503_s20 + $0x300] sm:$0xf] }
  0x3e   : > { %259 = vst [vmem:[%s6508_s21 + $0xbc] sm:$0xf] %v258_v47  ;;  %v262_v49 = vld [vmem:[%s6503_s20 + $0x308] sm:$0xf]  ;;  %v264_v50 = vld [vmem:[%s6503_s20 + $0x310] sm:$0xf] }
  0x3f   : > { %261 = vst [vmem:[%s6508_s21 + $0xc0] sm:$0xf] %v260_v48  ;;  %263 = vst [vmem:[%s6508_s21 + $0xc4] sm:$0xf] %v262_v49  ;;  %v266_v51 = vld [vmem:[%s6503_s20 + $0x318] sm:$0xf] }
  0x40   : > { %265 = vst [vmem:[%s6508_s21 + $0xc8] sm:$0xf] %v264_v50  ;;  %v268_v52 = vld [vmem:[%s6503_s20 + $0x320] sm:$0xf]  ;;  %v270_v53 = vld [vmem:[%s6503_s20 + $0x328] sm:$0xf] }
  0x41   : > { %267 = vst [vmem:[%s6508_s21 + $0xcc] sm:$0xf] %v266_v51  ;;  %269 = vst [vmem:[%s6508_s21 + $0xd0] sm:$0xf] %v268_v52  ;;  %v272_v54 = vld [vmem:[%s6503_s20 + $0x330] sm:$0xf] }
  0x42   : > { %271 = vst [vmem:[%s6508_s21 + $0xd4] sm:$0xf] %v270_v53  ;;  %v274_v55 = vld [vmem:[%s6503_s20 + $0x338] sm:$0xf]  ;;  %v276_v56 = vld [vmem:[%s6503_s20 + $0x340] sm:$0xf] }
  0x43   : > { %273 = vst [vmem:[%s6508_s21 + $0xd8] sm:$0xf] %v272_v54  ;;  %275 = vst [vmem:[%s6508_s21 + $0xdc] sm:$0xf] %v274_v55  ;;  %v278_v57 = vld [vmem:[%s6503_s20 + $0x348] sm:$0xf] }
  0x44   : > { %277 = vst [vmem:[%s6508_s21 + $0xe0] sm:$0xf] %v276_v56  ;;  %v280_v58 = vld [vmem:[%s6503_s20 + $0x350] sm:$0xf]  ;;  %v282_v59 = vld [vmem:[%s6503_s20 + $0x358] sm:$0xf] }
  0x45   : > { %279 = vst [vmem:[%s6508_s21 + $0xe4] sm:$0xf] %v278_v57  ;;  %281 = vst [vmem:[%s6508_s21 + $0xe8] sm:$0xf] %v280_v58  ;;  %v284_v60 = vld [vmem:[%s6503_s20 + $0x360] sm:$0xf] }
  0x46   : > { %283 = vst [vmem:[%s6508_s21 + $0xec] sm:$0xf] %v282_v59  ;;  %v286_v61 = vld [vmem:[%s6503_s20 + $0x368] sm:$0xf]  ;;  %v288_v62 = vld [vmem:[%s6503_s20 + $0x370] sm:$0xf] }
  0x47   : > { %285 = vst [vmem:[%s6508_s21 + $0xf0] sm:$0xf] %v284_v60  ;;  %287 = vst [vmem:[%s6508_s21 + $0xf4] sm:$0xf] %v286_v61  ;;  %v290_v63 = vld [vmem:[%s6503_s20 + $0x378] sm:$0xf] }
  0x48   : > { %289 = vst [vmem:[%s6508_s21 + $0xf8] sm:$0xf] %v288_v62  ;;  %v292_v0 = vld [vmem:[%s6503_s20 + $0x400] sm:$0xf]  ;;  %v294_v1 = vld [vmem:[%s6503_s20 + $0x408] sm:$0xf] }
  0x49   : > { %291 = vst [vmem:[%s6508_s21 + $0xfc] sm:$0xf] %v290_v63  ;;  %293 = vst [vmem:[%s6508_s21 + $0x100] sm:$0xf] %v292_v0  ;;  %v296_v2 = vld [vmem:[%s6503_s20 + $0x410] sm:$0xf] }
  0x4a   : > { %295 = vst [vmem:[%s6508_s21 + $0x104] sm:$0xf] %v294_v1  ;;  %v298_v3 = vld [vmem:[%s6503_s20 + $0x418] sm:$0xf]  ;;  %v300_v4 = vld [vmem:[%s6503_s20 + $0x420] sm:$0xf] }
  0x4b   : > { %297 = vst [vmem:[%s6508_s21 + $0x108] sm:$0xf] %v296_v2  ;;  %299 = vst [vmem:[%s6508_s21 + $0x10c] sm:$0xf] %v298_v3  ;;  %v302_v5 = vld [vmem:[%s6503_s20 + $0x428] sm:$0xf] }
  0x4c   : > { %301 = vst [vmem:[%s6508_s21 + $0x110] sm:$0xf] %v300_v4  ;;  %v304_v6 = vld [vmem:[%s6503_s20 + $0x430] sm:$0xf]  ;;  %v306_v7 = vld [vmem:[%s6503_s20 + $0x438] sm:$0xf] }
  0x4d   : > { %303 = vst [vmem:[%s6508_s21 + $0x114] sm:$0xf] %v302_v5  ;;  %305 = vst [vmem:[%s6508_s21 + $0x118] sm:$0xf] %v304_v6  ;;  %v308_v8 = vld [vmem:[%s6503_s20 + $0x440] sm:$0xf] }
  0x4e   : > { %307 = vst [vmem:[%s6508_s21 + $0x11c] sm:$0xf] %v306_v7  ;;  %v310_v9 = vld [vmem:[%s6503_s20 + $0x448] sm:$0xf]  ;;  %v312_v10 = vld [vmem:[%s6503_s20 + $0x450] sm:$0xf] }
  0x4f   : > { %309 = vst [vmem:[%s6508_s21 + $0x120] sm:$0xf] %v308_v8  ;;  %311 = vst [vmem:[%s6508_s21 + $0x124] sm:$0xf] %v310_v9  ;;  %v314_v11 = vld [vmem:[%s6503_s20 + $0x458] sm:$0xf] }
  0x50   : > { %313 = vst [vmem:[%s6508_s21 + $0x128] sm:$0xf] %v312_v10  ;;  %v316_v12 = vld [vmem:[%s6503_s20 + $0x460] sm:$0xf]  ;;  %v318_v13 = vld [vmem:[%s6503_s20 + $0x468] sm:$0xf] }
  0x51   : > { %315 = vst [vmem:[%s6508_s21 + $0x12c] sm:$0xf] %v314_v11  ;;  %317 = vst [vmem:[%s6508_s21 + $0x130] sm:$0xf] %v316_v12  ;;  %v320_v14 = vld [vmem:[%s6503_s20 + $0x470] sm:$0xf] }
  0x52   : > { %319 = vst [vmem:[%s6508_s21 + $0x134] sm:$0xf] %v318_v13  ;;  %v322_v15 = vld [vmem:[%s6503_s20 + $0x478] sm:$0xf]  ;;  %v324_v16 = vld [vmem:[%s6503_s20 + $0x500] sm:$0xf] }
  0x53   : > { %321 = vst [vmem:[%s6508_s21 + $0x138] sm:$0xf] %v320_v14  ;;  %323 = vst [vmem:[%s6508_s21 + $0x13c] sm:$0xf] %v322_v15  ;;  %v326_v17 = vld [vmem:[%s6503_s20 + $0x508] sm:$0xf] }
  0x54   : > { %325 = vst [vmem:[%s6508_s21 + $0x140] sm:$0xf] %v324_v16  ;;  %v328_v18 = vld [vmem:[%s6503_s20 + $0x510] sm:$0xf]  ;;  %v330_v19 = vld [vmem:[%s6503_s20 + $0x518] sm:$0xf] }
  0x55   : > { %327 = vst [vmem:[%s6508_s21 + $0x144] sm:$0xf] %v326_v17  ;;  %329 = vst [vmem:[%s6508_s21 + $0x148] sm:$0xf] %v328_v18  ;;  %v332_v20 = vld [vmem:[%s6503_s20 + $0x520] sm:$0xf] }
  0x56   : > { %331 = vst [vmem:[%s6508_s21 + $0x14c] sm:$0xf] %v330_v19  ;;  %v334_v21 = vld [vmem:[%s6503_s20 + $0x528] sm:$0xf]  ;;  %v336_v22 = vld [vmem:[%s6503_s20 + $0x530] sm:$0xf] }
  0x57   : > { %333 = vst [vmem:[%s6508_s21 + $0x150] sm:$0xf] %v332_v20  ;;  %335 = vst [vmem:[%s6508_s21 + $0x154] sm:$0xf] %v334_v21  ;;  %v338_v23 = vld [vmem:[%s6503_s20 + $0x538] sm:$0xf] }
  0x58   : > { %337 = vst [vmem:[%s6508_s21 + $0x158] sm:$0xf] %v336_v22  ;;  %v340_v24 = vld [vmem:[%s6503_s20 + $0x540] sm:$0xf]  ;;  %v342_v25 = vld [vmem:[%s6503_s20 + $0x548] sm:$0xf] }
  0x59   : > { %339 = vst [vmem:[%s6508_s21 + $0x15c] sm:$0xf] %v338_v23  ;;  %341 = vst [vmem:[%s6508_s21 + $0x160] sm:$0xf] %v340_v24  ;;  %v344_v26 = vld [vmem:[%s6503_s20 + $0x550] sm:$0xf] }
  0x5a   : > { %343 = vst [vmem:[%s6508_s21 + $0x164] sm:$0xf] %v342_v25  ;;  %v346_v27 = vld [vmem:[%s6503_s20 + $0x558] sm:$0xf]  ;;  %v348_v28 = vld [vmem:[%s6503_s20 + $0x560] sm:$0xf] }
  0x5b   : > { %345 = vst [vmem:[%s6508_s21 + $0x168] sm:$0xf] %v344_v26  ;;  %347 = vst [vmem:[%s6508_s21 + $0x16c] sm:$0xf] %v346_v27  ;;  %v350_v29 = vld [vmem:[%s6503_s20 + $0x568] sm:$0xf] }
  0x5c   : > { %349 = vst [vmem:[%s6508_s21 + $0x170] sm:$0xf] %v348_v28  ;;  %v352_v30 = vld [vmem:[%s6503_s20 + $0x570] sm:$0xf]  ;;  %v354_v31 = vld [vmem:[%s6503_s20 + $0x578] sm:$0xf] }
  0x5d   : > { %351 = vst [vmem:[%s6508_s21 + $0x174] sm:$0xf] %v350_v29  ;;  %353 = vst [vmem:[%s6508_s21 + $0x178] sm:$0xf] %v352_v30  ;;  %v356_v32 = vld [vmem:[%s6503_s20 + $0x600] sm:$0xf] }
  0x5e   : > { %355 = vst [vmem:[%s6508_s21 + $0x17c] sm:$0xf] %v354_v31  ;;  %v358_v33 = vld [vmem:[%s6503_s20 + $0x608] sm:$0xf]  ;;  %v360_v34 = vld [vmem:[%s6503_s20 + $0x610] sm:$0xf] }
  0x5f   : > { %357 = vst [vmem:[%s6508_s21 + $0x180] sm:$0xf] %v356_v32  ;;  %359 = vst [vmem:[%s6508_s21 + $0x184] sm:$0xf] %v358_v33  ;;  %v362_v35 = vld [vmem:[%s6503_s20 + $0x618] sm:$0xf] }
  0x60   : > { %361 = vst [vmem:[%s6508_s21 + $0x188] sm:$0xf] %v360_v34  ;;  %v364_v36 = vld [vmem:[%s6503_s20 + $0x620] sm:$0xf]  ;;  %v366_v37 = vld [vmem:[%s6503_s20 + $0x628] sm:$0xf] }
  0x61   : > { %363 = vst [vmem:[%s6508_s21 + $0x18c] sm:$0xf] %v362_v35  ;;  %365 = vst [vmem:[%s6508_s21 + $0x190] sm:$0xf] %v364_v36  ;;  %v368_v38 = vld [vmem:[%s6503_s20 + $0x630] sm:$0xf] }
  0x62   : > { %367 = vst [vmem:[%s6508_s21 + $0x194] sm:$0xf] %v366_v37  ;;  %v370_v39 = vld [vmem:[%s6503_s20 + $0x638] sm:$0xf]  ;;  %v372_v40 = vld [vmem:[%s6503_s20 + $0x640] sm:$0xf] }
  0x63   : > { %369 = vst [vmem:[%s6508_s21 + $0x198] sm:$0xf] %v368_v38  ;;  %371 = vst [vmem:[%s6508_s21 + $0x19c] sm:$0xf] %v370_v39  ;;  %v374_v41 = vld [vmem:[%s6503_s20 + $0x648] sm:$0xf] }
  0x64   : > { %373 = vst [vmem:[%s6508_s21 + $0x1a0] sm:$0xf] %v372_v40  ;;  %v376_v42 = vld [vmem:[%s6503_s20 + $0x650] sm:$0xf]  ;;  %v378_v43 = vld [vmem:[%s6503_s20 + $0x658] sm:$0xf] }
  0x65   : > { %375 = vst [vmem:[%s6508_s21 + $0x1a4] sm:$0xf] %v374_v41  ;;  %377 = vst [vmem:[%s6508_s21 + $0x1a8] sm:$0xf] %v376_v42  ;;  %v380_v44 = vld [vmem:[%s6503_s20 + $0x660] sm:$0xf] }
  0x66   : > { %379 = vst [vmem:[%s6508_s21 + $0x1ac] sm:$0xf] %v378_v43  ;;  %v382_v45 = vld [vmem:[%s6503_s20 + $0x668] sm:$0xf]  ;;  %v384_v46 = vld [vmem:[%s6503_s20 + $0x670] sm:$0xf] }
  0x67   : > { %381 = vst [vmem:[%s6508_s21 + $0x1b0] sm:$0xf] %v380_v44  ;;  %383 = vst [vmem:[%s6508_s21 + $0x1b4] sm:$0xf] %v382_v45  ;;  %v386_v47 = vld [vmem:[%s6503_s20 + $0x678] sm:$0xf] }
  0x68   : > { %385 = vst [vmem:[%s6508_s21 + $0x1b8] sm:$0xf] %v384_v46  ;;  %v388_v48 = vld [vmem:[%s6503_s20 + $0x700] sm:$0xf]  ;;  %v390_v49 = vld [vmem:[%s6503_s20 + $0x708] sm:$0xf] }
  0x69   : > { %387 = vst [vmem:[%s6508_s21 + $0x1bc] sm:$0xf] %v386_v47  ;;  %389 = vst [vmem:[%s6508_s21 + $0x1c0] sm:$0xf] %v388_v48  ;;  %v392_v50 = vld [vmem:[%s6503_s20 + $0x710] sm:$0xf] }
  0x6a   : > { %391 = vst [vmem:[%s6508_s21 + $0x1c4] sm:$0xf] %v390_v49  ;;  %v394_v51 = vld [vmem:[%s6503_s20 + $0x718] sm:$0xf]  ;;  %v396_v52 = vld [vmem:[%s6503_s20 + $0x720] sm:$0xf] }
  0x6b   : > { %393 = vst [vmem:[%s6508_s21 + $0x1c8] sm:$0xf] %v392_v50  ;;  %395 = vst [vmem:[%s6508_s21 + $0x1cc] sm:$0xf] %v394_v51  ;;  %v398_v53 = vld [vmem:[%s6503_s20 + $0x728] sm:$0xf] }
  0x6c   : > { %397 = vst [vmem:[%s6508_s21 + $0x1d0] sm:$0xf] %v396_v52  ;;  %v400_v54 = vld [vmem:[%s6503_s20 + $0x730] sm:$0xf]  ;;  %v402_v55 = vld [vmem:[%s6503_s20 + $0x738] sm:$0xf] }
  0x6d   : > { %399 = vst [vmem:[%s6508_s21 + $0x1d4] sm:$0xf] %v398_v53  ;;  %401 = vst [vmem:[%s6508_s21 + $0x1d8] sm:$0xf] %v400_v54  ;;  %v404_v56 = vld [vmem:[%s6503_s20 + $0x740] sm:$0xf] }
  0x6e   : > { %403 = vst [vmem:[%s6508_s21 + $0x1dc] sm:$0xf] %v402_v55  ;;  %v406_v57 = vld [vmem:[%s6503_s20 + $0x748] sm:$0xf]  ;;  %v408_v58 = vld [vmem:[%s6503_s20 + $0x750] sm:$0xf] }
  0x6f   : > { %405 = vst [vmem:[%s6508_s21 + $0x1e0] sm:$0xf] %v404_v56  ;;  %407 = vst [vmem:[%s6508_s21 + $0x1e4] sm:$0xf] %v406_v57  ;;  %v410_v59 = vld [vmem:[%s6503_s20 + $0x758] sm:$0xf] }
  0x70   : > { %409 = vst [vmem:[%s6508_s21 + $0x1e8] sm:$0xf] %v408_v58  ;;  %v412_v60 = vld [vmem:[%s6503_s20 + $0x760] sm:$0xf]  ;;  %v414_v61 = vld [vmem:[%s6503_s20 + $0x768] sm:$0xf] }
  0x71   : > { %411 = vst [vmem:[%s6508_s21 + $0x1ec] sm:$0xf] %v410_v59  ;;  %413 = vst [vmem:[%s6508_s21 + $0x1f0] sm:$0xf] %v412_v60  ;;  %v416_v62 = vld [vmem:[%s6503_s20 + $0x770] sm:$0xf] }
  0x72   : > { %415 = vst [vmem:[%s6508_s21 + $0x1f4] sm:$0xf] %v414_v61  ;;  %v418_v63 = vld [vmem:[%s6503_s20 + $0x778] sm:$0xf]  ;;  %417 = vst [vmem:[%s6508_s21 + $0x1f8] sm:$0xf] %v416_v62 }
  0x73   : > { %419 = vst [vmem:[%s6508_s21 + $0x1fc] sm:$0xf] %v418_v63 }
  0x74 PF: > { %698 = sbr.rel (!%p6472_p4) target bundleno = 207 (0xcf), region = 61  ;;  %s700_s23 = sand.u32 (%p6472_p4), 1, %s6378_s12  }
  0x75   : > { %s5616_s24 = sshll.u32 (%p6472_p4), %s6394_s16, 5  ;;  %s5601_s25 = sshll.u32 (%p6472_p4), %s700_s23, 9 }
  0x76   : > { %s706_s26 = sadd.s32 (%p6472_p4), %s6390_s15, %s5616_s24  ;;  %s6776_s22 = scalar_lea.vmem (%p6472_p4), [#allocation4], %s5601_s25 }
  0x77   : > { %s5604_s30 = sshll.u32 (%p6472_p4), %s706_s26, 2 }
  0x78   : > { %s6771_s5 = scalar_lea.vmem (%p6472_p4), %s8115_s1, %s5604_s30 }
  0x79   : > { %v726_v0 = vld [vmem:[%s6771_s5] sm:$0xf] (%p6472_p4)  ;;  %v728_v1 = vld [vmem:[%s6771_s5 + $0x8] sm:$0xf] (%p6472_p4)  ;;  %v730_v2 = vld [vmem:[%s6771_s5 + $0x10] sm:$0xf] (%p6472_p4) }
  0x7a   : > { %727 = vst [vmem:[%s6776_s22] sm:$0xf] (%p6472_p4), %v726_v0  ;;  %729 = vst [vmem:[%s6776_s22 + $0x4] sm:$0xf] (%p6472_p4), %v728_v1  ;;  %v732_v3 = vld [vmem:[%s6771_s5 + $0x18] sm:$0xf] (%p6472_p4) }
  0x7b   : > { %731 = vst [vmem:[%s6776_s22 + $0x8] sm:$0xf] %v730_v2  ;;  %v734_v4 = vld [vmem:[%s6771_s5 + $0x20] sm:$0xf]  ;;  %v736_v5 = vld [vmem:[%s6771_s5 + $0x28] sm:$0xf] }
  0x7c   : > { %733 = vst [vmem:[%s6776_s22 + $0xc] sm:$0xf] %v732_v3  ;;  %735 = vst [vmem:[%s6776_s22 + $0x10] sm:$0xf] %v734_v4  ;;  %v738_v6 = vld [vmem:[%s6771_s5 + $0x30] sm:$0xf] }
  0x7d   : > { %737 = vst [vmem:[%s6776_s22 + $0x14] sm:$0xf] %v736_v5  ;;  %v740_v7 = vld [vmem:[%s6771_s5 + $0x38] sm:$0xf]  ;;  %v742_v8 = vld [vmem:[%s6771_s5 + $0x40] sm:$0xf] }
  0x7e   : > { %739 = vst [vmem:[%s6776_s22 + $0x18] sm:$0xf] %v738_v6  ;;  %741 = vst [vmem:[%s6776_s22 + $0x1c] sm:$0xf] %v740_v7  ;;  %v744_v9 = vld [vmem:[%s6771_s5 + $0x48] sm:$0xf] }
  0x7f   : > { %743 = vst [vmem:[%s6776_s22 + $0x20] sm:$0xf] %v742_v8  ;;  %v746_v10 = vld [vmem:[%s6771_s5 + $0x50] sm:$0xf]  ;;  %v748_v11 = vld [vmem:[%s6771_s5 + $0x58] sm:$0xf] }
  0x80   : > { %745 = vst [vmem:[%s6776_s22 + $0x24] sm:$0xf] %v744_v9  ;;  %747 = vst [vmem:[%s6776_s22 + $0x28] sm:$0xf] %v746_v10  ;;  %v750_v12 = vld [vmem:[%s6771_s5 + $0x60] sm:$0xf] }
  0x81   : > { %749 = vst [vmem:[%s6776_s22 + $0x2c] sm:$0xf] %v748_v11  ;;  %v752_v13 = vld [vmem:[%s6771_s5 + $0x68] sm:$0xf]  ;;  %v754_v14 = vld [vmem:[%s6771_s5 + $0x70] sm:$0xf] }
  0x82   : > { %751 = vst [vmem:[%s6776_s22 + $0x30] sm:$0xf] %v750_v12  ;;  %753 = vst [vmem:[%s6776_s22 + $0x34] sm:$0xf] %v752_v13  ;;  %v756_v15 = vld [vmem:[%s6771_s5 + $0x78] sm:$0xf] }
  0x83   : > { %755 = vst [vmem:[%s6776_s22 + $0x38] sm:$0xf] %v754_v14  ;;  %v758_v16 = vld [vmem:[%s6771_s5 + $0x100] sm:$0xf]  ;;  %v760_v17 = vld [vmem:[%s6771_s5 + $0x108] sm:$0xf] }
  0x84   : > { %757 = vst [vmem:[%s6776_s22 + $0x3c] sm:$0xf] %v756_v15  ;;  %759 = vst [vmem:[%s6776_s22 + $0x40] sm:$0xf] %v758_v16  ;;  %v762_v18 = vld [vmem:[%s6771_s5 + $0x110] sm:$0xf] }
  0x85   : > { %761 = vst [vmem:[%s6776_s22 + $0x44] sm:$0xf] %v760_v17  ;;  %v764_v19 = vld [vmem:[%s6771_s5 + $0x118] sm:$0xf]  ;;  %v766_v20 = vld [vmem:[%s6771_s5 + $0x120] sm:$0xf] }
  0x86   : > { %763 = vst [vmem:[%s6776_s22 + $0x48] sm:$0xf] %v762_v18  ;;  %765 = vst [vmem:[%s6776_s22 + $0x4c] sm:$0xf] %v764_v19  ;;  %v768_v21 = vld [vmem:[%s6771_s5 + $0x128] sm:$0xf] }
  0x87   : > { %767 = vst [vmem:[%s6776_s22 + $0x50] sm:$0xf] %v766_v20  ;;  %v770_v22 = vld [vmem:[%s6771_s5 + $0x130] sm:$0xf]  ;;  %v772_v23 = vld [vmem:[%s6771_s5 + $0x138] sm:$0xf] }
  0x88   : > { %769 = vst [vmem:[%s6776_s22 + $0x54] sm:$0xf] %v768_v21  ;;  %771 = vst [vmem:[%s6776_s22 + $0x58] sm:$0xf] %v770_v22  ;;  %v774_v24 = vld [vmem:[%s6771_s5 + $0x140] sm:$0xf] }
  0x89   : > { %773 = vst [vmem:[%s6776_s22 + $0x5c] sm:$0xf] %v772_v23  ;;  %v776_v25 = vld [vmem:[%s6771_s5 + $0x148] sm:$0xf]  ;;  %v778_v26 = vld [vmem:[%s6771_s5 + $0x150] sm:$0xf] }
  0x8a   : > { %775 = vst [vmem:[%s6776_s22 + $0x60] sm:$0xf] %v774_v24  ;;  %777 = vst [vmem:[%s6776_s22 + $0x64] sm:$0xf] %v776_v25  ;;  %v780_v27 = vld [vmem:[%s6771_s5 + $0x158] sm:$0xf] }
  0x8b   : > { %779 = vst [vmem:[%s6776_s22 + $0x68] sm:$0xf] %v778_v26  ;;  %v782_v28 = vld [vmem:[%s6771_s5 + $0x160] sm:$0xf]  ;;  %v784_v29 = vld [vmem:[%s6771_s5 + $0x168] sm:$0xf] }
  0x8c   : > { %781 = vst [vmem:[%s6776_s22 + $0x6c] sm:$0xf] %v780_v27  ;;  %783 = vst [vmem:[%s6776_s22 + $0x70] sm:$0xf] %v782_v28  ;;  %v786_v30 = vld [vmem:[%s6771_s5 + $0x170] sm:$0xf] }
  0x8d   : > { %785 = vst [vmem:[%s6776_s22 + $0x74] sm:$0xf] %v784_v29  ;;  %v788_v31 = vld [vmem:[%s6771_s5 + $0x178] sm:$0xf]  ;;  %v790_v32 = vld [vmem:[%s6771_s5 + $0x200] sm:$0xf] }
  0x8e   : > { %787 = vst [vmem:[%s6776_s22 + $0x78] sm:$0xf] %v786_v30  ;;  %789 = vst [vmem:[%s6776_s22 + $0x7c] sm:$0xf] %v788_v31  ;;  %v792_v33 = vld [vmem:[%s6771_s5 + $0x208] sm:$0xf] }
  0x8f   : > { %791 = vst [vmem:[%s6776_s22 + $0x80] sm:$0xf] %v790_v32  ;;  %v794_v34 = vld [vmem:[%s6771_s5 + $0x210] sm:$0xf]  ;;  %v796_v35 = vld [vmem:[%s6771_s5 + $0x218] sm:$0xf] }
  0x90   : > { %793 = vst [vmem:[%s6776_s22 + $0x84] sm:$0xf] %v792_v33  ;;  %795 = vst [vmem:[%s6776_s22 + $0x88] sm:$0xf] %v794_v34  ;;  %v798_v36 = vld [vmem:[%s6771_s5 + $0x220] sm:$0xf] }
  0x91   : > { %797 = vst [vmem:[%s6776_s22 + $0x8c] sm:$0xf] %v796_v35  ;;  %v800_v37 = vld [vmem:[%s6771_s5 + $0x228] sm:$0xf]  ;;  %v802_v38 = vld [vmem:[%s6771_s5 + $0x230] sm:$0xf] }
  0x92   : > { %799 = vst [vmem:[%s6776_s22 + $0x90] sm:$0xf] %v798_v36  ;;  %801 = vst [vmem:[%s6776_s22 + $0x94] sm:$0xf] %v800_v37  ;;  %v804_v39 = vld [vmem:[%s6771_s5 + $0x238] sm:$0xf] }
  0x93   : > { %803 = vst [vmem:[%s6776_s22 + $0x98] sm:$0xf] %v802_v38  ;;  %v806_v40 = vld [vmem:[%s6771_s5 + $0x240] sm:$0xf]  ;;  %v808_v41 = vld [vmem:[%s6771_s5 + $0x248] sm:$0xf] }
  0x94   : > { %805 = vst [vmem:[%s6776_s22 + $0x9c] sm:$0xf] %v804_v39  ;;  %807 = vst [vmem:[%s6776_s22 + $0xa0] sm:$0xf] %v806_v40  ;;  %v810_v42 = vld [vmem:[%s6771_s5 + $0x250] sm:$0xf] }
  0x95   : > { %809 = vst [vmem:[%s6776_s22 + $0xa4] sm:$0xf] %v808_v41  ;;  %v812_v43 = vld [vmem:[%s6771_s5 + $0x258] sm:$0xf]  ;;  %v814_v44 = vld [vmem:[%s6771_s5 + $0x260] sm:$0xf] }
  0x96   : > { %811 = vst [vmem:[%s6776_s22 + $0xa8] sm:$0xf] %v810_v42  ;;  %813 = vst [vmem:[%s6776_s22 + $0xac] sm:$0xf] %v812_v43  ;;  %v816_v45 = vld [vmem:[%s6771_s5 + $0x268] sm:$0xf] }
  0x97   : > { %815 = vst [vmem:[%s6776_s22 + $0xb0] sm:$0xf] %v814_v44  ;;  %v818_v46 = vld [vmem:[%s6771_s5 + $0x270] sm:$0xf]  ;;  %v820_v47 = vld [vmem:[%s6771_s5 + $0x278] sm:$0xf] }
  0x98   : > { %817 = vst [vmem:[%s6776_s22 + $0xb4] sm:$0xf] %v816_v45  ;;  %819 = vst [vmem:[%s6776_s22 + $0xb8] sm:$0xf] %v818_v46  ;;  %v822_v48 = vld [vmem:[%s6771_s5 + $0x300] sm:$0xf] }
  0x99   : > { %821 = vst [vmem:[%s6776_s22 + $0xbc] sm:$0xf] %v820_v47  ;;  %v824_v49 = vld [vmem:[%s6771_s5 + $0x308] sm:$0xf]  ;;  %v826_v50 = vld [vmem:[%s6771_s5 + $0x310] sm:$0xf] }
  0x9a   : > { %823 = vst [vmem:[%s6776_s22 + $0xc0] sm:$0xf] %v822_v48  ;;  %825 = vst [vmem:[%s6776_s22 + $0xc4] sm:$0xf] %v824_v49  ;;  %v828_v51 = vld [vmem:[%s6771_s5 + $0x318] sm:$0xf] }
  0x9b   : > { %827 = vst [vmem:[%s6776_s22 + $0xc8] sm:$0xf] %v826_v50  ;;  %v830_v52 = vld [vmem:[%s6771_s5 + $0x320] sm:$0xf]  ;;  %v832_v53 = vld [vmem:[%s6771_s5 + $0x328] sm:$0xf] }
  0x9c   : > { %829 = vst [vmem:[%s6776_s22 + $0xcc] sm:$0xf] %v828_v51  ;;  %831 = vst [vmem:[%s6776_s22 + $0xd0] sm:$0xf] %v830_v52  ;;  %v834_v54 = vld [vmem:[%s6771_s5 + $0x330] sm:$0xf] }
  0x9d   : > { %833 = vst [vmem:[%s6776_s22 + $0xd4] sm:$0xf] %v832_v53  ;;  %v836_v55 = vld [vmem:[%s6771_s5 + $0x338] sm:$0xf]  ;;  %v838_v56 = vld [vmem:[%s6771_s5 + $0x340] sm:$0xf] }
  0x9e   : > { %835 = vst [vmem:[%s6776_s22 + $0xd8] sm:$0xf] %v834_v54  ;;  %837 = vst [vmem:[%s6776_s22 + $0xdc] sm:$0xf] %v836_v55  ;;  %v840_v57 = vld [vmem:[%s6771_s5 + $0x348] sm:$0xf] }
  0x9f   : > { %839 = vst [vmem:[%s6776_s22 + $0xe0] sm:$0xf] %v838_v56  ;;  %v842_v58 = vld [vmem:[%s6771_s5 + $0x350] sm:$0xf]  ;;  %v844_v59 = vld [vmem:[%s6771_s5 + $0x358] sm:$0xf] }
  0xa0   : > { %841 = vst [vmem:[%s6776_s22 + $0xe4] sm:$0xf] %v840_v57  ;;  %843 = vst [vmem:[%s6776_s22 + $0xe8] sm:$0xf] %v842_v58  ;;  %v846_v60 = vld [vmem:[%s6771_s5 + $0x360] sm:$0xf] }
  0xa1   : > { %845 = vst [vmem:[%s6776_s22 + $0xec] sm:$0xf] %v844_v59  ;;  %v848_v61 = vld [vmem:[%s6771_s5 + $0x368] sm:$0xf]  ;;  %v850_v62 = vld [vmem:[%s6771_s5 + $0x370] sm:$0xf] }
  0xa2   : > { %847 = vst [vmem:[%s6776_s22 + $0xf0] sm:$0xf] %v846_v60  ;;  %849 = vst [vmem:[%s6776_s22 + $0xf4] sm:$0xf] %v848_v61  ;;  %v852_v63 = vld [vmem:[%s6771_s5 + $0x378] sm:$0xf] }
  0xa3   : > { %851 = vst [vmem:[%s6776_s22 + $0xf8] sm:$0xf] %v850_v62  ;;  %v854_v0 = vld [vmem:[%s6771_s5 + $0x400] sm:$0xf]  ;;  %v856_v1 = vld [vmem:[%s6771_s5 + $0x408] sm:$0xf] }
  0xa4   : > { %853 = vst [vmem:[%s6776_s22 + $0xfc] sm:$0xf] %v852_v63  ;;  %855 = vst [vmem:[%s6776_s22 + $0x100] sm:$0xf] %v854_v0  ;;  %v858_v2 = vld [vmem:[%s6771_s5 + $0x410] sm:$0xf] }
  0xa5   : > { %857 = vst [vmem:[%s6776_s22 + $0x104] sm:$0xf] %v856_v1  ;;  %v860_v3 = vld [vmem:[%s6771_s5 + $0x418] sm:$0xf]  ;;  %v862_v4 = vld [vmem:[%s6771_s5 + $0x420] sm:$0xf] }
  0xa6   : > { %859 = vst [vmem:[%s6776_s22 + $0x108] sm:$0xf] %v858_v2  ;;  %861 = vst [vmem:[%s6776_s22 + $0x10c] sm:$0xf] %v860_v3  ;;  %v864_v5 = vld [vmem:[%s6771_s5 + $0x428] sm:$0xf] }
  0xa7   : > { %863 = vst [vmem:[%s6776_s22 + $0x110] sm:$0xf] %v862_v4  ;;  %v866_v6 = vld [vmem:[%s6771_s5 + $0x430] sm:$0xf]  ;;  %v868_v7 = vld [vmem:[%s6771_s5 + $0x438] sm:$0xf] }
  0xa8   : > { %865 = vst [vmem:[%s6776_s22 + $0x114] sm:$0xf] %v864_v5  ;;  %867 = vst [vmem:[%s6776_s22 + $0x118] sm:$0xf] %v866_v6  ;;  %v870_v8 = vld [vmem:[%s6771_s5 + $0x440] sm:$0xf] }
  0xa9   : > { %869 = vst [vmem:[%s6776_s22 + $0x11c] sm:$0xf] %v868_v7  ;;  %v872_v9 = vld [vmem:[%s6771_s5 + $0x448] sm:$0xf]  ;;  %v874_v10 = vld [vmem:[%s6771_s5 + $0x450] sm:$0xf] }
  0xaa   : > { %871 = vst [vmem:[%s6776_s22 + $0x120] sm:$0xf] %v870_v8  ;;  %873 = vst [vmem:[%s6776_s22 + $0x124] sm:$0xf] %v872_v9  ;;  %v876_v11 = vld [vmem:[%s6771_s5 + $0x458] sm:$0xf] }
  0xab   : > { %875 = vst [vmem:[%s6776_s22 + $0x128] sm:$0xf] %v874_v10  ;;  %v878_v12 = vld [vmem:[%s6771_s5 + $0x460] sm:$0xf]  ;;  %v880_v13 = vld [vmem:[%s6771_s5 + $0x468] sm:$0xf] }
  0xac   : > { %877 = vst [vmem:[%s6776_s22 + $0x12c] sm:$0xf] %v876_v11  ;;  %879 = vst [vmem:[%s6776_s22 + $0x130] sm:$0xf] %v878_v12  ;;  %v882_v14 = vld [vmem:[%s6771_s5 + $0x470] sm:$0xf] }
  0xad   : > { %881 = vst [vmem:[%s6776_s22 + $0x134] sm:$0xf] %v880_v13  ;;  %v884_v15 = vld [vmem:[%s6771_s5 + $0x478] sm:$0xf]  ;;  %v886_v16 = vld [vmem:[%s6771_s5 + $0x500] sm:$0xf] }
  0xae   : > { %883 = vst [vmem:[%s6776_s22 + $0x138] sm:$0xf] %v882_v14  ;;  %885 = vst [vmem:[%s6776_s22 + $0x13c] sm:$0xf] %v884_v15  ;;  %v888_v17 = vld [vmem:[%s6771_s5 + $0x508] sm:$0xf] }
  0xaf   : > { %887 = vst [vmem:[%s6776_s22 + $0x140] sm:$0xf] %v886_v16  ;;  %v890_v18 = vld [vmem:[%s6771_s5 + $0x510] sm:$0xf]  ;;  %v892_v19 = vld [vmem:[%s6771_s5 + $0x518] sm:$0xf] }
  0xb0   : > { %889 = vst [vmem:[%s6776_s22 + $0x144] sm:$0xf] %v888_v17  ;;  %891 = vst [vmem:[%s6776_s22 + $0x148] sm:$0xf] %v890_v18  ;;  %v894_v20 = vld [vmem:[%s6771_s5 + $0x520] sm:$0xf] }
  0xb1   : > { %893 = vst [vmem:[%s6776_s22 + $0x14c] sm:$0xf] %v892_v19  ;;  %v896_v21 = vld [vmem:[%s6771_s5 + $0x528] sm:$0xf]  ;;  %v898_v22 = vld [vmem:[%s6771_s5 + $0x530] sm:$0xf] }
  0xb2   : > { %895 = vst [vmem:[%s6776_s22 + $0x150] sm:$0xf] %v894_v20  ;;  %897 = vst [vmem:[%s6776_s22 + $0x154] sm:$0xf] %v896_v21  ;;  %v900_v23 = vld [vmem:[%s6771_s5 + $0x538] sm:$0xf] }
  0xb3   : > { %899 = vst [vmem:[%s6776_s22 + $0x158] sm:$0xf] %v898_v22  ;;  %v902_v24 = vld [vmem:[%s6771_s5 + $0x540] sm:$0xf]  ;;  %v904_v25 = vld [vmem:[%s6771_s5 + $0x548] sm:$0xf] }
  0xb4   : > { %901 = vst [vmem:[%s6776_s22 + $0x15c] sm:$0xf] %v900_v23  ;;  %903 = vst [vmem:[%s6776_s22 + $0x160] sm:$0xf] %v902_v24  ;;  %v906_v26 = vld [vmem:[%s6771_s5 + $0x550] sm:$0xf] }
  0xb5   : > { %905 = vst [vmem:[%s6776_s22 + $0x164] sm:$0xf] %v904_v25  ;;  %v908_v27 = vld [vmem:[%s6771_s5 + $0x558] sm:$0xf]  ;;  %v910_v28 = vld [vmem:[%s6771_s5 + $0x560] sm:$0xf] }
  0xb6   : > { %907 = vst [vmem:[%s6776_s22 + $0x168] sm:$0xf] %v906_v26  ;;  %909 = vst [vmem:[%s6776_s22 + $0x16c] sm:$0xf] %v908_v27  ;;  %v912_v29 = vld [vmem:[%s6771_s5 + $0x568] sm:$0xf] }
  0xb7   : > { %911 = vst [vmem:[%s6776_s22 + $0x170] sm:$0xf] %v910_v28  ;;  %v914_v30 = vld [vmem:[%s6771_s5 + $0x570] sm:$0xf]  ;;  %v916_v31 = vld [vmem:[%s6771_s5 + $0x578] sm:$0xf] }
  0xb8   : > { %913 = vst [vmem:[%s6776_s22 + $0x174] sm:$0xf] %v912_v29  ;;  %915 = vst [vmem:[%s6776_s22 + $0x178] sm:$0xf] %v914_v30  ;;  %v918_v32 = vld [vmem:[%s6771_s5 + $0x600] sm:$0xf] }
  0xb9   : > { %917 = vst [vmem:[%s6776_s22 + $0x17c] sm:$0xf] %v916_v31  ;;  %v920_v33 = vld [vmem:[%s6771_s5 + $0x608] sm:$0xf]  ;;  %v922_v34 = vld [vmem:[%s6771_s5 + $0x610] sm:$0xf] }
  0xba   : > { %919 = vst [vmem:[%s6776_s22 + $0x180] sm:$0xf] %v918_v32  ;;  %921 = vst [vmem:[%s6776_s22 + $0x184] sm:$0xf] %v920_v33  ;;  %v924_v35 = vld [vmem:[%s6771_s5 + $0x618] sm:$0xf] }
  0xbb   : > { %923 = vst [vmem:[%s6776_s22 + $0x188] sm:$0xf] %v922_v34  ;;  %v926_v36 = vld [vmem:[%s6771_s5 + $0x620] sm:$0xf]  ;;  %v928_v37 = vld [vmem:[%s6771_s5 + $0x628] sm:$0xf] }
  0xbc   : > { %925 = vst [vmem:[%s6776_s22 + $0x18c] sm:$0xf] %v924_v35  ;;  %927 = vst [vmem:[%s6776_s22 + $0x190] sm:$0xf] %v926_v36  ;;  %v930_v38 = vld [vmem:[%s6771_s5 + $0x630] sm:$0xf] }
  0xbd   : > { %929 = vst [vmem:[%s6776_s22 + $0x194] sm:$0xf] %v928_v37  ;;  %v932_v39 = vld [vmem:[%s6771_s5 + $0x638] sm:$0xf]  ;;  %v934_v40 = vld [vmem:[%s6771_s5 + $0x640] sm:$0xf] }
  0xbe   : > { %931 = vst [vmem:[%s6776_s22 + $0x198] sm:$0xf] %v930_v38  ;;  %933 = vst [vmem:[%s6776_s22 + $0x19c] sm:$0xf] %v932_v39  ;;  %v936_v41 = vld [vmem:[%s6771_s5 + $0x648] sm:$0xf] }
  0xbf   : > { %935 = vst [vmem:[%s6776_s22 + $0x1a0] sm:$0xf] %v934_v40  ;;  %v938_v42 = vld [vmem:[%s6771_s5 + $0x650] sm:$0xf]  ;;  %v940_v43 = vld [vmem:[%s6771_s5 + $0x658] sm:$0xf] }
  0xc0   : > { %937 = vst [vmem:[%s6776_s22 + $0x1a4] sm:$0xf] %v936_v41  ;;  %939 = vst [vmem:[%s6776_s22 + $0x1a8] sm:$0xf] %v938_v42  ;;  %v942_v44 = vld [vmem:[%s6771_s5 + $0x660] sm:$0xf] }
  0xc1   : > { %941 = vst [vmem:[%s6776_s22 + $0x1ac] sm:$0xf] %v940_v43  ;;  %v944_v45 = vld [vmem:[%s6771_s5 + $0x668] sm:$0xf]  ;;  %v946_v46 = vld [vmem:[%s6771_s5 + $0x670] sm:$0xf] }
  0xc2   : > { %943 = vst [vmem:[%s6776_s22 + $0x1b0] sm:$0xf] %v942_v44  ;;  %945 = vst [vmem:[%s6776_s22 + $0x1b4] sm:$0xf] %v944_v45  ;;  %v948_v47 = vld [vmem:[%s6771_s5 + $0x678] sm:$0xf] }
  0xc3   : > { %947 = vst [vmem:[%s6776_s22 + $0x1b8] sm:$0xf] %v946_v46  ;;  %v950_v48 = vld [vmem:[%s6771_s5 + $0x700] sm:$0xf]  ;;  %v952_v49 = vld [vmem:[%s6771_s5 + $0x708] sm:$0xf] }
  0xc4   : > { %949 = vst [vmem:[%s6776_s22 + $0x1bc] sm:$0xf] %v948_v47  ;;  %951 = vst [vmem:[%s6776_s22 + $0x1c0] sm:$0xf] %v950_v48  ;;  %v954_v50 = vld [vmem:[%s6771_s5 + $0x710] sm:$0xf] }
  0xc5   : > { %953 = vst [vmem:[%s6776_s22 + $0x1c4] sm:$0xf] %v952_v49  ;;  %v956_v51 = vld [vmem:[%s6771_s5 + $0x718] sm:$0xf]  ;;  %v958_v52 = vld [vmem:[%s6771_s5 + $0x720] sm:$0xf] }
  0xc6   : > { %955 = vst [vmem:[%s6776_s22 + $0x1c8] sm:$0xf] %v954_v50  ;;  %957 = vst [vmem:[%s6776_s22 + $0x1cc] sm:$0xf] %v956_v51  ;;  %v960_v53 = vld [vmem:[%s6771_s5 + $0x728] sm:$0xf] }
  0xc7   : > { %959 = vst [vmem:[%s6776_s22 + $0x1d0] sm:$0xf] %v958_v52  ;;  %v962_v54 = vld [vmem:[%s6771_s5 + $0x730] sm:$0xf]  ;;  %v964_v55 = vld [vmem:[%s6771_s5 + $0x738] sm:$0xf] }
  0xc8   : > { %961 = vst [vmem:[%s6776_s22 + $0x1d4] sm:$0xf] %v960_v53  ;;  %963 = vst [vmem:[%s6776_s22 + $0x1d8] sm:$0xf] %v962_v54  ;;  %v966_v56 = vld [vmem:[%s6771_s5 + $0x740] sm:$0xf] }
  0xc9   : > { %965 = vst [vmem:[%s6776_s22 + $0x1dc] sm:$0xf] %v964_v55  ;;  %v968_v57 = vld [vmem:[%s6771_s5 + $0x748] sm:$0xf]  ;;  %v970_v58 = vld [vmem:[%s6771_s5 + $0x750] sm:$0xf] }
  0xca   : > { %967 = vst [vmem:[%s6776_s22 + $0x1e0] sm:$0xf] %v966_v56  ;;  %969 = vst [vmem:[%s6776_s22 + $0x1e4] sm:$0xf] %v968_v57  ;;  %v972_v59 = vld [vmem:[%s6771_s5 + $0x758] sm:$0xf] }
  0xcb   : > { %971 = vst [vmem:[%s6776_s22 + $0x1e8] sm:$0xf] %v970_v58  ;;  %v974_v60 = vld [vmem:[%s6771_s5 + $0x760] sm:$0xf]  ;;  %v976_v61 = vld [vmem:[%s6771_s5 + $0x768] sm:$0xf] }
  0xcc   : > { %973 = vst [vmem:[%s6776_s22 + $0x1ec] sm:$0xf] %v972_v59  ;;  %975 = vst [vmem:[%s6776_s22 + $0x1f0] sm:$0xf] %v974_v60  ;;  %v978_v62 = vld [vmem:[%s6771_s5 + $0x770] sm:$0xf] }
  0xcd   : > { %977 = vst [vmem:[%s6776_s22 + $0x1f4] sm:$0xf] %v976_v61  ;;  %v980_v63 = vld [vmem:[%s6771_s5 + $0x778] sm:$0xf]  ;;  %979 = vst [vmem:[%s6776_s22 + $0x1f8] sm:$0xf] %v978_v62 }
  0xce   : > { %981 = vst [vmem:[%s6776_s22 + $0x1fc] sm:$0xf] %v980_v63 }
  0xcf PF: > { %p5605_p11 = scmp.ge.s32.totalorder %s6398_s17, 1  ;;  %p1259_p12 = scmp.lt.s32.totalorder %s6398_s17, 5 }
  0xd1   : > { %p1260_p13 = pnand %p5605_p11, %p1259_p12 }
  0xd2   : > { %s1266_s6 = sand.u32 (!%p1260_p13), 1, %s6374_s11   ;;  %s1294_s7 = sand.u32 (!%p1260_p13), 1, %s6366_s9  }
  0xd3   : > { %1263 = sbr.rel (%p1260_p13) target bundleno = 1173 (0x495), region = 102  ;;  %s5606_s8 = sshll.u32 (!%p1260_p13), %s1266_s6, 9 }
  0xd4   : > { %s5608_s20 = sshll.u32 (!%p1260_p13), %s1294_s7, 4  ;;  %s7035_s21 = scalar_lea.vmem (!%p1260_p13), [#allocation3], %s5606_s8 }
  0xd5   : > { %s7037_s23 = scalar_lea.vmem (!%p1260_p13), [#allocation4], %s5606_s8  ;;  %s7039_s24 = scalar_lea.vmem (!%p1260_p13), [#allocation5], %s5608_s20 }
  0xd6   : > { %p5609_p0 = scmp.ne.s32.totalorder (!%p1260_p13), %s6382_s13, 0 }
  0xda   : > { %1304 = sbr.rel (%p5609_p0) target bundleno = 347 (0x15b), region = 114  ;;  %v6400_v0 = vmov (!%p5609_p0), 0.0  }
  0xdb   : > { %1305 = vst [vmem:[#allocation2] sm:$0xff] (!%p5609_p0), %v6400_v0  ;;  %1306 = vst [vmem:[#allocation2 + $0x8] sm:$0xff] (!%p5609_p0), %v6400_v0 }
  0xdc   : > { %1307 = vst [vmem:[#allocation2 + $0x10] sm:$0xff] (!%p5609_p0), %v6400_v0  ;;  %1308 = vst [vmem:[#allocation2 + $0x18] sm:$0xff] (!%p5609_p0), %v6400_v0 }
  0xdd   : > { %1309 = vst [vmem:[#allocation2 + $0x20] sm:$0xff] (!%p5609_p0), %v6400_v0  ;;  %1310 = vst [vmem:[#allocation2 + $0x28] sm:$0xff] (!%p5609_p0), %v6400_v0 }
  0xde   : > { %1311 = vst [vmem:[#allocation2 + $0x30] sm:$0xff] (!%p5609_p0), %v6400_v0  ;;  %1312 = vst [vmem:[#allocation2 + $0x38] sm:$0xff] (!%p5609_p0), %v6400_v0 }
  0xdf   : > { %1313 = vst [vmem:[#allocation2 + $0x40] sm:$0xff] (!%p5609_p0), %v6400_v0  ;;  %1314 = vst [vmem:[#allocation2 + $0x48] sm:$0xff] (!%p5609_p0), %v6400_v0 }
  0xe0   : > { %1315 = vst [vmem:[#allocation2 + $0x50] sm:$0xff] (!%p5609_p0), %v6400_v0  ;;  %1316 = vst [vmem:[#allocation2 + $0x58] sm:$0xff] (!%p5609_p0), %v6400_v0 }
  0xe1   : > { %1317 = vst [vmem:[#allocation2 + $0x60] sm:$0xff] %v6400_v0  ;;  %1318 = vst [vmem:[#allocation2 + $0x68] sm:$0xff] %v6400_v0 }
  0xe2   : > { %1319 = vst [vmem:[#allocation2 + $0x70] sm:$0xff] %v6400_v0  ;;  %1320 = vst [vmem:[#allocation2 + $0x78] sm:$0xff] %v6400_v0 }
  0xe3   : > { %1321 = vst [vmem:[#allocation2 + $0x80] sm:$0xff] %v6400_v0  ;;  %1322 = vst [vmem:[#allocation2 + $0x88] sm:$0xff] %v6400_v0 }
  0xe4   : > { %1323 = vst [vmem:[#allocation2 + $0x90] sm:$0xff] %v6400_v0  ;;  %1324 = vst [vmem:[#allocation2 + $0x98] sm:$0xff] %v6400_v0 }
  0xe5   : > { %1325 = vst [vmem:[#allocation2 + $0xa0] sm:$0xff] %v6400_v0  ;;  %1326 = vst [vmem:[#allocation2 + $0xa8] sm:$0xff] %v6400_v0 }
  0xe6   : > { %1327 = vst [vmem:[#allocation2 + $0xb0] sm:$0xff] %v6400_v0  ;;  %1328 = vst [vmem:[#allocation2 + $0xb8] sm:$0xff] %v6400_v0 }
  0xe7   : > { %1329 = vst [vmem:[#allocation2 + $0xc0] sm:$0xff] %v6400_v0  ;;  %1330 = vst [vmem:[#allocation2 + $0xc8] sm:$0xff] %v6400_v0 }
  0xe8   : > { %1331 = vst [vmem:[#allocation2 + $0xd0] sm:$0xff] %v6400_v0  ;;  %1332 = vst [vmem:[#allocation2 + $0xd8] sm:$0xff] %v6400_v0 }
  0xe9   : > { %1333 = vst [vmem:[#allocation2 + $0xe0] sm:$0xff] %v6400_v0  ;;  %1334 = vst [vmem:[#allocation2 + $0xe8] sm:$0xff] %v6400_v0 }
  0xea   : > { %1335 = vst [vmem:[#allocation2 + $0xf0] sm:$0xff] %v6400_v0  ;;  %1336 = vst [vmem:[#allocation2 + $0xf8] sm:$0xff] %v6400_v0 }
  0xeb   : > { %1337 = vst [vmem:[#allocation2 + $0x100] sm:$0xff] %v6400_v0  ;;  %1338 = vst [vmem:[#allocation2 + $0x108] sm:$0xff] %v6400_v0 }
  0xec   : > { %1339 = vst [vmem:[#allocation2 + $0x110] sm:$0xff] %v6400_v0  ;;  %1340 = vst [vmem:[#allocation2 + $0x118] sm:$0xff] %v6400_v0 }
  0xed   : > { %1341 = vst [vmem:[#allocation2 + $0x120] sm:$0xff] %v6400_v0  ;;  %1342 = vst [vmem:[#allocation2 + $0x128] sm:$0xff] %v6400_v0 }
  0xee   : > { %1343 = vst [vmem:[#allocation2 + $0x130] sm:$0xff] %v6400_v0  ;;  %1344 = vst [vmem:[#allocation2 + $0x138] sm:$0xff] %v6400_v0 }
  0xef   : > { %1345 = vst [vmem:[#allocation2 + $0x140] sm:$0xff] %v6400_v0  ;;  %1346 = vst [vmem:[#allocation2 + $0x148] sm:$0xff] %v6400_v0 }
  0xf0   : > { %1347 = vst [vmem:[#allocation2 + $0x150] sm:$0xff] %v6400_v0  ;;  %1348 = vst [vmem:[#allocation2 + $0x158] sm:$0xff] %v6400_v0 }
  0xf1   : > { %1349 = vst [vmem:[#allocation2 + $0x160] sm:$0xff] %v6400_v0  ;;  %1350 = vst [vmem:[#allocation2 + $0x168] sm:$0xff] %v6400_v0 }
  0xf2   : > { %1351 = vst [vmem:[#allocation2 + $0x170] sm:$0xff] %v6400_v0  ;;  %1352 = vst [vmem:[#allocation2 + $0x178] sm:$0xff] %v6400_v0 }
  0xf3   : > { %1353 = vst [vmem:[#allocation2 + $0x180] sm:$0xff] %v6400_v0  ;;  %1354 = vst [vmem:[#allocation2 + $0x188] sm:$0xff] %v6400_v0 }
  0xf4   : > { %1355 = vst [vmem:[#allocation2 + $0x190] sm:$0xff] %v6400_v0  ;;  %1356 = vst [vmem:[#allocation2 + $0x198] sm:$0xff] %v6400_v0 }
  0xf5   : > { %1357 = vst [vmem:[#allocation2 + $0x1a0] sm:$0xff] %v6400_v0  ;;  %1358 = vst [vmem:[#allocation2 + $0x1a8] sm:$0xff] %v6400_v0 }
  0xf6   : > { %1359 = vst [vmem:[#allocation2 + $0x1b0] sm:$0xff] %v6400_v0  ;;  %1360 = vst [vmem:[#allocation2 + $0x1b8] sm:$0xff] %v6400_v0 }
  0xf7   : > { %1361 = vst [vmem:[#allocation2 + $0x1c0] sm:$0xff] %v6400_v0  ;;  %1362 = vst [vmem:[#allocation2 + $0x1c8] sm:$0xff] %v6400_v0 }
  0xf8   : > { %1363 = vst [vmem:[#allocation2 + $0x1d0] sm:$0xff] %v6400_v0  ;;  %1364 = vst [vmem:[#allocation2 + $0x1d8] sm:$0xff] %v6400_v0 }
  0xf9   : > { %1365 = vst [vmem:[#allocation2 + $0x1e0] sm:$0xff] %v6400_v0  ;;  %1366 = vst [vmem:[#allocation2 + $0x1e8] sm:$0xff] %v6400_v0 }
  0xfa   : > { %1367 = vst [vmem:[#allocation2 + $0x1f0] sm:$0xff] %v6400_v0  ;;  %1368 = vst [vmem:[#allocation2 + $0x1f8] sm:$0xff] %v6400_v0 }
  0xfb   : > { %1369 = vst [vmem:[#allocation2 + $0x200] sm:$0xff] %v6400_v0  ;;  %1370 = vst [vmem:[#allocation2 + $0x208] sm:$0xff] %v6400_v0 }
  0xfc   : > { %1371 = vst [vmem:[#allocation2 + $0x210] sm:$0xff] %v6400_v0  ;;  %1372 = vst [vmem:[#allocation2 + $0x218] sm:$0xff] %v6400_v0 }
  0xfd   : > { %1373 = vst [vmem:[#allocation2 + $0x220] sm:$0xff] %v6400_v0  ;;  %1374 = vst [vmem:[#allocation2 + $0x228] sm:$0xff] %v6400_v0 }
  0xfe   : > { %1375 = vst [vmem:[#allocation2 + $0x230] sm:$0xff] %v6400_v0  ;;  %1376 = vst [vmem:[#allocation2 + $0x238] sm:$0xff] %v6400_v0 }
  0xff   : > { %1377 = vst [vmem:[#allocation2 + $0x240] sm:$0xff] %v6400_v0  ;;  %1378 = vst [vmem:[#allocation2 + $0x248] sm:$0xff] %v6400_v0 }
 0x100   : > { %1379 = vst [vmem:[#allocation2 + $0x250] sm:$0xff] %v6400_v0  ;;  %1380 = vst [vmem:[#allocation2 + $0x258] sm:$0xff] %v6400_v0 }
 0x101   : > { %1381 = vst [vmem:[#allocation2 + $0x260] sm:$0xff] %v6400_v0  ;;  %1382 = vst [vmem:[#allocation2 + $0x268] sm:$0xff] %v6400_v0 }
 0x102   : > { %1383 = vst [vmem:[#allocation2 + $0x270] sm:$0xff] %v6400_v0  ;;  %1384 = vst [vmem:[#allocation2 + $0x278] sm:$0xff] %v6400_v0 }
 0x103   : > { %1385 = vst [vmem:[#allocation2 + $0x280] sm:$0xff] %v6400_v0  ;;  %1386 = vst [vmem:[#allocation2 + $0x288] sm:$0xff] %v6400_v0 }
 0x104   : > { %1387 = vst [vmem:[#allocation2 + $0x290] sm:$0xff] %v6400_v0  ;;  %1388 = vst [vmem:[#allocation2 + $0x298] sm:$0xff] %v6400_v0 }
 0x105   : > { %1389 = vst [vmem:[#allocation2 + $0x2a0] sm:$0xff] %v6400_v0  ;;  %1390 = vst [vmem:[#allocation2 + $0x2a8] sm:$0xff] %v6400_v0 }
 0x106   : > { %1391 = vst [vmem:[#allocation2 + $0x2b0] sm:$0xff] %v6400_v0  ;;  %1392 = vst [vmem:[#allocation2 + $0x2b8] sm:$0xff] %v6400_v0 }
 0x107   : > { %1393 = vst [vmem:[#allocation2 + $0x2c0] sm:$0xff] %v6400_v0  ;;  %1394 = vst [vmem:[#allocation2 + $0x2c8] sm:$0xff] %v6400_v0 }
 0x108   : > { %1395 = vst [vmem:[#allocation2 + $0x2d0] sm:$0xff] %v6400_v0  ;;  %1396 = vst [vmem:[#allocation2 + $0x2d8] sm:$0xff] %v6400_v0 }
 0x109   : > { %1397 = vst [vmem:[#allocation2 + $0x2e0] sm:$0xff] %v6400_v0  ;;  %1398 = vst [vmem:[#allocation2 + $0x2e8] sm:$0xff] %v6400_v0 }
 0x10a   : > { %1399 = vst [vmem:[#allocation2 + $0x2f0] sm:$0xff] %v6400_v0  ;;  %1400 = vst [vmem:[#allocation2 + $0x2f8] sm:$0xff] %v6400_v0 }
 0x10b   : > { %1401 = vst [vmem:[#allocation2 + $0x300] sm:$0xff] %v6400_v0  ;;  %1402 = vst [vmem:[#allocation2 + $0x308] sm:$0xff] %v6400_v0 }
 0x10c   : > { %1403 = vst [vmem:[#allocation2 + $0x310] sm:$0xff] %v6400_v0  ;;  %1404 = vst [vmem:[#allocation2 + $0x318] sm:$0xff] %v6400_v0 }
 0x10d   : > { %1405 = vst [vmem:[#allocation2 + $0x320] sm:$0xff] %v6400_v0  ;;  %1406 = vst [vmem:[#allocation2 + $0x328] sm:$0xff] %v6400_v0 }
 0x10e   : > { %1407 = vst [vmem:[#allocation2 + $0x330] sm:$0xff] %v6400_v0  ;;  %1408 = vst [vmem:[#allocation2 + $0x338] sm:$0xff] %v6400_v0 }
 0x10f   : > { %1409 = vst [vmem:[#allocation2 + $0x340] sm:$0xff] %v6400_v0  ;;  %1410 = vst [vmem:[#allocation2 + $0x348] sm:$0xff] %v6400_v0 }
 0x110   : > { %1411 = vst [vmem:[#allocation2 + $0x350] sm:$0xff] %v6400_v0  ;;  %1412 = vst [vmem:[#allocation2 + $0x358] sm:$0xff] %v6400_v0 }
 0x111   : > { %1413 = vst [vmem:[#allocation2 + $0x360] sm:$0xff] %v6400_v0  ;;  %1414 = vst [vmem:[#allocation2 + $0x368] sm:$0xff] %v6400_v0 }
 0x112   : > { %1415 = vst [vmem:[#allocation2 + $0x370] sm:$0xff] %v6400_v0  ;;  %1416 = vst [vmem:[#allocation2 + $0x378] sm:$0xff] %v6400_v0 }
 0x113   : > { %1417 = vst [vmem:[#allocation2 + $0x380] sm:$0xff] %v6400_v0  ;;  %1418 = vst [vmem:[#allocation2 + $0x388] sm:$0xff] %v6400_v0 }
 0x114   : > { %1419 = vst [vmem:[#allocation2 + $0x390] sm:$0xff] %v6400_v0  ;;  %1420 = vst [vmem:[#allocation2 + $0x398] sm:$0xff] %v6400_v0 }
 0x115   : > { %1421 = vst [vmem:[#allocation2 + $0x3a0] sm:$0xff] %v6400_v0  ;;  %1422 = vst [vmem:[#allocation2 + $0x3a8] sm:$0xff] %v6400_v0 }
 0x116   : > { %1423 = vst [vmem:[#allocation2 + $0x3b0] sm:$0xff] %v6400_v0  ;;  %1424 = vst [vmem:[#allocation2 + $0x3b8] sm:$0xff] %v6400_v0 }
 0x117   : > { %1425 = vst [vmem:[#allocation2 + $0x3c0] sm:$0xff] %v6400_v0  ;;  %1426 = vst [vmem:[#allocation2 + $0x3c8] sm:$0xff] %v6400_v0 }
 0x118   : > { %1427 = vst [vmem:[#allocation2 + $0x3d0] sm:$0xff] %v6400_v0  ;;  %1428 = vst [vmem:[#allocation2 + $0x3d8] sm:$0xff] %v6400_v0 }
 0x119   : > { %1429 = vst [vmem:[#allocation2 + $0x3e0] sm:$0xff] %v6400_v0  ;;  %1430 = vst [vmem:[#allocation2 + $0x3e8] sm:$0xff] %v6400_v0 }
 0x11a   : > { %1431 = vst [vmem:[#allocation2 + $0x3f0] sm:$0xff] %v6400_v0  ;;  %1432 = vst [vmem:[#allocation2 + $0x3f8] sm:$0xff] %v6400_v0 }
 0x11b   : > { %1433 = vst [vmem:[#allocation2 + $0x400] sm:$0xff] %v6400_v0  ;;  %1434 = vst [vmem:[#allocation2 + $0x408] sm:$0xff] %v6400_v0 }
 0x11c   : > { %1435 = vst [vmem:[#allocation2 + $0x410] sm:$0xff] %v6400_v0  ;;  %1436 = vst [vmem:[#allocation2 + $0x418] sm:$0xff] %v6400_v0 }
 0x11d   : > { %1437 = vst [vmem:[#allocation2 + $0x420] sm:$0xff] %v6400_v0  ;;  %1438 = vst [vmem:[#allocation2 + $0x428] sm:$0xff] %v6400_v0 }
 0x11e   : > { %1439 = vst [vmem:[#allocation2 + $0x430] sm:$0xff] %v6400_v0  ;;  %1440 = vst [vmem:[#allocation2 + $0x438] sm:$0xff] %v6400_v0 }
 0x11f   : > { %1441 = vst [vmem:[#allocation2 + $0x440] sm:$0xff] %v6400_v0  ;;  %1442 = vst [vmem:[#allocation2 + $0x448] sm:$0xff] %v6400_v0 }
 0x120   : > { %1443 = vst [vmem:[#allocation2 + $0x450] sm:$0xff] %v6400_v0  ;;  %1444 = vst [vmem:[#allocation2 + $0x458] sm:$0xff] %v6400_v0 }
 0x121   : > { %1445 = vst [vmem:[#allocation2 + $0x460] sm:$0xff] %v6400_v0  ;;  %1446 = vst [vmem:[#allocation2 + $0x468] sm:$0xff] %v6400_v0 }
 0x122   : > { %1447 = vst [vmem:[#allocation2 + $0x470] sm:$0xff] %v6400_v0  ;;  %1448 = vst [vmem:[#allocation2 + $0x478] sm:$0xff] %v6400_v0 }
 0x123   : > { %1449 = vst [vmem:[#allocation2 + $0x480] sm:$0xff] %v6400_v0  ;;  %1450 = vst [vmem:[#allocation2 + $0x488] sm:$0xff] %v6400_v0 }
 0x124   : > { %1451 = vst [vmem:[#allocation2 + $0x490] sm:$0xff] %v6400_v0  ;;  %1452 = vst [vmem:[#allocation2 + $0x498] sm:$0xff] %v6400_v0 }
 0x125   : > { %1453 = vst [vmem:[#allocation2 + $0x4a0] sm:$0xff] %v6400_v0  ;;  %1454 = vst [vmem:[#allocation2 + $0x4a8] sm:$0xff] %v6400_v0 }
 0x126   : > { %1455 = vst [vmem:[#allocation2 + $0x4b0] sm:$0xff] %v6400_v0  ;;  %1456 = vst [vmem:[#allocation2 + $0x4b8] sm:$0xff] %v6400_v0 }
 0x127   : > { %1457 = vst [vmem:[#allocation2 + $0x4c0] sm:$0xff] %v6400_v0  ;;  %1458 = vst [vmem:[#allocation2 + $0x4c8] sm:$0xff] %v6400_v0 }
 0x128   : > { %1459 = vst [vmem:[#allocation2 + $0x4d0] sm:$0xff] %v6400_v0  ;;  %1460 = vst [vmem:[#allocation2 + $0x4d8] sm:$0xff] %v6400_v0 }
 0x129   : > { %1461 = vst [vmem:[#allocation2 + $0x4e0] sm:$0xff] %v6400_v0  ;;  %1462 = vst [vmem:[#allocation2 + $0x4e8] sm:$0xff] %v6400_v0 }
 0x12a   : > { %1463 = vst [vmem:[#allocation2 + $0x4f0] sm:$0xff] %v6400_v0  ;;  %1464 = vst [vmem:[#allocation2 + $0x4f8] sm:$0xff] %v6400_v0 }
 0x12b   : > { %1465 = vst [vmem:[#allocation2 + $0x500] sm:$0xff] %v6400_v0  ;;  %1466 = vst [vmem:[#allocation2 + $0x508] sm:$0xff] %v6400_v0 }
 0x12c   : > { %1467 = vst [vmem:[#allocation2 + $0x510] sm:$0xff] %v6400_v0  ;;  %1468 = vst [vmem:[#allocation2 + $0x518] sm:$0xff] %v6400_v0 }
 0x12d   : > { %1469 = vst [vmem:[#allocation2 + $0x520] sm:$0xff] %v6400_v0  ;;  %1470 = vst [vmem:[#allocation2 + $0x528] sm:$0xff] %v6400_v0 }
 0x12e   : > { %1471 = vst [vmem:[#allocation2 + $0x530] sm:$0xff] %v6400_v0  ;;  %1472 = vst [vmem:[#allocation2 + $0x538] sm:$0xff] %v6400_v0 }
 0x12f   : > { %1473 = vst [vmem:[#allocation2 + $0x540] sm:$0xff] %v6400_v0  ;;  %1474 = vst [vmem:[#allocation2 + $0x548] sm:$0xff] %v6400_v0 }
 0x130   : > { %1475 = vst [vmem:[#allocation2 + $0x550] sm:$0xff] %v6400_v0  ;;  %1476 = vst [vmem:[#allocation2 + $0x558] sm:$0xff] %v6400_v0 }
 0x131   : > { %1477 = vst [vmem:[#allocation2 + $0x560] sm:$0xff] %v6400_v0  ;;  %1478 = vst [vmem:[#allocation2 + $0x568] sm:$0xff] %v6400_v0 }
 0x132   : > { %1479 = vst [vmem:[#allocation2 + $0x570] sm:$0xff] %v6400_v0  ;;  %1480 = vst [vmem:[#allocation2 + $0x578] sm:$0xff] %v6400_v0 }
 0x133   : > { %1481 = vst [vmem:[#allocation2 + $0x580] sm:$0xff] %v6400_v0  ;;  %1482 = vst [vmem:[#allocation2 + $0x588] sm:$0xff] %v6400_v0 }
 0x134   : > { %1483 = vst [vmem:[#allocation2 + $0x590] sm:$0xff] %v6400_v0  ;;  %1484 = vst [vmem:[#allocation2 + $0x598] sm:$0xff] %v6400_v0 }
 0x135   : > { %1485 = vst [vmem:[#allocation2 + $0x5a0] sm:$0xff] %v6400_v0  ;;  %1486 = vst [vmem:[#allocation2 + $0x5a8] sm:$0xff] %v6400_v0 }
 0x136   : > { %1487 = vst [vmem:[#allocation2 + $0x5b0] sm:$0xff] %v6400_v0  ;;  %1488 = vst [vmem:[#allocation2 + $0x5b8] sm:$0xff] %v6400_v0 }
 0x137   : > { %1489 = vst [vmem:[#allocation2 + $0x5c0] sm:$0xff] %v6400_v0  ;;  %1490 = vst [vmem:[#allocation2 + $0x5c8] sm:$0xff] %v6400_v0 }
 0x138   : > { %1491 = vst [vmem:[#allocation2 + $0x5d0] sm:$0xff] %v6400_v0  ;;  %1492 = vst [vmem:[#allocation2 + $0x5d8] sm:$0xff] %v6400_v0 }
 0x139   : > { %1493 = vst [vmem:[#allocation2 + $0x5e0] sm:$0xff] %v6400_v0  ;;  %1494 = vst [vmem:[#allocation2 + $0x5e8] sm:$0xff] %v6400_v0 }
 0x13a   : > { %1495 = vst [vmem:[#allocation2 + $0x5f0] sm:$0xff] %v6400_v0  ;;  %1496 = vst [vmem:[#allocation2 + $0x5f8] sm:$0xff] %v6400_v0 }
 0x13b   : > { %1497 = vst [vmem:[#allocation2 + $0x600] sm:$0xff] %v6400_v0  ;;  %1498 = vst [vmem:[#allocation2 + $0x608] sm:$0xff] %v6400_v0 }
 0x13c   : > { %1499 = vst [vmem:[#allocation2 + $0x610] sm:$0xff] %v6400_v0  ;;  %1500 = vst [vmem:[#allocation2 + $0x618] sm:$0xff] %v6400_v0 }
 0x13d   : > { %1501 = vst [vmem:[#allocation2 + $0x620] sm:$0xff] %v6400_v0  ;;  %1502 = vst [vmem:[#allocation2 + $0x628] sm:$0xff] %v6400_v0 }
 0x13e   : > { %1503 = vst [vmem:[#allocation2 + $0x630] sm:$0xff] %v6400_v0  ;;  %1504 = vst [vmem:[#allocation2 + $0x638] sm:$0xff] %v6400_v0 }
 0x13f   : > { %1505 = vst [vmem:[#allocation2 + $0x640] sm:$0xff] %v6400_v0  ;;  %1506 = vst [vmem:[#allocation2 + $0x648] sm:$0xff] %v6400_v0 }
 0x140   : > { %1507 = vst [vmem:[#allocation2 + $0x650] sm:$0xff] %v6400_v0  ;;  %1508 = vst [vmem:[#allocation2 + $0x658] sm:$0xff] %v6400_v0 }
 0x141   : > { %1509 = vst [vmem:[#allocation2 + $0x660] sm:$0xff] %v6400_v0  ;;  %1510 = vst [vmem:[#allocation2 + $0x668] sm:$0xff] %v6400_v0 }
 0x142   : > { %1511 = vst [vmem:[#allocation2 + $0x670] sm:$0xff] %v6400_v0  ;;  %1512 = vst [vmem:[#allocation2 + $0x678] sm:$0xff] %v6400_v0 }
 0x143   : > { %1513 = vst [vmem:[#allocation2 + $0x680] sm:$0xff] %v6400_v0  ;;  %1514 = vst [vmem:[#allocation2 + $0x688] sm:$0xff] %v6400_v0 }
 0x144   : > { %1515 = vst [vmem:[#allocation2 + $0x690] sm:$0xff] %v6400_v0  ;;  %1516 = vst [vmem:[#allocation2 + $0x698] sm:$0xff] %v6400_v0 }
 0x145   : > { %1517 = vst [vmem:[#allocation2 + $0x6a0] sm:$0xff] %v6400_v0  ;;  %1518 = vst [vmem:[#allocation2 + $0x6a8] sm:$0xff] %v6400_v0 }
 0x146   : > { %1519 = vst [vmem:[#allocation2 + $0x6b0] sm:$0xff] %v6400_v0  ;;  %1520 = vst [vmem:[#allocation2 + $0x6b8] sm:$0xff] %v6400_v0 }
 0x147   : > { %1521 = vst [vmem:[#allocation2 + $0x6c0] sm:$0xff] %v6400_v0  ;;  %1522 = vst [vmem:[#allocation2 + $0x6c8] sm:$0xff] %v6400_v0 }
 0x148   : > { %1523 = vst [vmem:[#allocation2 + $0x6d0] sm:$0xff] %v6400_v0  ;;  %1524 = vst [vmem:[#allocation2 + $0x6d8] sm:$0xff] %v6400_v0 }
 0x149   : > { %1525 = vst [vmem:[#allocation2 + $0x6e0] sm:$0xff] %v6400_v0  ;;  %1526 = vst [vmem:[#allocation2 + $0x6e8] sm:$0xff] %v6400_v0 }
 0x14a   : > { %1527 = vst [vmem:[#allocation2 + $0x6f0] sm:$0xff] %v6400_v0  ;;  %1528 = vst [vmem:[#allocation2 + $0x6f8] sm:$0xff] %v6400_v0 }
 0x14b   : > { %1529 = vst [vmem:[#allocation2 + $0x700] sm:$0xff] %v6400_v0  ;;  %1530 = vst [vmem:[#allocation2 + $0x708] sm:$0xff] %v6400_v0 }
 0x14c   : > { %1531 = vst [vmem:[#allocation2 + $0x710] sm:$0xff] %v6400_v0  ;;  %1532 = vst [vmem:[#allocation2 + $0x718] sm:$0xff] %v6400_v0 }
 0x14d   : > { %1533 = vst [vmem:[#allocation2 + $0x720] sm:$0xff] %v6400_v0  ;;  %1534 = vst [vmem:[#allocation2 + $0x728] sm:$0xff] %v6400_v0 }
 0x14e   : > { %1535 = vst [vmem:[#allocation2 + $0x730] sm:$0xff] %v6400_v0  ;;  %1536 = vst [vmem:[#allocation2 + $0x738] sm:$0xff] %v6400_v0 }
 0x14f   : > { %1537 = vst [vmem:[#allocation2 + $0x740] sm:$0xff] %v6400_v0  ;;  %1538 = vst [vmem:[#allocation2 + $0x748] sm:$0xff] %v6400_v0 }
 0x150   : > { %1539 = vst [vmem:[#allocation2 + $0x750] sm:$0xff] %v6400_v0  ;;  %1540 = vst [vmem:[#allocation2 + $0x758] sm:$0xff] %v6400_v0 }
 0x151   : > { %1541 = vst [vmem:[#allocation2 + $0x760] sm:$0xff] %v6400_v0  ;;  %1542 = vst [vmem:[#allocation2 + $0x768] sm:$0xff] %v6400_v0 }
 0x152   : > { %1543 = vst [vmem:[#allocation2 + $0x770] sm:$0xff] %v6400_v0  ;;  %1544 = vst [vmem:[#allocation2 + $0x778] sm:$0xff] %v6400_v0 }
 0x153   : > { %1545 = vst [vmem:[#allocation2 + $0x780] sm:$0xff] %v6400_v0  ;;  %1546 = vst [vmem:[#allocation2 + $0x788] sm:$0xff] %v6400_v0 }
 0x154   : > { %1547 = vst [vmem:[#allocation2 + $0x790] sm:$0xff] %v6400_v0  ;;  %1548 = vst [vmem:[#allocation2 + $0x798] sm:$0xff] %v6400_v0 }
 0x155   : > { %1549 = vst [vmem:[#allocation2 + $0x7a0] sm:$0xff] %v6400_v0  ;;  %1550 = vst [vmem:[#allocation2 + $0x7a8] sm:$0xff] %v6400_v0 }
 0x156   : > { %1551 = vst [vmem:[#allocation2 + $0x7b0] sm:$0xff] %v6400_v0  ;;  %1552 = vst [vmem:[#allocation2 + $0x7b8] sm:$0xff] %v6400_v0 }
 0x157   : > { %1553 = vst [vmem:[#allocation2 + $0x7c0] sm:$0xff] %v6400_v0  ;;  %1554 = vst [vmem:[#allocation2 + $0x7c8] sm:$0xff] %v6400_v0 }
 0x158   : > { %1555 = vst [vmem:[#allocation2 + $0x7d0] sm:$0xff] %v6400_v0  ;;  %1556 = vst [vmem:[#allocation2 + $0x7d8] sm:$0xff] %v6400_v0 }
 0x159   : > { %1557 = vst [vmem:[#allocation2 + $0x7e0] sm:$0xff] %v6400_v0  ;;  %1558 = vst [vmem:[#allocation2 + $0x7e8] sm:$0xff] %v6400_v0 }
 0x15a   : > { %1559 = vst [vmem:[#allocation2 + $0x7f0] sm:$0xff] %v6400_v0  ;;  %1560 = vst [vmem:[#allocation2 + $0x7f8] sm:$0xff] %v6400_v0 }
 0x15b PF: > { %v5618_v2 = vld [vmem:[%s7035_s21] sm:$0xff]   ;;  %v6129_v7 = vld [vmem:[%s7035_s21 + $0x8] sm:$0xff]   ;;  %v6130_v12 = vld [vmem:[%s7035_s21 + $0x10] sm:$0xff]   ;;  %p5610_p1 = scmp.ne.s32.totalorder %s6382_s13, 1 }
 0x15c   : > { %v1561_v1 = vld [vmem:[#allocation2] sm:$0xff]  ;;  %v1562_v3 = vld [vmem:[#allocation2 + $0x8] sm:$0xff]  ;;  %v5619_v4 = vunpack.c.l.bf16 %v5618_v2  ;;  %v5620_v5 = vunpack.c.h.bf16 %v5618_v2  ;;  %v5623_v9 = vunpack.c.l.bf16 %v6129_v7  ;;  %v5624_v10 = vunpack.c.h.bf16 %v6129_v7  ;;  %v6131_v19 = vld [vmem:[%s7035_s21 + $0x18] sm:$0xff]  }
 0x15d   : > { %v1563_v6 = vld [vmem:[#allocation2 + $0x10] sm:$0xff]  ;;  %v1564_v8 = vld [vmem:[#allocation2 + $0x18] sm:$0xff]  ;;  %v5627_v16 = vunpack.c.l.bf16 %v6130_v12  ;;  %v5628_v17 = vunpack.c.h.bf16 %v6130_v12  ;;  %v5631_v23 = vunpack.c.l.bf16 %v6131_v19  ;;  %v5632_v24 = vunpack.c.h.bf16 %v6131_v19  ;;  %v6132_v26 = vld [vmem:[%s7035_s21 + $0x20] sm:$0xff]  }
 0x15e   : > { %v1565_v11 = vld [vmem:[#allocation2 + $0x20] sm:$0xff]  ;;  %v1566_v13 = vld [vmem:[#allocation2 + $0x28] sm:$0xff]  ;;  %v1945_v14 = vadd.f32 %v5619_v4, %v1561_v1  ;;  %v1946_v15 = vadd.f32 %v5620_v5, %v1562_v3  ;;  %v1947_v21 = vadd.f32 %v5623_v9, %v1563_v6  ;;  %v1948_v22 = vadd.f32 %v5624_v10, %v1564_v8  ;;  %v6134_v40 = vld [vmem:[%s7035_s21 + $0x30] sm:$0xff]  }
 0x15f   : > { %v1567_v18 = vld [vmem:[#allocation2 + $0x30] sm:$0xff]  ;;  %v1568_v20 = vld [vmem:[#allocation2 + $0x38] sm:$0xff]  ;;  %v1949_v28 = vadd.f32 %v5627_v16, %v1565_v11  ;;  %v1950_v29 = vadd.f32 %v5628_v17, %v1566_v13  ;;  %v5635_v30 = vunpack.c.l.bf16 %v6132_v26  ;;  %v5636_v31 = vunpack.c.h.bf16 %v6132_v26  ;;  %v6133_v33 = vld [vmem:[%s7035_s21 + $0x28] sm:$0xff]  }
 0x160   : > { %v1569_v25 = vld [vmem:[#allocation2 + $0x40] sm:$0xff]  ;;  %v1570_v27 = vld [vmem:[#allocation2 + $0x48] sm:$0xff]  ;;  %2073 = vst [vmem:[#allocation2] sm:$0xff] %v1945_v14  ;;  %2074 = vst [vmem:[#allocation2 + $0x8] sm:$0xff] %v1946_v15  ;;  %v1951_v35 = vadd.f32 %v5631_v23, %v1567_v18  ;;  %v1952_v36 = vadd.f32 %v5632_v24, %v1568_v20  ;;  %v5639_v37 = vunpack.c.l.bf16 %v6133_v33  ;;  %v5640_v38 = vunpack.c.h.bf16 %v6133_v33 }
 0x161   : > { %v1571_v32 = vld [vmem:[#allocation2 + $0x50] sm:$0xff]  ;;  %v1572_v34 = vld [vmem:[#allocation2 + $0x58] sm:$0xff]  ;;  %2075 = vst [vmem:[#allocation2 + $0x10] sm:$0xff] %v1947_v21  ;;  %2076 = vst [vmem:[#allocation2 + $0x18] sm:$0xff] %v1948_v22  ;;  %v1953_v42 = vadd.f32 %v5635_v30, %v1569_v25  ;;  %v1954_v43 = vadd.f32 %v5636_v31, %v1570_v27  ;;  %v5643_v44 = vunpack.c.l.bf16 %v6134_v40  ;;  %v5644_v45 = vunpack.c.h.bf16 %v6134_v40 }
 0x162   : > { %v1573_v39 = vld [vmem:[#allocation2 + $0x60] sm:$0xff]  ;;  %v1574_v41 = vld [vmem:[#allocation2 + $0x68] sm:$0xff]  ;;  %2077 = vst [vmem:[#allocation2 + $0x20] sm:$0xff] %v1949_v28  ;;  %2078 = vst [vmem:[#allocation2 + $0x28] sm:$0xff] %v1950_v29  ;;  %v1955_v49 = vadd.f32 %v5639_v37, %v1571_v32  ;;  %v1956_v50 = vadd.f32 %v5640_v38, %v1572_v34  ;;  %vm4137_vm0 = vcmask (!%p5610_p1), 130112   ;;  %vm4144_vm1 = vcmask (!%p5610_p1), 195712  }
 0x163   : > { %v1575_v46 = vld [vmem:[#allocation2 + $0x70] sm:$0xff]  ;;  %v6135_v47 = vld [vmem:[%s7035_s21 + $0x38] sm:$0xff]   ;;  %2079 = vst [vmem:[#allocation2 + $0x30] sm:$0xff] %v1951_v35  ;;  %2080 = vst [vmem:[#allocation2 + $0x38] sm:$0xff] %v1952_v36  ;;  %v1957_v56 = vadd.f32 %v5643_v44, %v1573_v39  ;;  %v1958_v57 = vadd.f32 %v5644_v45, %v1574_v41  ;;  %vm4151_vm2 = vcmask (!%p5610_p1), 261312   ;;  %vm4158_vm3 = vcmask (!%p5610_p1), 326912  }
 0x164   : > { %v1576_v48 = vld [vmem:[#allocation2 + $0x78] sm:$0xff]  ;;  %v5647_v51 = vunpack.c.l.bf16 %v6135_v47  ;;  %v5648_v52 = vunpack.c.h.bf16 %v6135_v47  ;;  %v1577_v53 = vld [vmem:[#allocation2 + $0x80] sm:$0xff]  ;;  %v1578_v55 = vld [vmem:[#allocation2 + $0x88] sm:$0xff]  ;;  %2081 = vst [vmem:[#allocation2 + $0x40] sm:$0xff] %v1953_v42  ;;  %vm4165_vm4 = vcmask (!%p5610_p1), 392512   ;;  %vm4172_vm5 = vcmask (!%p5610_p1), 458112  }
 0x165   : > { %v6136_v54 = vld [vmem:[%s7035_s21 + $0x40] sm:$0xff]   ;;  %2082 = vst [vmem:[#allocation2 + $0x48] sm:$0xff] %v1954_v43  ;;  %v1579_v60 = vld [vmem:[#allocation2 + $0x90] sm:$0xff]  ;;  %v6137_v61 = vld [vmem:[%s7035_s21 + $0x48] sm:$0xff]   ;;  %vm4179_vm6 = vcmask (!%p5610_p1), 523712   ;;  %vm4186_vm7 = vcmask (!%p5610_p1), 589312  }
 0x166   : > { %v5651_v58 = vunpack.c.l.bf16 %v6136_v54  ;;  %v5652_v59 = vunpack.c.h.bf16 %v6136_v54  ;;  %v1580_v62 = vld [vmem:[#allocation2 + $0x98] sm:$0xff]  ;;  %2083 = vst [vmem:[#allocation2 + $0x50] sm:$0xff] %v1955_v49  ;;  %2084 = vst [vmem:[#allocation2 + $0x58] sm:$0xff] %v1956_v50  ;;  %v1959_v63 = vadd.f32 %v5647_v51, %v1575_v46  ;;  %v1960_v0 = vadd.f32 %v5648_v52, %v1576_v48  ;;  %v1581_v3 = vld [vmem:[#allocation2 + $0xa0] sm:$0xff] }
 0x167   : > { %v5655_v1 = vunpack.c.l.bf16 %v6137_v61  ;;  %v5656_v2 = vunpack.c.h.bf16 %v6137_v61  ;;  %v6138_v4 = vld [vmem:[%s7035_s21 + $0x50] sm:$0xff]   ;;  %v1582_v5 = vld [vmem:[#allocation2 + $0xa8] sm:$0xff]  ;;  %2085 = vst [vmem:[#allocation2 + $0x60] sm:$0xff] %v1957_v56  ;;  %2086 = vst [vmem:[#allocation2 + $0x68] sm:$0xff] %v1958_v57  ;;  %vm4193_vm8 = vcmask (!%p5610_p1), 654912   ;;  %vm4200_vm9 = vcmask (!%p5610_p1), 720512  }
 0x168   : > { %v1961_v6 = vadd.f32 %v5651_v58, %v1577_v53  ;;  %v1962_v7 = vadd.f32 %v5652_v59, %v1578_v55  ;;  %v5659_v8 = vunpack.c.l.bf16 %v6138_v4  ;;  %v5660_v9 = vunpack.c.h.bf16 %v6138_v4  ;;  %v1583_v10 = vld [vmem:[#allocation2 + $0xb0] sm:$0xff]  ;;  %v6139_v11 = vld [vmem:[%s7035_s21 + $0x58] sm:$0xff]   ;;  %2087 = vst [vmem:[#allocation2 + $0x70] sm:$0xff] %v1959_v63  ;;  %2088 = vst [vmem:[#allocation2 + $0x78] sm:$0xff] %v1960_v0 }
 0x169   : > { %v1584_v12 = vld [vmem:[#allocation2 + $0xb8] sm:$0xff]  ;;  %v1963_v13 = vadd.f32 %v5655_v1, %v1579_v60  ;;  %v1964_v14 = vadd.f32 %v5656_v2, %v1580_v62  ;;  %v5663_v15 = vunpack.c.l.bf16 %v6139_v11  ;;  %v5664_v16 = vunpack.c.h.bf16 %v6139_v11  ;;  %v1585_v17 = vld [vmem:[#allocation2 + $0xc0] sm:$0xff]  ;;  %v1586_v19 = vld [vmem:[#allocation2 + $0xc8] sm:$0xff] }
 0x16a   : > { %v6140_v18 = vld [vmem:[%s7035_s21 + $0x60] sm:$0xff]   ;;  %2089 = vst [vmem:[#allocation2 + $0x80] sm:$0xff] %v1961_v6  ;;  %2090 = vst [vmem:[#allocation2 + $0x88] sm:$0xff] %v1962_v7  ;;  %v1965_v20 = vadd.f32 %v5659_v8, %v1581_v3  ;;  %v1966_v21 = vadd.f32 %v5660_v9, %v1582_v5  ;;  %v1587_v24 = vld [vmem:[#allocation2 + $0xd0] sm:$0xff]  ;;  %vm8122_vm10 = vcmask (!%p5610_p1), 786112   ;;  %vm4214_vm11 = vcmask (!%p5610_p1), 851712  }
 0x16b   : > { %v5667_v22 = vunpack.c.l.bf16 %v6140_v18  ;;  %v5668_v23 = vunpack.c.h.bf16 %v6140_v18  ;;  %v6141_v25 = vld [vmem:[%s7035_s21 + $0x68] sm:$0xff]   ;;  %v1588_v26 = vld [vmem:[#allocation2 + $0xd8] sm:$0xff]  ;;  %2091 = vst [vmem:[#allocation2 + $0x90] sm:$0xff] %v1963_v13  ;;  %2092 = vst [vmem:[#allocation2 + $0x98] sm:$0xff] %v1964_v14  ;;  %v1967_v27 = vadd.f32 %v5663_v15, %v1583_v10  ;;  %v1968_v28 = vadd.f32 %v5664_v16, %v1584_v12 }
 0x16c   : > { %v5671_v29 = vunpack.c.l.bf16 %v6141_v25  ;;  %v5672_v30 = vunpack.c.h.bf16 %v6141_v25  ;;  %v1589_v31 = vld [vmem:[#allocation2 + $0xe0] sm:$0xff]  ;;  %v6142_v32 = vld [vmem:[%s7035_s21 + $0x70] sm:$0xff]   ;;  %v1590_v33 = vld [vmem:[#allocation2 + $0xe8] sm:$0xff]  ;;  %2093 = vst [vmem:[#allocation2 + $0xa0] sm:$0xff] %v1965_v20  ;;  %vm4221_vm12 = vcmask (!%p5610_p1), 917312   ;;  %vm4228_vm13 = vcmask (!%p5610_p1), 982912  }
 0x16d   : > { %2094 = vst [vmem:[#allocation2 + $0xa8] sm:$0xff] %v1966_v21  ;;  %v1969_v34 = vadd.f32 %v5667_v22, %v1585_v17  ;;  %v1970_v35 = vadd.f32 %v5668_v23, %v1586_v19  ;;  %v5675_v36 = vunpack.c.l.bf16 %v6142_v32  ;;  %v5676_v37 = vunpack.c.h.bf16 %v6142_v32  ;;  %v1591_v38 = vld [vmem:[#allocation2 + $0xf0] sm:$0xff]  ;;  %v6143_v39 = vld [vmem:[%s7035_s21 + $0x78] sm:$0xff]   ;;  %2095 = vst [vmem:[#allocation2 + $0xb0] sm:$0xff] %v1967_v27 }
 0x16e   : > { %v1592_v40 = vld [vmem:[#allocation2 + $0xf8] sm:$0xff]  ;;  %2096 = vst [vmem:[#allocation2 + $0xb8] sm:$0xff] %v1968_v28  ;;  %v1971_v41 = vadd.f32 %v5671_v29, %v1587_v24  ;;  %v1972_v42 = vadd.f32 %v5672_v30, %v1588_v26  ;;  %v5679_v43 = vunpack.c.l.bf16 %v6143_v39  ;;  %v5680_v44 = vunpack.c.h.bf16 %v6143_v39  ;;  %v1593_v45 = vld [vmem:[#allocation2 + $0x100] sm:$0xff]  ;;  %v1594_v47 = vld [vmem:[#allocation2 + $0x108] sm:$0xff] }
 0x16f   : > { %v6144_v46 = vld [vmem:[%s7035_s21 + $0x80] sm:$0xff]   ;;  %2097 = vst [vmem:[#allocation2 + $0xc0] sm:$0xff] %v1969_v34  ;;  %2098 = vst [vmem:[#allocation2 + $0xc8] sm:$0xff] %v1970_v35  ;;  %v1973_v48 = vadd.f32 %v5675_v36, %v1589_v31  ;;  %v1974_v49 = vadd.f32 %v5676_v37, %v1590_v33  ;;  %v1595_v52 = vld [vmem:[#allocation2 + $0x110] sm:$0xff]  ;;  %vm4235_vm14 = vcmask (!%p5610_p1), 1048512   ;;  %vm8117_vm15 = vcmask (!%p5610_p1), 1041409  }
 0x170   : > { %v5683_v50 = vunpack.c.l.bf16 %v6144_v46  ;;  %v5684_v51 = vunpack.c.h.bf16 %v6144_v46  ;;  %v6145_v53 = vld [vmem:[%s7035_s21 + $0x88] sm:$0xff]   ;;  %v1596_v54 = vld [vmem:[#allocation2 + $0x118] sm:$0xff]  ;;  %2099 = vst [vmem:[#allocation2 + $0xd0] sm:$0xff] %v1971_v41  ;;  %2100 = vst [vmem:[#allocation2 + $0xd8] sm:$0xff] %v1972_v42  ;;  %v1975_v55 = vadd.f32 %v5679_v43, %v1591_v38  ;;  %v1976_v56 = vadd.f32 %v5680_v44, %v1592_v40 }
 0x171   : > { %v5687_v57 = vunpack.c.l.bf16 %v6145_v53  ;;  %v5688_v58 = vunpack.c.h.bf16 %v6145_v53  ;;  %v1597_v59 = vld [vmem:[#allocation2 + $0x120] sm:$0xff]  ;;  %v6146_v60 = vld [vmem:[%s7035_s21 + $0x90] sm:$0xff]   ;;  %v1598_v61 = vld [vmem:[#allocation2 + $0x128] sm:$0xff]  ;;  %2101 = vst [vmem:[#allocation2 + $0xe0] sm:$0xff] %v1973_v48 }
 0x172   : > { %2102 = vst [vmem:[#allocation2 + $0xe8] sm:$0xff] %v1974_v49  ;;  %v1977_v62 = vadd.f32 %v5683_v50, %v1593_v45  ;;  %v1978_v63 = vadd.f32 %v5684_v51, %v1594_v47  ;;  %v5691_v0 = vunpack.c.l.bf16 %v6146_v60  ;;  %v5692_v1 = vunpack.c.h.bf16 %v6146_v60  ;;  %v1599_v2 = vld [vmem:[#allocation2 + $0x130] sm:$0xff]  ;;  %v6147_v3 = vld [vmem:[%s7035_s21 + $0x98] sm:$0xff]   ;;  %2103 = vst [vmem:[#allocation2 + $0xf0] sm:$0xff] %v1975_v55 }
 0x173   : > { %v1600_v4 = vld [vmem:[#allocation2 + $0x138] sm:$0xff]  ;;  %2104 = vst [vmem:[#allocation2 + $0xf8] sm:$0xff] %v1976_v56  ;;  %v1979_v5 = vadd.f32 %v5687_v57, %v1595_v52  ;;  %v1980_v6 = vadd.f32 %v5688_v58, %v1596_v54  ;;  %v5695_v7 = vunpack.c.l.bf16 %v6147_v3  ;;  %v5696_v8 = vunpack.c.h.bf16 %v6147_v3  ;;  %v1601_v9 = vld [vmem:[#allocation2 + $0x140] sm:$0xff]  ;;  %v1602_v11 = vld [vmem:[#allocation2 + $0x148] sm:$0xff] }
 0x174   : > { %v6148_v10 = vld [vmem:[%s7035_s21 + $0xa0] sm:$0xff]   ;;  %2105 = vst [vmem:[#allocation2 + $0x100] sm:$0xff] %v1977_v62  ;;  %2106 = vst [vmem:[#allocation2 + $0x108] sm:$0xff] %v1978_v63  ;;  %v1981_v12 = vadd.f32 %v5691_v0, %v1597_v59  ;;  %v1982_v13 = vadd.f32 %v5692_v1, %v1598_v61  ;;  %v1603_v16 = vld [vmem:[#allocation2 + $0x150] sm:$0xff] }
 0x175   : > { %v5699_v14 = vunpack.c.l.bf16 %v6148_v10  ;;  %v5700_v15 = vunpack.c.h.bf16 %v6148_v10  ;;  %v6149_v17 = vld [vmem:[%s7035_s21 + $0xa8] sm:$0xff]   ;;  %v1604_v18 = vld [vmem:[#allocation2 + $0x158] sm:$0xff]  ;;  %2107 = vst [vmem:[#allocation2 + $0x110] sm:$0xff] %v1979_v5  ;;  %2108 = vst [vmem:[#allocation2 + $0x118] sm:$0xff] %v1980_v6  ;;  %v1983_v19 = vadd.f32 %v5695_v7, %v1599_v2  ;;  %v1984_v20 = vadd.f32 %v5696_v8, %v1600_v4 }
 0x176   : > { %v5703_v21 = vunpack.c.l.bf16 %v6149_v17  ;;  %v5704_v22 = vunpack.c.h.bf16 %v6149_v17  ;;  %v1605_v23 = vld [vmem:[#allocation2 + $0x160] sm:$0xff]  ;;  %v6150_v24 = vld [vmem:[%s7035_s21 + $0xb0] sm:$0xff]   ;;  %v1606_v25 = vld [vmem:[#allocation2 + $0x168] sm:$0xff]  ;;  %2109 = vst [vmem:[#allocation2 + $0x120] sm:$0xff] %v1981_v12 }
 0x177   : > { %2110 = vst [vmem:[#allocation2 + $0x128] sm:$0xff] %v1982_v13  ;;  %v1985_v26 = vadd.f32 %v5699_v14, %v1601_v9  ;;  %v1986_v27 = vadd.f32 %v5700_v15, %v1602_v11  ;;  %v5707_v28 = vunpack.c.l.bf16 %v6150_v24  ;;  %v5708_v29 = vunpack.c.h.bf16 %v6150_v24  ;;  %v1607_v30 = vld [vmem:[#allocation2 + $0x170] sm:$0xff]  ;;  %v6151_v31 = vld [vmem:[%s7035_s21 + $0xb8] sm:$0xff]   ;;  %2111 = vst [vmem:[#allocation2 + $0x130] sm:$0xff] %v1983_v19 }
 0x178   : > { %v1608_v32 = vld [vmem:[#allocation2 + $0x178] sm:$0xff]  ;;  %2112 = vst [vmem:[#allocation2 + $0x138] sm:$0xff] %v1984_v20  ;;  %v1987_v33 = vadd.f32 %v5703_v21, %v1603_v16  ;;  %v1988_v34 = vadd.f32 %v5704_v22, %v1604_v18  ;;  %v5711_v35 = vunpack.c.l.bf16 %v6151_v31  ;;  %v5712_v36 = vunpack.c.h.bf16 %v6151_v31  ;;  %v1609_v37 = vld [vmem:[#allocation2 + $0x180] sm:$0xff]  ;;  %v1610_v39 = vld [vmem:[#allocation2 + $0x188] sm:$0xff] }
 0x179   : > { %v6152_v38 = vld [vmem:[%s7035_s21 + $0xc0] sm:$0xff]   ;;  %2113 = vst [vmem:[#allocation2 + $0x140] sm:$0xff] %v1985_v26  ;;  %2114 = vst [vmem:[#allocation2 + $0x148] sm:$0xff] %v1986_v27  ;;  %v1989_v40 = vadd.f32 %v5707_v28, %v1605_v23  ;;  %v1990_v41 = vadd.f32 %v5708_v29, %v1606_v25  ;;  %v1611_v44 = vld [vmem:[#allocation2 + $0x190] sm:$0xff] }
 0x17a   : > { %v5715_v42 = vunpack.c.l.bf16 %v6152_v38  ;;  %v5716_v43 = vunpack.c.h.bf16 %v6152_v38  ;;  %v6153_v45 = vld [vmem:[%s7035_s21 + $0xc8] sm:$0xff]   ;;  %v1612_v46 = vld [vmem:[#allocation2 + $0x198] sm:$0xff]  ;;  %2115 = vst [vmem:[#allocation2 + $0x150] sm:$0xff] %v1987_v33  ;;  %2116 = vst [vmem:[#allocation2 + $0x158] sm:$0xff] %v1988_v34  ;;  %v1991_v47 = vadd.f32 %v5711_v35, %v1607_v30  ;;  %v1992_v48 = vadd.f32 %v5712_v36, %v1608_v32 }
 0x17b   : > { %v5719_v49 = vunpack.c.l.bf16 %v6153_v45  ;;  %v5720_v50 = vunpack.c.h.bf16 %v6153_v45  ;;  %v1613_v51 = vld [vmem:[#allocation2 + $0x1a0] sm:$0xff]  ;;  %v6154_v52 = vld [vmem:[%s7035_s21 + $0xd0] sm:$0xff]   ;;  %v1614_v53 = vld [vmem:[#allocation2 + $0x1a8] sm:$0xff]  ;;  %2117 = vst [vmem:[#allocation2 + $0x160] sm:$0xff] %v1989_v40 }
 0x17c   : > { %2118 = vst [vmem:[#allocation2 + $0x168] sm:$0xff] %v1990_v41  ;;  %v1993_v54 = vadd.f32 %v5715_v42, %v1609_v37  ;;  %v1994_v55 = vadd.f32 %v5716_v43, %v1610_v39  ;;  %v5723_v56 = vunpack.c.l.bf16 %v6154_v52  ;;  %v5724_v57 = vunpack.c.h.bf16 %v6154_v52  ;;  %v1615_v58 = vld [vmem:[#allocation2 + $0x1b0] sm:$0xff]  ;;  %v6155_v59 = vld [vmem:[%s7035_s21 + $0xd8] sm:$0xff]   ;;  %2119 = vst [vmem:[#allocation2 + $0x170] sm:$0xff] %v1991_v47 }
 0x17d   : > { %v1616_v60 = vld [vmem:[#allocation2 + $0x1b8] sm:$0xff]  ;;  %2120 = vst [vmem:[#allocation2 + $0x178] sm:$0xff] %v1992_v48  ;;  %v1995_v61 = vadd.f32 %v5719_v49, %v1611_v44  ;;  %v1996_v62 = vadd.f32 %v5720_v50, %v1612_v46  ;;  %v5727_v63 = vunpack.c.l.bf16 %v6155_v59  ;;  %v5728_v0 = vunpack.c.h.bf16 %v6155_v59  ;;  %v1617_v1 = vld [vmem:[#allocation2 + $0x1c0] sm:$0xff]  ;;  %v1618_v3 = vld [vmem:[#allocation2 + $0x1c8] sm:$0xff] }
 0x17e   : > { %v6156_v2 = vld [vmem:[%s7035_s21 + $0xe0] sm:$0xff]   ;;  %2121 = vst [vmem:[#allocation2 + $0x180] sm:$0xff] %v1993_v54  ;;  %2122 = vst [vmem:[#allocation2 + $0x188] sm:$0xff] %v1994_v55  ;;  %v1997_v4 = vadd.f32 %v5723_v56, %v1613_v51  ;;  %v1998_v5 = vadd.f32 %v5724_v57, %v1614_v53  ;;  %v1619_v8 = vld [vmem:[#allocation2 + $0x1d0] sm:$0xff] }
 0x17f   : > { %v5731_v6 = vunpack.c.l.bf16 %v6156_v2  ;;  %v5732_v7 = vunpack.c.h.bf16 %v6156_v2  ;;  %v6157_v9 = vld [vmem:[%s7035_s21 + $0xe8] sm:$0xff]   ;;  %v1620_v10 = vld [vmem:[#allocation2 + $0x1d8] sm:$0xff]  ;;  %2123 = vst [vmem:[#allocation2 + $0x190] sm:$0xff] %v1995_v61  ;;  %2124 = vst [vmem:[#allocation2 + $0x198] sm:$0xff] %v1996_v62  ;;  %v1999_v11 = vadd.f32 %v5727_v63, %v1615_v58  ;;  %v2000_v12 = vadd.f32 %v5728_v0, %v1616_v60 }
 0x180   : > { %v5735_v13 = vunpack.c.l.bf16 %v6157_v9  ;;  %v5736_v14 = vunpack.c.h.bf16 %v6157_v9  ;;  %v1621_v15 = vld [vmem:[#allocation2 + $0x1e0] sm:$0xff]  ;;  %v6158_v16 = vld [vmem:[%s7035_s21 + $0xf0] sm:$0xff]   ;;  %v1622_v17 = vld [vmem:[#allocation2 + $0x1e8] sm:$0xff]  ;;  %2125 = vst [vmem:[#allocation2 + $0x1a0] sm:$0xff] %v1997_v4 }
 0x181   : > { %2126 = vst [vmem:[#allocation2 + $0x1a8] sm:$0xff] %v1998_v5  ;;  %v2001_v18 = vadd.f32 %v5731_v6, %v1617_v1  ;;  %v2002_v19 = vadd.f32 %v5732_v7, %v1618_v3  ;;  %v5739_v20 = vunpack.c.l.bf16 %v6158_v16  ;;  %v5740_v21 = vunpack.c.h.bf16 %v6158_v16  ;;  %v1623_v22 = vld [vmem:[#allocation2 + $0x1f0] sm:$0xff]  ;;  %v6159_v23 = vld [vmem:[%s7035_s21 + $0xf8] sm:$0xff]   ;;  %2127 = vst [vmem:[#allocation2 + $0x1b0] sm:$0xff] %v1999_v11 }
 0x182   : > { %v1624_v24 = vld [vmem:[#allocation2 + $0x1f8] sm:$0xff]  ;;  %2128 = vst [vmem:[#allocation2 + $0x1b8] sm:$0xff] %v2000_v12  ;;  %v2003_v25 = vadd.f32 %v5735_v13, %v1619_v8  ;;  %v2004_v26 = vadd.f32 %v5736_v14, %v1620_v10  ;;  %v5743_v27 = vunpack.c.l.bf16 %v6159_v23  ;;  %v5744_v28 = vunpack.c.h.bf16 %v6159_v23  ;;  %v1625_v29 = vld [vmem:[#allocation2 + $0x200] sm:$0xff]  ;;  %v1626_v31 = vld [vmem:[#allocation2 + $0x208] sm:$0xff] }
 0x183   : > { %v6160_v30 = vld [vmem:[%s7035_s21 + $0x100] sm:$0xff]   ;;  %2129 = vst [vmem:[#allocation2 + $0x1c0] sm:$0xff] %v2001_v18  ;;  %2130 = vst [vmem:[#allocation2 + $0x1c8] sm:$0xff] %v2002_v19  ;;  %v2005_v32 = vadd.f32 %v5739_v20, %v1621_v15  ;;  %v2006_v33 = vadd.f32 %v5740_v21, %v1622_v17  ;;  %v1627_v36 = vld [vmem:[#allocation2 + $0x210] sm:$0xff] }
 0x184   : > { %v5747_v34 = vunpack.c.l.bf16 %v6160_v30  ;;  %v5748_v35 = vunpack.c.h.bf16 %v6160_v30  ;;  %v6161_v37 = vld [vmem:[%s7035_s21 + $0x108] sm:$0xff]   ;;  %v1628_v38 = vld [vmem:[#allocation2 + $0x218] sm:$0xff]  ;;  %2131 = vst [vmem:[#allocation2 + $0x1d0] sm:$0xff] %v2003_v25  ;;  %2132 = vst [vmem:[#allocation2 + $0x1d8] sm:$0xff] %v2004_v26  ;;  %v2007_v39 = vadd.f32 %v5743_v27, %v1623_v22  ;;  %v2008_v40 = vadd.f32 %v5744_v28, %v1624_v24 }
 0x185   : > { %v5751_v41 = vunpack.c.l.bf16 %v6161_v37  ;;  %v5752_v42 = vunpack.c.h.bf16 %v6161_v37  ;;  %v1629_v43 = vld [vmem:[#allocation2 + $0x220] sm:$0xff]  ;;  %v6162_v44 = vld [vmem:[%s7035_s21 + $0x110] sm:$0xff]   ;;  %v1630_v45 = vld [vmem:[#allocation2 + $0x228] sm:$0xff]  ;;  %2133 = vst [vmem:[#allocation2 + $0x1e0] sm:$0xff] %v2005_v32 }
 0x186   : > { %2134 = vst [vmem:[#allocation2 + $0x1e8] sm:$0xff] %v2006_v33  ;;  %v2009_v46 = vadd.f32 %v5747_v34, %v1625_v29  ;;  %v2010_v47 = vadd.f32 %v5748_v35, %v1626_v31  ;;  %v5755_v48 = vunpack.c.l.bf16 %v6162_v44  ;;  %v5756_v49 = vunpack.c.h.bf16 %v6162_v44  ;;  %v1631_v50 = vld [vmem:[#allocation2 + $0x230] sm:$0xff]  ;;  %v6163_v51 = vld [vmem:[%s7035_s21 + $0x118] sm:$0xff]   ;;  %2135 = vst [vmem:[#allocation2 + $0x1f0] sm:$0xff] %v2007_v39 }
 0x187   : > { %v1632_v52 = vld [vmem:[#allocation2 + $0x238] sm:$0xff]  ;;  %2136 = vst [vmem:[#allocation2 + $0x1f8] sm:$0xff] %v2008_v40  ;;  %v2011_v53 = vadd.f32 %v5751_v41, %v1627_v36  ;;  %v2012_v54 = vadd.f32 %v5752_v42, %v1628_v38  ;;  %v5759_v55 = vunpack.c.l.bf16 %v6163_v51  ;;  %v5760_v56 = vunpack.c.h.bf16 %v6163_v51  ;;  %v1633_v57 = vld [vmem:[#allocation2 + $0x240] sm:$0xff]  ;;  %v1634_v59 = vld [vmem:[#allocation2 + $0x248] sm:$0xff] }
 0x188   : > { %v6164_v58 = vld [vmem:[%s7035_s21 + $0x120] sm:$0xff]   ;;  %2137 = vst [vmem:[#allocation2 + $0x200] sm:$0xff] %v2009_v46  ;;  %2138 = vst [vmem:[#allocation2 + $0x208] sm:$0xff] %v2010_v47  ;;  %v2013_v60 = vadd.f32 %v5755_v48, %v1629_v43  ;;  %v2014_v61 = vadd.f32 %v5756_v49, %v1630_v45  ;;  %v1635_v0 = vld [vmem:[#allocation2 + $0x250] sm:$0xff] }
 0x189   : > { %v5763_v62 = vunpack.c.l.bf16 %v6164_v58  ;;  %v5764_v63 = vunpack.c.h.bf16 %v6164_v58  ;;  %v6165_v1 = vld [vmem:[%s7035_s21 + $0x128] sm:$0xff]   ;;  %v1636_v2 = vld [vmem:[#allocation2 + $0x258] sm:$0xff]  ;;  %2139 = vst [vmem:[#allocation2 + $0x210] sm:$0xff] %v2011_v53  ;;  %2140 = vst [vmem:[#allocation2 + $0x218] sm:$0xff] %v2012_v54  ;;  %v2015_v3 = vadd.f32 %v5759_v55, %v1631_v50  ;;  %v2016_v4 = vadd.f32 %v5760_v56, %v1632_v52 }
 0x18a   : > { %v5767_v5 = vunpack.c.l.bf16 %v6165_v1  ;;  %v5768_v6 = vunpack.c.h.bf16 %v6165_v1  ;;  %v1637_v7 = vld [vmem:[#allocation2 + $0x260] sm:$0xff]  ;;  %v6166_v8 = vld [vmem:[%s7035_s21 + $0x130] sm:$0xff]   ;;  %v1638_v9 = vld [vmem:[#allocation2 + $0x268] sm:$0xff]  ;;  %2141 = vst [vmem:[#allocation2 + $0x220] sm:$0xff] %v2013_v60 }
 0x18b   : > { %2142 = vst [vmem:[#allocation2 + $0x228] sm:$0xff] %v2014_v61  ;;  %v2017_v10 = vadd.f32 %v5763_v62, %v1633_v57  ;;  %v2018_v11 = vadd.f32 %v5764_v63, %v1634_v59  ;;  %v5771_v12 = vunpack.c.l.bf16 %v6166_v8  ;;  %v5772_v13 = vunpack.c.h.bf16 %v6166_v8  ;;  %v1639_v14 = vld [vmem:[#allocation2 + $0x270] sm:$0xff]  ;;  %v6167_v15 = vld [vmem:[%s7035_s21 + $0x138] sm:$0xff]   ;;  %2143 = vst [vmem:[#allocation2 + $0x230] sm:$0xff] %v2015_v3 }
 0x18c   : > { %v1640_v16 = vld [vmem:[#allocation2 + $0x278] sm:$0xff]  ;;  %2144 = vst [vmem:[#allocation2 + $0x238] sm:$0xff] %v2016_v4  ;;  %v2019_v17 = vadd.f32 %v5767_v5, %v1635_v0  ;;  %v2020_v18 = vadd.f32 %v5768_v6, %v1636_v2  ;;  %v5775_v19 = vunpack.c.l.bf16 %v6167_v15  ;;  %v5776_v20 = vunpack.c.h.bf16 %v6167_v15  ;;  %v1641_v21 = vld [vmem:[#allocation2 + $0x280] sm:$0xff]  ;;  %v1642_v23 = vld [vmem:[#allocation2 + $0x288] sm:$0xff] }
 0x18d   : > { %v6168_v22 = vld [vmem:[%s7035_s21 + $0x140] sm:$0xff]   ;;  %2145 = vst [vmem:[#allocation2 + $0x240] sm:$0xff] %v2017_v10  ;;  %2146 = vst [vmem:[#allocation2 + $0x248] sm:$0xff] %v2018_v11  ;;  %v2021_v24 = vadd.f32 %v5771_v12, %v1637_v7  ;;  %v2022_v25 = vadd.f32 %v5772_v13, %v1638_v9  ;;  %v1643_v28 = vld [vmem:[#allocation2 + $0x290] sm:$0xff] }
 0x18e   : > { %v5779_v26 = vunpack.c.l.bf16 %v6168_v22  ;;  %v5780_v27 = vunpack.c.h.bf16 %v6168_v22  ;;  %v6169_v29 = vld [vmem:[%s7035_s21 + $0x148] sm:$0xff]   ;;  %v1644_v30 = vld [vmem:[#allocation2 + $0x298] sm:$0xff]  ;;  %2147 = vst [vmem:[#allocation2 + $0x250] sm:$0xff] %v2019_v17  ;;  %2148 = vst [vmem:[#allocation2 + $0x258] sm:$0xff] %v2020_v18  ;;  %v2023_v31 = vadd.f32 %v5775_v19, %v1639_v14  ;;  %v2024_v32 = vadd.f32 %v5776_v20, %v1640_v16 }
 0x18f   : > { %v5783_v33 = vunpack.c.l.bf16 %v6169_v29  ;;  %v5784_v34 = vunpack.c.h.bf16 %v6169_v29  ;;  %v1645_v35 = vld [vmem:[#allocation2 + $0x2a0] sm:$0xff]  ;;  %v6170_v36 = vld [vmem:[%s7035_s21 + $0x150] sm:$0xff]   ;;  %v1646_v37 = vld [vmem:[#allocation2 + $0x2a8] sm:$0xff]  ;;  %2149 = vst [vmem:[#allocation2 + $0x260] sm:$0xff] %v2021_v24 }
 0x190   : > { %2150 = vst [vmem:[#allocation2 + $0x268] sm:$0xff] %v2022_v25  ;;  %v2025_v38 = vadd.f32 %v5779_v26, %v1641_v21  ;;  %v2026_v39 = vadd.f32 %v5780_v27, %v1642_v23  ;;  %v5787_v40 = vunpack.c.l.bf16 %v6170_v36  ;;  %v5788_v41 = vunpack.c.h.bf16 %v6170_v36  ;;  %v1647_v42 = vld [vmem:[#allocation2 + $0x2b0] sm:$0xff]  ;;  %v6171_v43 = vld [vmem:[%s7035_s21 + $0x158] sm:$0xff]   ;;  %2151 = vst [vmem:[#allocation2 + $0x270] sm:$0xff] %v2023_v31 }
 0x191   : > { %v1648_v44 = vld [vmem:[#allocation2 + $0x2b8] sm:$0xff]  ;;  %2152 = vst [vmem:[#allocation2 + $0x278] sm:$0xff] %v2024_v32  ;;  %v2027_v45 = vadd.f32 %v5783_v33, %v1643_v28  ;;  %v2028_v46 = vadd.f32 %v5784_v34, %v1644_v30  ;;  %v5791_v47 = vunpack.c.l.bf16 %v6171_v43  ;;  %v5792_v48 = vunpack.c.h.bf16 %v6171_v43  ;;  %v1649_v49 = vld [vmem:[#allocation2 + $0x2c0] sm:$0xff]  ;;  %v1650_v51 = vld [vmem:[#allocation2 + $0x2c8] sm:$0xff] }
 0x192   : > { %v6172_v50 = vld [vmem:[%s7035_s21 + $0x160] sm:$0xff]   ;;  %2153 = vst [vmem:[#allocation2 + $0x280] sm:$0xff] %v2025_v38  ;;  %2154 = vst [vmem:[#allocation2 + $0x288] sm:$0xff] %v2026_v39  ;;  %v2029_v52 = vadd.f32 %v5787_v40, %v1645_v35  ;;  %v2030_v53 = vadd.f32 %v5788_v41, %v1646_v37  ;;  %v1651_v56 = vld [vmem:[#allocation2 + $0x2d0] sm:$0xff] }
 0x193   : > { %v5795_v54 = vunpack.c.l.bf16 %v6172_v50  ;;  %v5796_v55 = vunpack.c.h.bf16 %v6172_v50  ;;  %v6173_v57 = vld [vmem:[%s7035_s21 + $0x168] sm:$0xff]   ;;  %v1652_v58 = vld [vmem:[#allocation2 + $0x2d8] sm:$0xff]  ;;  %2155 = vst [vmem:[#allocation2 + $0x290] sm:$0xff] %v2027_v45  ;;  %2156 = vst [vmem:[#allocation2 + $0x298] sm:$0xff] %v2028_v46  ;;  %v2031_v59 = vadd.f32 %v5791_v47, %v1647_v42  ;;  %v2032_v60 = vadd.f32 %v5792_v48, %v1648_v44 }
 0x194   : > { %v5799_v61 = vunpack.c.l.bf16 %v6173_v57  ;;  %v5800_v62 = vunpack.c.h.bf16 %v6173_v57  ;;  %v1653_v63 = vld [vmem:[#allocation2 + $0x2e0] sm:$0xff]  ;;  %v6174_v0 = vld [vmem:[%s7035_s21 + $0x170] sm:$0xff]   ;;  %v1654_v1 = vld [vmem:[#allocation2 + $0x2e8] sm:$0xff]  ;;  %2157 = vst [vmem:[#allocation2 + $0x2a0] sm:$0xff] %v2029_v52 }
 0x195   : > { %2158 = vst [vmem:[#allocation2 + $0x2a8] sm:$0xff] %v2030_v53  ;;  %v2033_v2 = vadd.f32 %v5795_v54, %v1649_v49  ;;  %v2034_v3 = vadd.f32 %v5796_v55, %v1650_v51  ;;  %v5803_v4 = vunpack.c.l.bf16 %v6174_v0  ;;  %v5804_v5 = vunpack.c.h.bf16 %v6174_v0  ;;  %v1655_v6 = vld [vmem:[#allocation2 + $0x2f0] sm:$0xff]  ;;  %v6175_v7 = vld [vmem:[%s7035_s21 + $0x178] sm:$0xff]   ;;  %2159 = vst [vmem:[#allocation2 + $0x2b0] sm:$0xff] %v2031_v59 }
 0x196   : > { %v1656_v8 = vld [vmem:[#allocation2 + $0x2f8] sm:$0xff]  ;;  %2160 = vst [vmem:[#allocation2 + $0x2b8] sm:$0xff] %v2032_v60  ;;  %v2035_v9 = vadd.f32 %v5799_v61, %v1651_v56  ;;  %v2036_v10 = vadd.f32 %v5800_v62, %v1652_v58  ;;  %v5807_v11 = vunpack.c.l.bf16 %v6175_v7  ;;  %v5808_v12 = vunpack.c.h.bf16 %v6175_v7  ;;  %v1657_v13 = vld [vmem:[#allocation2 + $0x300] sm:$0xff]  ;;  %v1658_v15 = vld [vmem:[#allocation2 + $0x308] sm:$0xff] }
 0x197   : > { %v6176_v14 = vld [vmem:[%s7035_s21 + $0x180] sm:$0xff]   ;;  %2161 = vst [vmem:[#allocation2 + $0x2c0] sm:$0xff] %v2033_v2  ;;  %2162 = vst [vmem:[#allocation2 + $0x2c8] sm:$0xff] %v2034_v3  ;;  %v2037_v16 = vadd.f32 %v5803_v4, %v1653_v63  ;;  %v2038_v17 = vadd.f32 %v5804_v5, %v1654_v1  ;;  %v1659_v20 = vld [vmem:[#allocation2 + $0x310] sm:$0xff] }
 0x198   : > { %v5811_v18 = vunpack.c.l.bf16 %v6176_v14  ;;  %v5812_v19 = vunpack.c.h.bf16 %v6176_v14  ;;  %v6177_v21 = vld [vmem:[%s7035_s21 + $0x188] sm:$0xff]   ;;  %v1660_v22 = vld [vmem:[#allocation2 + $0x318] sm:$0xff]  ;;  %2163 = vst [vmem:[#allocation2 + $0x2d0] sm:$0xff] %v2035_v9  ;;  %2164 = vst [vmem:[#allocation2 + $0x2d8] sm:$0xff] %v2036_v10  ;;  %v2039_v23 = vadd.f32 %v5807_v11, %v1655_v6  ;;  %v2040_v24 = vadd.f32 %v5808_v12, %v1656_v8 }
 0x199   : > { %v5815_v25 = vunpack.c.l.bf16 %v6177_v21  ;;  %v5816_v26 = vunpack.c.h.bf16 %v6177_v21  ;;  %v1661_v27 = vld [vmem:[#allocation2 + $0x320] sm:$0xff]  ;;  %v6178_v28 = vld [vmem:[%s7035_s21 + $0x190] sm:$0xff]   ;;  %v1662_v29 = vld [vmem:[#allocation2 + $0x328] sm:$0xff]  ;;  %2165 = vst [vmem:[#allocation2 + $0x2e0] sm:$0xff] %v2037_v16 }
 0x19a   : > { %2166 = vst [vmem:[#allocation2 + $0x2e8] sm:$0xff] %v2038_v17  ;;  %v2041_v30 = vadd.f32 %v5811_v18, %v1657_v13  ;;  %v2042_v31 = vadd.f32 %v5812_v19, %v1658_v15  ;;  %v5819_v32 = vunpack.c.l.bf16 %v6178_v28  ;;  %v5820_v33 = vunpack.c.h.bf16 %v6178_v28  ;;  %v1663_v34 = vld [vmem:[#allocation2 + $0x330] sm:$0xff]  ;;  %v6179_v35 = vld [vmem:[%s7035_s21 + $0x198] sm:$0xff]   ;;  %2167 = vst [vmem:[#allocation2 + $0x2f0] sm:$0xff] %v2039_v23 }
 0x19b   : > { %v1664_v36 = vld [vmem:[#allocation2 + $0x338] sm:$0xff]  ;;  %2168 = vst [vmem:[#allocation2 + $0x2f8] sm:$0xff] %v2040_v24  ;;  %v2043_v37 = vadd.f32 %v5815_v25, %v1659_v20  ;;  %v2044_v38 = vadd.f32 %v5816_v26, %v1660_v22  ;;  %v5823_v39 = vunpack.c.l.bf16 %v6179_v35  ;;  %v5824_v40 = vunpack.c.h.bf16 %v6179_v35  ;;  %v1665_v41 = vld [vmem:[#allocation2 + $0x340] sm:$0xff]  ;;  %v1666_v43 = vld [vmem:[#allocation2 + $0x348] sm:$0xff] }
 0x19c   : > { %v6180_v42 = vld [vmem:[%s7035_s21 + $0x1a0] sm:$0xff]   ;;  %2169 = vst [vmem:[#allocation2 + $0x300] sm:$0xff] %v2041_v30  ;;  %2170 = vst [vmem:[#allocation2 + $0x308] sm:$0xff] %v2042_v31  ;;  %v2045_v44 = vadd.f32 %v5819_v32, %v1661_v27  ;;  %v2046_v45 = vadd.f32 %v5820_v33, %v1662_v29  ;;  %v1667_v48 = vld [vmem:[#allocation2 + $0x350] sm:$0xff] }
 0x19d   : > { %v5827_v46 = vunpack.c.l.bf16 %v6180_v42  ;;  %v5828_v47 = vunpack.c.h.bf16 %v6180_v42  ;;  %v6181_v49 = vld [vmem:[%s7035_s21 + $0x1a8] sm:$0xff]   ;;  %v1668_v50 = vld [vmem:[#allocation2 + $0x358] sm:$0xff]  ;;  %2171 = vst [vmem:[#allocation2 + $0x310] sm:$0xff] %v2043_v37  ;;  %2172 = vst [vmem:[#allocation2 + $0x318] sm:$0xff] %v2044_v38  ;;  %v2047_v51 = vadd.f32 %v5823_v39, %v1663_v34  ;;  %v2048_v52 = vadd.f32 %v5824_v40, %v1664_v36 }
 0x19e   : > { %v5831_v53 = vunpack.c.l.bf16 %v6181_v49  ;;  %v5832_v54 = vunpack.c.h.bf16 %v6181_v49  ;;  %v1669_v55 = vld [vmem:[#allocation2 + $0x360] sm:$0xff]  ;;  %v6182_v56 = vld [vmem:[%s7035_s21 + $0x1b0] sm:$0xff]   ;;  %v1670_v57 = vld [vmem:[#allocation2 + $0x368] sm:$0xff]  ;;  %2173 = vst [vmem:[#allocation2 + $0x320] sm:$0xff] %v2045_v44 }
 0x19f   : > { %2174 = vst [vmem:[#allocation2 + $0x328] sm:$0xff] %v2046_v45  ;;  %v2049_v58 = vadd.f32 %v5827_v46, %v1665_v41  ;;  %v2050_v59 = vadd.f32 %v5828_v47, %v1666_v43  ;;  %v5835_v60 = vunpack.c.l.bf16 %v6182_v56  ;;  %v5836_v61 = vunpack.c.h.bf16 %v6182_v56  ;;  %v1671_v62 = vld [vmem:[#allocation2 + $0x370] sm:$0xff]  ;;  %v6183_v63 = vld [vmem:[%s7035_s21 + $0x1b8] sm:$0xff]   ;;  %2175 = vst [vmem:[#allocation2 + $0x330] sm:$0xff] %v2047_v51 }
 0x1a0   : > { %v1672_v0 = vld [vmem:[#allocation2 + $0x378] sm:$0xff]  ;;  %2176 = vst [vmem:[#allocation2 + $0x338] sm:$0xff] %v2048_v52  ;;  %v2051_v1 = vadd.f32 %v5831_v53, %v1667_v48  ;;  %v2052_v2 = vadd.f32 %v5832_v54, %v1668_v50  ;;  %v5839_v3 = vunpack.c.l.bf16 %v6183_v63  ;;  %v5840_v4 = vunpack.c.h.bf16 %v6183_v63  ;;  %v1673_v5 = vld [vmem:[#allocation2 + $0x380] sm:$0xff]  ;;  %v1674_v7 = vld [vmem:[#allocation2 + $0x388] sm:$0xff] }
 0x1a1   : > { %v6184_v6 = vld [vmem:[%s7035_s21 + $0x1c0] sm:$0xff]   ;;  %2177 = vst [vmem:[#allocation2 + $0x340] sm:$0xff] %v2049_v58  ;;  %2178 = vst [vmem:[#allocation2 + $0x348] sm:$0xff] %v2050_v59  ;;  %v2053_v8 = vadd.f32 %v5835_v60, %v1669_v55  ;;  %v2054_v9 = vadd.f32 %v5836_v61, %v1670_v57  ;;  %v1675_v12 = vld [vmem:[#allocation2 + $0x390] sm:$0xff] }
 0x1a2   : > { %v5843_v10 = vunpack.c.l.bf16 %v6184_v6  ;;  %v5844_v11 = vunpack.c.h.bf16 %v6184_v6  ;;  %v6185_v13 = vld [vmem:[%s7035_s21 + $0x1c8] sm:$0xff]   ;;  %v1676_v14 = vld [vmem:[#allocation2 + $0x398] sm:$0xff]  ;;  %2179 = vst [vmem:[#allocation2 + $0x350] sm:$0xff] %v2051_v1  ;;  %2180 = vst [vmem:[#allocation2 + $0x358] sm:$0xff] %v2052_v2  ;;  %v2055_v15 = vadd.f32 %v5839_v3, %v1671_v62  ;;  %v2056_v16 = vadd.f32 %v5840_v4, %v1672_v0 }
 0x1a3   : > { %v5847_v17 = vunpack.c.l.bf16 %v6185_v13  ;;  %v5848_v18 = vunpack.c.h.bf16 %v6185_v13  ;;  %v1677_v19 = vld [vmem:[#allocation2 + $0x3a0] sm:$0xff]  ;;  %v6186_v20 = vld [vmem:[%s7035_s21 + $0x1d0] sm:$0xff]   ;;  %v1678_v21 = vld [vmem:[#allocation2 + $0x3a8] sm:$0xff]  ;;  %2181 = vst [vmem:[#allocation2 + $0x360] sm:$0xff] %v2053_v8 }
 0x1a4   : > { %2182 = vst [vmem:[#allocation2 + $0x368] sm:$0xff] %v2054_v9  ;;  %v2057_v22 = vadd.f32 %v5843_v10, %v1673_v5  ;;  %v2058_v23 = vadd.f32 %v5844_v11, %v1674_v7  ;;  %v5851_v24 = vunpack.c.l.bf16 %v6186_v20  ;;  %v5852_v25 = vunpack.c.h.bf16 %v6186_v20  ;;  %v1679_v26 = vld [vmem:[#allocation2 + $0x3b0] sm:$0xff]  ;;  %v6187_v27 = vld [vmem:[%s7035_s21 + $0x1d8] sm:$0xff]   ;;  %2183 = vst [vmem:[#allocation2 + $0x370] sm:$0xff] %v2055_v15 }
 0x1a5   : > { %v1680_v28 = vld [vmem:[#allocation2 + $0x3b8] sm:$0xff]  ;;  %2184 = vst [vmem:[#allocation2 + $0x378] sm:$0xff] %v2056_v16  ;;  %v2059_v29 = vadd.f32 %v5847_v17, %v1675_v12  ;;  %v2060_v30 = vadd.f32 %v5848_v18, %v1676_v14  ;;  %v5855_v31 = vunpack.c.l.bf16 %v6187_v27  ;;  %v5856_v32 = vunpack.c.h.bf16 %v6187_v27  ;;  %v1681_v33 = vld [vmem:[#allocation2 + $0x3c0] sm:$0xff]  ;;  %v1682_v35 = vld [vmem:[#allocation2 + $0x3c8] sm:$0xff] }
 0x1a6   : > { %v6188_v34 = vld [vmem:[%s7035_s21 + $0x1e0] sm:$0xff]   ;;  %2185 = vst [vmem:[#allocation2 + $0x380] sm:$0xff] %v2057_v22  ;;  %2186 = vst [vmem:[#allocation2 + $0x388] sm:$0xff] %v2058_v23  ;;  %v2061_v36 = vadd.f32 %v5851_v24, %v1677_v19  ;;  %v2062_v37 = vadd.f32 %v5852_v25, %v1678_v21  ;;  %v1683_v40 = vld [vmem:[#allocation2 + $0x3d0] sm:$0xff] }
 0x1a7   : > { %v5859_v38 = vunpack.c.l.bf16 %v6188_v34  ;;  %v5860_v39 = vunpack.c.h.bf16 %v6188_v34  ;;  %v6189_v41 = vld [vmem:[%s7035_s21 + $0x1e8] sm:$0xff]   ;;  %v1684_v42 = vld [vmem:[#allocation2 + $0x3d8] sm:$0xff]  ;;  %2187 = vst [vmem:[#allocation2 + $0x390] sm:$0xff] %v2059_v29  ;;  %2188 = vst [vmem:[#allocation2 + $0x398] sm:$0xff] %v2060_v30  ;;  %v2063_v43 = vadd.f32 %v5855_v31, %v1679_v26  ;;  %v2064_v44 = vadd.f32 %v5856_v32, %v1680_v28 }
 0x1a8   : > { %v5863_v45 = vunpack.c.l.bf16 %v6189_v41  ;;  %v5864_v46 = vunpack.c.h.bf16 %v6189_v41  ;;  %v1685_v47 = vld [vmem:[#allocation2 + $0x3e0] sm:$0xff]  ;;  %v6190_v48 = vld [vmem:[%s7035_s21 + $0x1f0] sm:$0xff]   ;;  %v1686_v49 = vld [vmem:[#allocation2 + $0x3e8] sm:$0xff]  ;;  %2189 = vst [vmem:[#allocation2 + $0x3a0] sm:$0xff] %v2061_v36 }
 0x1a9   : > { %2190 = vst [vmem:[#allocation2 + $0x3a8] sm:$0xff] %v2062_v37  ;;  %v2065_v50 = vadd.f32 %v5859_v38, %v1681_v33  ;;  %v2066_v51 = vadd.f32 %v5860_v39, %v1682_v35  ;;  %v5867_v52 = vunpack.c.l.bf16 %v6190_v48  ;;  %v5868_v53 = vunpack.c.h.bf16 %v6190_v48  ;;  %v1687_v54 = vld [vmem:[#allocation2 + $0x3f0] sm:$0xff]  ;;  %v6191_v55 = vld [vmem:[%s7035_s21 + $0x1f8] sm:$0xff]   ;;  %2191 = vst [vmem:[#allocation2 + $0x3b0] sm:$0xff] %v2063_v43 }
 0x1aa   : > { %v1688_v56 = vld [vmem:[#allocation2 + $0x3f8] sm:$0xff]  ;;  %2192 = vst [vmem:[#allocation2 + $0x3b8] sm:$0xff] %v2064_v44  ;;  %v2067_v57 = vadd.f32 %v5863_v45, %v1683_v40  ;;  %v2068_v58 = vadd.f32 %v5864_v46, %v1684_v42  ;;  %v5871_v59 = vunpack.c.l.bf16 %v6191_v55  ;;  %v5872_v60 = vunpack.c.h.bf16 %v6191_v55  ;;  %v2202_v61 = vld [vmem:[#allocation2 + $0x400] sm:$0xff]  ;;  %v2203_v63 = vld [vmem:[#allocation2 + $0x408] sm:$0xff] }
 0x1ab   : > { %v5874_v62 = vld [vmem:[%s7037_s23] sm:$0xff]   ;;  %2193 = vst [vmem:[#allocation2 + $0x3c0] sm:$0xff] %v2065_v50  ;;  %2194 = vst [vmem:[#allocation2 + $0x3c8] sm:$0xff] %v2066_v51  ;;  %v2069_v0 = vadd.f32 %v5867_v52, %v1685_v47  ;;  %v2070_v1 = vadd.f32 %v5868_v53, %v1686_v49  ;;  %v2204_v4 = vld [vmem:[#allocation2 + $0x410] sm:$0xff] }
 0x1ac   : > { %v5875_v2 = vunpack.c.l.bf16 %v5874_v62  ;;  %v5876_v3 = vunpack.c.h.bf16 %v5874_v62  ;;  %v6192_v5 = vld [vmem:[%s7037_s23 + $0x8] sm:$0xff]   ;;  %v2205_v6 = vld [vmem:[#allocation2 + $0x418] sm:$0xff]  ;;  %2195 = vst [vmem:[#allocation2 + $0x3d0] sm:$0xff] %v2067_v57  ;;  %2196 = vst [vmem:[#allocation2 + $0x3d8] sm:$0xff] %v2068_v58  ;;  %v2071_v7 = vadd.f32 %v5871_v59, %v1687_v54  ;;  %v2072_v8 = vadd.f32 %v5872_v60, %v1688_v56 }
 0x1ad   : > { %v5879_v9 = vunpack.c.l.bf16 %v6192_v5  ;;  %v5880_v10 = vunpack.c.h.bf16 %v6192_v5  ;;  %v2206_v11 = vld [vmem:[#allocation2 + $0x420] sm:$0xff]  ;;  %v6193_v12 = vld [vmem:[%s7037_s23 + $0x10] sm:$0xff]   ;;  %v2207_v13 = vld [vmem:[#allocation2 + $0x428] sm:$0xff]  ;;  %2197 = vst [vmem:[#allocation2 + $0x3e0] sm:$0xff] %v2069_v0 }
 0x1ae   : > { %2198 = vst [vmem:[#allocation2 + $0x3e8] sm:$0xff] %v2070_v1  ;;  %v2586_v14 = vadd.f32 %v5875_v2, %v2202_v61  ;;  %v2587_v15 = vadd.f32 %v5876_v3, %v2203_v63  ;;  %v5883_v16 = vunpack.c.l.bf16 %v6193_v12  ;;  %v5884_v17 = vunpack.c.h.bf16 %v6193_v12  ;;  %v2208_v18 = vld [vmem:[#allocation2 + $0x430] sm:$0xff]  ;;  %v6194_v19 = vld [vmem:[%s7037_s23 + $0x18] sm:$0xff]   ;;  %2199 = vst [vmem:[#allocation2 + $0x3f0] sm:$0xff] %v2071_v7 }
 0x1af   : > { %v2209_v20 = vld [vmem:[#allocation2 + $0x438] sm:$0xff]  ;;  %2200 = vst [vmem:[#allocation2 + $0x3f8] sm:$0xff] %v2072_v8  ;;  %v2588_v21 = vadd.f32 %v5879_v9, %v2204_v4  ;;  %v2589_v22 = vadd.f32 %v5880_v10, %v2205_v6  ;;  %v5887_v23 = vunpack.c.l.bf16 %v6194_v19  ;;  %v5888_v24 = vunpack.c.h.bf16 %v6194_v19  ;;  %v2210_v25 = vld [vmem:[#allocation2 + $0x440] sm:$0xff]  ;;  %v2211_v27 = vld [vmem:[#allocation2 + $0x448] sm:$0xff] }
 0x1b0   : > { %v6195_v26 = vld [vmem:[%s7037_s23 + $0x20] sm:$0xff]   ;;  %2714 = vst [vmem:[#allocation2 + $0x400] sm:$0xff] %v2586_v14  ;;  %2715 = vst [vmem:[#allocation2 + $0x408] sm:$0xff] %v2587_v15  ;;  %v2590_v28 = vadd.f32 %v5883_v16, %v2206_v11  ;;  %v2591_v29 = vadd.f32 %v5884_v17, %v2207_v13  ;;  %v2212_v32 = vld [vmem:[#allocation2 + $0x450] sm:$0xff] }
 0x1b1   : > { %v5891_v30 = vunpack.c.l.bf16 %v6195_v26  ;;  %v5892_v31 = vunpack.c.h.bf16 %v6195_v26  ;;  %v6196_v33 = vld [vmem:[%s7037_s23 + $0x28] sm:$0xff]   ;;  %v2213_v34 = vld [vmem:[#allocation2 + $0x458] sm:$0xff]  ;;  %2716 = vst [vmem:[#allocation2 + $0x410] sm:$0xff] %v2588_v21  ;;  %2717 = vst [vmem:[#allocation2 + $0x418] sm:$0xff] %v2589_v22  ;;  %v2592_v35 = vadd.f32 %v5887_v23, %v2208_v18  ;;  %v2593_v36 = vadd.f32 %v5888_v24, %v2209_v20 }
 0x1b2   : > { %v5895_v37 = vunpack.c.l.bf16 %v6196_v33  ;;  %v5896_v38 = vunpack.c.h.bf16 %v6196_v33  ;;  %v2214_v39 = vld [vmem:[#allocation2 + $0x460] sm:$0xff]  ;;  %v6197_v40 = vld [vmem:[%s7037_s23 + $0x30] sm:$0xff]   ;;  %v2215_v41 = vld [vmem:[#allocation2 + $0x468] sm:$0xff]  ;;  %2718 = vst [vmem:[#allocation2 + $0x420] sm:$0xff] %v2590_v28 }
 0x1b3   : > { %2719 = vst [vmem:[#allocation2 + $0x428] sm:$0xff] %v2591_v29  ;;  %v2594_v42 = vadd.f32 %v5891_v30, %v2210_v25  ;;  %v2595_v43 = vadd.f32 %v5892_v31, %v2211_v27  ;;  %v5899_v44 = vunpack.c.l.bf16 %v6197_v40  ;;  %v5900_v45 = vunpack.c.h.bf16 %v6197_v40  ;;  %v2216_v46 = vld [vmem:[#allocation2 + $0x470] sm:$0xff]  ;;  %v6198_v47 = vld [vmem:[%s7037_s23 + $0x38] sm:$0xff]   ;;  %2720 = vst [vmem:[#allocation2 + $0x430] sm:$0xff] %v2592_v35 }
 0x1b4   : > { %v2217_v48 = vld [vmem:[#allocation2 + $0x478] sm:$0xff]  ;;  %2721 = vst [vmem:[#allocation2 + $0x438] sm:$0xff] %v2593_v36  ;;  %v2596_v49 = vadd.f32 %v5895_v37, %v2212_v32  ;;  %v2597_v50 = vadd.f32 %v5896_v38, %v2213_v34  ;;  %v5903_v51 = vunpack.c.l.bf16 %v6198_v47  ;;  %v5904_v52 = vunpack.c.h.bf16 %v6198_v47  ;;  %v2218_v53 = vld [vmem:[#allocation2 + $0x480] sm:$0xff]  ;;  %v2219_v55 = vld [vmem:[#allocation2 + $0x488] sm:$0xff] }
 0x1b5   : > { %v6199_v54 = vld [vmem:[%s7037_s23 + $0x40] sm:$0xff]   ;;  %2722 = vst [vmem:[#allocation2 + $0x440] sm:$0xff] %v2594_v42  ;;  %2723 = vst [vmem:[#allocation2 + $0x448] sm:$0xff] %v2595_v43  ;;  %v2598_v56 = vadd.f32 %v5899_v44, %v2214_v39  ;;  %v2599_v57 = vadd.f32 %v5900_v45, %v2215_v41  ;;  %v2220_v60 = vld [vmem:[#allocation2 + $0x490] sm:$0xff] }
 0x1b6   : > { %v5907_v58 = vunpack.c.l.bf16 %v6199_v54  ;;  %v5908_v59 = vunpack.c.h.bf16 %v6199_v54  ;;  %v6200_v61 = vld [vmem:[%s7037_s23 + $0x48] sm:$0xff]   ;;  %v2221_v62 = vld [vmem:[#allocation2 + $0x498] sm:$0xff]  ;;  %2724 = vst [vmem:[#allocation2 + $0x450] sm:$0xff] %v2596_v49  ;;  %2725 = vst [vmem:[#allocation2 + $0x458] sm:$0xff] %v2597_v50  ;;  %v2600_v63 = vadd.f32 %v5903_v51, %v2216_v46  ;;  %v2601_v0 = vadd.f32 %v5904_v52, %v2217_v48 }
 0x1b7   : > { %v5911_v1 = vunpack.c.l.bf16 %v6200_v61  ;;  %v5912_v2 = vunpack.c.h.bf16 %v6200_v61  ;;  %v2222_v3 = vld [vmem:[#allocation2 + $0x4a0] sm:$0xff]  ;;  %v6201_v4 = vld [vmem:[%s7037_s23 + $0x50] sm:$0xff]   ;;  %v2223_v5 = vld [vmem:[#allocation2 + $0x4a8] sm:$0xff]  ;;  %2726 = vst [vmem:[#allocation2 + $0x460] sm:$0xff] %v2598_v56 }
 0x1b8   : > { %2727 = vst [vmem:[#allocation2 + $0x468] sm:$0xff] %v2599_v57  ;;  %v2602_v6 = vadd.f32 %v5907_v58, %v2218_v53  ;;  %v2603_v7 = vadd.f32 %v5908_v59, %v2219_v55  ;;  %v5915_v8 = vunpack.c.l.bf16 %v6201_v4  ;;  %v5916_v9 = vunpack.c.h.bf16 %v6201_v4  ;;  %v2224_v10 = vld [vmem:[#allocation2 + $0x4b0] sm:$0xff]  ;;  %v6202_v11 = vld [vmem:[%s7037_s23 + $0x58] sm:$0xff]   ;;  %2728 = vst [vmem:[#allocation2 + $0x470] sm:$0xff] %v2600_v63 }
 0x1b9   : > { %v2225_v12 = vld [vmem:[#allocation2 + $0x4b8] sm:$0xff]  ;;  %2729 = vst [vmem:[#allocation2 + $0x478] sm:$0xff] %v2601_v0  ;;  %v2604_v13 = vadd.f32 %v5911_v1, %v2220_v60  ;;  %v2605_v14 = vadd.f32 %v5912_v2, %v2221_v62  ;;  %v5919_v15 = vunpack.c.l.bf16 %v6202_v11  ;;  %v5920_v16 = vunpack.c.h.bf16 %v6202_v11  ;;  %v2226_v17 = vld [vmem:[#allocation2 + $0x4c0] sm:$0xff]  ;;  %v2227_v19 = vld [vmem:[#allocation2 + $0x4c8] sm:$0xff] }
 0x1ba   : > { %v6203_v18 = vld [vmem:[%s7037_s23 + $0x60] sm:$0xff]   ;;  %2730 = vst [vmem:[#allocation2 + $0x480] sm:$0xff] %v2602_v6  ;;  %2731 = vst [vmem:[#allocation2 + $0x488] sm:$0xff] %v2603_v7  ;;  %v2606_v20 = vadd.f32 %v5915_v8, %v2222_v3  ;;  %v2607_v21 = vadd.f32 %v5916_v9, %v2223_v5  ;;  %v2228_v24 = vld [vmem:[#allocation2 + $0x4d0] sm:$0xff] }
 0x1bb   : > { %v5923_v22 = vunpack.c.l.bf16 %v6203_v18  ;;  %v5924_v23 = vunpack.c.h.bf16 %v6203_v18  ;;  %v6204_v25 = vld [vmem:[%s7037_s23 + $0x68] sm:$0xff]   ;;  %v2229_v26 = vld [vmem:[#allocation2 + $0x4d8] sm:$0xff]  ;;  %2732 = vst [vmem:[#allocation2 + $0x490] sm:$0xff] %v2604_v13  ;;  %2733 = vst [vmem:[#allocation2 + $0x498] sm:$0xff] %v2605_v14  ;;  %v2608_v27 = vadd.f32 %v5919_v15, %v2224_v10  ;;  %v2609_v28 = vadd.f32 %v5920_v16, %v2225_v12 }
 0x1bc   : > { %v5927_v29 = vunpack.c.l.bf16 %v6204_v25  ;;  %v5928_v30 = vunpack.c.h.bf16 %v6204_v25  ;;  %v2230_v31 = vld [vmem:[#allocation2 + $0x4e0] sm:$0xff]  ;;  %v6205_v32 = vld [vmem:[%s7037_s23 + $0x70] sm:$0xff]   ;;  %v2231_v33 = vld [vmem:[#allocation2 + $0x4e8] sm:$0xff]  ;;  %2734 = vst [vmem:[#allocation2 + $0x4a0] sm:$0xff] %v2606_v20 }
 0x1bd   : > { %2735 = vst [vmem:[#allocation2 + $0x4a8] sm:$0xff] %v2607_v21  ;;  %v2610_v34 = vadd.f32 %v5923_v22, %v2226_v17  ;;  %v2611_v35 = vadd.f32 %v5924_v23, %v2227_v19  ;;  %v5931_v36 = vunpack.c.l.bf16 %v6205_v32  ;;  %v5932_v37 = vunpack.c.h.bf16 %v6205_v32  ;;  %v2232_v38 = vld [vmem:[#allocation2 + $0x4f0] sm:$0xff]  ;;  %v6206_v39 = vld [vmem:[%s7037_s23 + $0x78] sm:$0xff]   ;;  %2736 = vst [vmem:[#allocation2 + $0x4b0] sm:$0xff] %v2608_v27 }
 0x1be   : > { %v2233_v40 = vld [vmem:[#allocation2 + $0x4f8] sm:$0xff]  ;;  %2737 = vst [vmem:[#allocation2 + $0x4b8] sm:$0xff] %v2609_v28  ;;  %v2612_v41 = vadd.f32 %v5927_v29, %v2228_v24  ;;  %v2613_v42 = vadd.f32 %v5928_v30, %v2229_v26  ;;  %v5935_v43 = vunpack.c.l.bf16 %v6206_v39  ;;  %v5936_v44 = vunpack.c.h.bf16 %v6206_v39  ;;  %v2234_v45 = vld [vmem:[#allocation2 + $0x500] sm:$0xff]  ;;  %v2235_v47 = vld [vmem:[#allocation2 + $0x508] sm:$0xff] }
 0x1bf   : > { %v6207_v46 = vld [vmem:[%s7037_s23 + $0x80] sm:$0xff]   ;;  %2738 = vst [vmem:[#allocation2 + $0x4c0] sm:$0xff] %v2610_v34  ;;  %2739 = vst [vmem:[#allocation2 + $0x4c8] sm:$0xff] %v2611_v35  ;;  %v2614_v48 = vadd.f32 %v5931_v36, %v2230_v31  ;;  %v2615_v49 = vadd.f32 %v5932_v37, %v2231_v33  ;;  %v2236_v52 = vld [vmem:[#allocation2 + $0x510] sm:$0xff] }
 0x1c0   : > { %v5939_v50 = vunpack.c.l.bf16 %v6207_v46  ;;  %v5940_v51 = vunpack.c.h.bf16 %v6207_v46  ;;  %v6208_v53 = vld [vmem:[%s7037_s23 + $0x88] sm:$0xff]   ;;  %v2237_v54 = vld [vmem:[#allocation2 + $0x518] sm:$0xff]  ;;  %2740 = vst [vmem:[#allocation2 + $0x4d0] sm:$0xff] %v2612_v41  ;;  %2741 = vst [vmem:[#allocation2 + $0x4d8] sm:$0xff] %v2613_v42  ;;  %v2616_v55 = vadd.f32 %v5935_v43, %v2232_v38  ;;  %v2617_v56 = vadd.f32 %v5936_v44, %v2233_v40 }
 0x1c1   : > { %v5943_v57 = vunpack.c.l.bf16 %v6208_v53  ;;  %v5944_v58 = vunpack.c.h.bf16 %v6208_v53  ;;  %v2238_v59 = vld [vmem:[#allocation2 + $0x520] sm:$0xff]  ;;  %v6209_v60 = vld [vmem:[%s7037_s23 + $0x90] sm:$0xff]   ;;  %v2239_v61 = vld [vmem:[#allocation2 + $0x528] sm:$0xff]  ;;  %2742 = vst [vmem:[#allocation2 + $0x4e0] sm:$0xff] %v2614_v48 }
 0x1c2   : > { %2743 = vst [vmem:[#allocation2 + $0x4e8] sm:$0xff] %v2615_v49  ;;  %v2618_v62 = vadd.f32 %v5939_v50, %v2234_v45  ;;  %v2619_v63 = vadd.f32 %v5940_v51, %v2235_v47  ;;  %v5947_v0 = vunpack.c.l.bf16 %v6209_v60  ;;  %v5948_v1 = vunpack.c.h.bf16 %v6209_v60  ;;  %v2240_v2 = vld [vmem:[#allocation2 + $0x530] sm:$0xff]  ;;  %v6210_v3 = vld [vmem:[%s7037_s23 + $0x98] sm:$0xff]   ;;  %2744 = vst [vmem:[#allocation2 + $0x4f0] sm:$0xff] %v2616_v55 }
 0x1c3   : > { %v2241_v4 = vld [vmem:[#allocation2 + $0x538] sm:$0xff]  ;;  %2745 = vst [vmem:[#allocation2 + $0x4f8] sm:$0xff] %v2617_v56  ;;  %v2620_v5 = vadd.f32 %v5943_v57, %v2236_v52  ;;  %v2621_v6 = vadd.f32 %v5944_v58, %v2237_v54  ;;  %v5951_v7 = vunpack.c.l.bf16 %v6210_v3  ;;  %v5952_v8 = vunpack.c.h.bf16 %v6210_v3  ;;  %v2242_v9 = vld [vmem:[#allocation2 + $0x540] sm:$0xff]  ;;  %v2243_v11 = vld [vmem:[#allocation2 + $0x548] sm:$0xff] }
 0x1c4   : > { %v6211_v10 = vld [vmem:[%s7037_s23 + $0xa0] sm:$0xff]   ;;  %2746 = vst [vmem:[#allocation2 + $0x500] sm:$0xff] %v2618_v62  ;;  %2747 = vst [vmem:[#allocation2 + $0x508] sm:$0xff] %v2619_v63  ;;  %v2622_v12 = vadd.f32 %v5947_v0, %v2238_v59  ;;  %v2623_v13 = vadd.f32 %v5948_v1, %v2239_v61  ;;  %v2244_v16 = vld [vmem:[#allocation2 + $0x550] sm:$0xff] }
 0x1c5   : > { %v5955_v14 = vunpack.c.l.bf16 %v6211_v10  ;;  %v5956_v15 = vunpack.c.h.bf16 %v6211_v10  ;;  %v6212_v17 = vld [vmem:[%s7037_s23 + $0xa8] sm:$0xff]   ;;  %v2245_v18 = vld [vmem:[#allocation2 + $0x558] sm:$0xff]  ;;  %2748 = vst [vmem:[#allocation2 + $0x510] sm:$0xff] %v2620_v5  ;;  %2749 = vst [vmem:[#allocation2 + $0x518] sm:$0xff] %v2621_v6  ;;  %v2624_v19 = vadd.f32 %v5951_v7, %v2240_v2  ;;  %v2625_v20 = vadd.f32 %v5952_v8, %v2241_v4 }
 0x1c6   : > { %v5959_v21 = vunpack.c.l.bf16 %v6212_v17  ;;  %v5960_v22 = vunpack.c.h.bf16 %v6212_v17  ;;  %v2246_v23 = vld [vmem:[#allocation2 + $0x560] sm:$0xff]  ;;  %v6213_v24 = vld [vmem:[%s7037_s23 + $0xb0] sm:$0xff]   ;;  %v2247_v25 = vld [vmem:[#allocation2 + $0x568] sm:$0xff]  ;;  %2750 = vst [vmem:[#allocation2 + $0x520] sm:$0xff] %v2622_v12 }
 0x1c7   : > { %2751 = vst [vmem:[#allocation2 + $0x528] sm:$0xff] %v2623_v13  ;;  %v2626_v26 = vadd.f32 %v5955_v14, %v2242_v9  ;;  %v2627_v27 = vadd.f32 %v5956_v15, %v2243_v11  ;;  %v5963_v28 = vunpack.c.l.bf16 %v6213_v24  ;;  %v5964_v29 = vunpack.c.h.bf16 %v6213_v24  ;;  %v2248_v30 = vld [vmem:[#allocation2 + $0x570] sm:$0xff]  ;;  %v6214_v31 = vld [vmem:[%s7037_s23 + $0xb8] sm:$0xff]   ;;  %2752 = vst [vmem:[#allocation2 + $0x530] sm:$0xff] %v2624_v19 }
 0x1c8   : > { %v2249_v32 = vld [vmem:[#allocation2 + $0x578] sm:$0xff]  ;;  %2753 = vst [vmem:[#allocation2 + $0x538] sm:$0xff] %v2625_v20  ;;  %v2628_v33 = vadd.f32 %v5959_v21, %v2244_v16  ;;  %v2629_v34 = vadd.f32 %v5960_v22, %v2245_v18  ;;  %v5967_v35 = vunpack.c.l.bf16 %v6214_v31  ;;  %v5968_v36 = vunpack.c.h.bf16 %v6214_v31  ;;  %v2250_v37 = vld [vmem:[#allocation2 + $0x580] sm:$0xff]  ;;  %v2251_v39 = vld [vmem:[#allocation2 + $0x588] sm:$0xff] }
 0x1c9   : > { %v6215_v38 = vld [vmem:[%s7037_s23 + $0xc0] sm:$0xff]   ;;  %2754 = vst [vmem:[#allocation2 + $0x540] sm:$0xff] %v2626_v26  ;;  %2755 = vst [vmem:[#allocation2 + $0x548] sm:$0xff] %v2627_v27  ;;  %v2630_v40 = vadd.f32 %v5963_v28, %v2246_v23  ;;  %v2631_v41 = vadd.f32 %v5964_v29, %v2247_v25  ;;  %v2252_v44 = vld [vmem:[#allocation2 + $0x590] sm:$0xff] }
 0x1ca   : > { %v5971_v42 = vunpack.c.l.bf16 %v6215_v38  ;;  %v5972_v43 = vunpack.c.h.bf16 %v6215_v38  ;;  %v6216_v45 = vld [vmem:[%s7037_s23 + $0xc8] sm:$0xff]   ;;  %v2253_v46 = vld [vmem:[#allocation2 + $0x598] sm:$0xff]  ;;  %2756 = vst [vmem:[#allocation2 + $0x550] sm:$0xff] %v2628_v33  ;;  %2757 = vst [vmem:[#allocation2 + $0x558] sm:$0xff] %v2629_v34  ;;  %v2632_v47 = vadd.f32 %v5967_v35, %v2248_v30  ;;  %v2633_v48 = vadd.f32 %v5968_v36, %v2249_v32 }
 0x1cb   : > { %v5975_v49 = vunpack.c.l.bf16 %v6216_v45  ;;  %v5976_v50 = vunpack.c.h.bf16 %v6216_v45  ;;  %v2254_v51 = vld [vmem:[#allocation2 + $0x5a0] sm:$0xff]  ;;  %v6217_v52 = vld [vmem:[%s7037_s23 + $0xd0] sm:$0xff]   ;;  %v2255_v53 = vld [vmem:[#allocation2 + $0x5a8] sm:$0xff]  ;;  %2758 = vst [vmem:[#allocation2 + $0x560] sm:$0xff] %v2630_v40 }
 0x1cc   : > { %2759 = vst [vmem:[#allocation2 + $0x568] sm:$0xff] %v2631_v41  ;;  %v2634_v54 = vadd.f32 %v5971_v42, %v2250_v37  ;;  %v2635_v55 = vadd.f32 %v5972_v43, %v2251_v39  ;;  %v5979_v56 = vunpack.c.l.bf16 %v6217_v52  ;;  %v5980_v57 = vunpack.c.h.bf16 %v6217_v52  ;;  %v2256_v58 = vld [vmem:[#allocation2 + $0x5b0] sm:$0xff]  ;;  %v6218_v59 = vld [vmem:[%s7037_s23 + $0xd8] sm:$0xff]   ;;  %2760 = vst [vmem:[#allocation2 + $0x570] sm:$0xff] %v2632_v47 }
 0x1cd   : > { %v2257_v60 = vld [vmem:[#allocation2 + $0x5b8] sm:$0xff]  ;;  %2761 = vst [vmem:[#allocation2 + $0x578] sm:$0xff] %v2633_v48  ;;  %v2636_v61 = vadd.f32 %v5975_v49, %v2252_v44  ;;  %v2637_v62 = vadd.f32 %v5976_v50, %v2253_v46  ;;  %v5983_v63 = vunpack.c.l.bf16 %v6218_v59  ;;  %v5984_v0 = vunpack.c.h.bf16 %v6218_v59  ;;  %v2258_v1 = vld [vmem:[#allocation2 + $0x5c0] sm:$0xff]  ;;  %v2259_v3 = vld [vmem:[#allocation2 + $0x5c8] sm:$0xff] }
 0x1ce   : > { %v6219_v2 = vld [vmem:[%s7037_s23 + $0xe0] sm:$0xff]   ;;  %2762 = vst [vmem:[#allocation2 + $0x580] sm:$0xff] %v2634_v54  ;;  %2763 = vst [vmem:[#allocation2 + $0x588] sm:$0xff] %v2635_v55  ;;  %v2638_v4 = vadd.f32 %v5979_v56, %v2254_v51  ;;  %v2639_v5 = vadd.f32 %v5980_v57, %v2255_v53  ;;  %v2260_v8 = vld [vmem:[#allocation2 + $0x5d0] sm:$0xff] }
 0x1cf   : > { %v5987_v6 = vunpack.c.l.bf16 %v6219_v2  ;;  %v5988_v7 = vunpack.c.h.bf16 %v6219_v2  ;;  %v6220_v9 = vld [vmem:[%s7037_s23 + $0xe8] sm:$0xff]   ;;  %v2261_v10 = vld [vmem:[#allocation2 + $0x5d8] sm:$0xff]  ;;  %2764 = vst [vmem:[#allocation2 + $0x590] sm:$0xff] %v2636_v61  ;;  %2765 = vst [vmem:[#allocation2 + $0x598] sm:$0xff] %v2637_v62  ;;  %v2640_v11 = vadd.f32 %v5983_v63, %v2256_v58  ;;  %v2641_v12 = vadd.f32 %v5984_v0, %v2257_v60 }
 0x1d0   : > { %v5991_v13 = vunpack.c.l.bf16 %v6220_v9  ;;  %v5992_v14 = vunpack.c.h.bf16 %v6220_v9  ;;  %v2262_v15 = vld [vmem:[#allocation2 + $0x5e0] sm:$0xff]  ;;  %v6221_v16 = vld [vmem:[%s7037_s23 + $0xf0] sm:$0xff]   ;;  %v2263_v17 = vld [vmem:[#allocation2 + $0x5e8] sm:$0xff]  ;;  %2766 = vst [vmem:[#allocation2 + $0x5a0] sm:$0xff] %v2638_v4 }
 0x1d1   : > { %2767 = vst [vmem:[#allocation2 + $0x5a8] sm:$0xff] %v2639_v5  ;;  %v2642_v18 = vadd.f32 %v5987_v6, %v2258_v1  ;;  %v2643_v19 = vadd.f32 %v5988_v7, %v2259_v3  ;;  %v5995_v20 = vunpack.c.l.bf16 %v6221_v16  ;;  %v5996_v21 = vunpack.c.h.bf16 %v6221_v16  ;;  %v2264_v22 = vld [vmem:[#allocation2 + $0x5f0] sm:$0xff]  ;;  %v6222_v23 = vld [vmem:[%s7037_s23 + $0xf8] sm:$0xff]   ;;  %2768 = vst [vmem:[#allocation2 + $0x5b0] sm:$0xff] %v2640_v11 }
 0x1d2   : > { %v2265_v24 = vld [vmem:[#allocation2 + $0x5f8] sm:$0xff]  ;;  %2769 = vst [vmem:[#allocation2 + $0x5b8] sm:$0xff] %v2641_v12  ;;  %v2644_v25 = vadd.f32 %v5991_v13, %v2260_v8  ;;  %v2645_v26 = vadd.f32 %v5992_v14, %v2261_v10  ;;  %v5999_v27 = vunpack.c.l.bf16 %v6222_v23  ;;  %v6000_v28 = vunpack.c.h.bf16 %v6222_v23  ;;  %v2266_v29 = vld [vmem:[#allocation2 + $0x600] sm:$0xff]  ;;  %v2267_v31 = vld [vmem:[#allocation2 + $0x608] sm:$0xff] }
 0x1d3   : > { %v6223_v30 = vld [vmem:[%s7037_s23 + $0x100] sm:$0xff]   ;;  %2770 = vst [vmem:[#allocation2 + $0x5c0] sm:$0xff] %v2642_v18  ;;  %2771 = vst [vmem:[#allocation2 + $0x5c8] sm:$0xff] %v2643_v19  ;;  %v2646_v32 = vadd.f32 %v5995_v20, %v2262_v15  ;;  %v2647_v33 = vadd.f32 %v5996_v21, %v2263_v17  ;;  %v2268_v36 = vld [vmem:[#allocation2 + $0x610] sm:$0xff] }
 0x1d4   : > { %v6003_v34 = vunpack.c.l.bf16 %v6223_v30  ;;  %v6004_v35 = vunpack.c.h.bf16 %v6223_v30  ;;  %v6224_v37 = vld [vmem:[%s7037_s23 + $0x108] sm:$0xff]   ;;  %v2269_v38 = vld [vmem:[#allocation2 + $0x618] sm:$0xff]  ;;  %2772 = vst [vmem:[#allocation2 + $0x5d0] sm:$0xff] %v2644_v25  ;;  %2773 = vst [vmem:[#allocation2 + $0x5d8] sm:$0xff] %v2645_v26  ;;  %v2648_v39 = vadd.f32 %v5999_v27, %v2264_v22  ;;  %v2649_v40 = vadd.f32 %v6000_v28, %v2265_v24 }
 0x1d5   : > { %v6007_v41 = vunpack.c.l.bf16 %v6224_v37  ;;  %v6008_v42 = vunpack.c.h.bf16 %v6224_v37  ;;  %v2270_v43 = vld [vmem:[#allocation2 + $0x620] sm:$0xff]  ;;  %v6225_v44 = vld [vmem:[%s7037_s23 + $0x110] sm:$0xff]   ;;  %v2271_v45 = vld [vmem:[#allocation2 + $0x628] sm:$0xff]  ;;  %2774 = vst [vmem:[#allocation2 + $0x5e0] sm:$0xff] %v2646_v32 }
 0x1d6   : > { %2775 = vst [vmem:[#allocation2 + $0x5e8] sm:$0xff] %v2647_v33  ;;  %v2650_v46 = vadd.f32 %v6003_v34, %v2266_v29  ;;  %v2651_v47 = vadd.f32 %v6004_v35, %v2267_v31  ;;  %v6011_v48 = vunpack.c.l.bf16 %v6225_v44  ;;  %v6012_v49 = vunpack.c.h.bf16 %v6225_v44  ;;  %v2272_v50 = vld [vmem:[#allocation2 + $0x630] sm:$0xff]  ;;  %v6226_v51 = vld [vmem:[%s7037_s23 + $0x118] sm:$0xff]   ;;  %2776 = vst [vmem:[#allocation2 + $0x5f0] sm:$0xff] %v2648_v39 }
 0x1d7   : > { %v2273_v52 = vld [vmem:[#allocation2 + $0x638] sm:$0xff]  ;;  %2777 = vst [vmem:[#allocation2 + $0x5f8] sm:$0xff] %v2649_v40  ;;  %v2652_v53 = vadd.f32 %v6007_v41, %v2268_v36  ;;  %v2653_v54 = vadd.f32 %v6008_v42, %v2269_v38  ;;  %v6015_v55 = vunpack.c.l.bf16 %v6226_v51  ;;  %v6016_v56 = vunpack.c.h.bf16 %v6226_v51  ;;  %v2274_v57 = vld [vmem:[#allocation2 + $0x640] sm:$0xff]  ;;  %v2275_v59 = vld [vmem:[#allocation2 + $0x648] sm:$0xff] }
 0x1d8   : > { %v6227_v58 = vld [vmem:[%s7037_s23 + $0x120] sm:$0xff]   ;;  %2778 = vst [vmem:[#allocation2 + $0x600] sm:$0xff] %v2650_v46  ;;  %2779 = vst [vmem:[#allocation2 + $0x608] sm:$0xff] %v2651_v47  ;;  %v2654_v60 = vadd.f32 %v6011_v48, %v2270_v43  ;;  %v2655_v61 = vadd.f32 %v6012_v49, %v2271_v45  ;;  %v2276_v0 = vld [vmem:[#allocation2 + $0x650] sm:$0xff] }
 0x1d9   : > { %v6019_v62 = vunpack.c.l.bf16 %v6227_v58  ;;  %v6020_v63 = vunpack.c.h.bf16 %v6227_v58  ;;  %v6228_v1 = vld [vmem:[%s7037_s23 + $0x128] sm:$0xff]   ;;  %v2277_v2 = vld [vmem:[#allocation2 + $0x658] sm:$0xff]  ;;  %2780 = vst [vmem:[#allocation2 + $0x610] sm:$0xff] %v2652_v53  ;;  %2781 = vst [vmem:[#allocation2 + $0x618] sm:$0xff] %v2653_v54  ;;  %v2656_v3 = vadd.f32 %v6015_v55, %v2272_v50  ;;  %v2657_v4 = vadd.f32 %v6016_v56, %v2273_v52 }
 0x1da   : > { %v6023_v5 = vunpack.c.l.bf16 %v6228_v1  ;;  %v6024_v6 = vunpack.c.h.bf16 %v6228_v1  ;;  %v2278_v7 = vld [vmem:[#allocation2 + $0x660] sm:$0xff]  ;;  %v6229_v8 = vld [vmem:[%s7037_s23 + $0x130] sm:$0xff]   ;;  %v2279_v9 = vld [vmem:[#allocation2 + $0x668] sm:$0xff]  ;;  %2782 = vst [vmem:[#allocation2 + $0x620] sm:$0xff] %v2654_v60 }
 0x1db   : > { %2783 = vst [vmem:[#allocation2 + $0x628] sm:$0xff] %v2655_v61  ;;  %v2658_v10 = vadd.f32 %v6019_v62, %v2274_v57  ;;  %v2659_v11 = vadd.f32 %v6020_v63, %v2275_v59  ;;  %v6027_v12 = vunpack.c.l.bf16 %v6229_v8  ;;  %v6028_v13 = vunpack.c.h.bf16 %v6229_v8  ;;  %v2280_v14 = vld [vmem:[#allocation2 + $0x670] sm:$0xff]  ;;  %v6230_v15 = vld [vmem:[%s7037_s23 + $0x138] sm:$0xff]   ;;  %2784 = vst [vmem:[#allocation2 + $0x630] sm:$0xff] %v2656_v3 }
 0x1dc   : > { %v2281_v16 = vld [vmem:[#allocation2 + $0x678] sm:$0xff]  ;;  %2785 = vst [vmem:[#allocation2 + $0x638] sm:$0xff] %v2657_v4  ;;  %v2660_v17 = vadd.f32 %v6023_v5, %v2276_v0  ;;  %v2661_v18 = vadd.f32 %v6024_v6, %v2277_v2  ;;  %v6031_v19 = vunpack.c.l.bf16 %v6230_v15  ;;  %v6032_v20 = vunpack.c.h.bf16 %v6230_v15  ;;  %v2282_v21 = vld [vmem:[#allocation2 + $0x680] sm:$0xff]  ;;  %v2283_v23 = vld [vmem:[#allocation2 + $0x688] sm:$0xff] }
 0x1dd   : > { %v6231_v22 = vld [vmem:[%s7037_s23 + $0x140] sm:$0xff]   ;;  %2786 = vst [vmem:[#allocation2 + $0x640] sm:$0xff] %v2658_v10  ;;  %2787 = vst [vmem:[#allocation2 + $0x648] sm:$0xff] %v2659_v11  ;;  %v2662_v24 = vadd.f32 %v6027_v12, %v2278_v7  ;;  %v2663_v25 = vadd.f32 %v6028_v13, %v2279_v9  ;;  %v2284_v28 = vld [vmem:[#allocation2 + $0x690] sm:$0xff] }
 0x1de   : > { %v6035_v26 = vunpack.c.l.bf16 %v6231_v22  ;;  %v6036_v27 = vunpack.c.h.bf16 %v6231_v22  ;;  %v6232_v29 = vld [vmem:[%s7037_s23 + $0x148] sm:$0xff]   ;;  %v2285_v30 = vld [vmem:[#allocation2 + $0x698] sm:$0xff]  ;;  %2788 = vst [vmem:[#allocation2 + $0x650] sm:$0xff] %v2660_v17  ;;  %2789 = vst [vmem:[#allocation2 + $0x658] sm:$0xff] %v2661_v18  ;;  %v2664_v31 = vadd.f32 %v6031_v19, %v2280_v14  ;;  %v2665_v32 = vadd.f32 %v6032_v20, %v2281_v16 }
 0x1df   : > { %v6039_v33 = vunpack.c.l.bf16 %v6232_v29  ;;  %v6040_v34 = vunpack.c.h.bf16 %v6232_v29  ;;  %v2286_v35 = vld [vmem:[#allocation2 + $0x6a0] sm:$0xff]  ;;  %v6233_v36 = vld [vmem:[%s7037_s23 + $0x150] sm:$0xff]   ;;  %v2287_v37 = vld [vmem:[#allocation2 + $0x6a8] sm:$0xff]  ;;  %2790 = vst [vmem:[#allocation2 + $0x660] sm:$0xff] %v2662_v24 }
 0x1e0   : > { %2791 = vst [vmem:[#allocation2 + $0x668] sm:$0xff] %v2663_v25  ;;  %v2666_v38 = vadd.f32 %v6035_v26, %v2282_v21  ;;  %v2667_v39 = vadd.f32 %v6036_v27, %v2283_v23  ;;  %v6043_v40 = vunpack.c.l.bf16 %v6233_v36  ;;  %v6044_v41 = vunpack.c.h.bf16 %v6233_v36  ;;  %v2288_v42 = vld [vmem:[#allocation2 + $0x6b0] sm:$0xff]  ;;  %v6234_v43 = vld [vmem:[%s7037_s23 + $0x158] sm:$0xff]   ;;  %2792 = vst [vmem:[#allocation2 + $0x670] sm:$0xff] %v2664_v31 }
 0x1e1   : > { %v2289_v44 = vld [vmem:[#allocation2 + $0x6b8] sm:$0xff]  ;;  %2793 = vst [vmem:[#allocation2 + $0x678] sm:$0xff] %v2665_v32  ;;  %v2668_v45 = vadd.f32 %v6039_v33, %v2284_v28  ;;  %v2669_v46 = vadd.f32 %v6040_v34, %v2285_v30  ;;  %v6047_v47 = vunpack.c.l.bf16 %v6234_v43  ;;  %v6048_v48 = vunpack.c.h.bf16 %v6234_v43  ;;  %v2290_v49 = vld [vmem:[#allocation2 + $0x6c0] sm:$0xff]  ;;  %v2291_v51 = vld [vmem:[#allocation2 + $0x6c8] sm:$0xff] }
 0x1e2   : > { %v6235_v50 = vld [vmem:[%s7037_s23 + $0x160] sm:$0xff]   ;;  %2794 = vst [vmem:[#allocation2 + $0x680] sm:$0xff] %v2666_v38  ;;  %2795 = vst [vmem:[#allocation2 + $0x688] sm:$0xff] %v2667_v39  ;;  %v2670_v52 = vadd.f32 %v6043_v40, %v2286_v35  ;;  %v2671_v53 = vadd.f32 %v6044_v41, %v2287_v37  ;;  %v2292_v56 = vld [vmem:[#allocation2 + $0x6d0] sm:$0xff] }
 0x1e3   : > { %v6051_v54 = vunpack.c.l.bf16 %v6235_v50  ;;  %v6052_v55 = vunpack.c.h.bf16 %v6235_v50  ;;  %v6236_v57 = vld [vmem:[%s7037_s23 + $0x168] sm:$0xff]   ;;  %v2293_v58 = vld [vmem:[#allocation2 + $0x6d8] sm:$0xff]  ;;  %2796 = vst [vmem:[#allocation2 + $0x690] sm:$0xff] %v2668_v45  ;;  %2797 = vst [vmem:[#allocation2 + $0x698] sm:$0xff] %v2669_v46  ;;  %v2672_v59 = vadd.f32 %v6047_v47, %v2288_v42  ;;  %v2673_v60 = vadd.f32 %v6048_v48, %v2289_v44 }
 0x1e4   : > { %v6055_v61 = vunpack.c.l.bf16 %v6236_v57  ;;  %v6056_v62 = vunpack.c.h.bf16 %v6236_v57  ;;  %v2294_v63 = vld [vmem:[#allocation2 + $0x6e0] sm:$0xff]  ;;  %v6237_v0 = vld [vmem:[%s7037_s23 + $0x170] sm:$0xff]   ;;  %v2295_v1 = vld [vmem:[#allocation2 + $0x6e8] sm:$0xff]  ;;  %2798 = vst [vmem:[#allocation2 + $0x6a0] sm:$0xff] %v2670_v52 }
 0x1e5   : > { %2799 = vst [vmem:[#allocation2 + $0x6a8] sm:$0xff] %v2671_v53  ;;  %v2674_v2 = vadd.f32 %v6051_v54, %v2290_v49  ;;  %v2675_v3 = vadd.f32 %v6052_v55, %v2291_v51  ;;  %v6059_v4 = vunpack.c.l.bf16 %v6237_v0  ;;  %v6060_v5 = vunpack.c.h.bf16 %v6237_v0  ;;  %v2296_v6 = vld [vmem:[#allocation2 + $0x6f0] sm:$0xff]  ;;  %v6238_v7 = vld [vmem:[%s7037_s23 + $0x178] sm:$0xff]   ;;  %2800 = vst [vmem:[#allocation2 + $0x6b0] sm:$0xff] %v2672_v59 }
 0x1e6   : > { %v2297_v8 = vld [vmem:[#allocation2 + $0x6f8] sm:$0xff]  ;;  %2801 = vst [vmem:[#allocation2 + $0x6b8] sm:$0xff] %v2673_v60  ;;  %v2676_v9 = vadd.f32 %v6055_v61, %v2292_v56  ;;  %v2677_v10 = vadd.f32 %v6056_v62, %v2293_v58  ;;  %v6063_v11 = vunpack.c.l.bf16 %v6238_v7  ;;  %v6064_v12 = vunpack.c.h.bf16 %v6238_v7  ;;  %v2298_v13 = vld [vmem:[#allocation2 + $0x700] sm:$0xff]  ;;  %v2299_v15 = vld [vmem:[#allocation2 + $0x708] sm:$0xff] }
 0x1e7   : > { %v6239_v14 = vld [vmem:[%s7037_s23 + $0x180] sm:$0xff]   ;;  %2802 = vst [vmem:[#allocation2 + $0x6c0] sm:$0xff] %v2674_v2  ;;  %2803 = vst [vmem:[#allocation2 + $0x6c8] sm:$0xff] %v2675_v3  ;;  %v2678_v16 = vadd.f32 %v6059_v4, %v2294_v63  ;;  %v2679_v17 = vadd.f32 %v6060_v5, %v2295_v1  ;;  %v2300_v20 = vld [vmem:[#allocation2 + $0x710] sm:$0xff] }
 0x1e8   : > { %v6067_v18 = vunpack.c.l.bf16 %v6239_v14  ;;  %v6068_v19 = vunpack.c.h.bf16 %v6239_v14  ;;  %v6240_v21 = vld [vmem:[%s7037_s23 + $0x188] sm:$0xff]   ;;  %v2301_v22 = vld [vmem:[#allocation2 + $0x718] sm:$0xff]  ;;  %2804 = vst [vmem:[#allocation2 + $0x6d0] sm:$0xff] %v2676_v9  ;;  %2805 = vst [vmem:[#allocation2 + $0x6d8] sm:$0xff] %v2677_v10  ;;  %v2680_v23 = vadd.f32 %v6063_v11, %v2296_v6  ;;  %v2681_v24 = vadd.f32 %v6064_v12, %v2297_v8 }
 0x1e9   : > { %v6071_v25 = vunpack.c.l.bf16 %v6240_v21  ;;  %v6072_v26 = vunpack.c.h.bf16 %v6240_v21  ;;  %v2302_v27 = vld [vmem:[#allocation2 + $0x720] sm:$0xff]  ;;  %v6241_v28 = vld [vmem:[%s7037_s23 + $0x190] sm:$0xff]   ;;  %v2303_v29 = vld [vmem:[#allocation2 + $0x728] sm:$0xff]  ;;  %2806 = vst [vmem:[#allocation2 + $0x6e0] sm:$0xff] %v2678_v16 }
 0x1ea   : > { %2807 = vst [vmem:[#allocation2 + $0x6e8] sm:$0xff] %v2679_v17  ;;  %v2682_v30 = vadd.f32 %v6067_v18, %v2298_v13  ;;  %v2683_v31 = vadd.f32 %v6068_v19, %v2299_v15  ;;  %v6075_v32 = vunpack.c.l.bf16 %v6241_v28  ;;  %v6076_v33 = vunpack.c.h.bf16 %v6241_v28  ;;  %v2304_v34 = vld [vmem:[#allocation2 + $0x730] sm:$0xff]  ;;  %v6242_v35 = vld [vmem:[%s7037_s23 + $0x198] sm:$0xff]   ;;  %2808 = vst [vmem:[#allocation2 + $0x6f0] sm:$0xff] %v2680_v23 }
 0x1eb   : > { %v2305_v36 = vld [vmem:[#allocation2 + $0x738] sm:$0xff]  ;;  %2809 = vst [vmem:[#allocation2 + $0x6f8] sm:$0xff] %v2681_v24  ;;  %v2684_v37 = vadd.f32 %v6071_v25, %v2300_v20  ;;  %v2685_v38 = vadd.f32 %v6072_v26, %v2301_v22  ;;  %v6079_v39 = vunpack.c.l.bf16 %v6242_v35  ;;  %v6080_v40 = vunpack.c.h.bf16 %v6242_v35  ;;  %v2306_v41 = vld [vmem:[#allocation2 + $0x740] sm:$0xff]  ;;  %v2307_v43 = vld [vmem:[#allocation2 + $0x748] sm:$0xff] }
 0x1ec   : > { %v6243_v42 = vld [vmem:[%s7037_s23 + $0x1a0] sm:$0xff]   ;;  %2810 = vst [vmem:[#allocation2 + $0x700] sm:$0xff] %v2682_v30  ;;  %2811 = vst [vmem:[#allocation2 + $0x708] sm:$0xff] %v2683_v31  ;;  %v2686_v44 = vadd.f32 %v6075_v32, %v2302_v27  ;;  %v2687_v45 = vadd.f32 %v6076_v33, %v2303_v29  ;;  %v2308_v48 = vld [vmem:[#allocation2 + $0x750] sm:$0xff] }
 0x1ed   : > { %v6083_v46 = vunpack.c.l.bf16 %v6243_v42  ;;  %v6084_v47 = vunpack.c.h.bf16 %v6243_v42  ;;  %v6244_v49 = vld [vmem:[%s7037_s23 + $0x1a8] sm:$0xff]   ;;  %v2309_v50 = vld [vmem:[#allocation2 + $0x758] sm:$0xff]  ;;  %2812 = vst [vmem:[#allocation2 + $0x710] sm:$0xff] %v2684_v37  ;;  %2813 = vst [vmem:[#allocation2 + $0x718] sm:$0xff] %v2685_v38  ;;  %v2688_v51 = vadd.f32 %v6079_v39, %v2304_v34  ;;  %v2689_v52 = vadd.f32 %v6080_v40, %v2305_v36 }
 0x1ee   : > { %v6087_v53 = vunpack.c.l.bf16 %v6244_v49  ;;  %v6088_v54 = vunpack.c.h.bf16 %v6244_v49  ;;  %v2310_v55 = vld [vmem:[#allocation2 + $0x760] sm:$0xff]  ;;  %v6245_v56 = vld [vmem:[%s7037_s23 + $0x1b0] sm:$0xff]   ;;  %v2311_v57 = vld [vmem:[#allocation2 + $0x768] sm:$0xff]  ;;  %2814 = vst [vmem:[#allocation2 + $0x720] sm:$0xff] %v2686_v44 }
 0x1ef   : > { %2815 = vst [vmem:[#allocation2 + $0x728] sm:$0xff] %v2687_v45  ;;  %v2690_v58 = vadd.f32 %v6083_v46, %v2306_v41  ;;  %v2691_v59 = vadd.f32 %v6084_v47, %v2307_v43  ;;  %v6091_v60 = vunpack.c.l.bf16 %v6245_v56  ;;  %v6092_v61 = vunpack.c.h.bf16 %v6245_v56  ;;  %v2312_v62 = vld [vmem:[#allocation2 + $0x770] sm:$0xff]  ;;  %v6246_v63 = vld [vmem:[%s7037_s23 + $0x1b8] sm:$0xff]   ;;  %2816 = vst [vmem:[#allocation2 + $0x730] sm:$0xff] %v2688_v51 }
 0x1f0   : > { %v2313_v0 = vld [vmem:[#allocation2 + $0x778] sm:$0xff]  ;;  %2817 = vst [vmem:[#allocation2 + $0x738] sm:$0xff] %v2689_v52  ;;  %v2692_v1 = vadd.f32 %v6087_v53, %v2308_v48  ;;  %v2693_v2 = vadd.f32 %v6088_v54, %v2309_v50  ;;  %v6095_v3 = vunpack.c.l.bf16 %v6246_v63  ;;  %v6096_v4 = vunpack.c.h.bf16 %v6246_v63  ;;  %v2314_v5 = vld [vmem:[#allocation2 + $0x780] sm:$0xff]  ;;  %v2315_v7 = vld [vmem:[#allocation2 + $0x788] sm:$0xff] }
 0x1f1   : > { %v6247_v6 = vld [vmem:[%s7037_s23 + $0x1c0] sm:$0xff]   ;;  %2818 = vst [vmem:[#allocation2 + $0x740] sm:$0xff] %v2690_v58  ;;  %2819 = vst [vmem:[#allocation2 + $0x748] sm:$0xff] %v2691_v59  ;;  %v2694_v8 = vadd.f32 %v6091_v60, %v2310_v55  ;;  %v2695_v9 = vadd.f32 %v6092_v61, %v2311_v57  ;;  %v2316_v12 = vld [vmem:[#allocation2 + $0x790] sm:$0xff] }
 0x1f2   : > { %v6099_v10 = vunpack.c.l.bf16 %v6247_v6  ;;  %v6100_v11 = vunpack.c.h.bf16 %v6247_v6  ;;  %v6248_v13 = vld [vmem:[%s7037_s23 + $0x1c8] sm:$0xff]   ;;  %v2317_v14 = vld [vmem:[#allocation2 + $0x798] sm:$0xff]  ;;  %2820 = vst [vmem:[#allocation2 + $0x750] sm:$0xff] %v2692_v1  ;;  %2821 = vst [vmem:[#allocation2 + $0x758] sm:$0xff] %v2693_v2  ;;  %v2696_v15 = vadd.f32 %v6095_v3, %v2312_v62  ;;  %v2697_v16 = vadd.f32 %v6096_v4, %v2313_v0 }
 0x1f3   : > { %v6103_v17 = vunpack.c.l.bf16 %v6248_v13  ;;  %v6104_v18 = vunpack.c.h.bf16 %v6248_v13  ;;  %v2318_v19 = vld [vmem:[#allocation2 + $0x7a0] sm:$0xff]  ;;  %v6249_v20 = vld [vmem:[%s7037_s23 + $0x1d0] sm:$0xff]   ;;  %v2319_v21 = vld [vmem:[#allocation2 + $0x7a8] sm:$0xff]  ;;  %2822 = vst [vmem:[#allocation2 + $0x760] sm:$0xff] %v2694_v8 }
 0x1f4   : > { %2823 = vst [vmem:[#allocation2 + $0x768] sm:$0xff] %v2695_v9  ;;  %v2698_v22 = vadd.f32 %v6099_v10, %v2314_v5  ;;  %v2699_v23 = vadd.f32 %v6100_v11, %v2315_v7  ;;  %v6107_v24 = vunpack.c.l.bf16 %v6249_v20  ;;  %v6108_v25 = vunpack.c.h.bf16 %v6249_v20  ;;  %v2320_v26 = vld [vmem:[#allocation2 + $0x7b0] sm:$0xff]  ;;  %v6250_v27 = vld [vmem:[%s7037_s23 + $0x1d8] sm:$0xff]   ;;  %2824 = vst [vmem:[#allocation2 + $0x770] sm:$0xff] %v2696_v15 }
 0x1f5   : > { %v2321_v28 = vld [vmem:[#allocation2 + $0x7b8] sm:$0xff]  ;;  %2825 = vst [vmem:[#allocation2 + $0x778] sm:$0xff] %v2697_v16  ;;  %v2700_v29 = vadd.f32 %v6103_v17, %v2316_v12  ;;  %v2701_v30 = vadd.f32 %v6104_v18, %v2317_v14  ;;  %v6111_v31 = vunpack.c.l.bf16 %v6250_v27  ;;  %v6112_v32 = vunpack.c.h.bf16 %v6250_v27  ;;  %v2322_v33 = vld [vmem:[#allocation2 + $0x7c0] sm:$0xff]  ;;  %v2323_v35 = vld [vmem:[#allocation2 + $0x7c8] sm:$0xff] }
 0x1f6   : > { %v6251_v34 = vld [vmem:[%s7037_s23 + $0x1e0] sm:$0xff]   ;;  %2826 = vst [vmem:[#allocation2 + $0x780] sm:$0xff] %v2698_v22  ;;  %2827 = vst [vmem:[#allocation2 + $0x788] sm:$0xff] %v2699_v23  ;;  %v2702_v36 = vadd.f32 %v6107_v24, %v2318_v19  ;;  %v2703_v37 = vadd.f32 %v6108_v25, %v2319_v21  ;;  %v2324_v40 = vld [vmem:[#allocation2 + $0x7d0] sm:$0xff] }
 0x1f7   : > { %v6115_v38 = vunpack.c.l.bf16 %v6251_v34  ;;  %v6116_v39 = vunpack.c.h.bf16 %v6251_v34  ;;  %v6252_v41 = vld [vmem:[%s7037_s23 + $0x1e8] sm:$0xff]   ;;  %v2325_v42 = vld [vmem:[#allocation2 + $0x7d8] sm:$0xff]  ;;  %2828 = vst [vmem:[#allocation2 + $0x790] sm:$0xff] %v2700_v29  ;;  %2829 = vst [vmem:[#allocation2 + $0x798] sm:$0xff] %v2701_v30  ;;  %v2704_v43 = vadd.f32 %v6111_v31, %v2320_v26  ;;  %v2705_v44 = vadd.f32 %v6112_v32, %v2321_v28 }
 0x1f8   : > { %v6119_v45 = vunpack.c.l.bf16 %v6252_v41  ;;  %v6120_v46 = vunpack.c.h.bf16 %v6252_v41  ;;  %v2326_v47 = vld [vmem:[#allocation2 + $0x7e0] sm:$0xff]  ;;  %v6253_v48 = vld [vmem:[%s7037_s23 + $0x1f0] sm:$0xff]   ;;  %v2327_v49 = vld [vmem:[#allocation2 + $0x7e8] sm:$0xff]  ;;  %2830 = vst [vmem:[#allocation2 + $0x7a0] sm:$0xff] %v2702_v36  ;;  %2845 = sbr.rel (%p5610_p1) target bundleno = 1165 (0x48d), region = 118 }
 0x1f9   : > { %2831 = vst [vmem:[#allocation2 + $0x7a8] sm:$0xff] %v2703_v37  ;;  %v2706_v50 = vadd.f32 %v6115_v38, %v2322_v33  ;;  %v2707_v51 = vadd.f32 %v6116_v39, %v2323_v35  ;;  %v6123_v52 = vunpack.c.l.bf16 %v6253_v48  ;;  %v6124_v53 = vunpack.c.h.bf16 %v6253_v48  ;;  %v2328_v54 = vld [vmem:[#allocation2 + $0x7f0] sm:$0xff]  ;;  %v6254_v55 = vld [vmem:[%s7037_s23 + $0x1f8] sm:$0xff]   ;;  %2832 = vst [vmem:[#allocation2 + $0x7b0] sm:$0xff] %v2704_v43 }
 0x1fa   : > { %v2329_v56 = vld [vmem:[#allocation2 + $0x7f8] sm:$0xff]  ;;  %2833 = vst [vmem:[#allocation2 + $0x7b8] sm:$0xff] %v2705_v44  ;;  %v2708_v57 = vadd.f32 %v6119_v45, %v2324_v40  ;;  %v2709_v58 = vadd.f32 %v6120_v46, %v2325_v42  ;;  %v6127_v59 = vunpack.c.l.bf16 %v6254_v55  ;;  %v6128_v60 = vunpack.c.h.bf16 %v6254_v55  ;;  %v2848_v1 = vld [vmem:[#allocation2 + $0x10] sm:$0xff] (!%p5610_p1)  ;;  %v2846_v2 = vld [vmem:[#allocation2] sm:$0xff] (!%p5610_p1) }
 0x1fb   : > { %2834 = vst [vmem:[#allocation2 + $0x7c0] sm:$0xff] %v2706_v50  ;;  %2835 = vst [vmem:[#allocation2 + $0x7c8] sm:$0xff] %v2707_v51  ;;  %v2710_v61 = vadd.f32 %v6123_v52, %v2326_v47  ;;  %v2711_v62 = vadd.f32 %v6124_v53, %v2327_v49  ;;  %3106 = vadd.xlane.f32.xlu1 (!%p5610_p1), %v2848_v1  ;;  %3102 = vadd.xlane.f32.xlu0 (!%p5610_p1), %v2846_v2  ;;  %v2849_v3 = vld [vmem:[#allocation2 + $0x18] sm:$0xff] (!%p5610_p1)  ;;  %v2847_v4 = vld [vmem:[#allocation2 + $0x8] sm:$0xff] (!%p5610_p1) }
 0x1fc   : > { %2836 = vst [vmem:[#allocation2 + $0x7d0] sm:$0xff] %v2708_v57  ;;  %2837 = vst [vmem:[#allocation2 + $0x7d8] sm:$0xff] %v2709_v58  ;;  %v2712_v63 = vadd.f32 %v6127_v59, %v2328_v54  ;;  %v2713_v0 = vadd.f32 %v6128_v60, %v2329_v56  ;;  %v2851_v5 = vld [vmem:[#allocation2 + $0x28] sm:$0xff] (!%p5610_p1)  ;;  %v2850_v6 = vld [vmem:[#allocation2 + $0x20] sm:$0xff] (!%p5610_p1) }
 0x1fd   : > { %2838 = vst [vmem:[#allocation2 + $0x7e0] sm:$0xff] %v2710_v61  ;;  %2839 = vst [vmem:[#allocation2 + $0x7e8] sm:$0xff] %v2711_v62  ;;  %v2853_v7 = vld [vmem:[#allocation2 + $0x38] sm:$0xff] (!%p5610_p1)  ;;  %v2852_v8 = vld [vmem:[#allocation2 + $0x30] sm:$0xff] (!%p5610_p1) }
 0x1fe   : > { %2840 = vst [vmem:[#allocation2 + $0x7f0] sm:$0xff] %v2712_v63  ;;  %2841 = vst [vmem:[#allocation2 + $0x7f8] sm:$0xff] %v2713_v0  ;;  %v2855_v9 = vld [vmem:[#allocation2 + $0x48] sm:$0xff] (!%p5610_p1)  ;;  %v2854_v10 = vld [vmem:[#allocation2 + $0x40] sm:$0xff] (!%p5610_p1) }
 0x1ff   : > { %3108 = vadd.xlane.f32.xlu1 %v2849_v3  ;;  %3104 = vadd.xlane.f32.xlu0 %v2847_v4  ;;  %v2857_v11 = vld [vmem:[#allocation2 + $0x58] sm:$0xff]  ;;  %v2856_v12 = vld [vmem:[#allocation2 + $0x50] sm:$0xff]  ;;  %v2859_v13 = vld [vmem:[#allocation2 + $0x68] sm:$0xff] }
 0x200   : > { %v2858_v14 = vld [vmem:[#allocation2 + $0x60] sm:$0xff]  ;;  %v2861_v15 = vld [vmem:[#allocation2 + $0x78] sm:$0xff]  ;;  %v2860_v16 = vld [vmem:[#allocation2 + $0x70] sm:$0xff] }
 0x201   : > { %v2863_v17 = vld [vmem:[#allocation2 + $0x88] sm:$0xff]  ;;  %v2862_v18 = vld [vmem:[#allocation2 + $0x80] sm:$0xff]  ;;  %v2865_v19 = vld [vmem:[#allocation2 + $0x98] sm:$0xff] }
 0x202   : > { %v2864_v20 = vld [vmem:[#allocation2 + $0x90] sm:$0xff]  ;;  %v2867_v21 = vld [vmem:[#allocation2 + $0xa8] sm:$0xff]  ;;  %v2866_v22 = vld [vmem:[#allocation2 + $0xa0] sm:$0xff] }
 0x203   : > { %3112 = vadd.xlane.f32.xlu1 %v2851_v5  ;;  %3110 = vadd.xlane.f32.xlu0 %v2850_v6  ;;  %v2869_v23 = vld [vmem:[#allocation2 + $0xb8] sm:$0xff]  ;;  %v2868_v24 = vld [vmem:[#allocation2 + $0xb0] sm:$0xff]  ;;  %v2871_v25 = vld [vmem:[#allocation2 + $0xc8] sm:$0xff] }
 0x204   : > { %v2870_v26 = vld [vmem:[#allocation2 + $0xc0] sm:$0xff]  ;;  %v2873_v27 = vld [vmem:[#allocation2 + $0xd8] sm:$0xff]  ;;  %v2872_v28 = vld [vmem:[#allocation2 + $0xd0] sm:$0xff] }
 0x205   : > { %v2875_v29 = vld [vmem:[#allocation2 + $0xe8] sm:$0xff]  ;;  %v2874_v30 = vld [vmem:[#allocation2 + $0xe0] sm:$0xff]  ;;  %v2877_v31 = vld [vmem:[#allocation2 + $0xf8] sm:$0xff] }
 0x206   : > { %v2876_v32 = vld [vmem:[#allocation2 + $0xf0] sm:$0xff]  ;;  %v2879_v33 = vld [vmem:[#allocation2 + $0x108] sm:$0xff]  ;;  %v2878_v34 = vld [vmem:[#allocation2 + $0x100] sm:$0xff] }
 0x207   : > { %3116 = vadd.xlane.f32.xlu1 %v2853_v7  ;;  %3114 = vadd.xlane.f32.xlu0 %v2852_v8  ;;  %v2881_v35 = vld [vmem:[#allocation2 + $0x118] sm:$0xff]  ;;  %v2880_v36 = vld [vmem:[#allocation2 + $0x110] sm:$0xff]  ;;  %v2883_v37 = vld [vmem:[#allocation2 + $0x128] sm:$0xff]  ;;  %v4126_v7 = vlaneseq }
 0x208   : > { %v2882_v38 = vld [vmem:[#allocation2 + $0x120] sm:$0xff]  ;;  %v2885_v39 = vld [vmem:[#allocation2 + $0x138] sm:$0xff]  ;;  %v2884_v40 = vld [vmem:[#allocation2 + $0x130] sm:$0xff] }
 0x209   : > { %v2887_v41 = vld [vmem:[#allocation2 + $0x148] sm:$0xff]  ;;  %v2886_v42 = vld [vmem:[#allocation2 + $0x140] sm:$0xff]  ;;  %v2889_v43 = vld [vmem:[#allocation2 + $0x158] sm:$0xff] }
 0x20a   : > { %v2888_v44 = vld [vmem:[#allocation2 + $0x150] sm:$0xff]  ;;  %v2891_v45 = vld [vmem:[#allocation2 + $0x168] sm:$0xff]  ;;  %v2890_v46 = vld [vmem:[#allocation2 + $0x160] sm:$0xff] }
 0x20b   : > { %3120 = vadd.xlane.f32.xlu1 %v2855_v9  ;;  %3118 = vadd.xlane.f32.xlu0 %v2854_v10  ;;  %v2893_v47 = vld [vmem:[#allocation2 + $0x178] sm:$0xff]  ;;  %v2892_v48 = vld [vmem:[#allocation2 + $0x170] sm:$0xff]  ;;  %v2895_v49 = vld [vmem:[#allocation2 + $0x188] sm:$0xff]  ;;  %v7427_v10 = vand.u32 127, %v4126_v7 }
 0x20c   : > { %v2894_v50 = vld [vmem:[#allocation2 + $0x180] sm:$0xff]  ;;  %v2897_v51 = vld [vmem:[#allocation2 + $0x198] sm:$0xff]  ;;  %v2896_v52 = vld [vmem:[#allocation2 + $0x190] sm:$0xff] }
 0x20d   : > { %v2899_v53 = vld [vmem:[#allocation2 + $0x1a8] sm:$0xff]  ;;  %v2898_v54 = vld [vmem:[#allocation2 + $0x1a0] sm:$0xff]  ;;  %v2901_v55 = vld [vmem:[#allocation2 + $0x1b8] sm:$0xff] }
 0x20e   : > { %v2900_v56 = vld [vmem:[#allocation2 + $0x1b0] sm:$0xff]  ;;  %v2903_v57 = vld [vmem:[#allocation2 + $0x1c8] sm:$0xff]  ;;  %v2902_v58 = vld [vmem:[#allocation2 + $0x1c0] sm:$0xff] }
 0x20f   : > { %3124 = vadd.xlane.f32.xlu1 %v2857_v11  ;;  %3122 = vadd.xlane.f32.xlu0 %v2856_v12  ;;  %v2905_v59 = vld [vmem:[#allocation2 + $0x1d8] sm:$0xff]  ;;  %v2904_v60 = vld [vmem:[#allocation2 + $0x1d0] sm:$0xff]  ;;  %v2907_v61 = vld [vmem:[#allocation2 + $0x1e8] sm:$0xff]  ;;  %v7429_v11 = vshrl.u32 %v4126_v7, 7  ;;  %v4146_v12 = vadd.s32 4294967272, %v7427_v10 }
 0x210   : > { %v2906_v62 = vld [vmem:[#allocation2 + $0x1e0] sm:$0xff]  ;;  %v2909_v63 = vld [vmem:[#allocation2 + $0x1f8] sm:$0xff]  ;;  %v2908_v0 = vld [vmem:[#allocation2 + $0x1f0] sm:$0xff] }
 0x211   : > { %v2911_v1 = vld [vmem:[#allocation2 + $0x208] sm:$0xff]  ;;  %v2910_v2 = vld [vmem:[#allocation2 + $0x200] sm:$0xff]  ;;  %v2913_v3 = vld [vmem:[#allocation2 + $0x218] sm:$0xff] }
 0x212   : > { %v2912_v4 = vld [vmem:[#allocation2 + $0x210] sm:$0xff]  ;;  %v2915_v5 = vld [vmem:[#allocation2 + $0x228] sm:$0xff]  ;;  %v2914_v6 = vld [vmem:[#allocation2 + $0x220] sm:$0xff] }
 0x213   : > { %3128 = vadd.xlane.f32.xlu1 %v2859_v13  ;;  %3126 = vadd.xlane.f32.xlu0 %v2858_v14  ;;  %v2917_v8 = vld [vmem:[#allocation2 + $0x238] sm:$0xff]  ;;  %v2916_v9 = vld [vmem:[#allocation2 + $0x230] sm:$0xff]  ;;  %v4132_v13 = vadd.s32 4294967288, %v7427_v10  ;;  %v4139_v14 = vadd.s32 4294967280, %v7427_v10 }
 0x217   : > { %3132 = vadd.xlane.f32.xlu1 %v2861_v15  ;;  %3130 = vadd.xlane.f32.xlu0 %v2860_v16 }
 0x21b   : > { %3136 = vadd.xlane.f32.xlu1 %v2863_v17  ;;  %3134 = vadd.xlane.f32.xlu0 %v2862_v18  ;;  %v2919_v17 = vld [vmem:[#allocation2 + $0x248] sm:$0xff]  ;;  %v2918_v18 = vld [vmem:[#allocation2 + $0x240] sm:$0xff] }
 0x21f   : > { %3140 = vadd.xlane.f32.xlu1 %v2865_v19  ;;  %3138 = vadd.xlane.f32.xlu0 %v2864_v20  ;;  %v4160_v19 = vadd.s32 4294967256, %v7427_v10  ;;  %v4153_v20 = vadd.s32 4294967264, %v7427_v10 }
 0x223   : > { %3144 = vadd.xlane.f32.xlu1 %v2867_v21  ;;  %3142 = vadd.xlane.f32.xlu0 %v2866_v22  ;;  %v7438_v21 = vsub.s32 %v7427_v10, %v7429_v11 }
 0x227   : > { %3148 = vadd.xlane.f32.xlu1 %v2869_v23  ;;  %3146 = vadd.xlane.f32.xlu0 %v2868_v24  ;;  %v7441_v23 = vsub.s32 %v4146_v12, %v7429_v11  ;;  %v7444_v24 = vsub.s32 %v4132_v13, %v7429_v11 }
 0x22b   : > { %3152 = vadd.xlane.f32.xlu1 %v2871_v25  ;;  %3150 = vadd.xlane.f32.xlu0 %v2870_v26  ;;  %v7447_v25 = vsub.s32 %v4139_v14, %v7429_v11 }
 0x22f   : > { %3156 = vadd.xlane.f32.xlu1 %v2873_v27  ;;  %3154 = vadd.xlane.f32.xlu0 %v2872_v28 }
 0x233   : > { %3160 = vadd.xlane.f32.xlu1 %v2875_v29  ;;  %3158 = vadd.xlane.f32.xlu0 %v2874_v30  ;;  %v2921_v29 = vld [vmem:[#allocation2 + $0x258] sm:$0xff]  ;;  %v2920_v30 = vld [vmem:[#allocation2 + $0x250] sm:$0xff] }
 0x237   : > { %3164 = vadd.xlane.f32.xlu1 %v2877_v31  ;;  %3162 = vadd.xlane.f32.xlu0 %v2876_v32 }
 0x23b   : > { %3168 = vadd.xlane.f32.xlu1 %v2879_v33  ;;  %3166 = vadd.xlane.f32.xlu0 %v2878_v34  ;;  %v7450_v33 = vsub.s32 %v4160_v19, %v7429_v11  ;;  %v7453_v34 = vsub.s32 %v4153_v20, %v7429_v11 }
 0x23f   : > { %3172 = vadd.xlane.f32.xlu1 %v2881_v35  ;;  %3170 = vadd.xlane.f32.xlu0 %v2880_v36  ;;  %v4174_v35 = vadd.s32 4294967240, %v7427_v10  ;;  %v4167_v36 = vadd.s32 4294967248, %v7427_v10 }
 0x243   : > { %3176 = vadd.xlane.f32.xlu1 %v2883_v37  ;;  %3174 = vadd.xlane.f32.xlu0 %v2882_v38 }
 0x247   : > { %3180 = vadd.xlane.f32.xlu1 %v2885_v39  ;;  %3178 = vadd.xlane.f32.xlu0 %v2884_v40 }
 0x24b   : > { %3184 = vadd.xlane.f32.xlu1 %v2887_v41  ;;  %3182 = vadd.xlane.f32.xlu0 %v2886_v42 }
 0x24f   : > { %3188 = vadd.xlane.f32.xlu1 %v2889_v43  ;;  %3186 = vadd.xlane.f32.xlu0 %v2888_v44  ;;  %v2923_v43 = vld [vmem:[#allocation2 + $0x268] sm:$0xff]  ;;  %v2922_v44 = vld [vmem:[#allocation2 + $0x260] sm:$0xff] }
 0x253   : > { %3192 = vadd.xlane.f32.xlu1 %v2891_v45  ;;  %3190 = vadd.xlane.f32.xlu0 %v2890_v46 }
 0x257   : > { %3196 = vadd.xlane.f32.xlu1 %v2893_v47  ;;  %3194 = vadd.xlane.f32.xlu0 %v2892_v48 }
 0x25b   : > { %3200 = vadd.xlane.f32.xlu1 %v2895_v49  ;;  %3198 = vadd.xlane.f32.xlu0 %v2894_v50  ;;  %v7464_v49 = vsub.s32 %v4174_v35, %v7429_v11  ;;  %v7467_v50 = vsub.s32 %v4167_v36, %v7429_v11 }
 0x25f   : > { %3204 = vadd.xlane.f32.xlu1 %v2897_v51  ;;  %3202 = vadd.xlane.f32.xlu0 %v2896_v52  ;;  %v4181_v51 = vadd.s32 4294967232, %v7427_v10 }
 0x263   : > { %3208 = vadd.xlane.f32.xlu1 %v2899_v53  ;;  %3206 = vadd.xlane.f32.xlu0 %v2898_v54 }
 0x267   : > { %3212 = vadd.xlane.f32.xlu1 %v2901_v55  ;;  %3210 = vadd.xlane.f32.xlu0 %v2900_v56  ;;  %v4188_v55 = vadd.s32 4294967224, %v7427_v10 }
 0x26b   : > { %3216 = vadd.xlane.f32.xlu1 %v2903_v57  ;;  %3214 = vadd.xlane.f32.xlu0 %v2902_v58  ;;  %v2925_v58 = vld [vmem:[#allocation2 + $0x278] sm:$0xff] }
 0x26f   : > { %3220 = vadd.xlane.f32.xlu1 %v2905_v59  ;;  %3218 = vadd.xlane.f32.xlu0 %v2904_v60  ;;  %v2924_v59 = vld [vmem:[#allocation2 + $0x270] sm:$0xff] }
 0x273   : > { %3224 = vadd.xlane.f32.xlu1 %v2907_v61  ;;  %3222 = vadd.xlane.f32.xlu0 %v2906_v62 }
 0x277   : > { %3228 = vadd.xlane.f32.xlu1 %v2909_v63  ;;  %3226 = vadd.xlane.f32.xlu0 %v2908_v0  ;;  %v7477_v0 = vsub.s32 %v4181_v51, %v7429_v11 }
 0x27b   : > { %3232 = vadd.xlane.f32.xlu1 %v2911_v1  ;;  %3230 = vadd.xlane.f32.xlu0 %v2910_v2  ;;  %v4195_v1 = vadd.s32 4294967216, %v7427_v10 }
 0x27f   : > { %3236 = vadd.xlane.f32.xlu1 %v2913_v3  ;;  %3234 = vadd.xlane.f32.xlu0 %v2912_v4  ;;  %v7483_v4 = vsub.s32 %v4188_v55, %v7429_v11 }
 0x283   : > { %3240 = vadd.xlane.f32.xlu1 %v2915_v5  ;;  %3238 = vadd.xlane.f32.xlu0 %v2914_v6  ;;  %v4202_v5 = vadd.s32 4294967208, %v7427_v10 }
 0x285   : > { %v7495_v20 = vsub.s32 %v4202_v5, %v7429_v11  ;;  %v2934_v5 = vld [vmem:[#allocation2 + $0x2c0] sm:$0xff] }
 0x287   : > { %3244 = vadd.xlane.f32.xlu1 %v2917_v8  ;;  %3242 = vadd.xlane.f32.xlu0 %v2916_v9  ;;  %v2927_v8 = vld [vmem:[#allocation2 + $0x288] sm:$0xff]  ;;  %v2926_v9 = vld [vmem:[#allocation2 + $0x280] sm:$0xff] }
 0x288   : > { %v3107_v15 = vpop.xlane.xlu1 %3106  ;;  %v3103_v16 = vpop.xlane.xlu0 %3102 }
 0x289   : > { %v3614_v22 = vmul.f32 0.00390625, %v3103_v16  ;;  %v3616_v26 = vmul.f32 0.00390625, %v3107_v15  ;;  %v7489_v16 = vsub.s32 %v4195_v1, %v7429_v11 }
 0x28b   : > { %3248 = vadd.xlane.f32.xlu1 %v2919_v17  ;;  %3246 = vadd.xlane.f32.xlu0 %v2918_v18  ;;  %v4131_v37 = vrot.slane %v3614_v22, %v7438_v21  ;;  %v4143_v40 = vrot.slane %v3616_v26, %v7447_v25  ;;  %v4209_v17 = vadd.s32 4294967200, %v7427_v10  ;;  %v4216_v22 = vadd.s32 4294967192, %v7427_v10 }
 0x28c   : > { %v3109_v27 = vpop.xlane.xlu1 %3108  ;;  %v3105_v28 = vpop.xlane.xlu0 %3104 }
 0x28d   : > { %v3617_v31 = vmul.f32 0.00390625, %v3109_v27  ;;  %v3615_v32 = vmul.f32 0.00390625, %v3105_v28  ;;  %v2929_v28 = vld [vmem:[#allocation2 + $0x298] sm:$0xff]  ;;  %v7501_v36 = vsub.s32 %v4209_v17, %v7429_v11 }
 0x28e   : > { %v2937_v17 = vld [vmem:[#allocation2 + $0x2d8] sm:$0xff] }
 0x28f   : > { %v4150_v38 = vrot.slane %v3617_v31, %v7441_v23  ;;  %v4136_v39 = vrot.slane %v3615_v32, %v7444_v24  ;;  %3252 = vadd.xlane.f32.xlu1 %v2921_v29  ;;  %3250 = vadd.xlane.f32.xlu0 %v2920_v30  ;;  %v2928_v29 = vld [vmem:[#allocation2 + $0x290] sm:$0xff] }
 0x290   : > { %v3113_v41 = vpop.xlane.xlu1 %3112  ;;  %v3111_v42 = vpop.xlane.xlu0 %3110 }
 0x291   : > { %v4138_v45 = vsel %vm4137_vm0, %v4136_v39, %v4131_v37  ;;  %v3619_v46 = vmul.f32 0.00390625, %v3113_v41  ;;  %v3618_v47 = vmul.f32 0.00390625, %v3111_v42  ;;  %v4223_v37 = vadd.s32 4294967184, %v7427_v10 }
 0x292   : > { %v4145_v48 = vsel %vm4144_vm1, %v4143_v40, %v4138_v45  ;;  %v7507_v40 = vsub.s32 %v4216_v22, %v7429_v11  ;;  %v4230_v41 = vadd.s32 4294967176, %v7427_v10  ;;  %v2930_v45 = vld [vmem:[#allocation2 + $0x2a0] sm:$0xff] }
 0x293   : > { %v4164_v52 = vrot.slane %v3619_v46, %v7450_v33  ;;  %v4152_v53 = vsel %vm4151_vm2, %v4150_v38, %v4145_v48  ;;  %v4157_v54 = vrot.slane %v3618_v47, %v7453_v34  ;;  %3256 = vadd.xlane.f32.xlu1 %v2923_v43  ;;  %3254 = vadd.xlane.f32.xlu0 %v2922_v44  ;;  %v2931_v44 = vld [vmem:[#allocation2 + $0x2a8] sm:$0xff] }
 0x294   : > { %v3117_v56 = vpop.xlane.xlu1 %3116  ;;  %v3115_v57 = vpop.xlane.xlu0 %3114  ;;  %v7518_v10 = vsub.s32 %v4230_v41, %v7429_v11 }
 0x295   : > { %v4159_v60 = vsel %vm4158_vm3, %v4157_v54, %v4152_v53  ;;  %v3621_v61 = vmul.f32 0.00390625, %v3117_v56  ;;  %v3620_v62 = vmul.f32 0.00390625, %v3115_v57  ;;  %v2933_v57 = vld [vmem:[#allocation2 + $0x2b8] sm:$0xff] }
 0x296   : > { %v4166_v63 = vsel %vm4165_vm4, %v4164_v52, %v4159_v60  ;;  %v7513_v52 = vsub.s32 %v4223_v37, %v7429_v11 }
 0x297   : > { %v4178_v2 = vrot.slane %v3621_v61, %v7464_v49  ;;  %v4171_v3 = vrot.slane %v3620_v62, %v7467_v50  ;;  %3260 = vadd.xlane.f32.xlu1 %v2925_v58  ;;  %3258 = vadd.xlane.f32.xlu0 %v2924_v59  ;;  %v2932_v58 = vld [vmem:[#allocation2 + $0x2b0] sm:$0xff] }
 0x298   : > { %v3121_v6 = vpop.xlane.xlu1 %3120  ;;  %v3119_v7 = vpop.xlane.xlu0 %3118 }
 0x299   : > { %v4173_v12 = vsel %vm4172_vm5, %v4171_v3, %v4166_v63  ;;  %v3623_v13 = vmul.f32 0.00390625, %v3121_v6  ;;  %v3622_v14 = vmul.f32 0.00390625, %v3119_v7  ;;  %v2935_v3 = vld [vmem:[#allocation2 + $0x2c8] sm:$0xff] }
 0x29a   : > { %v4180_v15 = vsel %vm4179_vm6, %v4178_v2, %v4173_v12 }
 0x29b   : > { %v4192_v18 = vrot.slane %v3623_v13, %v7483_v4  ;;  %v4185_v19 = vrot.slane %v3622_v14, %v7477_v0  ;;  %3264 = vadd.xlane.f32.xlu1 %v2927_v8  ;;  %3262 = vadd.xlane.f32.xlu0 %v2926_v9 }
 0x29c   : > { %v3125_v26 = vpop.xlane.xlu1 %3124  ;;  %v3123_v27 = vpop.xlane.xlu0 %3122 }
 0x29d   : > { %v4187_v30 = vsel %vm4186_vm7, %v4185_v19, %v4180_v15  ;;  %v3625_v31 = vmul.f32 0.00390625, %v3125_v26  ;;  %v3624_v32 = vmul.f32 0.00390625, %v3123_v27 }
 0x29e   : > { %v4194_v35 = vsel %vm4193_vm8, %v4192_v18, %v4187_v30  ;;  %v2936_v18 = vld [vmem:[#allocation2 + $0x2d0] sm:$0xff] }
 0x29f   : > { %v4206_v38 = vrot.slane %v3625_v31, %v7495_v20  ;;  %v4199_v39 = vrot.slane %v3624_v32, %v7489_v16  ;;  %3268 = vadd.xlane.f32.xlu1 %v2929_v28  ;;  %3266 = vadd.xlane.f32.xlu0 %v2928_v29  ;;  %v2939_v31 = vld [vmem:[#allocation2 + $0x2e8] sm:$0xff]  ;;  %v2938_v32 = vld [vmem:[#allocation2 + $0x2e0] sm:$0xff] }
 0x2a0   : > { %v3129_v42 = vpop.xlane.xlu1 %3128  ;;  %v3127_v43 = vpop.xlane.xlu0 %3126 }
 0x2a1   : > { %v4201_v46 = vsel %vm4200_vm9, %v4199_v39, %v4194_v35  ;;  %v3627_v47 = vmul.f32 0.00390625, %v3129_v42  ;;  %v3626_v48 = vmul.f32 0.00390625, %v3127_v43 }
 0x2a2   : > { %v4208_v51 = vsel %vm8122_vm10, %v4206_v38, %v4201_v46  ;;  %v2940_v46 = vld [vmem:[#allocation2 + $0x2f0] sm:$0xff] }
 0x2a3   : > { %v4220_v53 = vrot.slane %v3627_v47, %v7507_v40  ;;  %v4213_v54 = vrot.slane %v3626_v48, %v7501_v36  ;;  %3272 = vadd.xlane.f32.xlu1 %v2931_v44  ;;  %3270 = vadd.xlane.f32.xlu0 %v2930_v45  ;;  %v2941_v45 = vld [vmem:[#allocation2 + $0x2f8] sm:$0xff] }
 0x2a4   : > { %v3133_v55 = vpop.xlane.xlu1 %3132  ;;  %v3131_v56 = vpop.xlane.xlu0 %3130 }
 0x2a5   : > { %v4215_v59 = vsel %vm4214_vm11, %v4213_v54, %v4208_v51  ;;  %v3629_v60 = vmul.f32 0.00390625, %v3133_v55  ;;  %v3628_v61 = vmul.f32 0.00390625, %v3131_v56 }
 0x2a6   : > { %v4222_v62 = vsel %vm4221_vm12, %v4220_v53, %v4215_v59  ;;  %v2942_v59 = vld [vmem:[#allocation2 + $0x300] sm:$0xff] }
 0x2a7   : > { %v4234_v63 = vrot.slane %v3629_v60, %v7518_v10  ;;  %v4227_v1 = vrot.slane %v3628_v61, %v7513_v52  ;;  %3276 = vadd.xlane.f32.xlu1 %v2933_v57  ;;  %3274 = vadd.xlane.f32.xlu0 %v2932_v58  ;;  %v2943_v58 = vld [vmem:[#allocation2 + $0x308] sm:$0xff] }
 0x2a8   : > { %v3137_v11 = vpop.xlane.xlu1 %3136  ;;  %v3135_v2 = vpop.xlane.xlu0 %3134 }
 0x2a9   : > { %v4229_v6 = vsel %vm4228_vm13, %v4227_v1, %v4222_v62  ;;  %v3631_v7 = vmul.f32 0.00390625, %v3137_v11  ;;  %v3630_v8 = vmul.f32 0.00390625, %v3135_v2 }
 0x2aa   : > { %v7526_v9 = vsel %vm4235_vm14, %v4234_v63, %v4229_v6  ;;  %v2944_v6 = vld [vmem:[#allocation2 + $0x310] sm:$0xff] }
 0x2ab   : > { %v4244_v12 = vrot.slane %v3631_v7, %v7444_v24  ;;  %v4240_v13 = vrot.slane %v3630_v8, %v7438_v21  ;;  %3280 = vadd.xlane.f32.xlu1 %v2935_v3  ;;  %3278 = vadd.xlane.f32.xlu0 %v2934_v5  ;;  %v2945_v5 = vld [vmem:[#allocation2 + $0x318] sm:$0xff] }
 0x2ac   : > { %v3141_v14 = vpop.xlane.xlu1 %3140  ;;  %v3139_v15 = vpop.xlane.xlu0 %3138 }
 0x2ad   : > { %v4245_v19 = vsel %vm4137_vm0, %v4244_v12, %v4240_v13  ;;  %v3633_v22 = vmul.f32 0.00390625, %v3141_v14  ;;  %v3632_v26 = vmul.f32 0.00390625, %v3139_v15 }
 0x2af   : > { %v4254_v27 = vrot.slane %v3633_v22, %v7441_v23  ;;  %v4249_v28 = vrot.slane %v3632_v26, %v7447_v25  ;;  %3284 = vadd.xlane.f32.xlu1 %v2937_v17  ;;  %3282 = vadd.xlane.f32.xlu0 %v2936_v18  ;;  %v2946_v22 = vld [vmem:[#allocation2 + $0x320] sm:$0xff] }
 0x2b0   : > { %v3145_v29 = vpop.xlane.xlu1 %3144  ;;  %v3143_v30 = vpop.xlane.xlu0 %3142 }
 0x2b1   : > { %v4250_v35 = vsel %vm4144_vm1, %v4249_v28, %v4245_v19  ;;  %v3635_v37 = vmul.f32 0.00390625, %v3145_v29  ;;  %v3634_v38 = vmul.f32 0.00390625, %v3143_v30  ;;  %v2947_v19 = vld [vmem:[#allocation2 + $0x328] sm:$0xff] }
 0x2b2   : > { %v4255_v39 = vsel %vm4151_vm2, %v4254_v27, %v4250_v35 }
 0x2b3   : > { %v4264_v41 = vrot.slane %v3635_v37, %v7450_v33  ;;  %v4259_v42 = vrot.slane %v3634_v38, %v7453_v34  ;;  %3288 = vadd.xlane.f32.xlu1 %v2939_v31  ;;  %3286 = vadd.xlane.f32.xlu0 %v2938_v32  ;;  %v2949_v37 = vld [vmem:[#allocation2 + $0x338] sm:$0xff]  ;;  %v2948_v38 = vld [vmem:[#allocation2 + $0x330] sm:$0xff] }
 0x2b4   : > { %v3149_v43 = vpop.xlane.xlu1 %3148  ;;  %v3147_v44 = vpop.xlane.xlu0 %3146 }
 0x2b5   : > { %v4260_v47 = vsel %vm4158_vm3, %v4259_v42, %v4255_v39  ;;  %v3637_v48 = vmul.f32 0.00390625, %v3149_v43  ;;  %v3636_v51 = vmul.f32 0.00390625, %v3147_v44 }
 0x2b6   : > { %v4265_v53 = vsel %vm4165_vm4, %v4264_v41, %v4260_v47 }
 0x2b7   : > { %v4274_v54 = vrot.slane %v3637_v48, %v7464_v49  ;;  %v4269_v55 = vrot.slane %v3636_v51, %v7467_v50  ;;  %3292 = vadd.xlane.f32.xlu1 %v2941_v45  ;;  %3290 = vadd.xlane.f32.xlu0 %v2940_v46  ;;  %v2951_v48 = vld [vmem:[#allocation2 + $0x348] sm:$0xff]  ;;  %v2950_v51 = vld [vmem:[#allocation2 + $0x340] sm:$0xff] }
 0x2b8   : > { %v3153_v56 = vpop.xlane.xlu1 %3152  ;;  %v3151_v57 = vpop.xlane.xlu0 %3150 }
 0x2b9   : > { %v4270_v60 = vsel %vm4172_vm5, %v4269_v55, %v4265_v53  ;;  %v3639_v61 = vmul.f32 0.00390625, %v3153_v56  ;;  %v3638_v62 = vmul.f32 0.00390625, %v3151_v57 }
 0x2ba   : > { %v4275_v63 = vsel %vm4179_vm6, %v4274_v54, %v4270_v60 }
 0x2bb   : > { %v4284_v1 = vrot.slane %v3639_v61, %v7483_v4  ;;  %v4279_v11 = vrot.slane %v3638_v62, %v7477_v0  ;;  %3296 = vadd.xlane.f32.xlu1 %v2943_v58  ;;  %3294 = vadd.xlane.f32.xlu0 %v2942_v59  ;;  %v2953_v62 = vld [vmem:[#allocation2 + $0x358] sm:$0xff] }
 0x2bc   : > { %v3157_v2 = vpop.xlane.xlu1 %3156  ;;  %v3155_v3 = vpop.xlane.xlu0 %3154 }
 0x2bd   : > { %v4280_v7 = vsel %vm4186_vm7, %v4279_v11, %v4275_v63  ;;  %v3641_v8 = vmul.f32 0.00390625, %v3157_v2  ;;  %v3640_v12 = vmul.f32 0.00390625, %v3155_v3  ;;  %v2952_v63 = vld [vmem:[#allocation2 + $0x350] sm:$0xff] }
 0x2be   : > { %v4285_v13 = vsel %vm4193_vm8, %v4284_v1, %v4280_v7  ;;  %v2955_v7 = vld [vmem:[#allocation2 + $0x368] sm:$0xff] }
 0x2bf   : > { %v4294_v14 = vrot.slane %v3641_v8, %v7495_v20  ;;  %v4289_v15 = vrot.slane %v3640_v12, %v7489_v16  ;;  %3300 = vadd.xlane.f32.xlu1 %v2945_v5  ;;  %3298 = vadd.xlane.f32.xlu0 %v2944_v6  ;;  %v2954_v8 = vld [vmem:[#allocation2 + $0x360] sm:$0xff] }
 0x2c0   : > { %v3161_v17 = vpop.xlane.xlu1 %3160  ;;  %v3159_v18 = vpop.xlane.xlu0 %3158 }
 0x2c1   : > { %v4290_v26 = vsel %vm4200_vm9, %v4289_v15, %v4285_v13  ;;  %v3643_v27 = vmul.f32 0.00390625, %v3161_v17  ;;  %v3642_v28 = vmul.f32 0.00390625, %v3159_v18 }
 0x2c2   : > { %v4295_v29 = vsel %vm8122_vm10, %v4294_v14, %v4290_v26  ;;  %v2957_v26 = vld [vmem:[#allocation2 + $0x378] sm:$0xff] }
 0x2c3   : > { %v4304_v30 = vrot.slane %v3643_v27, %v7507_v40  ;;  %v4299_v31 = vrot.slane %v3642_v28, %v7501_v36  ;;  %3304 = vadd.xlane.f32.xlu1 %v2947_v19  ;;  %3302 = vadd.xlane.f32.xlu0 %v2946_v22  ;;  %v2956_v27 = vld [vmem:[#allocation2 + $0x370] sm:$0xff] }
 0x2c4   : > { %v3165_v32 = vpop.xlane.xlu1 %3164  ;;  %v3163_v35 = vpop.xlane.xlu0 %3162 }
 0x2c5   : > { %v4300_v39 = vsel %vm4214_vm11, %v4299_v31, %v4295_v29  ;;  %v3645_v41 = vmul.f32 0.00390625, %v3165_v32  ;;  %v3644_v42 = vmul.f32 0.00390625, %v3163_v35 }
 0x2c6   : > { %v4305_v43 = vsel %vm4221_vm12, %v4304_v30, %v4300_v39  ;;  %v2959_v39 = vld [vmem:[#allocation2 + $0x388] sm:$0xff] }
 0x2c7   : > { %v4314_v44 = vrot.slane %v3645_v41, %v7518_v10  ;;  %v4309_v45 = vrot.slane %v3644_v42, %v7513_v52  ;;  %3308 = vadd.xlane.f32.xlu1 %v2949_v37  ;;  %3306 = vadd.xlane.f32.xlu0 %v2948_v38  ;;  %v2958_v41 = vld [vmem:[#allocation2 + $0x380] sm:$0xff] }
 0x2c8   : > { %v3169_v46 = vpop.xlane.xlu1 %3168  ;;  %v3167_v47 = vpop.xlane.xlu0 %3166 }
 0x2c9   : > { %v4310_v53 = vsel %vm4228_vm13, %v4309_v45, %v4305_v43  ;;  %v3647_v54 = vmul.f32 0.00390625, %v3169_v46  ;;  %v3646_v55 = vmul.f32 0.00390625, %v3167_v47 }
 0x2ca   : > { %v4315_v56 = vsel %vm4235_vm14, %v4314_v44, %v4310_v53  ;;  %v2961_v53 = vld [vmem:[#allocation2 + $0x398] sm:$0xff] }
 0x2cb   : > { %v7561_v57 = vsel %vm8117_vm15, %v4315_v56, %v7526_v9  ;;  %v4323_v58 = vrot.slane %v3647_v54, %v7444_v24  ;;  %v4319_v59 = vrot.slane %v3646_v55, %v7438_v21  ;;  %3312 = vadd.xlane.f32.xlu1 %v2951_v48  ;;  %3310 = vadd.xlane.f32.xlu0 %v2950_v51  ;;  %v2960_v54 = vld [vmem:[#allocation2 + $0x390] sm:$0xff]  ;;  %vm8118_vm15 = vcmask 1042434  }
 0x2cc   : > { %v3173_v60 = vpop.xlane.xlu1 %3172  ;;  %v3171_v61 = vpop.xlane.xlu0 %3170 }
 0x2cd   : > { %v4324_v1 = vsel %vm4137_vm0, %v4323_v58, %v4319_v59  ;;  %v3649_v11 = vmul.f32 0.00390625, %v3173_v60  ;;  %v3648_v2 = vmul.f32 0.00390625, %v3171_v61 }
 0x2cf   : > { %v4333_v3 = vrot.slane %v3649_v11, %v7441_v23  ;;  %v4328_v5 = vrot.slane %v3648_v2, %v7447_v25  ;;  %3316 = vadd.xlane.f32.xlu1 %v2953_v62  ;;  %3314 = vadd.xlane.f32.xlu0 %v2952_v63  ;;  %v2962_v11 = vld [vmem:[#allocation2 + $0x3a0] sm:$0xff] }
 0x2d0   : > { %v3177_v9 = vpop.xlane.xlu1 %3176  ;;  %v3175_v6 = vpop.xlane.xlu0 %3174 }
 0x2d1   : > { %v4329_v12 = vsel %vm4144_vm1, %v4328_v5, %v4324_v1  ;;  %v3651_v13 = vmul.f32 0.00390625, %v3177_v9  ;;  %v3650_v14 = vmul.f32 0.00390625, %v3175_v6  ;;  %v2963_v1 = vld [vmem:[#allocation2 + $0x3a8] sm:$0xff] }
 0x2d2   : > { %v4334_v15 = vsel %vm4151_vm2, %v4333_v3, %v4329_v12 }
 0x2d3   : > { %v4343_v17 = vrot.slane %v3651_v13, %v7450_v33  ;;  %v4338_v18 = vrot.slane %v3650_v14, %v7453_v34  ;;  %3320 = vadd.xlane.f32.xlu1 %v2955_v7  ;;  %3318 = vadd.xlane.f32.xlu0 %v2954_v8  ;;  %v2965_v13 = vld [vmem:[#allocation2 + $0x3b8] sm:$0xff]  ;;  %v2964_v14 = vld [vmem:[#allocation2 + $0x3b0] sm:$0xff] }
 0x2d4   : > { %v3181_v19 = vpop.xlane.xlu1 %3180  ;;  %v3179_v22 = vpop.xlane.xlu0 %3178 }
 0x2d5   : > { %v4339_v28 = vsel %vm4158_vm3, %v4338_v18, %v4334_v15  ;;  %v3653_v29 = vmul.f32 0.00390625, %v3181_v19  ;;  %v3652_v30 = vmul.f32 0.00390625, %v3179_v22 }
 0x2d6   : > { %v4344_v31 = vsel %vm4165_vm4, %v4343_v17, %v4339_v28 }
 0x2d7   : > { %v4353_v32 = vrot.slane %v3653_v29, %v7464_v49  ;;  %v4348_v35 = vrot.slane %v3652_v30, %v7467_v50  ;;  %3324 = vadd.xlane.f32.xlu1 %v2957_v26  ;;  %3322 = vadd.xlane.f32.xlu0 %v2956_v27  ;;  %v2967_v29 = vld [vmem:[#allocation2 + $0x3c8] sm:$0xff]  ;;  %v2966_v30 = vld [vmem:[#allocation2 + $0x3c0] sm:$0xff] }
 0x2d8   : > { %v3185_v37 = vpop.xlane.xlu1 %3184  ;;  %v3183_v38 = vpop.xlane.xlu0 %3182 }
 0x2d9   : > { %v4349_v42 = vsel %vm4172_vm5, %v4348_v35, %v4344_v31  ;;  %v3655_v43 = vmul.f32 0.00390625, %v3185_v37  ;;  %v3654_v44 = vmul.f32 0.00390625, %v3183_v38 }
 0x2da   : > { %v4354_v45 = vsel %vm4179_vm6, %v4353_v32, %v4349_v42 }
 0x2db   : > { %v4363_v46 = vrot.slane %v3655_v43, %v7483_v4  ;;  %v4358_v47 = vrot.slane %v3654_v44, %v7477_v0  ;;  %3328 = vadd.xlane.f32.xlu1 %v2959_v39  ;;  %3326 = vadd.xlane.f32.xlu0 %v2958_v41  ;;  %v2969_v44 = vld [vmem:[#allocation2 + $0x3d8] sm:$0xff] }
 0x2dc   : > { %v3189_v48 = vpop.xlane.xlu1 %3188  ;;  %v3187_v51 = vpop.xlane.xlu0 %3186 }
 0x2dd   : > { %v4359_v55 = vsel %vm4186_vm7, %v4358_v47, %v4354_v45  ;;  %v3657_v56 = vmul.f32 0.00390625, %v3189_v48  ;;  %v3656_v58 = vmul.f32 0.00390625, %v3187_v51  ;;  %v2968_v45 = vld [vmem:[#allocation2 + $0x3d0] sm:$0xff] }
 0x2de   : > { %v4364_v59 = vsel %vm4193_vm8, %v4363_v46, %v4359_v55  ;;  %v2971_v55 = vld [vmem:[#allocation2 + $0x3e8] sm:$0xff] }
 0x2df   : > { %v4373_v60 = vrot.slane %v3657_v56, %v7495_v20  ;;  %v4368_v61 = vrot.slane %v3656_v58, %v7489_v16  ;;  %3332 = vadd.xlane.f32.xlu1 %v2961_v53  ;;  %3330 = vadd.xlane.f32.xlu0 %v2960_v54  ;;  %v2970_v56 = vld [vmem:[#allocation2 + $0x3e0] sm:$0xff] }
 0x2e0   : > { %v3193_v62 = vpop.xlane.xlu1 %3192  ;;  %v3191_v63 = vpop.xlane.xlu0 %3190 }
 0x2e1   : > { %v4369_v2 = vsel %vm4200_vm9, %v4368_v61, %v4364_v59  ;;  %v3659_v3 = vmul.f32 0.00390625, %v3193_v62  ;;  %v3658_v5 = vmul.f32 0.00390625, %v3191_v63 }
 0x2e2   : > { %v4374_v9 = vsel %vm8122_vm10, %v4373_v60, %v4369_v2  ;;  %v2973_v2 = vld [vmem:[#allocation2 + $0x3f8] sm:$0xff] }
 0x2e3   : > { %v4383_v6 = vrot.slane %v3659_v3, %v7507_v40  ;;  %v4378_v7 = vrot.slane %v3658_v5, %v7501_v36  ;;  %3336 = vadd.xlane.f32.xlu1 %v2963_v1  ;;  %3334 = vadd.xlane.f32.xlu0 %v2962_v11  ;;  %v2972_v3 = vld [vmem:[#allocation2 + $0x3f0] sm:$0xff] }
 0x2e4   : > { %v3197_v8 = vpop.xlane.xlu1 %3196  ;;  %v3195_v12 = vpop.xlane.xlu0 %3194 }
 0x2e5   : > { %v4379_v15 = vsel %vm4214_vm11, %v4378_v7, %v4374_v9  ;;  %v3661_v17 = vmul.f32 0.00390625, %v3197_v8  ;;  %v3660_v18 = vmul.f32 0.00390625, %v3195_v12 }
 0x2e6   : > { %v4384_v19 = vsel %vm4221_vm12, %v4383_v6, %v4379_v15  ;;  %v2975_v15 = vld [vmem:[#allocation2 + $0x408] sm:$0xff] }
 0x2e7   : > { %v4393_v22 = vrot.slane %v3661_v17, %v7518_v10  ;;  %v4388_v26 = vrot.slane %v3660_v18, %v7513_v52  ;;  %3340 = vadd.xlane.f32.xlu1 %v2965_v13  ;;  %3338 = vadd.xlane.f32.xlu0 %v2964_v14  ;;  %v2974_v17 = vld [vmem:[#allocation2 + $0x400] sm:$0xff] }
 0x2e8   : > { %v3201_v27 = vpop.xlane.xlu1 %3200  ;;  %v3199_v28 = vpop.xlane.xlu0 %3198 }
 0x2e9   : > { %v4389_v31 = vsel %vm4228_vm13, %v4388_v26, %v4384_v19  ;;  %v3663_v32 = vmul.f32 0.00390625, %v3201_v27  ;;  %v3662_v35 = vmul.f32 0.00390625, %v3199_v28 }
 0x2ea   : > { %v4394_v37 = vsel %vm4235_vm14, %v4393_v22, %v4389_v31  ;;  %v2977_v31 = vld [vmem:[#allocation2 + $0x418] sm:$0xff] }
 0x2eb   : > { %v7596_v38 = vsel %vm8118_vm15, %v4394_v37, %v7561_v57  ;;  %v4402_v39 = vrot.slane %v3663_v32, %v7444_v24  ;;  %v4398_v41 = vrot.slane %v3662_v35, %v7438_v21  ;;  %3344 = vadd.xlane.f32.xlu1 %v2967_v29  ;;  %3342 = vadd.xlane.f32.xlu0 %v2966_v30  ;;  %v2976_v32 = vld [vmem:[#allocation2 + $0x410] sm:$0xff]  ;;  %vm8119_vm15 = vcmask 1043459  }
 0x2ec   : > { %v3205_v42 = vpop.xlane.xlu1 %3204  ;;  %v3203_v43 = vpop.xlane.xlu0 %3202 }
 0x2ed   : > { %v4403_v46 = vsel %vm4137_vm0, %v4402_v39, %v4398_v41  ;;  %v3665_v47 = vmul.f32 0.00390625, %v3205_v42  ;;  %v3664_v48 = vmul.f32 0.00390625, %v3203_v43 }
 0x2ef   : > { %v4412_v51 = vrot.slane %v3665_v47, %v7441_v23  ;;  %v4407_v53 = vrot.slane %v3664_v48, %v7447_v25  ;;  %3348 = vadd.xlane.f32.xlu1 %v2969_v44  ;;  %3346 = vadd.xlane.f32.xlu0 %v2968_v45  ;;  %v2978_v47 = vld [vmem:[#allocation2 + $0x420] sm:$0xff] }
 0x2f0   : > { %v3209_v57 = vpop.xlane.xlu1 %3208  ;;  %v3207_v54 = vpop.xlane.xlu0 %3206 }
 0x2f1   : > { %v4408_v58 = vsel %vm4144_vm1, %v4407_v53, %v4403_v46  ;;  %v3667_v59 = vmul.f32 0.00390625, %v3209_v57  ;;  %v3666_v60 = vmul.f32 0.00390625, %v3207_v54  ;;  %v2979_v46 = vld [vmem:[#allocation2 + $0x428] sm:$0xff] }
 0x2f2   : > { %v4413_v61 = vsel %vm4151_vm2, %v4412_v51, %v4408_v58 }
 0x2f3   : > { %v4422_v62 = vrot.slane %v3667_v59, %v7450_v33  ;;  %v4417_v63 = vrot.slane %v3666_v60, %v7453_v34  ;;  %3352 = vadd.xlane.f32.xlu1 %v2971_v55  ;;  %3350 = vadd.xlane.f32.xlu0 %v2970_v56  ;;  %v2981_v59 = vld [vmem:[#allocation2 + $0x438] sm:$0xff]  ;;  %v2980_v60 = vld [vmem:[#allocation2 + $0x430] sm:$0xff] }
 0x2f4   : > { %v3213_v1 = vpop.xlane.xlu1 %3212  ;;  %v3211_v11 = vpop.xlane.xlu0 %3210 }
 0x2f5   : > { %v4418_v5 = vsel %vm4158_vm3, %v4417_v63, %v4413_v61  ;;  %v3669_v9 = vmul.f32 0.00390625, %v3213_v1  ;;  %v3668_v6 = vmul.f32 0.00390625, %v3211_v11 }
 0x2f6   : > { %v4423_v7 = vsel %vm4165_vm4, %v4422_v62, %v4418_v5 }
 0x2f7   : > { %v4432_v8 = vrot.slane %v3669_v9, %v7464_v49  ;;  %v4427_v12 = vrot.slane %v3668_v6, %v7467_v50  ;;  %3356 = vadd.xlane.f32.xlu1 %v2973_v2  ;;  %3354 = vadd.xlane.f32.xlu0 %v2972_v3  ;;  %v2983_v9 = vld [vmem:[#allocation2 + $0x448] sm:$0xff]  ;;  %v2982_v6 = vld [vmem:[#allocation2 + $0x440] sm:$0xff] }
 0x2f8   : > { %v3217_v13 = vpop.xlane.xlu1 %3216  ;;  %v3215_v14 = vpop.xlane.xlu0 %3214 }
 0x2f9   : > { %v4428_v18 = vsel %vm4172_vm5, %v4427_v12, %v4423_v7  ;;  %v3671_v19 = vmul.f32 0.00390625, %v3217_v13  ;;  %v3670_v22 = vmul.f32 0.00390625, %v3215_v14 }
 0x2fa   : > { %v4433_v26 = vsel %vm4179_vm6, %v4432_v8, %v4428_v18 }
 0x2fb   : > { %v4442_v27 = vrot.slane %v3671_v19, %v7483_v4  ;;  %v4437_v28 = vrot.slane %v3670_v22, %v7477_v0  ;;  %3360 = vadd.xlane.f32.xlu1 %v2975_v15  ;;  %3358 = vadd.xlane.f32.xlu0 %v2974_v17  ;;  %v2985_v22 = vld [vmem:[#allocation2 + $0x458] sm:$0xff] }
 0x2fc   : > { %v3221_v29 = vpop.xlane.xlu1 %3220  ;;  %v3219_v30 = vpop.xlane.xlu0 %3218 }
 0x2fd   : > { %v4438_v35 = vsel %vm4186_vm7, %v4437_v28, %v4433_v26  ;;  %v3673_v37 = vmul.f32 0.00390625, %v3221_v29  ;;  %v3672_v39 = vmul.f32 0.00390625, %v3219_v30  ;;  %v2984_v26 = vld [vmem:[#allocation2 + $0x450] sm:$0xff] }
 0x2fe   : > { %v4443_v41 = vsel %vm4193_vm8, %v4442_v27, %v4438_v35  ;;  %v2987_v35 = vld [vmem:[#allocation2 + $0x468] sm:$0xff] }
 0x2ff   : > { %v4452_v42 = vrot.slane %v3673_v37, %v7495_v20  ;;  %v4447_v43 = vrot.slane %v3672_v39, %v7489_v16  ;;  %3364 = vadd.xlane.f32.xlu1 %v2977_v31  ;;  %3362 = vadd.xlane.f32.xlu0 %v2976_v32  ;;  %v2986_v37 = vld [vmem:[#allocation2 + $0x460] sm:$0xff] }
 0x300   : > { %v3225_v44 = vpop.xlane.xlu1 %3224  ;;  %v3223_v45 = vpop.xlane.xlu0 %3222 }
 0x301   : > { %v4448_v48 = vsel %vm4200_vm9, %v4447_v43, %v4443_v41  ;;  %v3675_v51 = vmul.f32 0.00390625, %v3225_v44  ;;  %v3674_v53 = vmul.f32 0.00390625, %v3223_v45 }
 0x302   : > { %v4453_v57 = vsel %vm8122_vm10, %v4452_v42, %v4448_v48  ;;  %v2989_v48 = vld [vmem:[#allocation2 + $0x478] sm:$0xff] }
 0x303   : > { %v4462_v54 = vrot.slane %v3675_v51, %v7507_v40  ;;  %v4457_v55 = vrot.slane %v3674_v53, %v7501_v36  ;;  %3368 = vadd.xlane.f32.xlu1 %v2979_v46  ;;  %3366 = vadd.xlane.f32.xlu0 %v2978_v47  ;;  %v2988_v51 = vld [vmem:[#allocation2 + $0x470] sm:$0xff] }
 0x304   : > { %v3229_v56 = vpop.xlane.xlu1 %3228  ;;  %v3227_v58 = vpop.xlane.xlu0 %3226 }
 0x305   : > { %v4458_v61 = vsel %vm4214_vm11, %v4457_v55, %v4453_v57  ;;  %v3677_v62 = vmul.f32 0.00390625, %v3229_v56  ;;  %v3676_v63 = vmul.f32 0.00390625, %v3227_v58 }
 0x306   : > { %v4463_v1 = vsel %vm4221_vm12, %v4462_v54, %v4458_v61  ;;  %v2991_v61 = vld [vmem:[#allocation2 + $0x488] sm:$0xff] }
 0x307   : > { %v4472_v11 = vrot.slane %v3677_v62, %v7518_v10  ;;  %v4467_v2 = vrot.slane %v3676_v63, %v7513_v52  ;;  %3372 = vadd.xlane.f32.xlu1 %v2981_v59  ;;  %3370 = vadd.xlane.f32.xlu0 %v2980_v60  ;;  %v2990_v62 = vld [vmem:[#allocation2 + $0x480] sm:$0xff] }
 0x308   : > { %v3233_v3 = vpop.xlane.xlu1 %3232  ;;  %v3231_v5 = vpop.xlane.xlu0 %3230 }
 0x309   : > { %v4468_v7 = vsel %vm4228_vm13, %v4467_v2, %v4463_v1  ;;  %v3679_v8 = vmul.f32 0.00390625, %v3233_v3  ;;  %v3678_v12 = vmul.f32 0.00390625, %v3231_v5 }
 0x30a   : > { %v4473_v13 = vsel %vm4235_vm14, %v4472_v11, %v4468_v7  ;;  %v2993_v7 = vld [vmem:[#allocation2 + $0x498] sm:$0xff] }
 0x30b   : > { %v7631_v14 = vsel %vm8119_vm15, %v4473_v13, %v7596_v38  ;;  %v4481_v15 = vrot.slane %v3679_v8, %v7444_v24  ;;  %v4477_v17 = vrot.slane %v3678_v12, %v7438_v21  ;;  %3376 = vadd.xlane.f32.xlu1 %v2983_v9  ;;  %3374 = vadd.xlane.f32.xlu0 %v2982_v6  ;;  %v2992_v8 = vld [vmem:[#allocation2 + $0x490] sm:$0xff]  ;;  %vm8120_vm15 = vcmask 1044484  }
 0x30c   : > { %v3237_v18 = vpop.xlane.xlu1 %3236  ;;  %v3235_v19 = vpop.xlane.xlu0 %3234 }
 0x30d   : > { %v4482_v27 = vsel %vm4137_vm0, %v4481_v15, %v4477_v17  ;;  %v3681_v28 = vmul.f32 0.00390625, %v3237_v18  ;;  %v3680_v29 = vmul.f32 0.00390625, %v3235_v19 }
 0x30f   : > { %v4491_v30 = vrot.slane %v3681_v28, %v7441_v23  ;;  %v4486_v31 = vrot.slane %v3680_v29, %v7447_v25  ;;  %3380 = vadd.xlane.f32.xlu1 %v2985_v22  ;;  %3378 = vadd.xlane.f32.xlu0 %v2984_v26  ;;  %v2994_v28 = vld [vmem:[#allocation2 + $0x4a0] sm:$0xff] }
 0x310   : > { %v3241_v38 = vpop.xlane.xlu1 %3240  ;;  %v3239_v32 = vpop.xlane.xlu0 %3238 }
 0x311   : > { %v4487_v39 = vsel %vm4144_vm1, %v4486_v31, %v4482_v27  ;;  %v3683_v41 = vmul.f32 0.00390625, %v3241_v38  ;;  %v3682_v42 = vmul.f32 0.00390625, %v3239_v32  ;;  %v2995_v27 = vld [vmem:[#allocation2 + $0x4a8] sm:$0xff] }
 0x312   : > { %v4492_v43 = vsel %vm4151_vm2, %v4491_v30, %v4487_v39 }
 0x313   : > { %v4501_v44 = vrot.slane %v3683_v41, %v7450_v33  ;;  %v4496_v45 = vrot.slane %v3682_v42, %v7453_v34  ;;  %3384 = vadd.xlane.f32.xlu1 %v2987_v35  ;;  %3382 = vadd.xlane.f32.xlu0 %v2986_v37  ;;  %v2997_v41 = vld [vmem:[#allocation2 + $0x4b8] sm:$0xff]  ;;  %v2996_v42 = vld [vmem:[#allocation2 + $0x4b0] sm:$0xff] }
 0x314   : > { %v3245_v46 = vpop.xlane.xlu1 %3244  ;;  %v3243_v47 = vpop.xlane.xlu0 %3242 }
 0x315   : > { %v4497_v53 = vsel %vm4158_vm3, %v4496_v45, %v4492_v43  ;;  %v3685_v57 = vmul.f32 0.00390625, %v3245_v46  ;;  %v3684_v54 = vmul.f32 0.00390625, %v3243_v47 }
 0x316   : > { %v4502_v55 = vsel %vm4165_vm4, %v4501_v44, %v4497_v53 }
 0x317   : > { %v4511_v56 = vrot.slane %v3685_v57, %v7464_v49  ;;  %v4506_v58 = vrot.slane %v3684_v54, %v7467_v50  ;;  %3388 = vadd.xlane.f32.xlu1 %v2989_v48  ;;  %3386 = vadd.xlane.f32.xlu0 %v2988_v51  ;;  %v2999_v57 = vld [vmem:[#allocation2 + $0x4c8] sm:$0xff]  ;;  %v2998_v54 = vld [vmem:[#allocation2 + $0x4c0] sm:$0xff] }
 0x318   : > { %v3249_v59 = vpop.xlane.xlu1 %3248  ;;  %v3247_v60 = vpop.xlane.xlu0 %3246 }
 0x319   : > { %v4507_v63 = vsel %vm4172_vm5, %v4506_v58, %v4502_v55  ;;  %v3687_v1 = vmul.f32 0.00390625, %v3249_v59  ;;  %v3686_v11 = vmul.f32 0.00390625, %v3247_v60 }
 0x31a   : > { %v4512_v2 = vsel %vm4179_vm6, %v4511_v56, %v4507_v63 }
 0x31b   : > { %v4521_v3 = vrot.slane %v3687_v1, %v7483_v4  ;;  %v4516_v5 = vrot.slane %v3686_v11, %v7477_v0  ;;  %3392 = vadd.xlane.f32.xlu1 %v2991_v61  ;;  %3390 = vadd.xlane.f32.xlu0 %v2990_v62  ;;  %v3001_v11 = vld [vmem:[#allocation2 + $0x4d8] sm:$0xff] }
 0x31c   : > { %v3253_v9 = vpop.xlane.xlu1 %3252  ;;  %v3251_v6 = vpop.xlane.xlu0 %3250 }
 0x31d   : > { %v4517_v12 = vsel %vm4186_vm7, %v4516_v5, %v4512_v2  ;;  %v3689_v13 = vmul.f32 0.00390625, %v3253_v9  ;;  %v3688_v15 = vmul.f32 0.00390625, %v3251_v6  ;;  %v3000_v2 = vld [vmem:[#allocation2 + $0x4d0] sm:$0xff] }
 0x31e   : > { %v4522_v17 = vsel %vm4193_vm8, %v4521_v3, %v4517_v12  ;;  %v3003_v12 = vld [vmem:[#allocation2 + $0x4e8] sm:$0xff] }
 0x31f   : > { %v4531_v18 = vrot.slane %v3689_v13, %v7495_v20  ;;  %v4526_v19 = vrot.slane %v3688_v15, %v7489_v16  ;;  %3396 = vadd.xlane.f32.xlu1 %v2993_v7  ;;  %3394 = vadd.xlane.f32.xlu0 %v2992_v8  ;;  %v3002_v13 = vld [vmem:[#allocation2 + $0x4e0] sm:$0xff] }
 0x320   : > { %v3257_v22 = vpop.xlane.xlu1 %3256  ;;  %v3255_v26 = vpop.xlane.xlu0 %3254 }
 0x321   : > { %v4527_v29 = vsel %vm4200_vm9, %v4526_v19, %v4522_v17  ;;  %v3691_v30 = vmul.f32 0.00390625, %v3257_v22  ;;  %v3690_v31 = vmul.f32 0.00390625, %v3255_v26 }
 0x322   : > { %v4532_v38 = vsel %vm8122_vm10, %v4531_v18, %v4527_v29  ;;  %v3005_v29 = vld [vmem:[#allocation2 + $0x4f8] sm:$0xff] }
 0x323   : > { %v4541_v32 = vrot.slane %v3691_v30, %v7507_v40  ;;  %v4536_v35 = vrot.slane %v3690_v31, %v7501_v36  ;;  %3400 = vadd.xlane.f32.xlu1 %v2995_v27  ;;  %3398 = vadd.xlane.f32.xlu0 %v2994_v28  ;;  %v3004_v30 = vld [vmem:[#allocation2 + $0x4f0] sm:$0xff] }
 0x324   : > { %v3261_v37 = vpop.xlane.xlu1 %3260  ;;  %v3259_v39 = vpop.xlane.xlu0 %3258 }
 0x325   : > { %v4537_v43 = vsel %vm4214_vm11, %v4536_v35, %v4532_v38  ;;  %v3693_v44 = vmul.f32 0.00390625, %v3261_v37  ;;  %v3692_v45 = vmul.f32 0.00390625, %v3259_v39 }
 0x326   : > { %v4542_v46 = vsel %vm4221_vm12, %v4541_v32, %v4537_v43  ;;  %v3007_v43 = vld [vmem:[#allocation2 + $0x508] sm:$0xff] }
 0x327   : > { %v4551_v47 = vrot.slane %v3693_v44, %v7518_v10  ;;  %v4546_v48 = vrot.slane %v3692_v45, %v7513_v52  ;;  %3404 = vadd.xlane.f32.xlu1 %v2997_v41  ;;  %3402 = vadd.xlane.f32.xlu0 %v2996_v42  ;;  %v3006_v44 = vld [vmem:[#allocation2 + $0x500] sm:$0xff] }
 0x328   : > { %v3265_v51 = vpop.xlane.xlu1 %3264  ;;  %v3263_v53 = vpop.xlane.xlu0 %3262 }
 0x329   : > { %v4547_v55 = vsel %vm4228_vm13, %v4546_v48, %v4542_v46  ;;  %v3695_v56 = vmul.f32 0.00390625, %v3265_v51  ;;  %v3694_v58 = vmul.f32 0.00390625, %v3263_v53 }
 0x32a   : > { %v4552_v59 = vsel %vm4235_vm14, %v4551_v47, %v4547_v55  ;;  %v3009_v55 = vld [vmem:[#allocation2 + $0x518] sm:$0xff] }
 0x32b   : > { %v7666_v60 = vsel %vm8120_vm15, %v4552_v59, %v7631_v14  ;;  %v4560_v61 = vrot.slane %v3695_v56, %v7444_v24  ;;  %v4556_v62 = vrot.slane %v3694_v58, %v7438_v21  ;;  %3408 = vadd.xlane.f32.xlu1 %v2999_v57  ;;  %3406 = vadd.xlane.f32.xlu0 %v2998_v54  ;;  %v3008_v56 = vld [vmem:[#allocation2 + $0x510] sm:$0xff]  ;;  %vm8121_vm15 = vcmask 1045509  }
 0x32c   : > { %v3269_v63 = vpop.xlane.xlu1 %3268  ;;  %v3267_v1 = vpop.xlane.xlu0 %3266 }
 0x32d   : > { %v4561_v3 = vsel %vm4137_vm0, %v4560_v61, %v4556_v62  ;;  %v3697_v5 = vmul.f32 0.00390625, %v3269_v63  ;;  %v3696_v9 = vmul.f32 0.00390625, %v3267_v1 }
 0x32f   : > { %v4570_v6 = vrot.slane %v3697_v5, %v7441_v23  ;;  %v4565_v7 = vrot.slane %v3696_v9, %v7447_v25  ;;  %3412 = vadd.xlane.f32.xlu1 %v3001_v11  ;;  %3410 = vadd.xlane.f32.xlu0 %v3000_v2  ;;  %v3010_v5 = vld [vmem:[#allocation2 + $0x520] sm:$0xff] }
 0x330   : > { %v3273_v14 = vpop.xlane.xlu1 %3272  ;;  %v3271_v8 = vpop.xlane.xlu0 %3270 }
 0x331   : > { %v4566_v15 = vsel %vm4144_vm1, %v4565_v7, %v4561_v3  ;;  %v3699_v17 = vmul.f32 0.00390625, %v3273_v14  ;;  %v3698_v18 = vmul.f32 0.00390625, %v3271_v8  ;;  %v3011_v3 = vld [vmem:[#allocation2 + $0x528] sm:$0xff] }
 0x332   : > { %v4571_v19 = vsel %vm4151_vm2, %v4570_v6, %v4566_v15 }
 0x333   : > { %v4580_v22 = vrot.slane %v3699_v17, %v7450_v33  ;;  %v4575_v26 = vrot.slane %v3698_v18, %v7453_v34  ;;  %3416 = vadd.xlane.f32.xlu1 %v3003_v12  ;;  %3414 = vadd.xlane.f32.xlu0 %v3002_v13  ;;  %v3013_v17 = vld [vmem:[#allocation2 + $0x538] sm:$0xff]  ;;  %v3012_v18 = vld [vmem:[#allocation2 + $0x530] sm:$0xff] }
 0x334   : > { %v3277_v27 = vpop.xlane.xlu1 %3276  ;;  %v3275_v28 = vpop.xlane.xlu0 %3274 }
 0x335   : > { %v4576_v31 = vsel %vm4158_vm3, %v4575_v26, %v4571_v19  ;;  %v3701_v38 = vmul.f32 0.00390625, %v3277_v27  ;;  %v3700_v32 = vmul.f32 0.00390625, %v3275_v28 }
 0x336   : > { %v4581_v35 = vsel %vm4165_vm4, %v4580_v22, %v4576_v31 }
 0x337   : > { %v4590_v37 = vrot.slane %v3701_v38, %v7464_v49  ;;  %v4585_v39 = vrot.slane %v3700_v32, %v7467_v50  ;;  %3420 = vadd.xlane.f32.xlu1 %v3005_v29  ;;  %3418 = vadd.xlane.f32.xlu0 %v3004_v30  ;;  %v3015_v38 = vld [vmem:[#allocation2 + $0x548] sm:$0xff]  ;;  %v3014_v32 = vld [vmem:[#allocation2 + $0x540] sm:$0xff] }
 0x338   : > { %v3281_v41 = vpop.xlane.xlu1 %3280  ;;  %v3279_v42 = vpop.xlane.xlu0 %3278 }
 0x339   : > { %v4586_v45 = vsel %vm4172_vm5, %v4585_v39, %v4581_v35  ;;  %v3703_v46 = vmul.f32 0.00390625, %v3281_v41  ;;  %v3702_v47 = vmul.f32 0.00390625, %v3279_v42 }
 0x33a   : > { %v4591_v48 = vsel %vm4179_vm6, %v4590_v37, %v4586_v45 }
 0x33b   : > { %v4600_v51 = vrot.slane %v3703_v46, %v7483_v4  ;;  %v4595_v53 = vrot.slane %v3702_v47, %v7477_v0  ;;  %3424 = vadd.xlane.f32.xlu1 %v3007_v43  ;;  %3422 = vadd.xlane.f32.xlu0 %v3006_v44  ;;  %v3017_v43 = vld [vmem:[#allocation2 + $0x558] sm:$0xff]  ;;  %v3016_v44 = vld [vmem:[#allocation2 + $0x550] sm:$0xff]  ;;  %v3019_v47 = vld [vmem:[#allocation2 + $0x568] sm:$0xff] }
 0x33c   : > { %v3285_v57 = vpop.xlane.xlu1 %3284  ;;  %v3283_v54 = vpop.xlane.xlu0 %3282 }
 0x33d   : > { %v4596_v58 = vsel %vm4186_vm7, %v4595_v53, %v4591_v48  ;;  %v3705_v59 = vmul.f32 0.00390625, %v3285_v57  ;;  %v3704_v61 = vmul.f32 0.00390625, %v3283_v54  ;;  %v3018_v48 = vld [vmem:[#allocation2 + $0x560] sm:$0xff]  ;;  %v3021_v57 = vld [vmem:[#allocation2 + $0x578] sm:$0xff]  ;;  %v3020_v54 = vld [vmem:[#allocation2 + $0x570] sm:$0xff] }
 0x33e   : > { %v4601_v62 = vsel %vm4193_vm8, %v4600_v51, %v4596_v58  ;;  %v3022_v58 = vld [vmem:[#allocation2 + $0x580] sm:$0xff] }
 0x33f   : > { %v4610_v63 = vrot.slane %v3705_v59, %v7495_v20  ;;  %v4605_v1 = vrot.slane %v3704_v61, %v7489_v16  ;;  %3428 = vadd.xlane.f32.xlu1 %v3009_v55  ;;  %3426 = vadd.xlane.f32.xlu0 %v3008_v56  ;;  %v3023_v56 = vld [vmem:[#allocation2 + $0x588] sm:$0xff] }
 0x340   : > { %v3289_v11 = vpop.xlane.xlu1 %3288  ;;  %v3287_v2 = vpop.xlane.xlu0 %3286 }
 0x341   : > { %v4606_v9 = vsel %vm4200_vm9, %v4605_v1, %v4601_v62  ;;  %v3707_v6 = vmul.f32 0.00390625, %v3289_v11  ;;  %v3706_v7 = vmul.f32 0.00390625, %v3287_v2  ;;  %v3025_v62 = vld [vmem:[#allocation2 + $0x598] sm:$0xff]  ;;  %v3027_v2 = vld [vmem:[#allocation2 + $0x5a8] sm:$0xff] }
 0x342   : > { %v4611_v14 = vsel %vm8122_vm10, %v4610_v63, %v4606_v9  ;;  %v3024_v63 = vld [vmem:[#allocation2 + $0x590] sm:$0xff] }
 0x343   : > { %v4620_v8 = vrot.slane %v3707_v6, %v7507_v40  ;;  %v4615_v12 = vrot.slane %v3706_v7, %v7501_v36  ;;  %3432 = vadd.xlane.f32.xlu1 %v3011_v3  ;;  %3430 = vadd.xlane.f32.xlu0 %v3010_v5  ;;  %v3026_v3 = vld [vmem:[#allocation2 + $0x5a0] sm:$0xff] }
 0x344   : > { %v3293_v13 = vpop.xlane.xlu1 %3292  ;;  %v3291_v15 = vpop.xlane.xlu0 %3290 }
 0x345   : > { %v4616_v19 = vsel %vm4214_vm11, %v4615_v12, %v4611_v14  ;;  %v3709_v22 = vmul.f32 0.00390625, %v3293_v13  ;;  %v3708_v26 = vmul.f32 0.00390625, %v3291_v15  ;;  %v3028_v12 = vld [vmem:[#allocation2 + $0x5b0] sm:$0xff] }
 0x346   : > { %v4621_v27 = vsel %vm4221_vm12, %v4620_v8, %v4616_v19  ;;  %v3029_v8 = vld [vmem:[#allocation2 + $0x5b8] sm:$0xff] }
 0x347   : > { %v4630_v28 = vrot.slane %v3709_v22, %v7518_v10  ;;  %v4625_v29 = vrot.slane %v3708_v26, %v7513_v52  ;;  %3436 = vadd.xlane.f32.xlu1 %v3013_v17  ;;  %3434 = vadd.xlane.f32.xlu0 %v3012_v18 }
 0x348   : > { %v3297_v30 = vpop.xlane.xlu1 %3296  ;;  %v3295_v31 = vpop.xlane.xlu0 %3294 }
 0x349   : > { %v4626_v35 = vsel %vm4228_vm13, %v4625_v29, %v4621_v27  ;;  %v3711_v5 = vmul.f32 0.00390625, %v3297_v30  ;;  %v3710_v9 = vmul.f32 0.00390625, %v3295_v31  ;;  %v3031_v27 = vld [vmem:[#allocation2 + $0x5c8] sm:$0xff] }
 0x34a   : > { %v4631_v37 = vsel %vm4235_vm14, %v4630_v28, %v4626_v35  ;;  %v3030_v28 = vld [vmem:[#allocation2 + $0x5c0] sm:$0xff] }
 0x34b   : > { %3440 = vadd.xlane.f32.xlu1 %v3015_v38  ;;  %3438 = vadd.xlane.f32.xlu0 %v3014_v32  ;;  %v7701_v39 = vsel %vm8121_vm15, %v4631_v37, %v7666_v60  ;;  %v4639_v13 = vrot.slane %v3711_v5, %v7444_v24  ;;  %v4635_v15 = vrot.slane %v3710_v9, %v7438_v21  ;;  %vm5432_vm15 = vcmask 1046534  }
 0x34c   : > { %v3301_v41 = vpop.xlane.xlu1 %3300  ;;  %v3299_v42 = vpop.xlane.xlu0 %3298 }
 0x34d   : > { %v3712_v6 = vmul.f32 0.00390625, %v3299_v42  ;;  %v3713_v17 = vmul.f32 0.00390625, %v3301_v41  ;;  %v4640_v31 = vsel %vm4137_vm0, %v4639_v13, %v4635_v15 }
 0x34f   : > { %3444 = vadd.xlane.f32.xlu1 %v3017_v43  ;;  %3442 = vadd.xlane.f32.xlu0 %v3016_v44  ;;  %v4644_v18 = vrot.slane %v3712_v6, %v7447_v25  ;;  %v4649_v38 = vrot.slane %v3713_v17, %v7441_v23 }
 0x350   : > { %v3305_v45 = vpop.xlane.xlu1 %3304  ;;  %v3303_v46 = vpop.xlane.xlu0 %3302 }
 0x351   : > { %v3714_v19 = vmul.f32 0.00390625, %v3303_v46  ;;  %v3715_v32 = vmul.f32 0.00390625, %v3305_v45  ;;  %v4645_v35 = vsel %vm4144_vm1, %v4644_v18, %v4640_v31 }
 0x352   : > { %v4650_v45 = vsel %vm4151_vm2, %v4649_v38, %v4645_v35  ;;  %v3037_v38 = vld [vmem:[#allocation2 + $0x5f8] sm:$0xff] }
 0x353   : > { %3448 = vadd.xlane.f32.xlu1 %v3019_v47  ;;  %3446 = vadd.xlane.f32.xlu0 %v3018_v48  ;;  %v4654_v37 = vrot.slane %v3714_v19, %v7453_v34  ;;  %v3033_v47 = vld [vmem:[#allocation2 + $0x5d8] sm:$0xff]  ;;  %v3032_v48 = vld [vmem:[#allocation2 + $0x5d0] sm:$0xff] }
 0x354   : > { %v7703_v51 = vpop.xlane.xlu1 %3308  ;;  %v3307_v53 = vpop.xlane.xlu0 %3306 }
 0x355   : > { %v3716_v41 = vmul.f32 0.00390625, %v3307_v53  ;;  %v4655_v53 = vsel %vm4158_vm3, %v4654_v37, %v4650_v45  ;;  %v3039_v45 = vld [vmem:[#allocation2 + $0x608] sm:$0xff] }
 0x357   : > { %3452 = vadd.xlane.f32.xlu1 %v3021_v57  ;;  %3450 = vadd.xlane.f32.xlu0 %v3020_v54 }
 0x358   : > { %v7705_v60 = vpop.xlane.xlu1 %3312  ;;  %v3311_v55 = vpop.xlane.xlu0 %3310 }
 0x359   : > { %v3719_v18 = vmul.f32 0.00390625, %v7705_v60 }
 0x35b   : > { %3456 = vadd.xlane.f32.xlu1 %v3023_v56  ;;  %3454 = vadd.xlane.f32.xlu0 %v3022_v58  ;;  %v4659_v56 = vrot.slane %v3715_v32, %v7450_v33  ;;  %v3717_v58 = vmul.f32 0.00390625, %v7703_v51  ;;  %v3036_v32 = vld [vmem:[#allocation2 + $0x5f0] sm:$0xff] }
 0x35c   : > { %v7707_v59 = vpop.xlane.xlu1 %3316  ;;  %v7709_v61 = vpop.xlane.xlu0 %3314 }
 0x35d   : > { %v4669_v17 = vrot.slane %v3717_v58, %v7464_v49  ;;  %v3038_v58 = vld [vmem:[#allocation2 + $0x600] sm:$0xff] }
 0x35f   : > { %3460 = vadd.xlane.f32.xlu1 %v3025_v62  ;;  %3458 = vadd.xlane.f32.xlu0 %v3024_v63  ;;  %v4664_v62 = vrot.slane %v3716_v41, %v7467_v50  ;;  %v3718_v63 = vmul.f32 0.00390625, %v3311_v55  ;;  %v4660_v55 = vsel %vm4165_vm4, %v4659_v56, %v4655_v53  ;;  %v4679_v41 = vrot.slane %v3719_v18, %v7483_v4 }
 0x360   : > { %v7711_v1 = vpop.xlane.xlu1 %3320  ;;  %v7713_v11 = vpop.xlane.xlu0 %3318 }
 0x361   : > { %v4665_v19 = vsel %vm4172_vm5, %v4664_v62, %v4660_v55 }
 0x363   : > { %3464 = vadd.xlane.f32.xlu1 %v3027_v2  ;;  %3462 = vadd.xlane.f32.xlu0 %v3026_v3 }
 0x364   : > { %v7715_v7 = vpop.xlane.xlu1 %3324  ;;  %v7717_v14 = vpop.xlane.xlu0 %3322 }
 0x367   : > { %3468 = vadd.xlane.f32.xlu1 %v3029_v8  ;;  %3466 = vadd.xlane.f32.xlu0 %v3028_v12  ;;  %v3035_v8 = vld [vmem:[#allocation2 + $0x5e8] sm:$0xff]  ;;  %v3034_v12 = vld [vmem:[#allocation2 + $0x5e0] sm:$0xff] }
 0x368   : > { %v3329_v22 = vpop.xlane.xlu1 %3328  ;;  %v3327_v26 = vpop.xlane.xlu0 %3326 }
 0x369   : > { %v3727_v29 = vmul.f32 0.00390625, %v3329_v22  ;;  %v3726_v30 = vmul.f32 0.00390625, %v3327_v26  ;;  %v4674_v22 = vrot.slane %v3718_v63, %v7477_v0  ;;  %v3720_v26 = vmul.f32 0.00390625, %v7709_v61 }
 0x36a   : > { %v4670_v61 = vsel %vm4179_vm6, %v4669_v17, %v4665_v19  ;;  %v3040_v17 = vld [vmem:[#allocation2 + $0x610] sm:$0xff] }
 0x36b   : > { %3472 = vadd.xlane.f32.xlu1 %v3031_v27  ;;  %3470 = vadd.xlane.f32.xlu0 %v3030_v28  ;;  %v4718_v42 = vrot.slane %v3727_v29, %v7444_v24  ;;  %v4714_v43 = vrot.slane %v3726_v30, %v7438_v21 }
 0x36c   : > { %v3333_v44 = vpop.xlane.xlu1 %3332  ;;  %v3331_v46 = vpop.xlane.xlu0 %3330 }
 0x36d   : > { %v3729_v57 = vmul.f32 0.00390625, %v3333_v44  ;;  %v3728_v54 = vmul.f32 0.00390625, %v3331_v46  ;;  %v4719_v3 = vsel %vm4137_vm0, %v4718_v42, %v4714_v43  ;;  %v4675_v42 = vsel %vm4186_vm7, %v4674_v22, %v4670_v61 }
 0x36e   : > { %v3721_v43 = vmul.f32 0.00390625, %v7707_v59  ;;  %v4684_v44 = vrot.slane %v3720_v26, %v7489_v16  ;;  %v4680_v63 = vsel %vm4193_vm8, %v4679_v41, %v4675_v42  ;;  %v3725_v26 = vmul.f32 0.00390625, %v7715_v7 }
 0x36f   : > { %v4723_v2 = vrot.slane %v3728_v54, %v7447_v25  ;;  %3476 = vadd.xlane.f32.xlu1 %v3033_v47  ;;  %3474 = vadd.xlane.f32.xlu0 %v3032_v48  ;;  %v4728_v5 = vrot.slane %v3729_v57, %v7441_v23  ;;  %v3722_v47 = vmul.f32 0.00390625, %v7713_v11  ;;  %v3723_v11 = vmul.f32 0.00390625, %v7711_v1 }
 0x370   : > { %v3337_v9 = vpop.xlane.xlu1 %3336  ;;  %v3335_v6 = vpop.xlane.xlu0 %3334  ;;  %v4709_v41 = vrot.slane %v3725_v26, %v7518_v10 }
 0x371   : > { %v4724_v13 = vsel %vm4144_vm1, %v4723_v2, %v4719_v3  ;;  %v3731_v51 = vmul.f32 0.00390625, %v3337_v9  ;;  %v3730_v15 = vmul.f32 0.00390625, %v3335_v6  ;;  %v4689_v2 = vrot.slane %v3721_v43, %v7495_v20 }
 0x372   : > { %v4729_v29 = vsel %vm4151_vm2, %v4728_v5, %v4724_v13  ;;  %v4685_v3 = vsel %vm4200_vm9, %v4684_v44, %v4680_v63  ;;  %v4694_v9 = vrot.slane %v3722_v47, %v7501_v36  ;;  %v3724_v6 = vmul.f32 0.00390625, %v7717_v14 }
 0x373   : > { %v4733_v27 = vrot.slane %v3730_v15, %v7453_v34  ;;  %3480 = vadd.xlane.f32.xlu1 %v3035_v8  ;;  %3478 = vadd.xlane.f32.xlu0 %v3034_v12  ;;  %v4738_v28 = vrot.slane %v3731_v51, %v7450_v33  ;;  %v3041_v15 = vld [vmem:[#allocation2 + $0x618] sm:$0xff]  ;;  %v4699_v19 = vrot.slane %v3723_v11, %v7507_v40  ;;  %v3047_v11 = vld [vmem:[#allocation2 + $0x648] sm:$0xff] }
 0x374   : > { %v3341_v30 = vpop.xlane.xlu1 %3340  ;;  %v3339_v31 = vpop.xlane.xlu0 %3338  ;;  %v4690_v22 = vsel %vm8122_vm10, %v4689_v2, %v4685_v3 }
 0x375   : > { %v4734_v60 = vsel %vm4158_vm3, %v4733_v27, %v4729_v29  ;;  %v3733_v35 = vmul.f32 0.00390625, %v3341_v30  ;;  %v3732_v37 = vmul.f32 0.00390625, %v3339_v31  ;;  %v4695_v27 = vsel %vm4214_vm11, %v4694_v9, %v4690_v22 }
 0x376   : > { %v4739_v57 = vsel %vm4165_vm4, %v4738_v28, %v4734_v60  ;;  %v4704_v28 = vrot.slane %v3724_v6, %v7513_v52  ;;  %v3042_v60 = vld [vmem:[#allocation2 + $0x620] sm:$0xff]  ;;  %v4700_v61 = vsel %vm4221_vm12, %v4699_v19, %v4695_v27  ;;  %v3048_v19 = vld [vmem:[#allocation2 + $0x650] sm:$0xff] }
 0x377   : > { %v4743_v46 = vrot.slane %v3732_v37, %v7467_v50  ;;  %3484 = vadd.xlane.f32.xlu1 %v3037_v38  ;;  %3482 = vadd.xlane.f32.xlu0 %v3036_v32  ;;  %v4748_v48 = vrot.slane %v3733_v35, %v7464_v49  ;;  %v3043_v32 = vld [vmem:[#allocation2 + $0x628] sm:$0xff] }
 0x378   : > { %v3345_v54 = vpop.xlane.xlu1 %3344  ;;  %v3343_v56 = vpop.xlane.xlu0 %3342  ;;  %v4705_v43 = vsel %vm4228_vm13, %v4704_v28, %v4700_v61 }
 0x379   : > { %v4744_v53 = vsel %vm4172_vm5, %v4743_v46, %v4739_v57  ;;  %v3735_v62 = vmul.f32 0.00390625, %v3345_v54  ;;  %v3734_v59 = vmul.f32 0.00390625, %v3343_v56  ;;  %v3045_v57 = vld [vmem:[#allocation2 + $0x638] sm:$0xff]  ;;  %v3044_v54 = vld [vmem:[#allocation2 + $0x630] sm:$0xff] }
 0x37a   : > { %v4749_v12 = vsel %vm4179_vm6, %v4748_v48, %v4744_v53  ;;  %v4710_v53 = vsel %vm4235_vm14, %v4709_v41, %v4705_v43  ;;  %v3052_v43 = vld [vmem:[#allocation2 + $0x670] sm:$0xff] }
 0x37b   : > { %v4753_v5 = vrot.slane %v3734_v59, %v7477_v0  ;;  %3488 = vadd.xlane.f32.xlu1 %v3039_v45  ;;  %3486 = vadd.xlane.f32.xlu0 %v3038_v58  ;;  %v4758_v8 = vrot.slane %v3735_v62, %v7483_v4 }
 0x37c   : > { %v3349_v13 = vpop.xlane.xlu1 %3348  ;;  %v3347_v51 = vpop.xlane.xlu0 %3346 }
 0x37d   : > { %v4754_v55 = vsel %vm4186_vm7, %v4753_v5, %v4749_v12  ;;  %v3737_v18 = vmul.f32 0.00390625, %v3349_v13  ;;  %v3736_v1 = vmul.f32 0.00390625, %v3347_v51  ;;  %v3046_v5 = vld [vmem:[#allocation2 + $0x640] sm:$0xff]  ;;  %v5433_v13 = vsel %vm5432_vm15, %v4710_v53, %v7701_v39 }
 0x37e   : > { %v4759_v30 = vsel %vm4193_vm8, %v4758_v8, %v4754_v55  ;;  %v3054_v53 = vld [vmem:[#allocation2 + $0x680] sm:$0xff] }
 0x37f   : > { %v4763_v14 = vrot.slane %v3736_v1, %v7489_v16  ;;  %3492 = vadd.xlane.f32.xlu1 %v3041_v15  ;;  %3490 = vadd.xlane.f32.xlu0 %v3040_v17  ;;  %v4768_v29 = vrot.slane %v3737_v18, %v7495_v20  ;;  %v3049_v1 = vld [vmem:[#allocation2 + $0x658] sm:$0xff] }
 0x380   : > { %v3353_v31 = vpop.xlane.xlu1 %3352  ;;  %v3351_v38 = vpop.xlane.xlu0 %3350 }
 0x381   : > { %v4764_v35 = vsel %vm4200_vm9, %v4763_v14, %v4759_v30  ;;  %v3739_v37 = vmul.f32 0.00390625, %v3353_v31  ;;  %v3738_v7 = vmul.f32 0.00390625, %v3351_v38  ;;  %v3051_v30 = vld [vmem:[#allocation2 + $0x668] sm:$0xff]  ;;  %v3050_v31 = vld [vmem:[#allocation2 + $0x660] sm:$0xff] }
 0x382   : > { %v4769_v46 = vsel %vm8122_vm10, %v4768_v29, %v4764_v35  ;;  %vm8123_vm10 = vcmask 1047559  }
 0x383   : > { %v4773_v42 = vrot.slane %v3738_v7, %v7501_v36  ;;  %3496 = vadd.xlane.f32.xlu1 %v3043_v32  ;;  %3494 = vadd.xlane.f32.xlu0 %v3042_v60  ;;  %v4778_v44 = vrot.slane %v3739_v37, %v7507_v40 }
 0x384   : > { %v3357_v47 = vpop.xlane.xlu1 %3356  ;;  %v3355_v48 = vpop.xlane.xlu0 %3354 }
 0x385   : > { %v4774_v56 = vsel %vm4214_vm11, %v4773_v42, %v4769_v46  ;;  %v3741_v45 = vmul.f32 0.00390625, %v3357_v47  ;;  %v3740_v58 = vmul.f32 0.00390625, %v3355_v48  ;;  %v3053_v42 = vld [vmem:[#allocation2 + $0x678] sm:$0xff] }
 0x386   : > { %v4779_v63 = vsel %vm4221_vm12, %v4778_v44, %v4774_v56 }
 0x387   : > { %v4788_v62 = vrot.slane %v3741_v45, %v7518_v10  ;;  %v4783_v59 = vrot.slane %v3740_v58, %v7513_v52  ;;  %3500 = vadd.xlane.f32.xlu1 %v3045_v57  ;;  %3498 = vadd.xlane.f32.xlu0 %v3044_v54  ;;  %v3055_v58 = vld [vmem:[#allocation2 + $0x688] sm:$0xff] }
 0x388   : > { %v3361_v2 = vpop.xlane.xlu1 %3360  ;;  %v3359_v3 = vpop.xlane.xlu0 %3358 }
 0x389   : > { %v4784_v9 = vsel %vm4228_vm13, %v4783_v59, %v4779_v63  ;;  %v3743_v6 = vmul.f32 0.00390625, %v3361_v2  ;;  %v3742_v8 = vmul.f32 0.00390625, %v3359_v3 }
 0x38a   : > { %v4789_v12 = vsel %vm4235_vm14, %v4788_v62, %v4784_v9 }
 0x38b   : > { %v4797_v51 = vrot.slane %v3743_v6, %v7444_v24  ;;  %v4793_v15 = vrot.slane %v3742_v8, %v7438_v21  ;;  %3504 = vadd.xlane.f32.xlu1 %v3047_v11  ;;  %3502 = vadd.xlane.f32.xlu0 %v3046_v5  ;;  %v5435_v17 = vsel %vm8123_vm10, %v4789_v12, %v5433_v13  ;;  %v3070_v6 = vld [vmem:[#allocation2 + $0x700] sm:$0xff]  ;;  %v3056_v8 = vld [vmem:[#allocation2 + $0x690] sm:$0xff]  ;;  %vm8126_vm10 = vcmask 786112  }
 0x38c   : > { %v3365_v55 = vpop.xlane.xlu1 %3364  ;;  %v3363_v18 = vpop.xlane.xlu0 %3362  ;;  %5445 = vst [vmem:[%s7039_s24] sm:$0xff] %v5435_v17 }
 0x38d   : > { %v4798_v22 = vsel %vm4137_vm0, %v4797_v51, %v4793_v15  ;;  %v3745_v26 = vmul.f32 0.00390625, %v3365_v55  ;;  %v3744_v14 = vmul.f32 0.00390625, %v3363_v18 }
 0x38f   : > { %v4807_v27 = vrot.slane %v3745_v26, %v7441_v23  ;;  %v4802_v39 = vrot.slane %v3744_v14, %v7447_v25  ;;  %3508 = vadd.xlane.f32.xlu1 %v3049_v1  ;;  %3506 = vadd.xlane.f32.xlu0 %v3048_v19  ;;  %v3057_v19 = vld [vmem:[#allocation2 + $0x698] sm:$0xff] }
 0x390   : > { %v3369_v28 = vpop.xlane.xlu1 %3368  ;;  %v3367_v29 = vpop.xlane.xlu0 %3366 }
 0x391   : > { %v4803_v38 = vsel %vm4144_vm1, %v4802_v39, %v4798_v22  ;;  %v3747_v32 = vmul.f32 0.00390625, %v3369_v28  ;;  %v3746_v60 = vmul.f32 0.00390625, %v3367_v29  ;;  %v3071_v22 = vld [vmem:[#allocation2 + $0x708] sm:$0xff] }
 0x392   : > { %v4808_v35 = vsel %vm4151_vm2, %v4807_v27, %v4803_v38  ;;  %v3086_v38 = vld [vmem:[#allocation2 + $0x780] sm:$0xff] }
 0x393   : > { %v4817_v37 = vrot.slane %v3747_v32, %v7450_v33  ;;  %v4812_v7 = vrot.slane %v3746_v60, %v7453_v34  ;;  %3512 = vadd.xlane.f32.xlu1 %v3051_v30  ;;  %3510 = vadd.xlane.f32.xlu0 %v3050_v31  ;;  %v3072_v32 = vld [vmem:[#allocation2 + $0x710] sm:$0xff] }
 0x394   : > { %v3373_v41 = vpop.xlane.xlu1 %3372  ;;  %v3371_v61 = vpop.xlane.xlu0 %3370 }
 0x395   : > { %v4813_v44 = vsel %vm4158_vm3, %v4812_v7, %v4808_v35  ;;  %v3749_v46 = vmul.f32 0.00390625, %v3373_v41  ;;  %v3748_v47 = vmul.f32 0.00390625, %v3371_v61 }
 0x396   : > { %v4818_v48 = vsel %vm4165_vm4, %v4817_v37, %v4813_v44  ;;  %v3058_v44 = vld [vmem:[#allocation2 + $0x6a0] sm:$0xff] }
 0x397   : > { %v4827_v57 = vrot.slane %v3749_v46, %v7464_v49  ;;  %v4822_v54 = vrot.slane %v3748_v47, %v7467_v50  ;;  %3516 = vadd.xlane.f32.xlu1 %v3053_v42  ;;  %3514 = vadd.xlane.f32.xlu0 %v3052_v43  ;;  %v3087_v46 = vld [vmem:[#allocation2 + $0x788] sm:$0xff] }
 0x398   : > { %v3377_v56 = vpop.xlane.xlu1 %3376  ;;  %v3375_v45 = vpop.xlane.xlu0 %3374 }
 0x399   : > { %v4823_v62 = vsel %vm4172_vm5, %v4822_v54, %v4818_v48  ;;  %v3751_v59 = vmul.f32 0.00390625, %v3377_v56  ;;  %v3750_v63 = vmul.f32 0.00390625, %v3375_v45 }
 0x39a   : > { %v4828_v2 = vsel %vm4179_vm6, %v4827_v57, %v4823_v62  ;;  %v3088_v62 = vld [vmem:[#allocation2 + $0x790] sm:$0xff] }
 0x39b   : > { %v4837_v3 = vrot.slane %v3751_v59, %v7483_v4  ;;  %v4832_v11 = vrot.slane %v3750_v63, %v7477_v0  ;;  %3520 = vadd.xlane.f32.xlu1 %v3055_v58  ;;  %3518 = vadd.xlane.f32.xlu0 %v3054_v53  ;;  %v3073_v59 = vld [vmem:[#allocation2 + $0x718] sm:$0xff] }
 0x39c   : > { %v3381_v5 = vpop.xlane.xlu1 %3380  ;;  %v3379_v9 = vpop.xlane.xlu0 %3378 }
 0x39d   : > { %v4833_v12 = vsel %vm4186_vm7, %v4832_v11, %v4828_v2  ;;  %v3753_v13 = vmul.f32 0.00390625, %v3381_v5  ;;  %v3752_v51 = vmul.f32 0.00390625, %v3379_v9 }
 0x39e   : > { %v4838_v15 = vsel %vm4193_vm8, %v4837_v3, %v4833_v12  ;;  %v3059_v12 = vld [vmem:[#allocation2 + $0x6a8] sm:$0xff] }
 0x39f   : > { %v4847_v17 = vrot.slane %v3753_v13, %v7495_v20  ;;  %v4842_v55 = vrot.slane %v3752_v51, %v7489_v16  ;;  %3550 = vadd.xlane.f32.xlu1 %v3070_v6  ;;  %3522 = vadd.xlane.f32.xlu0 %v3056_v8  ;;  %v3074_v8 = vld [vmem:[#allocation2 + $0x720] sm:$0xff] }
 0x3a0   : > { %v3385_v18 = vpop.xlane.xlu1 %3384  ;;  %v3383_v1 = vpop.xlane.xlu0 %3382 }
 0x3a1   : > { %v4843_v26 = vsel %vm4200_vm9, %v4842_v55, %v4838_v15  ;;  %v3755_v14 = vmul.f32 0.00390625, %v3385_v18  ;;  %v3754_v27 = vmul.f32 0.00390625, %v3383_v1 }
 0x3a2   : > { %v4848_v39 = vsel %vm8126_vm10, %v4847_v17, %v4843_v26  ;;  %v3089_v26 = vld [vmem:[#allocation2 + $0x798] sm:$0xff] }
 0x3a3   : > { %v4857_v28 = vrot.slane %v3755_v14, %v7507_v40  ;;  %v4852_v29 = vrot.slane %v3754_v27, %v7501_v36  ;;  %3524 = vadd.xlane.f32.xlu1 %v3057_v19  ;;  %3552 = vadd.xlane.f32.xlu0 %v3071_v22  ;;  %v3060_v22 = vld [vmem:[#allocation2 + $0x6b0] sm:$0xff] }
 0x3a4   : > { %v3389_v30 = vpop.xlane.xlu1 %3388  ;;  %v3387_v31 = vpop.xlane.xlu0 %3386 }
 0x3a5   : > { %v4853_v60 = vsel %vm4214_vm11, %v4852_v29, %v4848_v39  ;;  %v3757_v35 = vmul.f32 0.00390625, %v3389_v30  ;;  %v3756_v37 = vmul.f32 0.00390625, %v3387_v31 }
 0x3a6   : > { %v4858_v7 = vsel %vm4221_vm12, %v4857_v28, %v4853_v60  ;;  %v3075_v60 = vld [vmem:[#allocation2 + $0x728] sm:$0xff] }
 0x3a7   : > { %v4867_v41 = vrot.slane %v3757_v35, %v7518_v10  ;;  %v4862_v61 = vrot.slane %v3756_v37, %v7513_v52  ;;  %3582 = vadd.xlane.f32.xlu1 %v3086_v38  ;;  %3554 = vadd.xlane.f32.xlu0 %v3072_v32  ;;  %v3090_v32 = vld [vmem:[#allocation2 + $0x7a0] sm:$0xff] }
 0x3a8   : > { %v3393_v42 = vpop.xlane.xlu1 %3392  ;;  %v3391_v43 = vpop.xlane.xlu0 %3390 }
 0x3a9   : > { %v4863_v47 = vsel %vm4228_vm13, %v4862_v61, %v4858_v7  ;;  %v3759_v48 = vmul.f32 0.00390625, %v3393_v42  ;;  %v3758_v57 = vmul.f32 0.00390625, %v3391_v43 }
 0x3aa   : > { %v7824_v54 = vsel %vm4235_vm14, %v4867_v41, %v4863_v47  ;;  %v3061_v47 = vld [vmem:[#allocation2 + $0x6b8] sm:$0xff] }
 0x3ab   : > { %v4876_v56 = vrot.slane %v3759_v48, %v7444_v24  ;;  %v4872_v45 = vrot.slane %v3758_v57, %v7438_v21  ;;  %3526 = vadd.xlane.f32.xlu1 %v3058_v44  ;;  %3584 = vadd.xlane.f32.xlu0 %v3087_v46  ;;  %v3076_v46 = vld [vmem:[#allocation2 + $0x730] sm:$0xff] }
 0x3ac   : > { %v3397_v58 = vpop.xlane.xlu1 %3396  ;;  %v3395_v53 = vpop.xlane.xlu0 %3394 }
 0x3ad   : > { %v4877_v63 = vsel %vm4137_vm0, %v4876_v56, %v4872_v45  ;;  %v3761_v2 = vmul.f32 0.00390625, %v3397_v58  ;;  %v3760_v3 = vmul.f32 0.00390625, %v3395_v53 }
 0x3af   : > { %v4886_v11 = vrot.slane %v3761_v2, %v7441_v23  ;;  %v4881_v5 = vrot.slane %v3760_v3, %v7447_v25  ;;  %3586 = vadd.xlane.f32.xlu1 %v3088_v62  ;;  %3556 = vadd.xlane.f32.xlu0 %v3073_v59  ;;  %v3091_v2 = vld [vmem:[#allocation2 + $0x7a8] sm:$0xff] }
 0x3b0   : > { %v3401_v9 = vpop.xlane.xlu1 %3400  ;;  %v3399_v6 = vpop.xlane.xlu0 %3398 }
 0x3b1   : > { %v4882_v13 = vsel %vm4144_vm1, %v4881_v5, %v4877_v63  ;;  %v3763_v51 = vmul.f32 0.00390625, %v3401_v9  ;;  %v3762_v15 = vmul.f32 0.00390625, %v3399_v6  ;;  %v3062_v63 = vld [vmem:[#allocation2 + $0x6c0] sm:$0xff] }
 0x3b2   : > { %v4887_v17 = vsel %vm4151_vm2, %v4886_v11, %v4882_v13 }
 0x3b3   : > { %v4896_v55 = vrot.slane %v3763_v51, %v7450_v33  ;;  %v4891_v18 = vrot.slane %v3762_v15, %v7453_v34  ;;  %3558 = vadd.xlane.f32.xlu1 %v3074_v8  ;;  %3528 = vadd.xlane.f32.xlu0 %v3059_v12  ;;  %v3092_v51 = vld [vmem:[#allocation2 + $0x7b0] sm:$0xff]  ;;  %v3077_v15 = vld [vmem:[#allocation2 + $0x738] sm:$0xff] }
 0x3b4   : > { %v3405_v1 = vpop.xlane.xlu1 %3404  ;;  %v3403_v19 = vpop.xlane.xlu0 %3402 }
 0x3b5   : > { %v4892_v14 = vsel %vm4158_vm3, %v4891_v18, %v4887_v17  ;;  %v3765_v27 = vmul.f32 0.00390625, %v3405_v1  ;;  %v3764_v39 = vmul.f32 0.00390625, %v3403_v19 }
 0x3b6   : > { %v4897_v28 = vsel %vm4165_vm4, %v4896_v55, %v4892_v14 }
 0x3b7   : > { %v4906_v29 = vrot.slane %v3765_v27, %v7464_v49  ;;  %v4901_v30 = vrot.slane %v3764_v39, %v7467_v50  ;;  %3530 = vadd.xlane.f32.xlu1 %v3060_v22  ;;  %3588 = vadd.xlane.f32.xlu0 %v3089_v26  ;;  %v3078_v27 = vld [vmem:[#allocation2 + $0x740] sm:$0xff]  ;;  %v3063_v39 = vld [vmem:[#allocation2 + $0x6c8] sm:$0xff] }
 0x3b8   : > { %v3409_v31 = vpop.xlane.xlu1 %3408  ;;  %v3407_v38 = vpop.xlane.xlu0 %3406 }
 0x3b9   : > { %v4902_v35 = vsel %vm4172_vm5, %v4901_v30, %v4897_v28  ;;  %v3767_v37 = vmul.f32 0.00390625, %v3409_v31  ;;  %v3766_v7 = vmul.f32 0.00390625, %v3407_v38 }
 0x3ba   : > { %v4907_v41 = vsel %vm4179_vm6, %v4906_v29, %v4902_v35 }
 0x3bb   : > { %v4916_v61 = vrot.slane %v3767_v37, %v7483_v4  ;;  %v4911_v42 = vrot.slane %v3766_v7, %v7477_v0  ;;  %3590 = vadd.xlane.f32.xlu1 %v3090_v32  ;;  %3560 = vadd.xlane.f32.xlu0 %v3075_v60  ;;  %v3064_v7 = vld [vmem:[#allocation2 + $0x6d0] sm:$0xff] }
 0x3bc   : > { %v3413_v43 = vpop.xlane.xlu1 %3412  ;;  %v3411_v44 = vpop.xlane.xlu0 %3410 }
 0x3bd   : > { %v4912_v48 = vsel %vm4186_vm7, %v4911_v42, %v4907_v41  ;;  %v3769_v57 = vmul.f32 0.00390625, %v3413_v43  ;;  %v3768_v56 = vmul.f32 0.00390625, %v3411_v44  ;;  %v3093_v41 = vld [vmem:[#allocation2 + $0x7b8] sm:$0xff] }
 0x3be   : > { %v4917_v45 = vsel %vm4193_vm8, %v4916_v61, %v4912_v48  ;;  %v3094_v48 = vld [vmem:[#allocation2 + $0x7c0] sm:$0xff] }
 0x3bf   : > { %v4926_v58 = vrot.slane %v3769_v57, %v7495_v20  ;;  %v4921_v53 = vrot.slane %v3768_v56, %v7489_v16  ;;  %3562 = vadd.xlane.f32.xlu1 %v3076_v46  ;;  %3532 = vadd.xlane.f32.xlu0 %v3061_v47  ;;  %v3079_v57 = vld [vmem:[#allocation2 + $0x748] sm:$0xff] }
 0x3c0   : > { %v3417_v62 = vpop.xlane.xlu1 %3416  ;;  %v3415_v59 = vpop.xlane.xlu0 %3414 }
 0x3c1   : > { %v4922_v3 = vsel %vm4200_vm9, %v4921_v53, %v4917_v45  ;;  %v3771_v11 = vmul.f32 0.00390625, %v3417_v62  ;;  %v3770_v5 = vmul.f32 0.00390625, %v3415_v59 }
 0x3c2   : > { %v4927_v9 = vsel %vm8126_vm10, %v4926_v58, %v4922_v3  ;;  %vm8127_vm10 = vcmask 1041409   ;;  %v3080_v3 = vld [vmem:[#allocation2 + $0x750] sm:$0xff] }
 0x3c3   : > { %v4936_v6 = vrot.slane %v3771_v11, %v7507_v40  ;;  %v4931_v8 = vrot.slane %v3770_v5, %v7501_v36  ;;  %3534 = vadd.xlane.f32.xlu1 %v3062_v63  ;;  %3592 = vadd.xlane.f32.xlu0 %v3091_v2  ;;  %v3065_v11 = vld [vmem:[#allocation2 + $0x6d8] sm:$0xff] }
 0x3c4   : > { %v3421_v12 = vpop.xlane.xlu1 %3420  ;;  %v3419_v13 = vpop.xlane.xlu0 %3418 }
 0x3c5   : > { %v4932_v17 = vsel %vm4214_vm11, %v4931_v8, %v4927_v9  ;;  %v3773_v55 = vmul.f32 0.00390625, %v3421_v12  ;;  %v3772_v18 = vmul.f32 0.00390625, %v3419_v13 }
 0x3c6   : > { %v4937_v1 = vsel %vm4221_vm12, %v4936_v6, %v4932_v17  ;;  %v3066_v17 = vld [vmem:[#allocation2 + $0x6e0] sm:$0xff] }
 0x3c7   : > { %v4946_v19 = vrot.slane %v3773_v55, %v7518_v10  ;;  %v4941_v22 = vrot.slane %v3772_v18, %v7513_v52  ;;  %3594 = vadd.xlane.f32.xlu1 %v3092_v51  ;;  %3564 = vadd.xlane.f32.xlu0 %v3077_v15  ;;  %v3095_v55 = vld [vmem:[#allocation2 + $0x7c8] sm:$0xff] }
 0x3c8   : > { %v3425_v26 = vpop.xlane.xlu1 %3424  ;;  %v3423_v14 = vpop.xlane.xlu0 %3422 }
 0x3c9   : > { %v4942_v28 = vsel %vm4228_vm13, %v4941_v22, %v4937_v1  ;;  %v3775_v29 = vmul.f32 0.00390625, %v3425_v26  ;;  %v3774_v30 = vmul.f32 0.00390625, %v3423_v14 }
 0x3ca   : > { %v4947_v31 = vsel %vm4235_vm14, %v4946_v19, %v4942_v28  ;;  %v3096_v28 = vld [vmem:[#allocation2 + $0x7d0] sm:$0xff] }
 0x3cb   : > { %v7859_v38 = vsel %vm8127_vm10, %v4947_v31, %v7824_v54  ;;  %v4955_v32 = vrot.slane %v3775_v29, %v7444_v24  ;;  %v4951_v60 = vrot.slane %v3774_v30, %v7438_v21  ;;  %3566 = vadd.xlane.f32.xlu1 %v3078_v27  ;;  %3536 = vadd.xlane.f32.xlu0 %v3063_v39  ;;  %v3081_v29 = vld [vmem:[#allocation2 + $0x758] sm:$0xff]  ;;  %vm8128_vm10 = vcmask 786112  }
 0x3cc   : > { %v3429_v35 = vpop.xlane.xlu1 %3428  ;;  %v3427_v37 = vpop.xlane.xlu0 %3426 }
 0x3cd   : > { %v4956_v61 = vsel %vm4137_vm0, %v4955_v32, %v4951_v60  ;;  %v3777_v42 = vmul.f32 0.00390625, %v3429_v35  ;;  %v3776_v43 = vmul.f32 0.00390625, %v3427_v37 }
 0x3cf   : > { %v4965_v44 = vrot.slane %v3777_v42, %v7441_v23  ;;  %v4960_v46 = vrot.slane %v3776_v43, %v7447_v25  ;;  %3538 = vadd.xlane.f32.xlu1 %v3064_v7  ;;  %3596 = vadd.xlane.f32.xlu0 %v3093_v41  ;;  %v3067_v42 = vld [vmem:[#allocation2 + $0x6e8] sm:$0xff] }
 0x3d0   : > { %v3433_v54 = vpop.xlane.xlu1 %3432  ;;  %v3431_v47 = vpop.xlane.xlu0 %3430 }
 0x3d1   : > { %v4961_v56 = vsel %vm4144_vm1, %v4960_v46, %v4956_v61  ;;  %v3779_v45 = vmul.f32 0.00390625, %v3433_v54  ;;  %v3778_v58 = vmul.f32 0.00390625, %v3431_v47  ;;  %v3082_v61 = vld [vmem:[#allocation2 + $0x760] sm:$0xff] }
 0x3d2   : > { %v4966_v53 = vsel %vm4151_vm2, %v4965_v44, %v4961_v56 }
 0x3d3   : > { %v4975_v62 = vrot.slane %v3779_v45, %v7450_v33  ;;  %v4970_v59 = vrot.slane %v3778_v58, %v7453_v34  ;;  %3598 = vadd.xlane.f32.xlu1 %v3094_v48  ;;  %3568 = vadd.xlane.f32.xlu0 %v3079_v57  ;;  %v3068_v45 = vld [vmem:[#allocation2 + $0x6f0] sm:$0xff]  ;;  %v3097_v58 = vld [vmem:[#allocation2 + $0x7d8] sm:$0xff] }
 0x3d4   : > { %v3437_v63 = vpop.xlane.xlu1 %3436  ;;  %v3435_v2 = vpop.xlane.xlu0 %3434 }
 0x3d5   : > { %v4971_v5 = vsel %vm4158_vm3, %v4970_v59, %v4966_v53  ;;  %v3781_v9 = vmul.f32 0.00390625, %v3437_v63  ;;  %v3780_v6 = vmul.f32 0.00390625, %v3435_v2 }
 0x3d6   : > { %v4976_v8 = vsel %vm4165_vm4, %v4975_v62, %v4971_v5 }
 0x3d7   : > { %v4985_v12 = vrot.slane %v3781_v9, %v7464_v49  ;;  %v4980_v13 = vrot.slane %v3780_v6, %v7467_v50  ;;  %3570 = vadd.xlane.f32.xlu1 %v3080_v3  ;;  %3540 = vadd.xlane.f32.xlu0 %v3065_v11  ;;  %v3098_v9 = vld [vmem:[#allocation2 + $0x7e0] sm:$0xff]  ;;  %v3083_v6 = vld [vmem:[#allocation2 + $0x768] sm:$0xff] }
 0x3d8   : > { %v3441_v51 = vpop.xlane.xlu1 %3440  ;;  %v3439_v15 = vpop.xlane.xlu0 %3438 }
 0x3d9   : > { %v4981_v18 = vsel %vm4172_vm5, %v4980_v13, %v4976_v8  ;;  %v3783_v1 = vmul.f32 0.00390625, %v3441_v51  ;;  %v3782_v19 = vmul.f32 0.00390625, %v3439_v15 }
 0x3da   : > { %v4986_v22 = vsel %vm4179_vm6, %v4985_v12, %v4981_v18 }
 0x3db   : > { %v4995_v26 = vrot.slane %v3783_v1, %v7483_v4  ;;  %v4990_v14 = vrot.slane %v3782_v19, %v7477_v0  ;;  %3542 = vadd.xlane.f32.xlu1 %v3066_v17  ;;  %3600 = vadd.xlane.f32.xlu0 %v3095_v55  ;;  %v3084_v19 = vld [vmem:[#allocation2 + $0x770] sm:$0xff] }
 0x3dc   : > { %v3445_v27 = vpop.xlane.xlu1 %3444  ;;  %v3443_v39 = vpop.xlane.xlu0 %3442 }
 0x3dd   : > { %v4991_v30 = vsel %vm4186_vm7, %v4990_v14, %v4986_v22  ;;  %v3785_v31 = vmul.f32 0.00390625, %v3445_v27  ;;  %v3784_v32 = vmul.f32 0.00390625, %v3443_v39  ;;  %v3069_v22 = vld [vmem:[#allocation2 + $0x6f8] sm:$0xff] }
 0x3de   : > { %v4996_v60 = vsel %vm4193_vm8, %v4995_v26, %v4991_v30  ;;  %v3085_v30 = vld [vmem:[#allocation2 + $0x778] sm:$0xff] }
 0x3df   : > { %v5005_v35 = vrot.slane %v3785_v31, %v7495_v20  ;;  %v5000_v37 = vrot.slane %v3784_v32, %v7489_v16  ;;  %3602 = vadd.xlane.f32.xlu1 %v3096_v28  ;;  %3572 = vadd.xlane.f32.xlu0 %v3081_v29  ;;  %v3099_v31 = vld [vmem:[#allocation2 + $0x7e8] sm:$0xff] }
 0x3e0   : > { %v3449_v7 = vpop.xlane.xlu1 %3448  ;;  %v3447_v41 = vpop.xlane.xlu0 %3446 }
 0x3e1   : > { %v5001_v43 = vsel %vm4200_vm9, %v5000_v37, %v4996_v60  ;;  %v3787_v44 = vmul.f32 0.00390625, %v3449_v7  ;;  %v3786_v46 = vmul.f32 0.00390625, %v3447_v41 }
 0x3e2   : > { %v5006_v54 = vsel %vm8128_vm10, %v5005_v35, %v5001_v43  ;;  %vm8129_vm10 = vcmask 1042434   ;;  %v3100_v43 = vld [vmem:[#allocation2 + $0x7f0] sm:$0xff] }
 0x3e3   : > { %v5015_v47 = vrot.slane %v3787_v44, %v7507_v40  ;;  %v5010_v48 = vrot.slane %v3786_v46, %v7501_v36  ;;  %3574 = vadd.xlane.f32.xlu1 %v3082_v61  ;;  %3544 = vadd.xlane.f32.xlu0 %v3067_v42  ;;  %v3101_v44 = vld [vmem:[#allocation2 + $0x7f8] sm:$0xff] }
 0x3e4   : > { %v3453_v57 = vpop.xlane.xlu1 %3452  ;;  %v3451_v56 = vpop.xlane.xlu0 %3450 }
 0x3e5   : > { %v5011_v53 = vsel %vm4214_vm11, %v5010_v48, %v5006_v54  ;;  %v3789_v62 = vmul.f32 0.00390625, %v3453_v57  ;;  %v3788_v59 = vmul.f32 0.00390625, %v3451_v56 }
 0x3e6   : > { %v5016_v63 = vsel %vm4221_vm12, %v5015_v47, %v5011_v53 }
 0x3e7   : > { %v5025_v2 = vrot.slane %v3789_v62, %v7518_v10  ;;  %v5020_v3 = vrot.slane %v3788_v59, %v7513_v52  ;;  %3546 = vadd.xlane.f32.xlu1 %v3068_v45  ;;  %3604 = vadd.xlane.f32.xlu0 %v3097_v58 }
 0x3e8   : > { %v3457_v11 = vpop.xlane.xlu1 %3456  ;;  %v3455_v5 = vpop.xlane.xlu0 %3454 }
 0x3e9   : > { %v5021_v8 = vsel %vm4228_vm13, %v5020_v3, %v5016_v63  ;;  %v3791_v12 = vmul.f32 0.00390625, %v3457_v11  ;;  %v3790_v13 = vmul.f32 0.00390625, %v3455_v5 }
 0x3ea   : > { %v5026_v51 = vsel %vm4235_vm14, %v5025_v2, %v5021_v8 }
 0x3eb   : > { %v7894_v15 = vsel %vm8129_vm10, %v5026_v51, %v7859_v38  ;;  %v5034_v17 = vrot.slane %v3791_v12, %v7444_v24  ;;  %v5030_v55 = vrot.slane %v3790_v13, %v7438_v21  ;;  %3606 = vadd.xlane.f32.xlu1 %v3098_v9  ;;  %3576 = vadd.xlane.f32.xlu0 %v3083_v6  ;;  %vm8130_vm10 = vcmask 786112  }
 0x3ec   : > { %v3461_v18 = vpop.xlane.xlu1 %3460  ;;  %v3459_v1 = vpop.xlane.xlu0 %3458 }
 0x3ed   : > { %v5035_v26 = vsel %vm4137_vm0, %v5034_v17, %v5030_v55  ;;  %v3793_v14 = vmul.f32 0.00390625, %v3461_v18  ;;  %v3792_v27 = vmul.f32 0.00390625, %v3459_v1 }
 0x3ef   : > { %v5044_v39 = vrot.slane %v3793_v14, %v7441_v23  ;;  %v5039_v28 = vrot.slane %v3792_v27, %v7447_v25  ;;  %3578 = vadd.xlane.f32.xlu1 %v3084_v19  ;;  %3548 = vadd.xlane.f32.xlu0 %v3069_v22 }
 0x3f0   : > { %v3465_v38 = vpop.xlane.xlu1 %3464  ;;  %v3463_v29 = vpop.xlane.xlu0 %3462 }
 0x3f1   : > { %v5040_v32 = vsel %vm4144_vm1, %v5039_v28, %v5035_v26  ;;  %v3795_v60 = vmul.f32 0.00390625, %v3465_v38  ;;  %v3794_v35 = vmul.f32 0.00390625, %v3463_v29 }
 0x3f2   : > { %v5045_v37 = vsel %vm4151_vm2, %v5044_v39, %v5040_v32 }
 0x3f3   : > { %v5054_v7 = vrot.slane %v3795_v60, %v7450_v33  ;;  %v5049_v41 = vrot.slane %v3794_v35, %v7453_v34  ;;  %3580 = vadd.xlane.f32.xlu1 %v3085_v30  ;;  %3608 = vadd.xlane.f32.xlu0 %v3099_v31 }
 0x3f4   : > { %v3469_v61 = vpop.xlane.xlu1 %3468  ;;  %v3467_v42 = vpop.xlane.xlu0 %3466 }
 0x3f5   : > { %v5050_v46 = vsel %vm4158_vm3, %v5049_v41, %v5045_v37  ;;  %v3797_v54 = vmul.f32 0.00390625, %v3469_v61  ;;  %v3796_v47 = vmul.f32 0.00390625, %v3467_v42 }
 0x3f6   : > { %v5055_v48 = vsel %vm4165_vm4, %v5054_v7, %v5050_v46 }
 0x3f7   : > { %v5064_v57 = vrot.slane %v3797_v54, %v7464_v49  ;;  %v5059_v56 = vrot.slane %v3796_v47, %v7467_v50  ;;  %3610 = vadd.xlane.f32.xlu0 %v3100_v43  ;;  %3612 = vadd.xlane.f32.xlu1 %v3101_v44 }
 0x3f8   : > { %v3473_v45 = vpop.xlane.xlu1 %3472  ;;  %v3471_v58 = vpop.xlane.xlu0 %3470 }
 0x3f9   : > { %v5060_v53 = vsel %vm4172_vm5, %v5059_v56, %v5055_v48  ;;  %v3799_v62 = vmul.f32 0.00390625, %v3473_v45  ;;  %v3798_v59 = vmul.f32 0.00390625, %v3471_v58 }
 0x3fa   : > { %v5065_v63 = vsel %vm4179_vm6, %v5064_v57, %v5060_v53 }
 0x3fb   : > { %v5074_v2 = vrot.slane %v3799_v62, %v7483_v4  ;;  %v5069_v3 = vrot.slane %v3798_v59, %v7477_v0 }
 0x3fc   : > { %v3477_v11 = vpop.xlane.xlu1 %3476  ;;  %v3475_v5 = vpop.xlane.xlu0 %3474 }
 0x3fd   : > { %v5070_v9 = vsel %vm4186_vm7, %v5069_v3, %v5065_v63  ;;  %v3801_v6 = vmul.f32 0.00390625, %v3477_v11  ;;  %v3800_v8 = vmul.f32 0.00390625, %v3475_v5 }
 0x3fe   : > { %v5075_v12 = vsel %vm4193_vm8, %v5074_v2, %v5070_v9 }
 0x3ff   : > { %v5084_v13 = vrot.slane %v3801_v6, %v7495_v20  ;;  %v5079_v51 = vrot.slane %v3800_v8, %v7489_v16 }
 0x400   : > { %v3481_v17 = vpop.xlane.xlu1 %3480  ;;  %v3479_v55 = vpop.xlane.xlu0 %3478 }
 0x401   : > { %v5080_v18 = vsel %vm4200_vm9, %v5079_v51, %v5075_v12  ;;  %v3803_v1 = vmul.f32 0.00390625, %v3481_v17  ;;  %v3802_v19 = vmul.f32 0.00390625, %v3479_v55 }
 0x402   : > { %v5085_v22 = vsel %vm8130_vm10, %v5084_v13, %v5080_v18  ;;  %vm8131_vm10 = vcmask 1043459  }
 0x403   : > { %v5094_v26 = vrot.slane %v3803_v1, %v7507_v40  ;;  %v5089_v14 = vrot.slane %v3802_v19, %v7501_v36 }
 0x404   : > { %v3485_v27 = vpop.xlane.xlu1 %3484  ;;  %v3483_v39 = vpop.xlane.xlu0 %3482 }
 0x405   : > { %v5090_v28 = vsel %vm4214_vm11, %v5089_v14, %v5085_v22  ;;  %v3805_v38 = vmul.f32 0.00390625, %v3485_v27  ;;  %v3804_v29 = vmul.f32 0.00390625, %v3483_v39 }
 0x406   : > { %v5095_v30 = vsel %vm4221_vm12, %v5094_v26, %v5090_v28 }
 0x407   : > { %v5104_v31 = vrot.slane %v3805_v38, %v7518_v10  ;;  %v5099_v32 = vrot.slane %v3804_v29, %v7513_v52 }
 0x408   : > { %v3489_v60 = vpop.xlane.xlu1 %3488  ;;  %v3487_v35 = vpop.xlane.xlu0 %3486 }
 0x409   : > { %v5100_v37 = vsel %vm4228_vm13, %v5099_v32, %v5095_v30  ;;  %v3807_v7 = vmul.f32 0.00390625, %v3489_v60  ;;  %v3806_v41 = vmul.f32 0.00390625, %v3487_v35 }
 0x40a   : > { %v5105_v61 = vsel %vm4235_vm14, %v5104_v31, %v5100_v37 }
 0x40b   : > { %v7929_v42 = vsel %vm8131_vm10, %v5105_v61, %v7894_v15  ;;  %v5113_v43 = vrot.slane %v3807_v7, %v7444_v24  ;;  %v5109_v44 = vrot.slane %v3806_v41, %v7438_v21  ;;  %vm8132_vm10 = vcmask 786112  }
 0x40c   : > { %v3493_v46 = vpop.xlane.xlu1 %3492  ;;  %v3491_v54 = vpop.xlane.xlu0 %3490 }
 0x40d   : > { %v5114_v47 = vsel %vm4137_vm0, %v5113_v43, %v5109_v44  ;;  %v3809_v48 = vmul.f32 0.00390625, %v3493_v46  ;;  %v3808_v57 = vmul.f32 0.00390625, %v3491_v54 }
 0x40f   : > { %v5123_v56 = vrot.slane %v3809_v48, %v7441_v23  ;;  %v5118_v45 = vrot.slane %v3808_v57, %v7447_v25 }
 0x410   : > { %v3497_v58 = vpop.xlane.xlu1 %3496  ;;  %v3495_v53 = vpop.xlane.xlu0 %3494 }
 0x411   : > { %v5119_v62 = vsel %vm4144_vm1, %v5118_v45, %v5114_v47  ;;  %v3811_v15 = vmul.f32 0.00390625, %v3497_v58  ;;  %v3810_v59 = vmul.f32 0.00390625, %v3495_v53 }
 0x412   : > { %v5124_v63 = vsel %vm4151_vm2, %v5123_v56, %v5119_v62 }
 0x413   : > { %v5133_v2 = vrot.slane %v3811_v15, %v7450_v33  ;;  %v5128_v3 = vrot.slane %v3810_v59, %v7453_v34 }
 0x414   : > { %v3501_v11 = vpop.xlane.xlu1 %3500  ;;  %v3499_v5 = vpop.xlane.xlu0 %3498 }
 0x415   : > { %v5129_v9 = vsel %vm4158_vm3, %v5128_v3, %v5124_v63  ;;  %v3813_v6 = vmul.f32 0.00390625, %v3501_v11  ;;  %v3812_v8 = vmul.f32 0.00390625, %v3499_v5 }
 0x416   : > { %v5134_v12 = vsel %vm4165_vm4, %v5133_v2, %v5129_v9 }
 0x417   : > { %v5143_v13 = vrot.slane %v3813_v6, %v7464_v49  ;;  %v5138_v51 = vrot.slane %v3812_v8, %v7467_v50 }
 0x418   : > { %v3505_v17 = vpop.xlane.xlu1 %3504  ;;  %v3503_v55 = vpop.xlane.xlu0 %3502 }
 0x419   : > { %v5139_v18 = vsel %vm4172_vm5, %v5138_v51, %v5134_v12  ;;  %v3815_v1 = vmul.f32 0.00390625, %v3505_v17  ;;  %v3814_v19 = vmul.f32 0.00390625, %v3503_v55 }
 0x41a   : > { %v5144_v22 = vsel %vm4179_vm6, %v5143_v13, %v5139_v18 }
 0x41b   : > { %v5153_v26 = vrot.slane %v3815_v1, %v7483_v4  ;;  %v5148_v14 = vrot.slane %v3814_v19, %v7477_v0 }
 0x41c   : > { %v3509_v27 = vpop.xlane.xlu1 %3508  ;;  %v3507_v39 = vpop.xlane.xlu0 %3506 }
 0x41d   : > { %v5149_v28 = vsel %vm4186_vm7, %v5148_v14, %v5144_v22  ;;  %v3817_v38 = vmul.f32 0.00390625, %v3509_v27  ;;  %v3816_v29 = vmul.f32 0.00390625, %v3507_v39 }
 0x41e   : > { %v5154_v30 = vsel %vm4193_vm8, %v5153_v26, %v5149_v28 }
 0x41f   : > { %v5163_v31 = vrot.slane %v3817_v38, %v7495_v20  ;;  %v5158_v32 = vrot.slane %v3816_v29, %v7489_v16 }
 0x420   : > { %v3513_v60 = vpop.xlane.xlu1 %3512  ;;  %v3511_v35 = vpop.xlane.xlu0 %3510 }
 0x421   : > { %v5159_v37 = vsel %vm4200_vm9, %v5158_v32, %v5154_v30  ;;  %v3819_v7 = vmul.f32 0.00390625, %v3513_v60  ;;  %v3818_v41 = vmul.f32 0.00390625, %v3511_v35 }
 0x422   : > { %v5164_v61 = vsel %vm8132_vm10, %v5163_v31, %v5159_v37  ;;  %vm8133_vm10 = vcmask 1044484  }
 0x423   : > { %v5173_v43 = vrot.slane %v3819_v7, %v7507_v40  ;;  %v5168_v44 = vrot.slane %v3818_v41, %v7501_v36 }
 0x424   : > { %v3517_v46 = vpop.xlane.xlu1 %3516  ;;  %v3515_v54 = vpop.xlane.xlu0 %3514 }
 0x425   : > { %v5169_v47 = vsel %vm4214_vm11, %v5168_v44, %v5164_v61  ;;  %v3821_v48 = vmul.f32 0.00390625, %v3517_v46  ;;  %v3820_v57 = vmul.f32 0.00390625, %v3515_v54 }
 0x426   : > { %v5174_v56 = vsel %vm4221_vm12, %v5173_v43, %v5169_v47 }
 0x427   : > { %v5183_v45 = vrot.slane %v3821_v48, %v7518_v10  ;;  %v5178_v58 = vrot.slane %v3820_v57, %v7513_v52 }
 0x428   : > { %v3521_v53 = vpop.xlane.xlu1 %3520  ;;  %v3519_v62 = vpop.xlane.xlu0 %3518 }
 0x429   : > { %v5179_v15 = vsel %vm4228_vm13, %v5178_v58, %v5174_v56  ;;  %v3823_v59 = vmul.f32 0.00390625, %v3521_v53  ;;  %v3822_v63 = vmul.f32 0.00390625, %v3519_v62 }
 0x42a   : > { %v5184_v2 = vsel %vm4235_vm14, %v5183_v45, %v5179_v15 }
 0x42b   : > { %v5192_v3 = vrot.slane %v3823_v59, %v7444_v24  ;;  %v5188_v11 = vrot.slane %v3822_v63, %v7438_v21  ;;  %v7966_v5 = vsel %vm8133_vm10, %v5184_v2, %v7929_v42 }
 0x42c   : > { %v3551_v9 = vpop.xlane.xlu1 %3550  ;;  %v3523_v6 = vpop.xlane.xlu0 %3522 }
 0x42d   : > { %v5193_v8 = vsel %vm4137_vm0, %v5192_v3, %v5188_v11  ;;  %v3824_v12 = vmul.f32 0.00390625, %v3523_v6  ;;  %v3838_v13 = vmul.f32 0.00390625, %v3551_v9 }
 0x42f   : > { %v5197_v51 = vrot.slane %v3824_v12, %v7447_v25  ;;  %v5267_v22 = vrot.slane %v3838_v13, %v7438_v21 }
 0x430   : > { %v3525_v17 = vpop.xlane.xlu1 %3524  ;;  %v3553_v55 = vpop.xlane.xlu0 %3552 }
 0x431   : > { %v5198_v18 = vsel %vm4144_vm1, %v5197_v51, %v5193_v8  ;;  %v3825_v1 = vmul.f32 0.00390625, %v3525_v17  ;;  %v3839_v19 = vmul.f32 0.00390625, %v3553_v55 }
 0x433   : > { %v5202_v26 = vrot.slane %v3825_v1, %v7441_v23  ;;  %v5271_v42 = vrot.slane %v3839_v19, %v7444_v24 }
 0x434   : > { %v3583_v14 = vpop.xlane.xlu1 %3582  ;;  %v3555_v27 = vpop.xlane.xlu0 %3554 }
 0x435   : > { %v5203_v39 = vsel %vm4151_vm2, %v5202_v26, %v5198_v18  ;;  %v5272_v28 = vsel %vm4137_vm0, %v5271_v42, %v5267_v22  ;;  %v3840_v38 = vmul.f32 0.00390625, %v3555_v27  ;;  %v3854_v9 = vmul.f32 0.00390625, %v3583_v14 }
 0x437   : > { %v5276_v29 = vrot.slane %v3840_v38, %v7447_v25  ;;  %v5346_v22 = vrot.slane %v3854_v9, %v7438_v21 }
 0x438   : > { %v3527_v30 = vpop.xlane.xlu1 %3526  ;;  %v3585_v31 = vpop.xlane.xlu0 %3584 }
 0x439   : > { %v5277_v32 = vsel %vm4144_vm1, %v5276_v29, %v5272_v28  ;;  %v3826_v3 = vmul.f32 0.00390625, %v3527_v30  ;;  %v3855_v11 = vmul.f32 0.00390625, %v3585_v31 }
 0x43b   : > { %v5207_v51 = vrot.slane %v3826_v3, %v7453_v34  ;;  %v5350_v17 = vrot.slane %v3855_v11, %v7444_v24 }
 0x43c   : > { %v3587_v60 = vpop.xlane.xlu1 %3586  ;;  %v3557_v35 = vpop.xlane.xlu0 %3556 }
 0x43d   : > { %v3856_v6 = vmul.f32 0.00390625, %v3587_v60  ;;  %v3841_v8 = vmul.f32 0.00390625, %v3557_v35  ;;  %v5208_v30 = vsel %vm4158_vm3, %v5207_v51, %v5203_v39  ;;  %v5351_v24 = vsel %vm4137_vm0, %v5350_v17, %v5346_v22 }
 0x43e   : > { %vm8134_vm0 = vcmask 786112  }
 0x43f   : > { %v5355_v26 = vrot.slane %v3856_v6, %v7447_v25  ;;  %v5281_v14 = vrot.slane %v3841_v8, %v7441_v23 }
 0x440   : > { %v3559_v37 = vpop.xlane.xlu1 %3558  ;;  %v3529_v7 = vpop.xlane.xlu0 %3528 }
 0x441   : > { %v3827_v55 = vmul.f32 0.00390625, %v3529_v7  ;;  %v3842_v18 = vmul.f32 0.00390625, %v3559_v37  ;;  %v5356_v7 = vsel %vm4144_vm1, %v5355_v26, %v5351_v24  ;;  %v5282_v39 = vsel %vm4151_vm2, %v5281_v14, %v5277_v32  ;;  %vm8135_vm1 = vmmov %vm8134_vm0 }
 0x443   : > { %v5212_v31 = vrot.slane %v3827_v55, %v7450_v33  ;;  %v5286_v35 = vrot.slane %v3842_v18, %v7453_v34 }
 0x444   : > { %v3531_v41 = vpop.xlane.xlu1 %3530  ;;  %v3589_v61 = vpop.xlane.xlu0 %3588 }
 0x445   : > { %v3828_v1 = vmul.f32 0.00390625, %v3531_v41  ;;  %v3857_v19 = vmul.f32 0.00390625, %v3589_v61  ;;  %v5213_v9 = vsel %vm4165_vm4, %v5212_v31, %v5208_v30  ;;  %v5287_v8 = vsel %vm4158_vm3, %v5286_v35, %v5282_v39 }
 0x447   : > { %v5217_v21 = vrot.slane %v3828_v1, %v7467_v50  ;;  %v5360_v25 = vrot.slane %v3857_v19, %v7441_v23 }
 0x448   : > { %v3591_v43 = vpop.xlane.xlu1 %3590  ;;  %v3561_v44 = vpop.xlane.xlu0 %3560 }
 0x449   : > { %v3858_v42 = vmul.f32 0.00390625, %v3591_v43  ;;  %v3843_v27 = vmul.f32 0.00390625, %v3561_v44 }
 0x44b   : > { %v5365_v41 = vrot.slane %v3858_v42, %v7453_v34  ;;  %v5291_v61 = vrot.slane %v3843_v27, %v7450_v33  ;;  %v5218_v34 = vsel %vm4172_vm5, %v5217_v21, %v5213_v9 }
 0x44c   : > { %v3563_v46 = vpop.xlane.xlu1 %3562  ;;  %v3533_v54 = vpop.xlane.xlu0 %3532 }
 0x44d   : > { %v3844_v28 = vmul.f32 0.00390625, %v3563_v46  ;;  %v3829_v60 = vmul.f32 0.00390625, %v3533_v54 }
 0x44f   : > { %v5296_v44 = vrot.slane %v3844_v28, %v7467_v50  ;;  %v5222_v23 = vrot.slane %v3829_v60, %v7464_v49 }
 0x450   : > { %v3535_v47 = vpop.xlane.xlu1 %3534  ;;  %v3593_v48 = vpop.xlane.xlu0 %3592 }
 0x451   : > { %v3830_v37 = vmul.f32 0.00390625, %v3535_v47  ;;  %v3859_v43 = vmul.f32 0.00390625, %v3593_v48  ;;  %v5361_v48 = vsel %vm4151_vm2, %v5360_v25, %v5356_v7  ;;  %v5223_v22 = vsel %vm4179_vm6, %v5222_v23, %v5218_v34 }
 0x452   : > { %v5366_v51 = vsel %vm4158_vm3, %v5365_v41, %v5361_v48  ;;  %vm8136_vm2 = vcmask 1045509   ;;  %vm8137_vm3 = vmmov %vm8134_vm0 }
 0x453   : > { %v5227_v32 = vrot.slane %v3830_v37, %v7477_v0 }
 0x454   : > { %v3595_v57 = vpop.xlane.xlu1 %3594  ;;  %v3565_v56 = vpop.xlane.xlu0 %3564 }
 0x455   : > { %v3860_v46 = vmul.f32 0.00390625, %v3595_v57  ;;  %v3845_v54 = vmul.f32 0.00390625, %v3565_v56  ;;  %v5292_v57 = vsel %vm4165_vm4, %v5291_v61, %v5287_v8  ;;  %v5370_v56 = vrot.slane %v3859_v43, %v7450_v33 }
 0x456   : > { %v5297_v55 = vsel %vm4172_vm5, %v5296_v44, %v5292_v57  ;;  %v5228_v14 = vsel %vm4186_vm7, %v5227_v32, %v5223_v22 }
 0x458   : > { %v3567_v45 = vpop.xlane.xlu1 %3566  ;;  %v3537_v58 = vpop.xlane.xlu0 %3536 }
 0x459   : > { %v3846_v47 = vmul.f32 0.00390625, %v3567_v45  ;;  %v3831_v6 = vmul.f32 0.00390625, %v3537_v58  ;;  %v5375_v45 = vrot.slane %v3860_v46, %v7467_v50  ;;  %v5301_v58 = vrot.slane %v3845_v54, %v7464_v49 }
 0x45a   : > { %v5371_v50 = vsel %vm4165_vm4, %v5370_v56, %v5366_v51  ;;  %vm8138_vm4 = vcmask 1047559  }
 0x45b   : > { %v5306_v26 = vrot.slane %v3846_v47, %v7477_v0  ;;  %v5232_v42 = vrot.slane %v3831_v6, %v7483_v4  ;;  %v5376_v31 = vsel %vm4172_vm5, %v5375_v45, %v5371_v50  ;;  %v5302_v60 = vsel %vm4179_vm6, %v5301_v58, %v5297_v55 }
 0x45c   : > { %v3539_v53 = vpop.xlane.xlu1 %3538  ;;  %v7978_v62 = vpop.xlane.xlu0 %3596 }
 0x45d   : > { %v3832_v17 = vmul.f32 0.00390625, %v3539_v53  ;;  %v3861_v33 = vmul.f32 0.00390625, %v7978_v62  ;;  %v5307_v62 = vsel %vm4186_vm7, %v5306_v26, %v5302_v60 }
 0x45f   : > { %v5380_v7 = vrot.slane %v3861_v33, %v7464_v49 }
 0x460   : > { %v7980_v15 = vpop.xlane.xlu1 %3598  ;;  %v3569_v59 = vpop.xlane.xlu0 %3568 }
 0x461   : > { %v3847_v18 = vmul.f32 0.00390625, %v3569_v59  ;;  %v5237_v59 = vrot.slane %v3832_v17, %v7489_v16  ;;  %v3862_v30 = vmul.f32 0.00390625, %v7980_v15 }
 0x463   : > { %v5385_v39 = vrot.slane %v3862_v30, %v7477_v0 }
 0x464   : > { %v7982_v63 = vpop.xlane.xlu1 %3570  ;;  %v3541_v2 = vpop.xlane.xlu0 %3540 }
 0x465   : > { %v3833_v27 = vmul.f32 0.00390625, %v3541_v2  ;;  %v3848_v53 = vmul.f32 0.00390625, %v7982_v63  ;;  %v5311_v2 = vrot.slane %v3847_v18, %v7483_v4  ;;  %v5233_v63 = vsel %vm4193_vm8, %v5232_v42, %v5228_v14 }
 0x466   : > { %v5238_v43 = vsel %vm4200_vm9, %v5237_v59, %v5233_v63  ;;  %v5381_v42 = vsel %vm4179_vm6, %v5380_v7, %v5376_v31 }
 0x467   : > { %v5316_v15 = vrot.slane %v3848_v53, %v7489_v16  ;;  %v5312_v54 = vsel %vm4193_vm8, %v5311_v2, %v5307_v62  ;;  %v5386_v14 = vsel %vm4186_vm7, %v5385_v39, %v5381_v42 }
 0x468   : > { %v3543_v12 = vpop.xlane.xlu1 %3542  ;;  %v7984_v13 = vpop.xlane.xlu0 %3600 }
 0x469   : > { %v3834_v28 = vmul.f32 0.00390625, %v3543_v12  ;;  %v5242_v12 = vrot.slane %v3833_v27, %v7495_v20  ;;  %v5317_v0 = vsel %vm4200_vm9, %v5316_v15, %v5312_v54 }
 0x46b   : > { %v5247_v41 = vrot.slane %v3834_v28, %v7501_v36  ;;  %v5243_v47 = vsel %vm8134_vm0, %v5242_v12, %v5238_v43 }
 0x46c   : > { %v7991_v38 = vpop.xlane.xlu1 %3602  ;;  %v3573_v29 = vpop.xlane.xlu0 %3572 }
 0x46d   : > { %v3849_v37 = vmul.f32 0.00390625, %v3573_v29  ;;  %v3864_v29 = vmul.f32 0.00390625, %v7991_v38  ;;  %v5248_v34 = vsel %vm4214_vm11, %v5247_v41, %v5243_v47 }
 0x46f   : > { %v5395_v17 = vrot.slane %v3864_v29, %v7489_v16 }
 0x470   : > { %v3575_v3 = vpop.xlane.xlu1 %3574  ;;  %v3545_v11 = vpop.xlane.xlu0 %3544 }
 0x471   : > { %v3835_v24 = vmul.f32 0.00390625, %v3545_v11  ;;  %v3850_v61 = vmul.f32 0.00390625, %v3575_v3  ;;  %v3863_v11 = vmul.f32 0.00390625, %v7984_v13  ;;  %v5321_v3 = vrot.slane %v3849_v37, %v7495_v20 }
 0x473   : > { %v5252_v44 = vrot.slane %v3835_v24, %v7507_v40  ;;  %v5326_v48 = vrot.slane %v3850_v61, %v7501_v36  ;;  %v5390_v56 = vrot.slane %v3863_v11, %v7483_v4 }
 0x474   : > { %v3547_v1 = vpop.xlane.xlu1 %3546  ;;  %v3605_v19 = vpop.xlane.xlu0 %3604 }
 0x475   : > { %v3836_v35 = vmul.f32 0.00390625, %v3547_v1  ;;  %v3865_v32 = vmul.f32 0.00390625, %v3605_v19  ;;  %v5253_v13 = vsel %vm4221_vm12, %v5252_v44, %v5248_v34  ;;  %v5322_v1 = vsel %vm8135_vm1, %v5321_v3, %v5317_v0 }
 0x476   : > { %v5327_v27 = vsel %vm4214_vm11, %v5326_v48, %v5322_v1  ;;  %v5391_v50 = vsel %vm4193_vm8, %v5390_v56, %v5386_v14 }
 0x477   : > { %v5257_v49 = vrot.slane %v3836_v35, %v7513_v52  ;;  %v5400_v4 = vrot.slane %v3865_v32, %v7495_v20  ;;  %v5396_v31 = vsel %vm4200_vm9, %v5395_v17, %v5391_v50 }
 0x478   : > { %v3607_v21 = vpop.xlane.xlu1 %3606  ;;  %v3577_v25 = vpop.xlane.xlu0 %3576 }
 0x479   : > { %v3851_v46 = vmul.f32 0.00390625, %v3577_v25  ;;  %v3866_v38 = vmul.f32 0.00390625, %v3607_v21  ;;  %v5258_v55 = vsel %vm4228_vm13, %v5257_v49, %v5253_v13 }
 0x47b   : > { %v5331_v51 = vrot.slane %v3851_v46, %v7507_v40  ;;  %v5405_v33 = vrot.slane %v3866_v38, %v7501_v36  ;;  %v5401_v36 = vsel %vm8137_vm3, %v5400_v4, %v5396_v31 }
 0x47c   : > { %v3579_v9 = vpop.xlane.xlu1 %3578  ;;  %v3549_v23 = vpop.xlane.xlu0 %3548 }
 0x47d   : > { %v3852_v6 = vmul.f32 0.00390625, %v3579_v9  ;;  %v3837_v8 = vmul.f32 0.00390625, %v3549_v23  ;;  %v5332_v53 = vsel %vm4221_vm12, %v5331_v51, %v5327_v27  ;;  %v5406_v21 = vsel %vm4214_vm11, %v5405_v33, %v5401_v36 }
 0x47f   : > { %v5262_v57 = vrot.slane %v3837_v8, %v7518_v10  ;;  %v5336_v45 = vrot.slane %v3852_v6, %v7513_v52 }
 0x480   : > { %v3581_v58 = vpop.xlane.xlu1 %3580  ;;  %v3609_v18 = vpop.xlane.xlu0 %3608 }
 0x481   : > { %v5263_v19 = vsel %vm4235_vm14, %v5262_v57, %v5258_v55  ;;  %v3853_v22 = vmul.f32 0.00390625, %v3581_v58  ;;  %v3867_v26 = vmul.f32 0.00390625, %v3609_v18  ;;  %v5337_v59 = vsel %vm4228_vm13, %v5336_v45, %v5332_v53 }
 0x482   : > { %v5440_v16 = vsel %vm8136_vm2, %v5263_v19, %v7966_v5 }
 0x483   : > { %v5341_v28 = vrot.slane %v3853_v22, %v7518_v10  ;;  %v5410_v30 = vrot.slane %v3867_v26, %v7507_v40 }
 0x484   : > { %v3611_v24 = vpop.xlane.xlu0 %3610  ;;  %v3613_v20 = vpop.xlane.xlu1 %3612 }
 0x485   : > { %v5342_v5 = vsel %vm4235_vm14, %v5341_v28, %v5337_v59  ;;  %v3868_v60 = vmul.f32 0.00390625, %v3611_v24  ;;  %v3869_v2 = vmul.f32 0.00390625, %v3613_v20  ;;  %v5411_v40 = vsel %vm4221_vm12, %v5410_v30, %v5406_v21 }
 0x486   : > { %v5441_v35 = vsel %vm5432_vm15, %v5342_v5, %v5440_v16 }
 0x487   : > { %v5415_v25 = vrot.slane %v3868_v60, %v7513_v52  ;;  %v5420_v62 = vrot.slane %v3869_v2, %v7518_v10 }
 0x489   : > { %v5416_v63 = vsel %vm4228_vm13, %v5415_v25, %v5411_v40 }
 0x48a   : > { %v5421_v12 = vsel %vm4235_vm14, %v5420_v62, %v5416_v63 }
 0x48b   : > { %v5442_v37 = vsel %vm8138_vm4, %v5421_v12, %v5441_v35 }
 0x48c   : > { %5446 = vst [vmem:[%s7039_s24 + $0x8] sm:$0xff] %v5442_v37 }
 0x48d PF: > { %5453 = sbr.rel (!%p6484_p9) target bundleno = 1173 (0x495), region = 122  ;;  %s5612_s9 = sshll.u32 (%p6484_p9), %s6386_s14, 3  ;;  %v5487_v52 = vld [vmem:[%s7039_s24] sm:$0xff] (%p6484_p9) }
 0x48e   : > { %s5457_s25 = scalar_lea.vmem (%p6484_p9), %s8116_s2, %s5612_s9 }
 0x48f   : > { %5488 = vst [vmem:[%s5457_s25] sm:$0xff] (%p6484_p9), %v5487_v52 }
 0x493   : > { %v5489_v7 = vld [vmem:[%s7039_s24 + $0x8] sm:$0xff] (%p6484_p9) }
 0x494   : > { %5490 = vst [vmem:[%s5457_s25 + $0x10] sm:$0xff] %v5489_v7 }
 0x495 PF: > { %s12_s17 = sadd.s32 1, %s6398_s17   ;;  %s8139_s9 = smov %s6370_s10 }
 0x496   : > { %p9_p2 = scmp.ge.s32.totalorder %s12_s17, 6   ;;  %s8140_s10 = smov %s6489_s28 }
 0x497   : > { %s8141_s11 = smov %s6378_s12  ;;  %s8142_s12 = smov %s6492_s29 }
 0x498   : > { %s8143_s13 = smov %s6390_s15  ;;  %s8144_s14 = smov %s6394_s16 }
 0x499   : > { %s8145_s15 = smov %s8148_s18  ;;  %s8146_s16 = smov %s8152_s19 }
 0x49a   :  { %11 = sbr.rel (!%p9_p2) target bundleno = 5 (0x5), region = 200 }

</bundles_post_ra>
